<compile_context>
chip_gen: v5e
topology: v5e:2x2
jax: 0.10.0
libtpu: 0.0.40
codegen_flags: <defaults>
</compile_context>

<pallas_src>
import functools
import numpy as np

import jax
import jax.numpy as jnp
from jax.experimental import pallas as pl
from jax.experimental.pallas import tpu as pltpu


# ---------------------------------------------------------------------------
# In-kernel math helpers (all float32)
# ---------------------------------------------------------------------------

_LN_EPS = 1e-5


def _layernorm(x, g, b):
    """x: [T, C]; g/b: [1, C]; LayerNorm over last axis (eps=1e-5, nn.LayerNorm)."""
    mean = jnp.mean(x, axis=-1, keepdims=True)
    c = x - mean
    var = jnp.mean(c * c, axis=-1, keepdims=True)
    return c * jax.lax.rsqrt(var + _LN_EPS) * g + b


# XLA's float32 erf rational approximation (ErfImpl32) so nn.GELU()'s exact-erf GELU can be
# fused in-kernel (Mosaic has no guaranteed erf primitive). Division moved to the EUP.
_ERF_ALPHA = (-2.72614225801306e-10, 2.77068142495902e-08, -2.10102402082508e-06,
              -5.69250639462346e-05, -7.34990630326855e-04, -2.95459980854025e-03,
              -1.60960333262415e-02)
_ERF_BETA = (-1.45660718464996e-05, -2.13374055278905e-04, -1.68282697438203e-03,
             -7.37332916720468e-03, -1.42647390514189e-02)


def _erf_f32(x):
    x = jnp.clip(x, -4.0, 4.0)
    x2 = x * x
    p = _ERF_ALPHA[0]
    for c in _ERF_ALPHA[1:]:
        p = p * x2 + c
    q = _ERF_BETA[0]
    for c in _ERF_BETA[1:]:
        q = q * x2 + c
    return x * p * pl.reciprocal(q, approx=True)      # divide -> EUP reciprocal


def _gelu_exact(x):
    return 0.5 * x * (1.0 + _erf_f32(x * 0.7071067811865476))


# ---------------------------------------------------------------------------
# One Swin block on a VMEM-resident [T, C] token slab (batched attention over all windows)
# ---------------------------------------------------------------------------

def _block_body(x, attn_bias, qkv_w, fc1_w, proj_w, fc2_w, vec, num_heads, scale):
    """x: [T,C] f32.  attn_bias: [nH,T,T] = rel-pos bias + window/shift mask (precomputed).
    vec rows: 0 n1g, 1 n1b, 2 n2g, 3 n2b, 4 qkv_b(3C), 5 proj_b, 6 fc1_b(4C), 7 fc2_b."""
    T, C = x.shape
    D = C // num_heads

    n1g, n1b = vec[0:1, 0:C], vec[1:2, 0:C]
    n2g, n2b = vec[2:3, 0:C], vec[3:4, 0:C]
    qkv_b = vec[4:5, 0:3 * C]
    proj_b = vec[5:6, 0:C]
    fc1_b = vec[6:7, :]
    fc2_b = vec[7:8, 0:C]

    # ---- LN1 + fused QKV projection (stays in VMEM) ----
    xn = _layernorm(x, n1g, n1b)
    qkv = jnp.dot(xn, qkv_w, preferred_element_type=jnp.float32) + qkv_b       # [T, 3C]

    # ---- attention: one [T,T] matmul per head over ALL windows of the image ----
    heads = []
    for h in range(num_heads):
        q = qkv[:, h * D:(h + 1) * D] * scale
        k = qkv[:, C + h * D:C + (h + 1) * D]
        v = qkv[:, 2 * C + h * D:2 * C + (h + 1) * D]
        s = jnp.einsum('td,sd->ts', q, k, preferred_element_type=jnp.float32)  # [T, T]
        s = s + attn_bias[h]            # rel-pos bias + (-100 shift-group) + (-1e9 cross-window)
        s = s - jnp.max(s, axis=-1, keepdims=True)
        p = jnp.exp(s)
        p = p * pl.reciprocal(jnp.sum(p, axis=-1, keepdims=True), approx=True)
        heads.append(jnp.dot(p, v, preferred_element_type=jnp.float32))        # [T, D]
    attn = jnp.concatenate(heads, axis=-1)                                     # [T, C]

    # ---- output projection + residual ----
    x = x + jnp.dot(attn, proj_w, preferred_element_type=jnp.float32) + proj_b

    # ---- LN2 + MLP (fc1 -> exact GELU -> fc2) + residual ----
    xn2 = _layernorm(x, n2g, n2b)
    h1 = _gelu_exact(jnp.dot(xn2, fc1_w, preferred_element_type=jnp.float32) + fc1_b)
    return x + jnp.dot(h1, fc2_w, preferred_element_type=jnp.float32) + fc2_b


# ---------------------------------------------------------------------------
# Fused stage kernels (one pallas_call per stage, one image per grid step)
# ---------------------------------------------------------------------------

def _stage1_kernel(x_ref, pe_w_ref, pe_vec_ref, bias_ref, qkvw_ref, fc1w_ref,
                   projw_ref, fc2w_ref, vecs_ref, o_ref, *, num_heads, depth, scale):
    """Patch embed (matmul + LN) followed by `depth` Swin blocks; all in VMEM."""
    xp = x_ref[...].astype(jnp.float32)                 # [T, patch*patch*Cin]
    pv = pe_vec_ref[...]                                # rows: conv_b, norm_g, norm_b
    x = jnp.dot(xp, pe_w_ref[...], preferred_element_type=jnp.float32) + pv[0:1, :]
    x = _layernorm(x, pv[1:2, :], pv[2:3, :])           # [T, C]
    for d in range(depth):
        x = _block_body(x, bias_ref[d], qkvw_ref[d], fc1w_ref[d], projw_ref[d],
                        fc2w_ref[d], vecs_ref[d], num_heads, scale)
    o_ref[...] = x.astype(o_ref.dtype)


def _stage2_kernel(x_ref, mg_w_ref, mg_vec_ref, bias_ref, qkvw_ref, fc1w_ref,
                   projw_ref, fc2w_ref, vecs_ref, head_w_ref, head_vec_ref, o_ref,
                   *, num_heads, depth, scale, num_classes):
    """Patch-merge LN+Linear, `depth` Swin blocks, final LN + avg-pool + classifier head."""
    C = mg_w_ref.shape[1]
    xm = x_ref[...].astype(jnp.float32)                 # [T, 4*C_prev]
    mv = mg_vec_ref[...]                                # rows: norm_g, norm_b
    xn = _layernorm(xm, mv[0:1, :], mv[1:2, :])
    x = jnp.dot(xn, mg_w_ref[...], preferred_element_type=jnp.float32)   # bias-free reduction
    for d in range(depth):
        x = _block_body(x, bias_ref[d], qkvw_ref[d], fc1w_ref[d], projw_ref[d],
                        fc2w_ref[d], vecs_ref[d], num_heads, scale)
    hv = head_vec_ref[...]                              # rows: final_g, final_b, head_b
    xn = _layernorm(x, hv[0:1, 0:C], hv[1:2, 0:C])
    pooled = jnp.mean(xn, axis=0, keepdims=True)        # global average pool -> [1, C]
    logits = (jnp.dot(pooled, head_w_ref[...], preferred_element_type=jnp.float32)
              + hv[2:3, 0:num_classes])
    o_ref[0] = logits.astype(o_ref.dtype)


def _const_map(ndim):
    return lambda b: (0,) * ndim


def pallas_stage1(xp, p, tokens_per_image, num_heads):
    """xp: [B*T, patch*patch*Cin] -> [B*T, C] stage-1 tokens."""
    BT, Kp = xp.shape
    T = tokens_per_image
    B = BT // T
    depth, C = p['qkv_w'].shape[0], p['qkv_w'].shape[1]
    scale = float(C // num_heads) ** -0.5
    kern = functools.partial(_stage1_kernel, num_heads=num_heads, depth=depth, scale=scale)
    in_specs = [
        pl.BlockSpec((T, Kp), lambda b: (b, 0)),
        pl.BlockSpec(p['pe_w'].shape, _const_map(2)),
        pl.BlockSpec(p['pe_vec'].shape, _const_map(2)),
        pl.BlockSpec(p['attn_bias'].shape, _const_map(4)),
        pl.BlockSpec(p['qkv_w'].shape, _const_map(3)),
        pl.BlockSpec(p['fc1_w'].shape, _const_map(3)),
        pl.BlockSpec(p['proj_w'].shape, _const_map(3)),
        pl.BlockSpec(p['fc2_w'].shape, _const_map(3)),
        pl.BlockSpec(p['vecs'].shape, _const_map(3)),
    ]
    return pl.pallas_call(
        kern,
        grid=(B,),
        in_specs=in_specs,
        out_specs=pl.BlockSpec((T, C), lambda b: (b, 0)),
        out_shape=jax.ShapeDtypeStruct((BT, C), xp.dtype),
        compiler_params=pltpu.CompilerParams(dimension_semantics=("parallel",)),
    )(xp, p['pe_w'], p['pe_vec'], p['attn_bias'], p['qkv_w'], p['fc1_w'],
      p['proj_w'], p['fc2_w'], p['vecs'])


def pallas_stage2(xm, p, head_w, head_vec, tokens_per_image, num_heads):
    """xm: [B*T, 4*C_prev] merged-neighborhood tokens -> logits [B, num_classes]."""
    BT, K = xm.shape
    T = tokens_per_image
    B = BT // T
    depth, C = p['qkv_w'].shape[0], p['qkv_w'].shape[1]
    num_classes = head_w.shape[1]
    scale = float(C // num_heads) ** -0.5
    kern = functools.partial(_stage2_kernel, num_heads=num_heads, depth=depth,
                             scale=scale, num_classes=num_classes)
    in_specs = [
        pl.BlockSpec((T, K), lambda b: (b, 0)),
        pl.BlockSpec(p['mg_w'].shape, _const_map(2)),
        pl.BlockSpec(p['mg_vec'].shape, _const_map(2)),
        pl.BlockSpec(p['attn_bias'].shape, _const_map(4)),
        pl.BlockSpec(p['qkv_w'].shape, _const_map(3)),
        pl.BlockSpec(p['fc1_w'].shape, _const_map(3)),
        pl.BlockSpec(p['proj_w'].shape, _const_map(3)),
        pl.BlockSpec(p['fc2_w'].shape, _const_map(3)),
        pl.BlockSpec(p['vecs'].shape, _const_map(3)),
        pl.BlockSpec(head_w.shape, _const_map(2)),
        pl.BlockSpec(head_vec.shape, _const_map(2)),
    ]
    out = pl.pallas_call(
        kern,
        grid=(B,),
        in_specs=in_specs,
        out_specs=pl.BlockSpec((1, 1, num_classes), lambda b: (b, 0, 0)),
        out_shape=jax.ShapeDtypeStruct((B, 1, num_classes), xm.dtype),
        compiler_params=pltpu.CompilerParams(dimension_semantics=("parallel",)),
    )(xm, p['mg_w'], p['mg_vec'], p['attn_bias'], p['qkv_w'], p['fc1_w'],
      p['proj_w'], p['fc2_w'], p['vecs'], head_w, head_vec)
    return out.reshape(B, num_classes)


# ---------------------------------------------------------------------------
# Init-time (numpy) construction of the fused attention bias + mask tensors
# ---------------------------------------------------------------------------

def make_rel_pos_index(ws):
    coords = np.stack(np.meshgrid(np.arange(ws), np.arange(ws), indexing='ij'))
    coords = coords.reshape(2, -1)
    rel = coords[:, :, None] - coords[:, None, :]
    rel = rel.transpose(1, 2, 0).copy()
    rel[:, :, 0] += ws - 1
    rel[:, :, 1] += ws - 1
    rel[:, :, 0] *= 2 * ws - 1
    return rel.sum(-1).astype(np.int64)                 # [L, L]


def make_attention_bias(table, H, W, ws, shift, num_heads):
    """Fold relative-position bias + same-window constraint + shift-group mask into one
    additive [nH, H*W, H*W] tensor over row-major tokens (torchvision-equivalent)."""
    shift_h = 0 if ws >= H else shift
    shift_w = 0 if ws >= W else shift
    T = H * W
    hh, ww = np.meshgrid(np.arange(H), np.arange(W), indexing='ij')
    hr = (hh - shift_h) % H                             # coords after the cyclic -shift roll
    wr = (ww - shift_w) % W
    wid = ((hr // ws) * (W // ws) + (wr // ws)).reshape(-1)        # window id per token
    li = ((hr % ws) * ws + (wr % ws)).reshape(-1)                  # within-window position

    if shift_h or shift_w:
        grid_lbl = np.zeros((H, W), np.float32)
        h_slices = ((slice(0, -ws), slice(-ws, -shift_h), slice(-shift_h, None))
                    if shift_h else (slice(None),))
        w_slices = ((slice(0, -ws), slice(-ws, -shift_w), slice(-shift_w, None))
                    if shift_w else (slice(None),))
        cnt = 0
        for hs in h_slices:
            for wsl in w_slices:
                grid_lbl[hs, wsl] = cnt
                cnt += 1
        grp = grid_lbl[hr.reshape(-1), wr.reshape(-1)]
    else:
        grp = np.zeros((T,), np.float32)

    rel_idx = make_rel_pos_index(ws)                    # [L, L]
    pair_rel = rel_idx[li[:, None], li[None, :]]        # [T, T] index into bias table
    same_win = wid[:, None] == wid[None, :]
    same_grp = grp[:, None] == grp[None, :]
    add = np.where(same_win, np.where(same_grp, 0.0, -100.0), -1e9).astype(np.float32)

    bias = jnp.asarray(table)[jnp.asarray(pair_rel)]    # [T, T, nH]
    bias = jnp.transpose(bias, (2, 0, 1))               # [nH, T, T]
    return (bias + jnp.asarray(add)[None]).astype(jnp.float32)


# ---------------------------------------------------------------------------
# Deterministic synthetic parameters (packed layout for the fused kernels)
# ---------------------------------------------------------------------------

def init_params(key, *, num_classes=10, in_chans=3, img_size=32, patch=4, embed_dim=32,
                depths=(2, 2), num_heads=(2, 4), window_size=4, mlp_ratio=4):
    keys = iter(jax.random.split(key, 64))

    def nrm(shape, std=0.02):
        return jax.random.normal(next(keys), shape, jnp.float32) * std

    def build_stage(C, nH, depth, H, W):
        qkv_ws, fc1_ws, proj_ws, fc2_ws, vecs, biases = [], [], [], [], [], []
        for d in range(depth):
            qkv_ws.append(nrm((C, 3 * C)))
            fc1_ws.append(nrm((C, mlp_ratio * C)))
            proj_ws.append(nrm((C, C)))
            fc2_ws.append(nrm((mlp_ratio * C, C)))
            vec = np.zeros((8, mlp_ratio * C), np.float32)
            vec[0, :C] = 1.0                            # norm1 gamma
            vec[2, :C] = 1.0                            # norm2 gamma
            vecs.append(jnp.asarray(vec))               # rows 1,3,4,5,6,7: zero biases
            table = nrm(((2 * window_size - 1) ** 2, nH))
            shift = 0 if d % 2 == 0 else window_size // 2
            biases.append(make_attention_bias(table, H, W, window_size, shift, nH))
        return {'qkv_w': jnp.stack(qkv_ws), 'fc1_w': jnp.stack(fc1_ws),
                'proj_w': jnp.stack(proj_ws), 'fc2_w': jnp.stack(fc2_ws),
                'vecs': jnp.stack(vecs), 'attn_bias': jnp.stack(biases)}

    H = W = img_size // patch
    C1 = embed_dim
    s1 = build_stage(C1, num_heads[0], depths[0], H, W)
    s1['pe_w'] = nrm((patch * patch * in_chans, C1))
    pe_vec = np.zeros((3, C1), np.float32)
    pe_vec[1] = 1.0                                     # embed-LN gamma
    s1['pe_vec'] = jnp.asarray(pe_vec)

    C2 = 2 * embed_dim
    s2 = build_stage(C2, num_heads[1], depths[1], H // 2, W // 2)
    s2['mg_w'] = nrm((4 * C1, C2))                      # PatchMerging reduction (bias-free)
    mg_vec = np.zeros((2, 4 * C1), np.float32)
    mg_vec[0] = 1.0                                     # merge-LN gamma
    s2['mg_vec'] = jnp.asarray(mg_vec)

    head_vec = np.zeros((3, C2), np.float32)
    head_vec[0] = 1.0                                   # final-LN gamma; row 2 = head bias
    return {'stage1': s1, 'stage2': s2,
            'head_w': nrm((C2, num_classes)), 'head_vec': jnp.asarray(head_vec)}


# ---------------------------------------------------------------------------
# Forward pass: 2 pallas_calls; only cheap reshapes/transposes remain in XLA
# ---------------------------------------------------------------------------

def swin_forward(x_nchw, params, *, patch=4, num_heads=(2, 4)):
    B, Cin, H, W = x_nchw.shape
    Hp, Wp = H // patch, W // patch

    # Patch extraction (conv4x4/s4 expressed as a per-patch matmul inside the stage-1 kernel).
    x = x_nchw.transpose(0, 2, 3, 1)                                   # NCHW -> NHWC
    x = x.reshape(B, Hp, patch, Wp, patch, Cin).transpose(0, 1, 3, 2, 4, 5)
    xp = x.reshape(B * Hp * Wp, patch * patch * Cin)

    # Stage 1: patch embed + 2 Swin blocks (fused).
    x1 = pallas_stage1(xp, params['stage1'], Hp * Wp, num_heads[0])    # [B*T1, C1]
    C1 = x1.shape[-1]

    # Patch-merging 2x2 neighborhood gather (pure permutation, stays in XLA).
    xg = x1.reshape(B, Hp, Wp, C1)
    xm = jnp.concatenate([xg[:, 0::2, 0::2, :], xg[:, 1::2, 0::2, :],
                          xg[:, 0::2, 1::2, :], xg[:, 1::2, 1::2, :]], axis=-1)
    xm = xm.reshape(B * (Hp // 2) * (Wp // 2), 4 * C1)

    # Stage 2: patch-merge LN+Linear + 2 Swin blocks + final LN + pool + head (fused).
    return pallas_stage2(xm, params['stage2'], params['head_w'], params['head_vec'],
                         (Hp // 2) * (Wp // 2), num_heads[1])


if __name__ == "__main__":
    key = jax.random.PRNGKey(0)
    pkey, xkey = jax.random.split(key)

    NUM_CLASSES = 10
    params = init_params(pkey, num_classes=NUM_CLASSES)

    # NCHW input, like the PyTorch module.
    x = jax.random.normal(xkey, (2, 3, 32, 32), jnp.float32)

    fwd = jax.jit(functools.partial(swin_forward, patch=4, num_heads=(2, 4)))
    logits = fwd(x, params)
    jax.block_until_ready(logits)
    assert logits.shape == (2, NUM_CLASSES)
    assert logits.dtype == jnp.float32
    print("KERNEL_OK")
</pallas_src>

<mosaic_0001>
module attributes {stable_mosaic.version = 11 : i64} {
  func.func @_stage1_kernel(%arg0: i32, %arg1: memref<64x48xf32, #tpu.memory_space<vmem>>, %arg2: memref<48x32xf32, #tpu.memory_space<vmem>>, %arg3: memref<3x32xf32, #tpu.memory_space<vmem>>, %arg4: memref<2x2x64x64xf32, #tpu.memory_space<vmem>>, %arg5: memref<2x32x96xf32, #tpu.memory_space<vmem>>, %arg6: memref<2x32x128xf32, #tpu.memory_space<vmem>>, %arg7: memref<2x32x32xf32, #tpu.memory_space<vmem>>, %arg8: memref<2x128x32xf32, #tpu.memory_space<vmem>>, %arg9: memref<2x8x128xf32, #tpu.memory_space<vmem>>, %arg10: memref<64x32xf32, #tpu.memory_space<vmem>>) attributes {dimension_semantics = [#tpu.dimension_semantics<parallel>], iteration_bounds = array<i64: 2>, scalar_prefetch = 0 : i64, scratch_operands = 0 : i64, tpu.core_type = #tpu.core_type<tc>, window_params = [{transform_indices = @transform_0, window_bounds = array<i64: 64, 48>}, {pipeline_mode = #tpu.pipeline_mode<synchronous>, transform_indices = @transform_1, window_bounds = array<i64: 48, 32>}, {pipeline_mode = #tpu.pipeline_mode<synchronous>, transform_indices = @transform_2, window_bounds = array<i64: 3, 32>}, {pipeline_mode = #tpu.pipeline_mode<synchronous>, transform_indices = @transform_3, window_bounds = array<i64: 2, 2, 64, 64>}, {pipeline_mode = #tpu.pipeline_mode<synchronous>, transform_indices = @transform_4, window_bounds = array<i64: 2, 32, 96>}, {pipeline_mode = #tpu.pipeline_mode<synchronous>, transform_indices = @transform_5, window_bounds = array<i64: 2, 32, 128>}, {pipeline_mode = #tpu.pipeline_mode<synchronous>, transform_indices = @transform_6, window_bounds = array<i64: 2, 32, 32>}, {pipeline_mode = #tpu.pipeline_mode<synchronous>, transform_indices = @transform_7, window_bounds = array<i64: 2, 128, 32>}, {pipeline_mode = #tpu.pipeline_mode<synchronous>, transform_indices = @transform_8, window_bounds = array<i64: 2, 8, 128>}, {transform_indices = @transform_9, window_bounds = array<i64: 64, 32>}]} {
    %c0 = arith.constant 0 : index
    %c0_0 = arith.constant 0 : index
    %0 = vector.load %arg1[%c0, %c0_0] : memref<64x48xf32, #tpu.memory_space<vmem>>, vector<64x48xf32>
    %c0_1 = arith.constant 0 : index
    %c0_2 = arith.constant 0 : index
    %1 = vector.load %arg3[%c0_1, %c0_2] : memref<3x32xf32, #tpu.memory_space<vmem>>, vector<3x32xf32>
    %c0_3 = arith.constant 0 : index
    %c0_4 = arith.constant 0 : index
    %2 = vector.load %arg2[%c0_3, %c0_4] : memref<48x32xf32, #tpu.memory_space<vmem>>, vector<48x32xf32>
    %cst = arith.constant dense<0.000000e+00> : vector<64x32xf32>
    %3 = tpu.matmul %0, %2, %cst {dimension_numbers = #tpu.dot_dimension_numbers<[1], [0], [0], [1], [0, 0, 1, 1], [], []>} : vector<64x48xf32>, vector<48x32xf32>, vector<64x32xf32> -> vector<64x32xf32>
    %4 = vector.extract_strided_slice %1 {offsets = [0, 0], sizes = [1, 32], strides = [1, 1]} : vector<3x32xf32> to vector<1x32xf32>
    %5 = vector.broadcast %4 : vector<1x32xf32> to vector<64x32xf32>
    %6 = arith.addf %3, %5 : vector<64x32xf32>
    %7 = vector.extract_strided_slice %1 {offsets = [1, 0], sizes = [1, 32], strides = [1, 1]} : vector<3x32xf32> to vector<1x32xf32>
    %8 = vector.extract_strided_slice %1 {offsets = [2, 0], sizes = [1, 32], strides = [1, 1]} : vector<3x32xf32> to vector<1x32xf32>
    %cst_5 = arith.constant dense<0.000000e+00> : vector<64xf32>
    %9 = vector.multi_reduction <add>, %6, %cst_5 [1] : vector<64x32xf32> to vector<64xf32>
    %10 = vector.shape_cast %9 : vector<64xf32> to vector<64x1xf32>
    %cst_6 = arith.constant 3.200000e+01 : f32
    %11 = vector.broadcast %cst_6 : f32 to vector<64x1xf32>
    %12 = arith.divf %10, %11 : vector<64x1xf32>
    %13 = vector.broadcast %12 : vector<64x1xf32> to vector<64x32xf32>
    %14 = arith.subf %6, %13 : vector<64x32xf32>
    %15 = arith.mulf %14, %14 : vector<64x32xf32>
    %cst_7 = arith.constant dense<0.000000e+00> : vector<64xf32>
    %16 = vector.multi_reduction <add>, %15, %cst_7 [1] : vector<64x32xf32> to vector<64xf32>
    %17 = vector.shape_cast %16 : vector<64xf32> to vector<64x1xf32>
    %cst_8 = arith.constant 3.200000e+01 : f32
    %18 = vector.broadcast %cst_8 : f32 to vector<64x1xf32>
    %19 = arith.divf %17, %18 : vector<64x1xf32>
    %cst_9 = arith.constant 9.99999974E-6 : f32
    %20 = vector.broadcast %cst_9 : f32 to vector<64x1xf32>
    %21 = arith.addf %19, %20 : vector<64x1xf32>
    %22 = math.rsqrt %21 : vector<64x1xf32>
    %23 = vector.broadcast %22 : vector<64x1xf32> to vector<64x32xf32>
    %24 = arith.mulf %14, %23 : vector<64x32xf32>
    %25 = vector.broadcast %7 : vector<1x32xf32> to vector<64x32xf32>
    %26 = arith.mulf %24, %25 : vector<64x32xf32>
    %27 = vector.broadcast %8 : vector<1x32xf32> to vector<64x32xf32>
    %28 = arith.addf %26, %27 : vector<64x32xf32>
    %c0_10 = arith.constant 0 : index
    %c0_11 = arith.constant 0 : index
    %c0_12 = arith.constant 0 : index
    %c0_13 = arith.constant 0 : index
    %29 = vector.load %arg4[%c0_10, %c0_11, %c0_12, %c0_13] : memref<2x2x64x64xf32, #tpu.memory_space<vmem>>, vector<1x2x64x64xf32>
    %30 = vector.shape_cast %29 : vector<1x2x64x64xf32> to vector<2x64x64xf32>
    %c0_14 = arith.constant 0 : index
    %c0_15 = arith.constant 0 : index
    %c0_16 = arith.constant 0 : index
    %31 = vector.load %arg5[%c0_14, %c0_15, %c0_16] : memref<2x32x96xf32, #tpu.memory_space<vmem>>, vector<1x32x96xf32>
    %32 = vector.shape_cast %31 : vector<1x32x96xf32> to vector<32x96xf32>
    %c0_17 = arith.constant 0 : index
    %c0_18 = arith.constant 0 : index
    %c0_19 = arith.constant 0 : index
    %33 = vector.load %arg6[%c0_17, %c0_18, %c0_19] : memref<2x32x128xf32, #tpu.memory_space<vmem>>, vector<1x32x128xf32>
    %34 = vector.shape_cast %33 : vector<1x32x128xf32> to vector<32x128xf32>
    %c0_20 = arith.constant 0 : index
    %c0_21 = arith.constant 0 : index
    %c0_22 = arith.constant 0 : index
    %35 = vector.load %arg7[%c0_20, %c0_21, %c0_22] : memref<2x32x32xf32, #tpu.memory_space<vmem>>, vector<1x32x32xf32>
    %36 = vector.shape_cast %35 : vector<1x32x32xf32> to vector<32x32xf32>
    %c0_23 = arith.constant 0 : index
    %c0_24 = arith.constant 0 : index
    %c0_25 = arith.constant 0 : index
    %37 = vector.load %arg8[%c0_23, %c0_24, %c0_25] : memref<2x128x32xf32, #tpu.memory_space<vmem>>, vector<1x128x32xf32>
    %38 = vector.shape_cast %37 : vector<1x128x32xf32> to vector<128x32xf32>
    %c0_26 = arith.constant 0 : index
    %c0_27 = arith.constant 0 : index
    %c0_28 = arith.constant 0 : index
    %39 = vector.load %arg9[%c0_26, %c0_27, %c0_28] : memref<2x8x128xf32, #tpu.memory_space<vmem>>, vector<1x8x128xf32>
    %40 = vector.shape_cast %39 : vector<1x8x128xf32> to vector<8x128xf32>
    %41 = vector.extract_strided_slice %40 {offsets = [0, 0], sizes = [1, 32], strides = [1, 1]} : vector<8x128xf32> to vector<1x32xf32>
    %42 = vector.extract_strided_slice %40 {offsets = [1, 0], sizes = [1, 32], strides = [1, 1]} : vector<8x128xf32> to vector<1x32xf32>
    %43 = vector.extract_strided_slice %40 {offsets = [2, 0], sizes = [1, 32], strides = [1, 1]} : vector<8x128xf32> to vector<1x32xf32>
    %44 = vector.extract_strided_slice %40 {offsets = [3, 0], sizes = [1, 32], strides = [1, 1]} : vector<8x128xf32> to vector<1x32xf32>
    %45 = vector.extract_strided_slice %40 {offsets = [4, 0], sizes = [1, 96], strides = [1, 1]} : vector<8x128xf32> to vector<1x96xf32>
    %46 = vector.extract_strided_slice %40 {offsets = [5, 0], sizes = [1, 32], strides = [1, 1]} : vector<8x128xf32> to vector<1x32xf32>
    %47 = vector.extract_strided_slice %40 {offsets = [6, 0], sizes = [1, 128], strides = [1, 1]} : vector<8x128xf32> to vector<1x128xf32>
    %48 = vector.extract_strided_slice %40 {offsets = [7, 0], sizes = [1, 32], strides = [1, 1]} : vector<8x128xf32> to vector<1x32xf32>
    %cst_29 = arith.constant dense<0.000000e+00> : vector<64xf32>
    %49 = vector.multi_reduction <add>, %28, %cst_29 [1] : vector<64x32xf32> to vector<64xf32>
    %50 = vector.shape_cast %49 : vector<64xf32> to vector<64x1xf32>
    %cst_30 = arith.constant 3.200000e+01 : f32
    %51 = vector.broadcast %cst_30 : f32 to vector<64x1xf32>
    %52 = arith.divf %50, %51 : vector<64x1xf32>
    %53 = vector.broadcast %52 : vector<64x1xf32> to vector<64x32xf32>
    %54 = arith.subf %28, %53 : vector<64x32xf32>
    %55 = arith.mulf %54, %54 : vector<64x32xf32>
    %cst_31 = arith.constant dense<0.000000e+00> : vector<64xf32>
    %56 = vector.multi_reduction <add>, %55, %cst_31 [1] : vector<64x32xf32> to vector<64xf32>
    %57 = vector.shape_cast %56 : vector<64xf32> to vector<64x1xf32>
    %cst_32 = arith.constant 3.200000e+01 : f32
    %58 = vector.broadcast %cst_32 : f32 to vector<64x1xf32>
    %59 = arith.divf %57, %58 : vector<64x1xf32>
    %cst_33 = arith.constant 9.99999974E-6 : f32
    %60 = vector.broadcast %cst_33 : f32 to vector<64x1xf32>
    %61 = arith.addf %59, %60 : vector<64x1xf32>
    %62 = math.rsqrt %61 : vector<64x1xf32>
    %63 = vector.broadcast %62 : vector<64x1xf32> to vector<64x32xf32>
    %64 = arith.mulf %54, %63 : vector<64x32xf32>
    %65 = vector.broadcast %41 : vector<1x32xf32> to vector<64x32xf32>
    %66 = arith.mulf %64, %65 : vector<64x32xf32>
    %67 = vector.broadcast %42 : vector<1x32xf32> to vector<64x32xf32>
    %68 = arith.addf %66, %67 : vector<64x32xf32>
    %cst_34 = arith.constant dense<0.000000e+00> : vector<64x96xf32>
    %69 = tpu.matmul %68, %32, %cst_34 {dimension_numbers = #tpu.dot_dimension_numbers<[1], [0], [0], [1], [0, 0, 1, 1], [], []>} : vector<64x32xf32>, vector<32x96xf32>, vector<64x96xf32> -> vector<64x96xf32>
    %70 = vector.broadcast %45 : vector<1x96xf32> to vector<64x96xf32>
    %71 = arith.addf %69, %70 : vector<64x96xf32>
    %72 = vector.extract_strided_slice %71 {offsets = [0, 0], sizes = [64, 16], strides = [1, 1]} : vector<64x96xf32> to vector<64x16xf32>
    %cst_35 = arith.constant 2.500000e-01 : f32
    %73 = vector.broadcast %cst_35 : f32 to vector<64x16xf32>
    %74 = arith.mulf %72, %73 : vector<64x16xf32>
    %75 = vector.extract_strided_slice %71 {offsets = [0, 32], sizes = [64, 16], strides = [1, 1]} : vector<64x96xf32> to vector<64x16xf32>
    %76 = vector.extract_strided_slice %71 {offsets = [0, 64], sizes = [64, 16], strides = [1, 1]} : vector<64x96xf32> to vector<64x16xf32>
    "tpu.trace_start"() <{level = 10 : i32, message = "td,sd->ts"}> : () -> ()
    %cst_36 = arith.constant dense<0.000000e+00> : vector<64x64xf32>
    %77 = tpu.matmul %74, %75, %cst_36 {dimension_numbers = #tpu.dot_dimension_numbers<[1], [1], [0], [0], [0, 0, 1, 0], [], []>} : vector<64x16xf32>, vector<64x16xf32>, vector<64x64xf32> -> vector<64x64xf32>
    "tpu.trace_stop"() : () -> ()
    %78 = vector.extract_strided_slice %30 {offsets = [0, 0, 0], sizes = [1, 64, 64], strides = [1, 1, 1]} : vector<2x64x64xf32> to vector<1x64x64xf32>
    %79 = vector.shape_cast %78 : vector<1x64x64xf32> to vector<64x64xf32>
    %80 = arith.addf %77, %79 : vector<64x64xf32>
    %cst_37 = arith.constant dense<0xFF800000> : vector<64xf32>
    %81 = vector.multi_reduction <maximumf>, %80, %cst_37 [1] : vector<64x64xf32> to vector<64xf32>
    %82 = vector.shape_cast %81 : vector<64xf32> to vector<64x1xf32>
    %83 = vector.broadcast %82 : vector<64x1xf32> to vector<64x64xf32>
    %84 = arith.subf %80, %83 : vector<64x64xf32>
    %85 = math.exp %84 : vector<64x64xf32>
    %cst_38 = arith.constant dense<0.000000e+00> : vector<64xf32>
    %86 = vector.multi_reduction <add>, %85, %cst_38 [1] : vector<64x64xf32> to vector<64xf32>
    %87 = vector.shape_cast %86 : vector<64xf32> to vector<64x1xf32>
    %88 = tpu.reciprocal %87 {approx = true} : vector<64x1xf32> -> vector<64x1xf32>
    %89 = vector.broadcast %88 : vector<64x1xf32> to vector<64x64xf32>
    %90 = arith.mulf %85, %89 : vector<64x64xf32>
    %cst_39 = arith.constant dense<0.000000e+00> : vector<64x16xf32>
    %91 = tpu.matmul %90, %76, %cst_39 {dimension_numbers = #tpu.dot_dimension_numbers<[1], [0], [0], [1], [0, 0, 1, 1], [], []>} : vector<64x64xf32>, vector<64x16xf32>, vector<64x16xf32> -> vector<64x16xf32>
    %92 = vector.extract_strided_slice %71 {offsets = [0, 16], sizes = [64, 16], strides = [1, 1]} : vector<64x96xf32> to vector<64x16xf32>
    %cst_40 = arith.constant 2.500000e-01 : f32
    %93 = vector.broadcast %cst_40 : f32 to vector<64x16xf32>
    %94 = arith.mulf %92, %93 : vector<64x16xf32>
    %95 = vector.extract_strided_slice %71 {offsets = [0, 48], sizes = [64, 16], strides = [1, 1]} : vector<64x96xf32> to vector<64x16xf32>
    %96 = vector.extract_strided_slice %71 {offsets = [0, 80], sizes = [64, 16], strides = [1, 1]} : vector<64x96xf32> to vector<64x16xf32>
    "tpu.trace_start"() <{level = 10 : i32, message = "td,sd->ts"}> : () -> ()
    %cst_41 = arith.constant dense<0.000000e+00> : vector<64x64xf32>
    %97 = tpu.matmul %94, %95, %cst_41 {dimension_numbers = #tpu.dot_dimension_numbers<[1], [1], [0], [0], [0, 0, 1, 0], [], []>} : vector<64x16xf32>, vector<64x16xf32>, vector<64x64xf32> -> vector<64x64xf32>
    "tpu.trace_stop"() : () -> ()
    %98 = vector.extract_strided_slice %30 {offsets = [1, 0, 0], sizes = [1, 64, 64], strides = [1, 1, 1]} : vector<2x64x64xf32> to vector<1x64x64xf32>
    %99 = vector.shape_cast %98 : vector<1x64x64xf32> to vector<64x64xf32>
    %100 = arith.addf %97, %99 : vector<64x64xf32>
    %cst_42 = arith.constant dense<0xFF800000> : vector<64xf32>
    %101 = vector.multi_reduction <maximumf>, %100, %cst_42 [1] : vector<64x64xf32> to vector<64xf32>
    %102 = vector.shape_cast %101 : vector<64xf32> to vector<64x1xf32>
    %103 = vector.broadcast %102 : vector<64x1xf32> to vector<64x64xf32>
    %104 = arith.subf %100, %103 : vector<64x64xf32>
    %105 = math.exp %104 : vector<64x64xf32>
    %cst_43 = arith.constant dense<0.000000e+00> : vector<64xf32>
    %106 = vector.multi_reduction <add>, %105, %cst_43 [1] : vector<64x64xf32> to vector<64xf32>
    %107 = vector.shape_cast %106 : vector<64xf32> to vector<64x1xf32>
    %108 = tpu.reciprocal %107 {approx = true} : vector<64x1xf32> -> vector<64x1xf32>
    %109 = vector.broadcast %108 : vector<64x1xf32> to vector<64x64xf32>
    %110 = arith.mulf %105, %109 : vector<64x64xf32>
    %cst_44 = arith.constant dense<0.000000e+00> : vector<64x16xf32>
    %111 = tpu.matmul %110, %96, %cst_44 {dimension_numbers = #tpu.dot_dimension_numbers<[1], [0], [0], [1], [0, 0, 1, 1], [], []>} : vector<64x64xf32>, vector<64x16xf32>, vector<64x16xf32> -> vector<64x16xf32>
    %112 = tpu.concatenate %91, %111 in 1 : vector<64x16xf32>, vector<64x16xf32> -> vector<64x32xf32>
    %cst_45 = arith.constant dense<0.000000e+00> : vector<64x32xf32>
    %113 = tpu.matmul %112, %36, %cst_45 {dimension_numbers = #tpu.dot_dimension_numbers<[1], [0], [0], [1], [0, 0, 1, 1], [], []>} : vector<64x32xf32>, vector<32x32xf32>, vector<64x32xf32> -> vector<64x32xf32>
    %114 = arith.addf %28, %113 : vector<64x32xf32>
    %115 = vector.broadcast %46 : vector<1x32xf32> to vector<64x32xf32>
    %116 = arith.addf %114, %115 : vector<64x32xf32>
    %cst_46 = arith.constant dense<0.000000e+00> : vector<64xf32>
    %117 = vector.multi_reduction <add>, %116, %cst_46 [1] : vector<64x32xf32> to vector<64xf32>
    %118 = vector.shape_cast %117 : vector<64xf32> to vector<64x1xf32>
    %cst_47 = arith.constant 3.200000e+01 : f32
    %119 = vector.broadcast %cst_47 : f32 to vector<64x1xf32>
    %120 = arith.divf %118, %119 : vector<64x1xf32>
    %121 = vector.broadcast %120 : vector<64x1xf32> to vector<64x32xf32>
    %122 = arith.subf %116, %121 : vector<64x32xf32>
    %123 = arith.mulf %122, %122 : vector<64x32xf32>
    %cst_48 = arith.constant dense<0.000000e+00> : vector<64xf32>
    %124 = vector.multi_reduction <add>, %123, %cst_48 [1] : vector<64x32xf32> to vector<64xf32>
    %125 = vector.shape_cast %124 : vector<64xf32> to vector<64x1xf32>
    %cst_49 = arith.constant 3.200000e+01 : f32
    %126 = vector.broadcast %cst_49 : f32 to vector<64x1xf32>
    %127 = arith.divf %125, %126 : vector<64x1xf32>
    %cst_50 = arith.constant 9.99999974E-6 : f32
    %128 = vector.broadcast %cst_50 : f32 to vector<64x1xf32>
    %129 = arith.addf %127, %128 : vector<64x1xf32>
    %130 = math.rsqrt %129 : vector<64x1xf32>
    %131 = vector.broadcast %130 : vector<64x1xf32> to vector<64x32xf32>
    %132 = arith.mulf %122, %131 : vector<64x32xf32>
    %133 = vector.broadcast %43 : vector<1x32xf32> to vector<64x32xf32>
    %134 = arith.mulf %132, %133 : vector<64x32xf32>
    %135 = vector.broadcast %44 : vector<1x32xf32> to vector<64x32xf32>
    %136 = arith.addf %134, %135 : vector<64x32xf32>
    %cst_51 = arith.constant dense<0.000000e+00> : vector<64x128xf32>
    %137 = tpu.matmul %136, %34, %cst_51 {dimension_numbers = #tpu.dot_dimension_numbers<[1], [0], [0], [1], [0, 0, 1, 1], [], []>} : vector<64x32xf32>, vector<32x128xf32>, vector<64x128xf32> -> vector<64x128xf32>
    %138 = vector.broadcast %47 : vector<1x128xf32> to vector<64x128xf32>
    %139 = arith.addf %137, %138 : vector<64x128xf32>
    %cst_52 = arith.constant 5.000000e-01 : f32
    %140 = vector.broadcast %cst_52 : f32 to vector<64x128xf32>
    %141 = arith.mulf %140, %139 : vector<64x128xf32>
    %cst_53 = arith.constant 0.707106769 : f32
    %142 = vector.broadcast %cst_53 : f32 to vector<64x128xf32>
    %143 = arith.mulf %139, %142 : vector<64x128xf32>
    %cst_54 = arith.constant -4.000000e+00 : f32
    %cst_55 = arith.constant 4.000000e+00 : f32
    %144 = vector.broadcast %cst_54 : f32 to vector<64x128xf32>
    %145 = arith.maximumf %144, %143 : vector<64x128xf32>
    %146 = vector.broadcast %cst_55 : f32 to vector<64x128xf32>
    %147 = arith.minimumf %146, %145 : vector<64x128xf32>
    %148 = arith.mulf %147, %147 : vector<64x128xf32>
    %cst_56 = arith.constant -2.72614237E-10 : f32
    %149 = vector.broadcast %cst_56 : f32 to vector<64x128xf32>
    %150 = arith.mulf %149, %148 : vector<64x128xf32>
    %cst_57 = arith.constant 2.77068146E-8 : f32
    %151 = vector.broadcast %cst_57 : f32 to vector<64x128xf32>
    %152 = arith.addf %150, %151 : vector<64x128xf32>
    %153 = arith.mulf %152, %148 : vector<64x128xf32>
    %cst_58 = arith.constant -2.10102394E-6 : f32
    %154 = vector.broadcast %cst_58 : f32 to vector<64x128xf32>
    %155 = arith.addf %153, %154 : vector<64x128xf32>
    %156 = arith.mulf %155, %148 : vector<64x128xf32>
    %cst_59 = arith.constant -5.69250624E-5 : f32
    %157 = vector.broadcast %cst_59 : f32 to vector<64x128xf32>
    %158 = arith.addf %156, %157 : vector<64x128xf32>
    %159 = arith.mulf %158, %148 : vector<64x128xf32>
    %cst_60 = arith.constant -7.34990637E-4 : f32
    %160 = vector.broadcast %cst_60 : f32 to vector<64x128xf32>
    %161 = arith.addf %159, %160 : vector<64x128xf32>
    %162 = arith.mulf %161, %148 : vector<64x128xf32>
    %cst_61 = arith.constant -2.954600e-03 : f32
    %163 = vector.broadcast %cst_61 : f32 to vector<64x128xf32>
    %164 = arith.addf %162, %163 : vector<64x128xf32>
    %165 = arith.mulf %164, %148 : vector<64x128xf32>
    %cst_62 = arith.constant -0.0160960332 : f32
    %166 = vector.broadcast %cst_62 : f32 to vector<64x128xf32>
    %167 = arith.addf %165, %166 : vector<64x128xf32>
    %cst_63 = arith.constant -1.45660715E-5 : f32
    %168 = vector.broadcast %cst_63 : f32 to vector<64x128xf32>
    %169 = arith.mulf %168, %148 : vector<64x128xf32>
    %cst_64 = arith.constant -2.13374049E-4 : f32
    %170 = vector.broadcast %cst_64 : f32 to vector<64x128xf32>
    %171 = arith.addf %169, %170 : vector<64x128xf32>
    %172 = arith.mulf %171, %148 : vector<64x128xf32>
    %cst_65 = arith.constant -0.00168282702 : f32
    %173 = vector.broadcast %cst_65 : f32 to vector<64x128xf32>
    %174 = arith.addf %172, %173 : vector<64x128xf32>
    %175 = arith.mulf %174, %148 : vector<64x128xf32>
    %cst_66 = arith.constant -0.00737332925 : f32
    %176 = vector.broadcast %cst_66 : f32 to vector<64x128xf32>
    %177 = arith.addf %175, %176 : vector<64x128xf32>
    %178 = arith.mulf %177, %148 : vector<64x128xf32>
    %cst_67 = arith.constant -0.0142647391 : f32
    %179 = vector.broadcast %cst_67 : f32 to vector<64x128xf32>
    %180 = arith.addf %178, %179 : vector<64x128xf32>
    %181 = arith.mulf %147, %167 : vector<64x128xf32>
    %182 = tpu.reciprocal %180 {approx = true} : vector<64x128xf32> -> vector<64x128xf32>
    %183 = arith.mulf %181, %182 : vector<64x128xf32>
    %cst_68 = arith.constant 1.000000e+00 : f32
    %184 = vector.broadcast %cst_68 : f32 to vector<64x128xf32>
    %185 = arith.addf %184, %183 : vector<64x128xf32>
    %186 = arith.mulf %141, %185 : vector<64x128xf32>
    %cst_69 = arith.constant dense<0.000000e+00> : vector<64x32xf32>
    %187 = tpu.matmul %186, %38, %cst_69 {dimension_numbers = #tpu.dot_dimension_numbers<[1], [0], [0], [1], [0, 0, 1, 1], [], []>} : vector<64x128xf32>, vector<128x32xf32>, vector<64x32xf32> -> vector<64x32xf32>
    %188 = arith.addf %116, %187 : vector<64x32xf32>
    %189 = vector.broadcast %48 : vector<1x32xf32> to vector<64x32xf32>
    %190 = arith.addf %188, %189 : vector<64x32xf32>
    %c1 = arith.constant 1 : index
    %c0_70 = arith.constant 0 : index
    %c0_71 = arith.constant 0 : index
    %c0_72 = arith.constant 0 : index
    %191 = vector.load %arg4[%c1, %c0_70, %c0_71, %c0_72] : memref<2x2x64x64xf32, #tpu.memory_space<vmem>>, vector<1x2x64x64xf32>
    %192 = vector.shape_cast %191 : vector<1x2x64x64xf32> to vector<2x64x64xf32>
    %c1_73 = arith.constant 1 : index
    %c0_74 = arith.constant 0 : index
    %c0_75 = arith.constant 0 : index
    %193 = vector.load %arg5[%c1_73, %c0_74, %c0_75] : memref<2x32x96xf32, #tpu.memory_space<vmem>>, vector<1x32x96xf32>
    %194 = vector.shape_cast %193 : vector<1x32x96xf32> to vector<32x96xf32>
    %c1_76 = arith.constant 1 : index
    %c0_77 = arith.constant 0 : index
    %c0_78 = arith.constant 0 : index
    %195 = vector.load %arg6[%c1_76, %c0_77, %c0_78] : memref<2x32x128xf32, #tpu.memory_space<vmem>>, vector<1x32x128xf32>
    %196 = vector.shape_cast %195 : vector<1x32x128xf32> to vector<32x128xf32>
    %c1_79 = arith.constant 1 : index
    %c0_80 = arith.constant 0 : index
    %c0_81 = arith.constant 0 : index
    %197 = vector.load %arg7[%c1_79, %c0_80, %c0_81] : memref<2x32x32xf32, #tpu.memory_space<vmem>>, vector<1x32x32xf32>
    %198 = vector.shape_cast %197 : vector<1x32x32xf32> to vector<32x32xf32>
    %c1_82 = arith.constant 1 : index
    %c0_83 = arith.constant 0 : index
    %c0_84 = arith.constant 0 : index
    %199 = vector.load %arg8[%c1_82, %c0_83, %c0_84] : memref<2x128x32xf32, #tpu.memory_space<vmem>>, vector<1x128x32xf32>
    %200 = vector.shape_cast %199 : vector<1x128x32xf32> to vector<128x32xf32>
    %c1_85 = arith.constant 1 : index
    %c0_86 = arith.constant 0 : index
    %c0_87 = arith.constant 0 : index
    %201 = vector.load %arg9[%c1_85, %c0_86, %c0_87] : memref<2x8x128xf32, #tpu.memory_space<vmem>>, vector<1x8x128xf32>
    %202 = vector.shape_cast %201 : vector<1x8x128xf32> to vector<8x128xf32>
    %203 = vector.extract_strided_slice %202 {offsets = [0, 0], sizes = [1, 32], strides = [1, 1]} : vector<8x128xf32> to vector<1x32xf32>
    %204 = vector.extract_strided_slice %202 {offsets = [1, 0], sizes = [1, 32], strides = [1, 1]} : vector<8x128xf32> to vector<1x32xf32>
    %205 = vector.extract_strided_slice %202 {offsets = [2, 0], sizes = [1, 32], strides = [1, 1]} : vector<8x128xf32> to vector<1x32xf32>
    %206 = vector.extract_strided_slice %202 {offsets = [3, 0], sizes = [1, 32], strides = [1, 1]} : vector<8x128xf32> to vector<1x32xf32>
    %207 = vector.extract_strided_slice %202 {offsets = [4, 0], sizes = [1, 96], strides = [1, 1]} : vector<8x128xf32> to vector<1x96xf32>
    %208 = vector.extract_strided_slice %202 {offsets = [5, 0], sizes = [1, 32], strides = [1, 1]} : vector<8x128xf32> to vector<1x32xf32>
    %209 = vector.extract_strided_slice %202 {offsets = [6, 0], sizes = [1, 128], strides = [1, 1]} : vector<8x128xf32> to vector<1x128xf32>
    %210 = vector.extract_strided_slice %202 {offsets = [7, 0], sizes = [1, 32], strides = [1, 1]} : vector<8x128xf32> to vector<1x32xf32>
    %cst_88 = arith.constant dense<0.000000e+00> : vector<64xf32>
    %211 = vector.multi_reduction <add>, %190, %cst_88 [1] : vector<64x32xf32> to vector<64xf32>
    %212 = vector.shape_cast %211 : vector<64xf32> to vector<64x1xf32>
    %cst_89 = arith.constant 3.200000e+01 : f32
    %213 = vector.broadcast %cst_89 : f32 to vector<64x1xf32>
    %214 = arith.divf %212, %213 : vector<64x1xf32>
    %215 = vector.broadcast %214 : vector<64x1xf32> to vector<64x32xf32>
    %216 = arith.subf %190, %215 : vector<64x32xf32>
    %217 = arith.mulf %216, %216 : vector<64x32xf32>
    %cst_90 = arith.constant dense<0.000000e+00> : vector<64xf32>
    %218 = vector.multi_reduction <add>, %217, %cst_90 [1] : vector<64x32xf32> to vector<64xf32>
    %219 = vector.shape_cast %218 : vector<64xf32> to vector<64x1xf32>
    %cst_91 = arith.constant 3.200000e+01 : f32
    %220 = vector.broadcast %cst_91 : f32 to vector<64x1xf32>
    %221 = arith.divf %219, %220 : vector<64x1xf32>
    %cst_92 = arith.constant 9.99999974E-6 : f32
    %222 = vector.broadcast %cst_92 : f32 to vector<64x1xf32>
    %223 = arith.addf %221, %222 : vector<64x1xf32>
    %224 = math.rsqrt %223 : vector<64x1xf32>
    %225 = vector.broadcast %224 : vector<64x1xf32> to vector<64x32xf32>
    %226 = arith.mulf %216, %225 : vector<64x32xf32>
    %227 = vector.broadcast %203 : vector<1x32xf32> to vector<64x32xf32>
    %228 = arith.mulf %226, %227 : vector<64x32xf32>
    %229 = vector.broadcast %204 : vector<1x32xf32> to vector<64x32xf32>
    %230 = arith.addf %228, %229 : vector<64x32xf32>
    %cst_93 = arith.constant dense<0.000000e+00> : vector<64x96xf32>
    %231 = tpu.matmul %230, %194, %cst_93 {dimension_numbers = #tpu.dot_dimension_numbers<[1], [0], [0], [1], [0, 0, 1, 1], [], []>} : vector<64x32xf32>, vector<32x96xf32>, vector<64x96xf32> -> vector<64x96xf32>
    %232 = vector.broadcast %207 : vector<1x96xf32> to vector<64x96xf32>
    %233 = arith.addf %231, %232 : vector<64x96xf32>
    %234 = vector.extract_strided_slice %233 {offsets = [0, 0], sizes = [64, 16], strides = [1, 1]} : vector<64x96xf32> to vector<64x16xf32>
    %cst_94 = arith.constant 2.500000e-01 : f32
    %235 = vector.broadcast %cst_94 : f32 to vector<64x16xf32>
    %236 = arith.mulf %234, %235 : vector<64x16xf32>
    %237 = vector.extract_strided_slice %233 {offsets = [0, 32], sizes = [64, 16], strides = [1, 1]} : vector<64x96xf32> to vector<64x16xf32>
    %238 = vector.extract_strided_slice %233 {offsets = [0, 64], sizes = [64, 16], strides = [1, 1]} : vector<64x96xf32> to vector<64x16xf32>
    "tpu.trace_start"() <{level = 10 : i32, message = "td,sd->ts"}> : () -> ()
    %cst_95 = arith.constant dense<0.000000e+00> : vector<64x64xf32>
    %239 = tpu.matmul %236, %237, %cst_95 {dimension_numbers = #tpu.dot_dimension_numbers<[1], [1], [0], [0], [0, 0, 1, 0], [], []>} : vector<64x16xf32>, vector<64x16xf32>, vector<64x64xf32> -> vector<64x64xf32>
    "tpu.trace_stop"() : () -> ()
    %240 = vector.extract_strided_slice %192 {offsets = [0, 0, 0], sizes = [1, 64, 64], strides = [1, 1, 1]} : vector<2x64x64xf32> to vector<1x64x64xf32>
    %241 = vector.shape_cast %240 : vector<1x64x64xf32> to vector<64x64xf32>
    %242 = arith.addf %239, %241 : vector<64x64xf32>
    %cst_96 = arith.constant dense<0xFF800000> : vector<64xf32>
    %243 = vector.multi_reduction <maximumf>, %242, %cst_96 [1] : vector<64x64xf32> to vector<64xf32>
    %244 = vector.shape_cast %243 : vector<64xf32> to vector<64x1xf32>
    %245 = vector.broadcast %244 : vector<64x1xf32> to vector<64x64xf32>
    %246 = arith.subf %242, %245 : vector<64x64xf32>
    %247 = math.exp %246 : vector<64x64xf32>
    %cst_97 = arith.constant dense<0.000000e+00> : vector<64xf32>
    %248 = vector.multi_reduction <add>, %247, %cst_97 [1] : vector<64x64xf32> to vector<64xf32>
    %249 = vector.shape_cast %248 : vector<64xf32> to vector<64x1xf32>
    %250 = tpu.reciprocal %249 {approx = true} : vector<64x1xf32> -> vector<64x1xf32>
    %251 = vector.broadcast %250 : vector<64x1xf32> to vector<64x64xf32>
    %252 = arith.mulf %247, %251 : vector<64x64xf32>
    %cst_98 = arith.constant dense<0.000000e+00> : vector<64x16xf32>
    %253 = tpu.matmul %252, %238, %cst_98 {dimension_numbers = #tpu.dot_dimension_numbers<[1], [0], [0], [1], [0, 0, 1, 1], [], []>} : vector<64x64xf32>, vector<64x16xf32>, vector<64x16xf32> -> vector<64x16xf32>
    %254 = vector.extract_strided_slice %233 {offsets = [0, 16], sizes = [64, 16], strides = [1, 1]} : vector<64x96xf32> to vector<64x16xf32>
    %cst_99 = arith.constant 2.500000e-01 : f32
    %255 = vector.broadcast %cst_99 : f32 to vector<64x16xf32>
    %256 = arith.mulf %254, %255 : vector<64x16xf32>
    %257 = vector.extract_strided_slice %233 {offsets = [0, 48], sizes = [64, 16], strides = [1, 1]} : vector<64x96xf32> to vector<64x16xf32>
    %258 = vector.extract_strided_slice %233 {offsets = [0, 80], sizes = [64, 16], strides = [1, 1]} : vector<64x96xf32> to vector<64x16xf32>
    "tpu.trace_start"() <{level = 10 : i32, message = "td,sd->ts"}> : () -> ()
    %cst_100 = arith.constant dense<0.000000e+00> : vector<64x64xf32>
    %259 = tpu.matmul %256, %257, %cst_100 {dimension_numbers = #tpu.dot_dimension_numbers<[1], [1], [0], [0], [0, 0, 1, 0], [], []>} : vector<64x16xf32>, vector<64x16xf32>, vector<64x64xf32> -> vector<64x64xf32>
    "tpu.trace_stop"() : () -> ()
    %260 = vector.extract_strided_slice %192 {offsets = [1, 0, 0], sizes = [1, 64, 64], strides = [1, 1, 1]} : vector<2x64x64xf32> to vector<1x64x64xf32>
    %261 = vector.shape_cast %260 : vector<1x64x64xf32> to vector<64x64xf32>
    %262 = arith.addf %259, %261 : vector<64x64xf32>
    %cst_101 = arith.constant dense<0xFF800000> : vector<64xf32>
    %263 = vector.multi_reduction <maximumf>, %262, %cst_101 [1] : vector<64x64xf32> to vector<64xf32>
    %264 = vector.shape_cast %263 : vector<64xf32> to vector<64x1xf32>
    %265 = vector.broadcast %264 : vector<64x1xf32> to vector<64x64xf32>
    %266 = arith.subf %262, %265 : vector<64x64xf32>
    %267 = math.exp %266 : vector<64x64xf32>
    %cst_102 = arith.constant dense<0.000000e+00> : vector<64xf32>
    %268 = vector.multi_reduction <add>, %267, %cst_102 [1] : vector<64x64xf32> to vector<64xf32>
    %269 = vector.shape_cast %268 : vector<64xf32> to vector<64x1xf32>
    %270 = tpu.reciprocal %269 {approx = true} : vector<64x1xf32> -> vector<64x1xf32>
    %271 = vector.broadcast %270 : vector<64x1xf32> to vector<64x64xf32>
    %272 = arith.mulf %267, %271 : vector<64x64xf32>
    %cst_103 = arith.constant dense<0.000000e+00> : vector<64x16xf32>
    %273 = tpu.matmul %272, %258, %cst_103 {dimension_numbers = #tpu.dot_dimension_numbers<[1], [0], [0], [1], [0, 0, 1, 1], [], []>} : vector<64x64xf32>, vector<64x16xf32>, vector<64x16xf32> -> vector<64x16xf32>
    %274 = tpu.concatenate %253, %273 in 1 : vector<64x16xf32>, vector<64x16xf32> -> vector<64x32xf32>
    %cst_104 = arith.constant dense<0.000000e+00> : vector<64x32xf32>
    %275 = tpu.matmul %274, %198, %cst_104 {dimension_numbers = #tpu.dot_dimension_numbers<[1], [0], [0], [1], [0, 0, 1, 1], [], []>} : vector<64x32xf32>, vector<32x32xf32>, vector<64x32xf32> -> vector<64x32xf32>
    %276 = arith.addf %190, %275 : vector<64x32xf32>
    %277 = vector.broadcast %208 : vector<1x32xf32> to vector<64x32xf32>
    %278 = arith.addf %276, %277 : vector<64x32xf32>
    %cst_105 = arith.constant dense<0.000000e+00> : vector<64xf32>
    %279 = vector.multi_reduction <add>, %278, %cst_105 [1] : vector<64x32xf32> to vector<64xf32>
    %280 = vector.shape_cast %279 : vector<64xf32> to vector<64x1xf32>
    %cst_106 = arith.constant 3.200000e+01 : f32
    %281 = vector.broadcast %cst_106 : f32 to vector<64x1xf32>
    %282 = arith.divf %280, %281 : vector<64x1xf32>
    %283 = vector.broadcast %282 : vector<64x1xf32> to vector<64x32xf32>
    %284 = arith.subf %278, %283 : vector<64x32xf32>
    %285 = arith.mulf %284, %284 : vector<64x32xf32>
    %cst_107 = arith.constant dense<0.000000e+00> : vector<64xf32>
    %286 = vector.multi_reduction <add>, %285, %cst_107 [1] : vector<64x32xf32> to vector<64xf32>
    %287 = vector.shape_cast %286 : vector<64xf32> to vector<64x1xf32>
    %cst_108 = arith.constant 3.200000e+01 : f32
    %288 = vector.broadcast %cst_108 : f32 to vector<64x1xf32>
    %289 = arith.divf %287, %288 : vector<64x1xf32>
    %cst_109 = arith.constant 9.99999974E-6 : f32
    %290 = vector.broadcast %cst_109 : f32 to vector<64x1xf32>
    %291 = arith.addf %289, %290 : vector<64x1xf32>
    %292 = math.rsqrt %291 : vector<64x1xf32>
    %293 = vector.broadcast %292 : vector<64x1xf32> to vector<64x32xf32>
    %294 = arith.mulf %284, %293 : vector<64x32xf32>
    %295 = vector.broadcast %205 : vector<1x32xf32> to vector<64x32xf32>
    %296 = arith.mulf %294, %295 : vector<64x32xf32>
    %297 = vector.broadcast %206 : vector<1x32xf32> to vector<64x32xf32>
    %298 = arith.addf %296, %297 : vector<64x32xf32>
    %cst_110 = arith.constant dense<0.000000e+00> : vector<64x128xf32>
    %299 = tpu.matmul %298, %196, %cst_110 {dimension_numbers = #tpu.dot_dimension_numbers<[1], [0], [0], [1], [0, 0, 1, 1], [], []>} : vector<64x32xf32>, vector<32x128xf32>, vector<64x128xf32> -> vector<64x128xf32>
    %300 = vector.broadcast %209 : vector<1x128xf32> to vector<64x128xf32>
    %301 = arith.addf %299, %300 : vector<64x128xf32>
    %cst_111 = arith.constant 5.000000e-01 : f32
    %302 = vector.broadcast %cst_111 : f32 to vector<64x128xf32>
    %303 = arith.mulf %302, %301 : vector<64x128xf32>
    %cst_112 = arith.constant 0.707106769 : f32
    %304 = vector.broadcast %cst_112 : f32 to vector<64x128xf32>
    %305 = arith.mulf %301, %304 : vector<64x128xf32>
    %cst_113 = arith.constant -4.000000e+00 : f32
    %cst_114 = arith.constant 4.000000e+00 : f32
    %306 = vector.broadcast %cst_113 : f32 to vector<64x128xf32>
    %307 = arith.maximumf %306, %305 : vector<64x128xf32>
    %308 = vector.broadcast %cst_114 : f32 to vector<64x128xf32>
    %309 = arith.minimumf %308, %307 : vector<64x128xf32>
    %310 = arith.mulf %309, %309 : vector<64x128xf32>
    %cst_115 = arith.constant -2.72614237E-10 : f32
    %311 = vector.broadcast %cst_115 : f32 to vector<64x128xf32>
    %312 = arith.mulf %311, %310 : vector<64x128xf32>
    %cst_116 = arith.constant 2.77068146E-8 : f32
    %313 = vector.broadcast %cst_116 : f32 to vector<64x128xf32>
    %314 = arith.addf %312, %313 : vector<64x128xf32>
    %315 = arith.mulf %314, %310 : vector<64x128xf32>
    %cst_117 = arith.constant -2.10102394E-6 : f32
    %316 = vector.broadcast %cst_117 : f32 to vector<64x128xf32>
    %317 = arith.addf %315, %316 : vector<64x128xf32>
    %318 = arith.mulf %317, %310 : vector<64x128xf32>
    %cst_118 = arith.constant -5.69250624E-5 : f32
    %319 = vector.broadcast %cst_118 : f32 to vector<64x128xf32>
    %320 = arith.addf %318, %319 : vector<64x128xf32>
    %321 = arith.mulf %320, %310 : vector<64x128xf32>
    %cst_119 = arith.constant -7.34990637E-4 : f32
    %322 = vector.broadcast %cst_119 : f32 to vector<64x128xf32>
    %323 = arith.addf %321, %322 : vector<64x128xf32>
    %324 = arith.mulf %323, %310 : vector<64x128xf32>
    %cst_120 = arith.constant -2.954600e-03 : f32
    %325 = vector.broadcast %cst_120 : f32 to vector<64x128xf32>
    %326 = arith.addf %324, %325 : vector<64x128xf32>
    %327 = arith.mulf %326, %310 : vector<64x128xf32>
    %cst_121 = arith.constant -0.0160960332 : f32
    %328 = vector.broadcast %cst_121 : f32 to vector<64x128xf32>
    %329 = arith.addf %327, %328 : vector<64x128xf32>
    %cst_122 = arith.constant -1.45660715E-5 : f32
    %330 = vector.broadcast %cst_122 : f32 to vector<64x128xf32>
    %331 = arith.mulf %330, %310 : vector<64x128xf32>
    %cst_123 = arith.constant -2.13374049E-4 : f32
    %332 = vector.broadcast %cst_123 : f32 to vector<64x128xf32>
    %333 = arith.addf %331, %332 : vector<64x128xf32>
    %334 = arith.mulf %333, %310 : vector<64x128xf32>
    %cst_124 = arith.constant -0.00168282702 : f32
    %335 = vector.broadcast %cst_124 : f32 to vector<64x128xf32>
    %336 = arith.addf %334, %335 : vector<64x128xf32>
    %337 = arith.mulf %336, %310 : vector<64x128xf32>
    %cst_125 = arith.constant -0.00737332925 : f32
    %338 = vector.broadcast %cst_125 : f32 to vector<64x128xf32>
    %339 = arith.addf %337, %338 : vector<64x128xf32>
    %340 = arith.mulf %339, %310 : vector<64x128xf32>
    %cst_126 = arith.constant -0.0142647391 : f32
    %341 = vector.broadcast %cst_126 : f32 to vector<64x128xf32>
    %342 = arith.addf %340, %341 : vector<64x128xf32>
    %343 = arith.mulf %309, %329 : vector<64x128xf32>
    %344 = tpu.reciprocal %342 {approx = true} : vector<64x128xf32> -> vector<64x128xf32>
    %345 = arith.mulf %343, %344 : vector<64x128xf32>
    %cst_127 = arith.constant 1.000000e+00 : f32
    %346 = vector.broadcast %cst_127 : f32 to vector<64x128xf32>
    %347 = arith.addf %346, %345 : vector<64x128xf32>
    %348 = arith.mulf %303, %347 : vector<64x128xf32>
    %cst_128 = arith.constant dense<0.000000e+00> : vector<64x32xf32>
    %349 = tpu.matmul %348, %200, %cst_128 {dimension_numbers = #tpu.dot_dimension_numbers<[1], [0], [0], [1], [0, 0, 1, 1], [], []>} : vector<64x128xf32>, vector<128x32xf32>, vector<64x32xf32> -> vector<64x32xf32>
    %350 = arith.addf %278, %349 : vector<64x32xf32>
    %351 = vector.broadcast %210 : vector<1x32xf32> to vector<64x32xf32>
    %352 = arith.addf %350, %351 : vector<64x32xf32>
    %c0_129 = arith.constant 0 : index
    %c0_130 = arith.constant 0 : index
    %353 = vector.load %arg10[%c0_129, %c0_130] : memref<64x32xf32, #tpu.memory_space<vmem>>, vector<64x32xf32>
    tpu.vector_store %arg10[%c0_129, %c0_130], %352 {strides = array<i32>} : memref<64x32xf32, #tpu.memory_space<vmem>>, vector<64x32xf32>,
    return
  }
  func.func @transform_0(%arg0: i32) -> (i32, i32) {
    %c0_i32 = arith.constant 0 : i32
    %c0_i32_0 = arith.constant 0 : i32
    return %arg0, %c0_i32 : i32, i32
  }
  func.func @transform_1(%arg0: i32) -> (i32, i32) {
    %c0_i32 = arith.constant 0 : i32
    %c0_i32_0 = arith.constant 0 : i32
    %c0_i32_1 = arith.constant 0 : i32
    return %c0_i32, %c0_i32_0 : i32, i32
  }
  func.func @transform_2(%arg0: i32) -> (i32, i32) {
    %c0_i32 = arith.constant 0 : i32
    %c0_i32_0 = arith.constant 0 : i32
    %c0_i32_1 = arith.constant 0 : i32
    return %c0_i32, %c0_i32_0 : i32, i32
  }
  func.func @transform_3(%arg0: i32) -> (i32, i32, i32, i32) {
    %c0_i32 = arith.constant 0 : i32
    %c0_i32_0 = arith.constant 0 : i32
    %c0_i32_1 = arith.constant 0 : i32
    %c0_i32_2 = arith.constant 0 : i32
    %c0_i32_3 = arith.constant 0 : i32
    return %c0_i32, %c0_i32_0, %c0_i32_1, %c0_i32_2 : i32, i32, i32, i32
  }
  func.func @transform_4(%arg0: i32) -> (i32, i32, i32) {
    %c0_i32 = arith.constant 0 : i32
    %c0_i32_0 = arith.constant 0 : i32
    %c0_i32_1 = arith.constant 0 : i32
    %c0_i32_2 = arith.constant 0 : i32
    return %c0_i32, %c0_i32_0, %c0_i32_1 : i32, i32, i32
  }
  func.func @transform_5(%arg0: i32) -> (i32, i32, i32) {
    %c0_i32 = arith.constant 0 : i32
    %c0_i32_0 = arith.constant 0 : i32
    %c0_i32_1 = arith.constant 0 : i32
    %c0_i32_2 = arith.constant 0 : i32
    return %c0_i32, %c0_i32_0, %c0_i32_1 : i32, i32, i32
  }
  func.func @transform_6(%arg0: i32) -> (i32, i32, i32) {
    %c0_i32 = arith.constant 0 : i32
    %c0_i32_0 = arith.constant 0 : i32
    %c0_i32_1 = arith.constant 0 : i32
    %c0_i32_2 = arith.constant 0 : i32
    return %c0_i32, %c0_i32_0, %c0_i32_1 : i32, i32, i32
  }
  func.func @transform_7(%arg0: i32) -> (i32, i32, i32) {
    %c0_i32 = arith.constant 0 : i32
    %c0_i32_0 = arith.constant 0 : i32
    %c0_i32_1 = arith.constant 0 : i32
    %c0_i32_2 = arith.constant 0 : i32
    return %c0_i32, %c0_i32_0, %c0_i32_1 : i32, i32, i32
  }
  func.func @transform_8(%arg0: i32) -> (i32, i32, i32) {
    %c0_i32 = arith.constant 0 : i32
    %c0_i32_0 = arith.constant 0 : i32
    %c0_i32_1 = arith.constant 0 : i32
    %c0_i32_2 = arith.constant 0 : i32
    return %c0_i32, %c0_i32_0, %c0_i32_1 : i32, i32, i32
  }
  func.func @transform_9(%arg0: i32) -> (i32, i32) {
    %c0_i32 = arith.constant 0 : i32
    %c0_i32_0 = arith.constant 0 : i32
    return %arg0, %c0_i32 : i32, i32
  }
}

module attributes {stable_mosaic.version = 11 : i64} {
  func.func @_stage2_kernel(%arg0: i32, %arg1: memref<16x128xf32, #tpu.memory_space<vmem>>, %arg2: memref<128x64xf32, #tpu.memory_space<vmem>>, %arg3: memref<2x128xf32, #tpu.memory_space<vmem>>, %arg4: memref<2x4x16x16xf32, #tpu.memory_space<vmem>>, %arg5: memref<2x64x192xf32, #tpu.memory_space<vmem>>, %arg6: memref<2x64x256xf32, #tpu.memory_space<vmem>>, %arg7: memref<2x64x64xf32, #tpu.memory_space<vmem>>, %arg8: memref<2x256x64xf32, #tpu.memory_space<vmem>>, %arg9: memref<2x8x256xf32, #tpu.memory_space<vmem>>, %arg10: memref<64x10xf32, #tpu.memory_space<vmem>>, %arg11: memref<3x64xf32, #tpu.memory_space<vmem>>, %arg12: memref<1x1x10xf32, #tpu.memory_space<vmem>>) attributes {dimension_semantics = [#tpu.dimension_semantics<parallel>], iteration_bounds = array<i64: 2>, scalar_prefetch = 0 : i64, scratch_operands = 0 : i64, tpu.core_type = #tpu.core_type<tc>, window_params = [{transform_indices = @transform_0, window_bounds = array<i64: 16, 128>}, {pipeline_mode = #tpu.pipeline_mode<synchronous>, transform_indices = @transform_1, window_bounds = array<i64: 128, 64>}, {pipeline_mode = #tpu.pipeline_mode<synchronous>, transform_indices = @transform_2, window_bounds = array<i64: 2, 128>}, {pipeline_mode = #tpu.pipeline_mode<synchronous>, transform_indices = @transform_3, window_bounds = array<i64: 2, 4, 16, 16>}, {pipeline_mode = #tpu.pipeline_mode<synchronous>, transform_indices = @transform_4, window_bounds = array<i64: 2, 64, 192>}, {pipeline_mode = #tpu.pipeline_mode<synchronous>, transform_indices = @transform_5, window_bounds = array<i64: 2, 64, 256>}, {pipeline_mode = #tpu.pipeline_mode<synchronous>, transform_indices = @transform_6, window_bounds = array<i64: 2, 64, 64>}, {pipeline_mode = #tpu.pipeline_mode<synchronous>, transform_indices = @transform_7, window_bounds = array<i64: 2, 256, 64>}, {pipeline_mode = #tpu.pipeline_mode<synchronous>, transform_indices = @transform_8, window_bounds = array<i64: 2, 8, 256>}, {pipeline_mode = #tpu.pipeline_mode<synchronous>, transform_indices = @transform_9, window_bounds = array<i64: 64, 10>}, {pipeline_mode = #tpu.pipeline_mode<synchronous>, transform_indices = @transform_10, window_bounds = array<i64: 3, 64>}, {transform_indices = @transform_11, window_bounds = array<i64: 1, 1, 10>}]} {
    %c0 = arith.constant 0 : index
    %c0_0 = arith.constant 0 : index
    %0 = vector.load %arg1[%c0, %c0_0] : memref<16x128xf32, #tpu.memory_space<vmem>>, vector<16x128xf32>
    %c0_1 = arith.constant 0 : index
    %c0_2 = arith.constant 0 : index
    %1 = vector.load %arg3[%c0_1, %c0_2] : memref<2x128xf32, #tpu.memory_space<vmem>>, vector<2x128xf32>
    %2 = vector.extract_strided_slice %1 {offsets = [0, 0], sizes = [1, 128], strides = [1, 1]} : vector<2x128xf32> to vector<1x128xf32>
    %3 = vector.extract_strided_slice %1 {offsets = [1, 0], sizes = [1, 128], strides = [1, 1]} : vector<2x128xf32> to vector<1x128xf32>
    %cst = arith.constant dense<0.000000e+00> : vector<16xf32>
    %4 = vector.multi_reduction <add>, %0, %cst [1] : vector<16x128xf32> to vector<16xf32>
    %5 = vector.shape_cast %4 : vector<16xf32> to vector<16x1xf32>
    %cst_3 = arith.constant 1.280000e+02 : f32
    %6 = vector.broadcast %cst_3 : f32 to vector<16x1xf32>
    %7 = arith.divf %5, %6 : vector<16x1xf32>
    %8 = vector.broadcast %7 : vector<16x1xf32> to vector<16x128xf32>
    %9 = arith.subf %0, %8 : vector<16x128xf32>
    %10 = arith.mulf %9, %9 : vector<16x128xf32>
    %cst_4 = arith.constant dense<0.000000e+00> : vector<16xf32>
    %11 = vector.multi_reduction <add>, %10, %cst_4 [1] : vector<16x128xf32> to vector<16xf32>
    %12 = vector.shape_cast %11 : vector<16xf32> to vector<16x1xf32>
    %cst_5 = arith.constant 1.280000e+02 : f32
    %13 = vector.broadcast %cst_5 : f32 to vector<16x1xf32>
    %14 = arith.divf %12, %13 : vector<16x1xf32>
    %cst_6 = arith.constant 9.99999974E-6 : f32
    %15 = vector.broadcast %cst_6 : f32 to vector<16x1xf32>
    %16 = arith.addf %14, %15 : vector<16x1xf32>
    %17 = math.rsqrt %16 : vector<16x1xf32>
    %18 = vector.broadcast %17 : vector<16x1xf32> to vector<16x128xf32>
    %19 = arith.mulf %9, %18 : vector<16x128xf32>
    %20 = vector.broadcast %2 : vector<1x128xf32> to vector<16x128xf32>
    %21 = arith.mulf %19, %20 : vector<16x128xf32>
    %22 = vector.broadcast %3 : vector<1x128xf32> to vector<16x128xf32>
    %23 = arith.addf %21, %22 : vector<16x128xf32>
    %c0_7 = arith.constant 0 : index
    %c0_8 = arith.constant 0 : index
    %24 = vector.load %arg2[%c0_7, %c0_8] : memref<128x64xf32, #tpu.memory_space<vmem>>, vector<128x64xf32>
    %cst_9 = arith.constant dense<0.000000e+00> : vector<16x64xf32>
    %25 = tpu.matmul %23, %24, %cst_9 {dimension_numbers = #tpu.dot_dimension_numbers<[1], [0], [0], [1], [0, 0, 1, 1], [], []>} : vector<16x128xf32>, vector<128x64xf32>, vector<16x64xf32> -> vector<16x64xf32>
    %c0_10 = arith.constant 0 : index
    %c0_11 = arith.constant 0 : index
    %c0_12 = arith.constant 0 : index
    %c0_13 = arith.constant 0 : index
    %26 = vector.load %arg4[%c0_10, %c0_11, %c0_12, %c0_13] : memref<2x4x16x16xf32, #tpu.memory_space<vmem>>, vector<1x4x16x16xf32>
    %27 = vector.shape_cast %26 : vector<1x4x16x16xf32> to vector<4x16x16xf32>
    %c0_14 = arith.constant 0 : index
    %c0_15 = arith.constant 0 : index
    %c0_16 = arith.constant 0 : index
    %28 = vector.load %arg5[%c0_14, %c0_15, %c0_16] : memref<2x64x192xf32, #tpu.memory_space<vmem>>, vector<1x64x192xf32>
    %29 = vector.shape_cast %28 : vector<1x64x192xf32> to vector<64x192xf32>
    %c0_17 = arith.constant 0 : index
    %c0_18 = arith.constant 0 : index
    %c0_19 = arith.constant 0 : index
    %30 = vector.load %arg6[%c0_17, %c0_18, %c0_19] : memref<2x64x256xf32, #tpu.memory_space<vmem>>, vector<1x64x256xf32>
    %31 = vector.shape_cast %30 : vector<1x64x256xf32> to vector<64x256xf32>
    %c0_20 = arith.constant 0 : index
    %c0_21 = arith.constant 0 : index
    %c0_22 = arith.constant 0 : index
    %32 = vector.load %arg7[%c0_20, %c0_21, %c0_22] : memref<2x64x64xf32, #tpu.memory_space<vmem>>, vector<1x64x64xf32>
    %33 = vector.shape_cast %32 : vector<1x64x64xf32> to vector<64x64xf32>
    %c0_23 = arith.constant 0 : index
    %c0_24 = arith.constant 0 : index
    %c0_25 = arith.constant 0 : index
    %34 = vector.load %arg8[%c0_23, %c0_24, %c0_25] : memref<2x256x64xf32, #tpu.memory_space<vmem>>, vector<1x256x64xf32>
    %35 = vector.shape_cast %34 : vector<1x256x64xf32> to vector<256x64xf32>
    %c0_26 = arith.constant 0 : index
    %c0_27 = arith.constant 0 : index
    %c0_28 = arith.constant 0 : index
    %36 = vector.load %arg9[%c0_26, %c0_27, %c0_28] : memref<2x8x256xf32, #tpu.memory_space<vmem>>, vector<1x8x256xf32>
    %37 = vector.shape_cast %36 : vector<1x8x256xf32> to vector<8x256xf32>
    %38 = vector.extract_strided_slice %37 {offsets = [0, 0], sizes = [1, 64], strides = [1, 1]} : vector<8x256xf32> to vector<1x64xf32>
    %39 = vector.extract_strided_slice %37 {offsets = [1, 0], sizes = [1, 64], strides = [1, 1]} : vector<8x256xf32> to vector<1x64xf32>
    %40 = vector.extract_strided_slice %37 {offsets = [2, 0], sizes = [1, 64], strides = [1, 1]} : vector<8x256xf32> to vector<1x64xf32>
    %41 = vector.extract_strided_slice %37 {offsets = [3, 0], sizes = [1, 64], strides = [1, 1]} : vector<8x256xf32> to vector<1x64xf32>
    %42 = vector.extract_strided_slice %37 {offsets = [4, 0], sizes = [1, 192], strides = [1, 1]} : vector<8x256xf32> to vector<1x192xf32>
    %43 = vector.extract_strided_slice %37 {offsets = [5, 0], sizes = [1, 64], strides = [1, 1]} : vector<8x256xf32> to vector<1x64xf32>
    %44 = vector.extract_strided_slice %37 {offsets = [6, 0], sizes = [1, 256], strides = [1, 1]} : vector<8x256xf32> to vector<1x256xf32>
    %45 = vector.extract_strided_slice %37 {offsets = [7, 0], sizes = [1, 64], strides = [1, 1]} : vector<8x256xf32> to vector<1x64xf32>
    %cst_29 = arith.constant dense<0.000000e+00> : vector<16xf32>
    %46 = vector.multi_reduction <add>, %25, %cst_29 [1] : vector<16x64xf32> to vector<16xf32>
    %47 = vector.shape_cast %46 : vector<16xf32> to vector<16x1xf32>
    %cst_30 = arith.constant 6.400000e+01 : f32
    %48 = vector.broadcast %cst_30 : f32 to vector<16x1xf32>
    %49 = arith.divf %47, %48 : vector<16x1xf32>
    %50 = vector.broadcast %49 : vector<16x1xf32> to vector<16x64xf32>
    %51 = arith.subf %25, %50 : vector<16x64xf32>
    %52 = arith.mulf %51, %51 : vector<16x64xf32>
    %cst_31 = arith.constant dense<0.000000e+00> : vector<16xf32>
    %53 = vector.multi_reduction <add>, %52, %cst_31 [1] : vector<16x64xf32> to vector<16xf32>
    %54 = vector.shape_cast %53 : vector<16xf32> to vector<16x1xf32>
    %cst_32 = arith.constant 6.400000e+01 : f32
    %55 = vector.broadcast %cst_32 : f32 to vector<16x1xf32>
    %56 = arith.divf %54, %55 : vector<16x1xf32>
    %cst_33 = arith.constant 9.99999974E-6 : f32
    %57 = vector.broadcast %cst_33 : f32 to vector<16x1xf32>
    %58 = arith.addf %56, %57 : vector<16x1xf32>
    %59 = math.rsqrt %58 : vector<16x1xf32>
    %60 = vector.broadcast %59 : vector<16x1xf32> to vector<16x64xf32>
    %61 = arith.mulf %51, %60 : vector<16x64xf32>
    %62 = vector.broadcast %38 : vector<1x64xf32> to vector<16x64xf32>
    %63 = arith.mulf %61, %62 : vector<16x64xf32>
    %64 = vector.broadcast %39 : vector<1x64xf32> to vector<16x64xf32>
    %65 = arith.addf %63, %64 : vector<16x64xf32>
    %cst_34 = arith.constant dense<0.000000e+00> : vector<16x192xf32>
    %66 = tpu.matmul %65, %29, %cst_34 {dimension_numbers = #tpu.dot_dimension_numbers<[1], [0], [0], [1], [0, 0, 1, 1], [], []>} : vector<16x64xf32>, vector<64x192xf32>, vector<16x192xf32> -> vector<16x192xf32>
    %67 = vector.broadcast %42 : vector<1x192xf32> to vector<16x192xf32>
    %68 = arith.addf %66, %67 : vector<16x192xf32>
    %69 = vector.extract_strided_slice %68 {offsets = [0, 0], sizes = [16, 16], strides = [1, 1]} : vector<16x192xf32> to vector<16x16xf32>
    %cst_35 = arith.constant 2.500000e-01 : f32
    %70 = vector.broadcast %cst_35 : f32 to vector<16x16xf32>
    %71 = arith.mulf %69, %70 : vector<16x16xf32>
    %72 = vector.extract_strided_slice %68 {offsets = [0, 64], sizes = [16, 16], strides = [1, 1]} : vector<16x192xf32> to vector<16x16xf32>
    %73 = vector.extract_strided_slice %68 {offsets = [0, 128], sizes = [16, 16], strides = [1, 1]} : vector<16x192xf32> to vector<16x16xf32>
    "tpu.trace_start"() <{level = 10 : i32, message = "td,sd->ts"}> : () -> ()
    %cst_36 = arith.constant dense<0.000000e+00> : vector<16x16xf32>
    %74 = tpu.matmul %71, %72, %cst_36 {dimension_numbers = #tpu.dot_dimension_numbers<[1], [1], [0], [0], [0, 0, 1, 0], [], []>} : vector<16x16xf32>, vector<16x16xf32>, vector<16x16xf32> -> vector<16x16xf32>
    "tpu.trace_stop"() : () -> ()
    %75 = vector.extract_strided_slice %27 {offsets = [0, 0, 0], sizes = [1, 16, 16], strides = [1, 1, 1]} : vector<4x16x16xf32> to vector<1x16x16xf32>
    %76 = vector.shape_cast %75 : vector<1x16x16xf32> to vector<16x16xf32>
    %77 = arith.addf %74, %76 : vector<16x16xf32>
    %cst_37 = arith.constant dense<0xFF800000> : vector<16xf32>
    %78 = vector.multi_reduction <maximumf>, %77, %cst_37 [1] : vector<16x16xf32> to vector<16xf32>
    %79 = vector.shape_cast %78 : vector<16xf32> to vector<16x1xf32>
    %80 = vector.broadcast %79 : vector<16x1xf32> to vector<16x16xf32>
    %81 = arith.subf %77, %80 : vector<16x16xf32>
    %82 = math.exp %81 : vector<16x16xf32>
    %cst_38 = arith.constant dense<0.000000e+00> : vector<16xf32>
    %83 = vector.multi_reduction <add>, %82, %cst_38 [1] : vector<16x16xf32> to vector<16xf32>
    %84 = vector.shape_cast %83 : vector<16xf32> to vector<16x1xf32>
    %85 = tpu.reciprocal %84 {approx = true} : vector<16x1xf32> -> vector<16x1xf32>
    %86 = vector.broadcast %85 : vector<16x1xf32> to vector<16x16xf32>
    %87 = arith.mulf %82, %86 : vector<16x16xf32>
    %cst_39 = arith.constant dense<0.000000e+00> : vector<16x16xf32>
    %88 = tpu.matmul %87, %73, %cst_39 {dimension_numbers = #tpu.dot_dimension_numbers<[1], [0], [0], [1], [0, 0, 1, 1], [], []>} : vector<16x16xf32>, vector<16x16xf32>, vector<16x16xf32> -> vector<16x16xf32>
    %89 = vector.extract_strided_slice %68 {offsets = [0, 16], sizes = [16, 16], strides = [1, 1]} : vector<16x192xf32> to vector<16x16xf32>
    %cst_40 = arith.constant 2.500000e-01 : f32
    %90 = vector.broadcast %cst_40 : f32 to vector<16x16xf32>
    %91 = arith.mulf %89, %90 : vector<16x16xf32>
    %92 = vector.extract_strided_slice %68 {offsets = [0, 80], sizes = [16, 16], strides = [1, 1]} : vector<16x192xf32> to vector<16x16xf32>
    %93 = vector.extract_strided_slice %68 {offsets = [0, 144], sizes = [16, 16], strides = [1, 1]} : vector<16x192xf32> to vector<16x16xf32>
    "tpu.trace_start"() <{level = 10 : i32, message = "td,sd->ts"}> : () -> ()
    %cst_41 = arith.constant dense<0.000000e+00> : vector<16x16xf32>
    %94 = tpu.matmul %91, %92, %cst_41 {dimension_numbers = #tpu.dot_dimension_numbers<[1], [1], [0], [0], [0, 0, 1, 0], [], []>} : vector<16x16xf32>, vector<16x16xf32>, vector<16x16xf32> -> vector<16x16xf32>
    "tpu.trace_stop"() : () -> ()
    %95 = vector.extract_strided_slice %27 {offsets = [1, 0, 0], sizes = [1, 16, 16], strides = [1, 1, 1]} : vector<4x16x16xf32> to vector<1x16x16xf32>
    %96 = vector.shape_cast %95 : vector<1x16x16xf32> to vector<16x16xf32>
    %97 = arith.addf %94, %96 : vector<16x16xf32>
    %cst_42 = arith.constant dense<0xFF800000> : vector<16xf32>
    %98 = vector.multi_reduction <maximumf>, %97, %cst_42 [1] : vector<16x16xf32> to vector<16xf32>
    %99 = vector.shape_cast %98 : vector<16xf32> to vector<16x1xf32>
    %100 = vector.broadcast %99 : vector<16x1xf32> to vector<16x16xf32>
    %101 = arith.subf %97, %100 : vector<16x16xf32>
    %102 = math.exp %101 : vector<16x16xf32>
    %cst_43 = arith.constant dense<0.000000e+00> : vector<16xf32>
    %103 = vector.multi_reduction <add>, %102, %cst_43 [1] : vector<16x16xf32> to vector<16xf32>
    %104 = vector.shape_cast %103 : vector<16xf32> to vector<16x1xf32>
    %105 = tpu.reciprocal %104 {approx = true} : vector<16x1xf32> -> vector<16x1xf32>
    %106 = vector.broadcast %105 : vector<16x1xf32> to vector<16x16xf32>
    %107 = arith.mulf %102, %106 : vector<16x16xf32>
    %cst_44 = arith.constant dense<0.000000e+00> : vector<16x16xf32>
    %108 = tpu.matmul %107, %93, %cst_44 {dimension_numbers = #tpu.dot_dimension_numbers<[1], [0], [0], [1], [0, 0, 1, 1], [], []>} : vector<16x16xf32>, vector<16x16xf32>, vector<16x16xf32> -> vector<16x16xf32>
    %109 = vector.extract_strided_slice %68 {offsets = [0, 32], sizes = [16, 16], strides = [1, 1]} : vector<16x192xf32> to vector<16x16xf32>
    %cst_45 = arith.constant 2.500000e-01 : f32
    %110 = vector.broadcast %cst_45 : f32 to vector<16x16xf32>
    %111 = arith.mulf %109, %110 : vector<16x16xf32>
    %112 = vector.extract_strided_slice %68 {offsets = [0, 96], sizes = [16, 16], strides = [1, 1]} : vector<16x192xf32> to vector<16x16xf32>
    %113 = vector.extract_strided_slice %68 {offsets = [0, 160], sizes = [16, 16], strides = [1, 1]} : vector<16x192xf32> to vector<16x16xf32>
    "tpu.trace_start"() <{level = 10 : i32, message = "td,sd->ts"}> : () -> ()
    %cst_46 = arith.constant dense<0.000000e+00> : vector<16x16xf32>
    %114 = tpu.matmul %111, %112, %cst_46 {dimension_numbers = #tpu.dot_dimension_numbers<[1], [1], [0], [0], [0, 0, 1, 0], [], []>} : vector<16x16xf32>, vector<16x16xf32>, vector<16x16xf32> -> vector<16x16xf32>
    "tpu.trace_stop"() : () -> ()
    %115 = vector.extract_strided_slice %27 {offsets = [2, 0, 0], sizes = [1, 16, 16], strides = [1, 1, 1]} : vector<4x16x16xf32> to vector<1x16x16xf32>
    %116 = vector.shape_cast %115 : vector<1x16x16xf32> to vector<16x16xf32>
    %117 = arith.addf %114, %116 : vector<16x16xf32>
    %cst_47 = arith.constant dense<0xFF800000> : vector<16xf32>
    %118 = vector.multi_reduction <maximumf>, %117, %cst_47 [1] : vector<16x16xf32> to vector<16xf32>
    %119 = vector.shape_cast %118 : vector<16xf32> to vector<16x1xf32>
    %120 = vector.broadcast %119 : vector<16x1xf32> to vector<16x16xf32>
    %121 = arith.subf %117, %120 : vector<16x16xf32>
    %122 = math.exp %121 : vector<16x16xf32>
    %cst_48 = arith.constant dense<0.000000e+00> : vector<16xf32>
    %123 = vector.multi_reduction <add>, %122, %cst_48 [1] : vector<16x16xf32> to vector<16xf32>
    %124 = vector.shape_cast %123 : vector<16xf32> to vector<16x1xf32>
    %125 = tpu.reciprocal %124 {approx = true} : vector<16x1xf32> -> vector<16x1xf32>
    %126 = vector.broadcast %125 : vector<16x1xf32> to vector<16x16xf32>
    %127 = arith.mulf %122, %126 : vector<16x16xf32>
    %cst_49 = arith.constant dense<0.000000e+00> : vector<16x16xf32>
    %128 = tpu.matmul %127, %113, %cst_49 {dimension_numbers = #tpu.dot_dimension_numbers<[1], [0], [0], [1], [0, 0, 1, 1], [], []>} : vector<16x16xf32>, vector<16x16xf32>, vector<16x16xf32> -> vector<16x16xf32>
    %129 = vector.extract_strided_slice %68 {offsets = [0, 48], sizes = [16, 16], strides = [1, 1]} : vector<16x192xf32> to vector<16x16xf32>
    %cst_50 = arith.constant 2.500000e-01 : f32
    %130 = vector.broadcast %cst_50 : f32 to vector<16x16xf32>
    %131 = arith.mulf %129, %130 : vector<16x16xf32>
    %132 = vector.extract_strided_slice %68 {offsets = [0, 112], sizes = [16, 16], strides = [1, 1]} : vector<16x192xf32> to vector<16x16xf32>
    %133 = vector.extract_strided_slice %68 {offsets = [0, 176], sizes = [16, 16], strides = [1, 1]} : vector<16x192xf32> to vector<16x16xf32>
    "tpu.trace_start"() <{level = 10 : i32, message = "td,sd->ts"}> : () -> ()
    %cst_51 = arith.constant dense<0.000000e+00> : vector<16x16xf32>
    %134 = tpu.matmul %131, %132, %cst_51 {dimension_numbers = #tpu.dot_dimension_numbers<[1], [1], [0], [0], [0, 0, 1, 0], [], []>} : vector<16x16xf32>, vector<16x16xf32>, vector<16x16xf32> -> vector<16x16xf32>
    "tpu.trace_stop"() : () -> ()
    %135 = vector.extract_strided_slice %27 {offsets = [3, 0, 0], sizes = [1, 16, 16], strides = [1, 1, 1]} : vector<4x16x16xf32> to vector<1x16x16xf32>
    %136 = vector.shape_cast %135 : vector<1x16x16xf32> to vector<16x16xf32>
    %137 = arith.addf %134, %136 : vector<16x16xf32>
    %cst_52 = arith.constant dense<0xFF800000> : vector<16xf32>
    %138 = vector.multi_reduction <maximumf>, %137, %cst_52 [1] : vector<16x16xf32> to vector<16xf32>
    %139 = vector.shape_cast %138 : vector<16xf32> to vector<16x1xf32>
    %140 = vector.broadcast %139 : vector<16x1xf32> to vector<16x16xf32>
    %141 = arith.subf %137, %140 : vector<16x16xf32>
    %142 = math.exp %141 : vector<16x16xf32>
    %cst_53 = arith.constant dense<0.000000e+00> : vector<16xf32>
    %143 = vector.multi_reduction <add>, %142, %cst_53 [1] : vector<16x16xf32> to vector<16xf32>
    %144 = vector.shape_cast %143 : vector<16xf32> to vector<16x1xf32>
    %145 = tpu.reciprocal %144 {approx = true} : vector<16x1xf32> -> vector<16x1xf32>
    %146 = vector.broadcast %145 : vector<16x1xf32> to vector<16x16xf32>
    %147 = arith.mulf %142, %146 : vector<16x16xf32>
    %cst_54 = arith.constant dense<0.000000e+00> : vector<16x16xf32>
    %148 = tpu.matmul %147, %133, %cst_54 {dimension_numbers = #tpu.dot_dimension_numbers<[1], [0], [0], [1], [0, 0, 1, 1], [], []>} : vector<16x16xf32>, vector<16x16xf32>, vector<16x16xf32> -> vector<16x16xf32>
    %149 = tpu.concatenate %88, %108, %128, %148 in 1 : vector<16x16xf32>, vector<16x16xf32>, vector<16x16xf32>, vector<16x16xf32> -> vector<16x64xf32>
    %cst_55 = arith.constant dense<0.000000e+00> : vector<16x64xf32>
    %150 = tpu.matmul %149, %33, %cst_55 {dimension_numbers = #tpu.dot_dimension_numbers<[1], [0], [0], [1], [0, 0, 1, 1], [], []>} : vector<16x64xf32>, vector<64x64xf32>, vector<16x64xf32> -> vector<16x64xf32>
    %151 = arith.addf %25, %150 : vector<16x64xf32>
    %152 = vector.broadcast %43 : vector<1x64xf32> to vector<16x64xf32>
    %153 = arith.addf %151, %152 : vector<16x64xf32>
    %cst_56 = arith.constant dense<0.000000e+00> : vector<16xf32>
    %154 = vector.multi_reduction <add>, %153, %cst_56 [1] : vector<16x64xf32> to vector<16xf32>
    %155 = vector.shape_cast %154 : vector<16xf32> to vector<16x1xf32>
    %cst_57 = arith.constant 6.400000e+01 : f32
    %156 = vector.broadcast %cst_57 : f32 to vector<16x1xf32>
    %157 = arith.divf %155, %156 : vector<16x1xf32>
    %158 = vector.broadcast %157 : vector<16x1xf32> to vector<16x64xf32>
    %159 = arith.subf %153, %158 : vector<16x64xf32>
    %160 = arith.mulf %159, %159 : vector<16x64xf32>
    %cst_58 = arith.constant dense<0.000000e+00> : vector<16xf32>
    %161 = vector.multi_reduction <add>, %160, %cst_58 [1] : vector<16x64xf32> to vector<16xf32>
    %162 = vector.shape_cast %161 : vector<16xf32> to vector<16x1xf32>
    %cst_59 = arith.constant 6.400000e+01 : f32
    %163 = vector.broadcast %cst_59 : f32 to vector<16x1xf32>
    %164 = arith.divf %162, %163 : vector<16x1xf32>
    %cst_60 = arith.constant 9.99999974E-6 : f32
    %165 = vector.broadcast %cst_60 : f32 to vector<16x1xf32>
    %166 = arith.addf %164, %165 : vector<16x1xf32>
    %167 = math.rsqrt %166 : vector<16x1xf32>
    %168 = vector.broadcast %167 : vector<16x1xf32> to vector<16x64xf32>
    %169 = arith.mulf %159, %168 : vector<16x64xf32>
    %170 = vector.broadcast %40 : vector<1x64xf32> to vector<16x64xf32>
    %171 = arith.mulf %169, %170 : vector<16x64xf32>
    %172 = vector.broadcast %41 : vector<1x64xf32> to vector<16x64xf32>
    %173 = arith.addf %171, %172 : vector<16x64xf32>
    %cst_61 = arith.constant dense<0.000000e+00> : vector<16x256xf32>
    %174 = tpu.matmul %173, %31, %cst_61 {dimension_numbers = #tpu.dot_dimension_numbers<[1], [0], [0], [1], [0, 0, 1, 1], [], []>} : vector<16x64xf32>, vector<64x256xf32>, vector<16x256xf32> -> vector<16x256xf32>
    %175 = vector.broadcast %44 : vector<1x256xf32> to vector<16x256xf32>
    %176 = arith.addf %174, %175 : vector<16x256xf32>
    %cst_62 = arith.constant 5.000000e-01 : f32
    %177 = vector.broadcast %cst_62 : f32 to vector<16x256xf32>
    %178 = arith.mulf %177, %176 : vector<16x256xf32>
    %cst_63 = arith.constant 0.707106769 : f32
    %179 = vector.broadcast %cst_63 : f32 to vector<16x256xf32>
    %180 = arith.mulf %176, %179 : vector<16x256xf32>
    %cst_64 = arith.constant -4.000000e+00 : f32
    %cst_65 = arith.constant 4.000000e+00 : f32
    %181 = vector.broadcast %cst_64 : f32 to vector<16x256xf32>
    %182 = arith.maximumf %181, %180 : vector<16x256xf32>
    %183 = vector.broadcast %cst_65 : f32 to vector<16x256xf32>
    %184 = arith.minimumf %183, %182 : vector<16x256xf32>
    %185 = arith.mulf %184, %184 : vector<16x256xf32>
    %cst_66 = arith.constant -2.72614237E-10 : f32
    %186 = vector.broadcast %cst_66 : f32 to vector<16x256xf32>
    %187 = arith.mulf %186, %185 : vector<16x256xf32>
    %cst_67 = arith.constant 2.77068146E-8 : f32
    %188 = vector.broadcast %cst_67 : f32 to vector<16x256xf32>
    %189 = arith.addf %187, %188 : vector<16x256xf32>
    %190 = arith.mulf %189, %185 : vector<16x256xf32>
    %cst_68 = arith.constant -2.10102394E-6 : f32
    %191 = vector.broadcast %cst_68 : f32 to vector<16x256xf32>
    %192 = arith.addf %190, %191 : vector<16x256xf32>
    %193 = arith.mulf %192, %185 : vector<16x256xf32>
    %cst_69 = arith.constant -5.69250624E-5 : f32
    %194 = vector.broadcast %cst_69 : f32 to vector<16x256xf32>
    %195 = arith.addf %193, %194 : vector<16x256xf32>
    %196 = arith.mulf %195, %185 : vector<16x256xf32>
    %cst_70 = arith.constant -7.34990637E-4 : f32
    %197 = vector.broadcast %cst_70 : f32 to vector<16x256xf32>
    %198 = arith.addf %196, %197 : vector<16x256xf32>
    %199 = arith.mulf %198, %185 : vector<16x256xf32>
    %cst_71 = arith.constant -2.954600e-03 : f32
    %200 = vector.broadcast %cst_71 : f32 to vector<16x256xf32>
    %201 = arith.addf %199, %200 : vector<16x256xf32>
    %202 = arith.mulf %201, %185 : vector<16x256xf32>
    %cst_72 = arith.constant -0.0160960332 : f32
    %203 = vector.broadcast %cst_72 : f32 to vector<16x256xf32>
    %204 = arith.addf %202, %203 : vector<16x256xf32>
    %cst_73 = arith.constant -1.45660715E-5 : f32
    %205 = vector.broadcast %cst_73 : f32 to vector<16x256xf32>
    %206 = arith.mulf %205, %185 : vector<16x256xf32>
    %cst_74 = arith.constant -2.13374049E-4 : f32
    %207 = vector.broadcast %cst_74 : f32 to vector<16x256xf32>
    %208 = arith.addf %206, %207 : vector<16x256xf32>
    %209 = arith.mulf %208, %185 : vector<16x256xf32>
    %cst_75 = arith.constant -0.00168282702 : f32
    %210 = vector.broadcast %cst_75 : f32 to vector<16x256xf32>
    %211 = arith.addf %209, %210 : vector<16x256xf32>
    %212 = arith.mulf %211, %185 : vector<16x256xf32>
    %cst_76 = arith.constant -0.00737332925 : f32
    %213 = vector.broadcast %cst_76 : f32 to vector<16x256xf32>
    %214 = arith.addf %212, %213 : vector<16x256xf32>
    %215 = arith.mulf %214, %185 : vector<16x256xf32>
    %cst_77 = arith.constant -0.0142647391 : f32
    %216 = vector.broadcast %cst_77 : f32 to vector<16x256xf32>
    %217 = arith.addf %215, %216 : vector<16x256xf32>
    %218 = arith.mulf %184, %204 : vector<16x256xf32>
    %219 = tpu.reciprocal %217 {approx = true} : vector<16x256xf32> -> vector<16x256xf32>
    %220 = arith.mulf %218, %219 : vector<16x256xf32>
    %cst_78 = arith.constant 1.000000e+00 : f32
    %221 = vector.broadcast %cst_78 : f32 to vector<16x256xf32>
    %222 = arith.addf %221, %220 : vector<16x256xf32>
    %223 = arith.mulf %178, %222 : vector<16x256xf32>
    %cst_79 = arith.constant dense<0.000000e+00> : vector<16x64xf32>
    %224 = tpu.matmul %223, %35, %cst_79 {dimension_numbers = #tpu.dot_dimension_numbers<[1], [0], [0], [1], [0, 0, 1, 1], [], []>} : vector<16x256xf32>, vector<256x64xf32>, vector<16x64xf32> -> vector<16x64xf32>
    %225 = arith.addf %153, %224 : vector<16x64xf32>
    %226 = vector.broadcast %45 : vector<1x64xf32> to vector<16x64xf32>
    %227 = arith.addf %225, %226 : vector<16x64xf32>
    %c1 = arith.constant 1 : index
    %c0_80 = arith.constant 0 : index
    %c0_81 = arith.constant 0 : index
    %c0_82 = arith.constant 0 : index
    %228 = vector.load %arg4[%c1, %c0_80, %c0_81, %c0_82] : memref<2x4x16x16xf32, #tpu.memory_space<vmem>>, vector<1x4x16x16xf32>
    %229 = vector.shape_cast %228 : vector<1x4x16x16xf32> to vector<4x16x16xf32>
    %c1_83 = arith.constant 1 : index
    %c0_84 = arith.constant 0 : index
    %c0_85 = arith.constant 0 : index
    %230 = vector.load %arg5[%c1_83, %c0_84, %c0_85] : memref<2x64x192xf32, #tpu.memory_space<vmem>>, vector<1x64x192xf32>
    %231 = vector.shape_cast %230 : vector<1x64x192xf32> to vector<64x192xf32>
    %c1_86 = arith.constant 1 : index
    %c0_87 = arith.constant 0 : index
    %c0_88 = arith.constant 0 : index
    %232 = vector.load %arg6[%c1_86, %c0_87, %c0_88] : memref<2x64x256xf32, #tpu.memory_space<vmem>>, vector<1x64x256xf32>
    %233 = vector.shape_cast %232 : vector<1x64x256xf32> to vector<64x256xf32>
    %c1_89 = arith.constant 1 : index
    %c0_90 = arith.constant 0 : index
    %c0_91 = arith.constant 0 : index
    %234 = vector.load %arg7[%c1_89, %c0_90, %c0_91] : memref<2x64x64xf32, #tpu.memory_space<vmem>>, vector<1x64x64xf32>
    %235 = vector.shape_cast %234 : vector<1x64x64xf32> to vector<64x64xf32>
    %c1_92 = arith.constant 1 : index
    %c0_93 = arith.constant 0 : index
    %c0_94 = arith.constant 0 : index
    %236 = vector.load %arg8[%c1_92, %c0_93, %c0_94] : memref<2x256x64xf32, #tpu.memory_space<vmem>>, vector<1x256x64xf32>
    %237 = vector.shape_cast %236 : vector<1x256x64xf32> to vector<256x64xf32>
    %c1_95 = arith.constant 1 : index
    %c0_96 = arith.constant 0 : index
    %c0_97 = arith.constant 0 : index
    %238 = vector.load %arg9[%c1_95, %c0_96, %c0_97] : memref<2x8x256xf32, #tpu.memory_space<vmem>>, vector<1x8x256xf32>
    %239 = vector.shape_cast %238 : vector<1x8x256xf32> to vector<8x256xf32>
    %240 = vector.extract_strided_slice %239 {offsets = [0, 0], sizes = [1, 64], strides = [1, 1]} : vector<8x256xf32> to vector<1x64xf32>
    %241 = vector.extract_strided_slice %239 {offsets = [1, 0], sizes = [1, 64], strides = [1, 1]} : vector<8x256xf32> to vector<1x64xf32>
    %242 = vector.extract_strided_slice %239 {offsets = [2, 0], sizes = [1, 64], strides = [1, 1]} : vector<8x256xf32> to vector<1x64xf32>
    %243 = vector.extract_strided_slice %239 {offsets = [3, 0], sizes = [1, 64], strides = [1, 1]} : vector<8x256xf32> to vector<1x64xf32>
    %244 = vector.extract_strided_slice %239 {offsets = [4, 0], sizes = [1, 192], strides = [1, 1]} : vector<8x256xf32> to vector<1x192xf32>
    %245 = vector.extract_strided_slice %239 {offsets = [5, 0], sizes = [1, 64], strides = [1, 1]} : vector<8x256xf32> to vector<1x64xf32>
    %246 = vector.extract_strided_slice %239 {offsets = [6, 0], sizes = [1, 256], strides = [1, 1]} : vector<8x256xf32> to vector<1x256xf32>
    %247 = vector.extract_strided_slice %239 {offsets = [7, 0], sizes = [1, 64], strides = [1, 1]} : vector<8x256xf32> to vector<1x64xf32>
    %cst_98 = arith.constant dense<0.000000e+00> : vector<16xf32>
    %248 = vector.multi_reduction <add>, %227, %cst_98 [1] : vector<16x64xf32> to vector<16xf32>
    %249 = vector.shape_cast %248 : vector<16xf32> to vector<16x1xf32>
    %cst_99 = arith.constant 6.400000e+01 : f32
    %250 = vector.broadcast %cst_99 : f32 to vector<16x1xf32>
    %251 = arith.divf %249, %250 : vector<16x1xf32>
    %252 = vector.broadcast %251 : vector<16x1xf32> to vector<16x64xf32>
    %253 = arith.subf %227, %252 : vector<16x64xf32>
    %254 = arith.mulf %253, %253 : vector<16x64xf32>
    %cst_100 = arith.constant dense<0.000000e+00> : vector<16xf32>
    %255 = vector.multi_reduction <add>, %254, %cst_100 [1] : vector<16x64xf32> to vector<16xf32>
    %256 = vector.shape_cast %255 : vector<16xf32> to vector<16x1xf32>
    %cst_101 = arith.constant 6.400000e+01 : f32
    %257 = vector.broadcast %cst_101 : f32 to vector<16x1xf32>
    %258 = arith.divf %256, %257 : vector<16x1xf32>
    %cst_102 = arith.constant 9.99999974E-6 : f32
    %259 = vector.broadcast %cst_102 : f32 to vector<16x1xf32>
    %260 = arith.addf %258, %259 : vector<16x1xf32>
    %261 = math.rsqrt %260 : vector<16x1xf32>
    %262 = vector.broadcast %261 : vector<16x1xf32> to vector<16x64xf32>
    %263 = arith.mulf %253, %262 : vector<16x64xf32>
    %264 = vector.broadcast %240 : vector<1x64xf32> to vector<16x64xf32>
    %265 = arith.mulf %263, %264 : vector<16x64xf32>
    %266 = vector.broadcast %241 : vector<1x64xf32> to vector<16x64xf32>
    %267 = arith.addf %265, %266 : vector<16x64xf32>
    %cst_103 = arith.constant dense<0.000000e+00> : vector<16x192xf32>
    %268 = tpu.matmul %267, %231, %cst_103 {dimension_numbers = #tpu.dot_dimension_numbers<[1], [0], [0], [1], [0, 0, 1, 1], [], []>} : vector<16x64xf32>, vector<64x192xf32>, vector<16x192xf32> -> vector<16x192xf32>
    %269 = vector.broadcast %244 : vector<1x192xf32> to vector<16x192xf32>
    %270 = arith.addf %268, %269 : vector<16x192xf32>
    %271 = vector.extract_strided_slice %270 {offsets = [0, 0], sizes = [16, 16], strides = [1, 1]} : vector<16x192xf32> to vector<16x16xf32>
    %cst_104 = arith.constant 2.500000e-01 : f32
    %272 = vector.broadcast %cst_104 : f32 to vector<16x16xf32>
    %273 = arith.mulf %271, %272 : vector<16x16xf32>
    %274 = vector.extract_strided_slice %270 {offsets = [0, 64], sizes = [16, 16], strides = [1, 1]} : vector<16x192xf32> to vector<16x16xf32>
    %275 = vector.extract_strided_slice %270 {offsets = [0, 128], sizes = [16, 16], strides = [1, 1]} : vector<16x192xf32> to vector<16x16xf32>
    "tpu.trace_start"() <{level = 10 : i32, message = "td,sd->ts"}> : () -> ()
    %cst_105 = arith.constant dense<0.000000e+00> : vector<16x16xf32>
    %276 = tpu.matmul %273, %274, %cst_105 {dimension_numbers = #tpu.dot_dimension_numbers<[1], [1], [0], [0], [0, 0, 1, 0], [], []>} : vector<16x16xf32>, vector<16x16xf32>, vector<16x16xf32> -> vector<16x16xf32>
    "tpu.trace_stop"() : () -> ()
    %277 = vector.extract_strided_slice %229 {offsets = [0, 0, 0], sizes = [1, 16, 16], strides = [1, 1, 1]} : vector<4x16x16xf32> to vector<1x16x16xf32>
    %278 = vector.shape_cast %277 : vector<1x16x16xf32> to vector<16x16xf32>
    %279 = arith.addf %276, %278 : vector<16x16xf32>
    %cst_106 = arith.constant dense<0xFF800000> : vector<16xf32>
    %280 = vector.multi_reduction <maximumf>, %279, %cst_106 [1] : vector<16x16xf32> to vector<16xf32>
    %281 = vector.shape_cast %280 : vector<16xf32> to vector<16x1xf32>
    %282 = vector.broadcast %281 : vector<16x1xf32> to vector<16x16xf32>
    %283 = arith.subf %279, %282 : vector<16x16xf32>
    %284 = math.exp %283 : vector<16x16xf32>
    %cst_107 = arith.constant dense<0.000000e+00> : vector<16xf32>
    %285 = vector.multi_reduction <add>, %284, %cst_107 [1] : vector<16x16xf32> to vector<16xf32>
    %286 = vector.shape_cast %285 : vector<16xf32> to vector<16x1xf32>
    %287 = tpu.reciprocal %286 {approx = true} : vector<16x1xf32> -> vector<16x1xf32>
    %288 = vector.broadcast %287 : vector<16x1xf32> to vector<16x16xf32>
    %289 = arith.mulf %284, %288 : vector<16x16xf32>
    %cst_108 = arith.constant dense<0.000000e+00> : vector<16x16xf32>
    %290 = tpu.matmul %289, %275, %cst_108 {dimension_numbers = #tpu.dot_dimension_numbers<[1], [0], [0], [1], [0, 0, 1, 1], [], []>} : vector<16x16xf32>, vector<16x16xf32>, vector<16x16xf32> -> vector<16x16xf32>
    %291 = vector.extract_strided_slice %270 {offsets = [0, 16], sizes = [16, 16], strides = [1, 1]} : vector<16x192xf32> to vector<16x16xf32>
    %cst_109 = arith.constant 2.500000e-01 : f32
    %292 = vector.broadcast %cst_109 : f32 to vector<16x16xf32>
    %293 = arith.mulf %291, %292 : vector<16x16xf32>
    %294 = vector.extract_strided_slice %270 {offsets = [0, 80], sizes = [16, 16], strides = [1, 1]} : vector<16x192xf32> to vector<16x16xf32>
    %295 = vector.extract_strided_slice %270 {offsets = [0, 144], sizes = [16, 16], strides = [1, 1]} : vector<16x192xf32> to vector<16x16xf32>
    "tpu.trace_start"() <{level = 10 : i32, message = "td,sd->ts"}> : () -> ()
    %cst_110 = arith.constant dense<0.000000e+00> : vector<16x16xf32>
    %296 = tpu.matmul %293, %294, %cst_110 {dimension_numbers = #tpu.dot_dimension_numbers<[1], [1], [0], [0], [0, 0, 1, 0], [], []>} : vector<16x16xf32>, vector<16x16xf32>, vector<16x16xf32> -> vector<16x16xf32>
    "tpu.trace_stop"() : () -> ()
    %297 = vector.extract_strided_slice %229 {offsets = [1, 0, 0], sizes = [1, 16, 16], strides = [1, 1, 1]} : vector<4x16x16xf32> to vector<1x16x16xf32>
    %298 = vector.shape_cast %297 : vector<1x16x16xf32> to vector<16x16xf32>
    %299 = arith.addf %296, %298 : vector<16x16xf32>
    %cst_111 = arith.constant dense<0xFF800000> : vector<16xf32>
    %300 = vector.multi_reduction <maximumf>, %299, %cst_111 [1] : vector<16x16xf32> to vector<16xf32>
    %301 = vector.shape_cast %300 : vector<16xf32> to vector<16x1xf32>
    %302 = vector.broadcast %301 : vector<16x1xf32> to vector<16x16xf32>
    %303 = arith.subf %299, %302 : vector<16x16xf32>
    %304 = math.exp %303 : vector<16x16xf32>
    %cst_112 = arith.constant dense<0.000000e+00> : vector<16xf32>
    %305 = vector.multi_reduction <add>, %304, %cst_112 [1] : vector<16x16xf32> to vector<16xf32>
    %306 = vector.shape_cast %305 : vector<16xf32> to vector<16x1xf32>
    %307 = tpu.reciprocal %306 {approx = true} : vector<16x1xf32> -> vector<16x1xf32>
    %308 = vector.broadcast %307 : vector<16x1xf32> to vector<16x16xf32>
    %309 = arith.mulf %304, %308 : vector<16x16xf32>
    %cst_113 = arith.constant dense<0.000000e+00> : vector<16x16xf32>
    %310 = tpu.matmul %309, %295, %cst_113 {dimension_numbers = #tpu.dot_dimension_numbers<[1], [0], [0], [1], [0, 0, 1, 1], [], []>} : vector<16x16xf32>, vector<16x16xf32>, vector<16x16xf32> -> vector<16x16xf32>
    %311 = vector.extract_strided_slice %270 {offsets = [0, 32], sizes = [16, 16], strides = [1, 1]} : vector<16x192xf32> to vector<16x16xf32>
    %cst_114 = arith.constant 2.500000e-01 : f32
    %312 = vector.broadcast %cst_114 : f32 to vector<16x16xf32>
    %313 = arith.mulf %311, %312 : vector<16x16xf32>
    %314 = vector.extract_strided_slice %270 {offsets = [0, 96], sizes = [16, 16], strides = [1, 1]} : vector<16x192xf32> to vector<16x16xf32>
    %315 = vector.extract_strided_slice %270 {offsets = [0, 160], sizes = [16, 16], strides = [1, 1]} : vector<16x192xf32> to vector<16x16xf32>
    "tpu.trace_start"() <{level = 10 : i32, message = "td,sd->ts"}> : () -> ()
    %cst_115 = arith.constant dense<0.000000e+00> : vector<16x16xf32>
    %316 = tpu.matmul %313, %314, %cst_115 {dimension_numbers = #tpu.dot_dimension_numbers<[1], [1], [0], [0], [0, 0, 1, 0], [], []>} : vector<16x16xf32>, vector<16x16xf32>, vector<16x16xf32> -> vector<16x16xf32>
    "tpu.trace_stop"() : () -> ()
    %317 = vector.extract_strided_slice %229 {offsets = [2, 0, 0], sizes = [1, 16, 16], strides = [1, 1, 1]} : vector<4x16x16xf32> to vector<1x16x16xf32>
    %318 = vector.shape_cast %317 : vector<1x16x16xf32> to vector<16x16xf32>
    %319 = arith.addf %316, %318 : vector<16x16xf32>
    %cst_116 = arith.constant dense<0xFF800000> : vector<16xf32>
    %320 = vector.multi_reduction <maximumf>, %319, %cst_116 [1] : vector<16x16xf32> to vector<16xf32>
    %321 = vector.shape_cast %320 : vector<16xf32> to vector<16x1xf32>
    %322 = vector.broadcast %321 : vector<16x1xf32> to vector<16x16xf32>
    %323 = arith.subf %319, %322 : vector<16x16xf32>
    %324 = math.exp %323 : vector<16x16xf32>
    %cst_117 = arith.constant dense<0.000000e+00> : vector<16xf32>
    %325 = vector.multi_reduction <add>, %324, %cst_117 [1] : vector<16x16xf32> to vector<16xf32>
    %326 = vector.shape_cast %325 : vector<16xf32> to vector<16x1xf32>
    %327 = tpu.reciprocal %326 {approx = true} : vector<16x1xf32> -> vector<16x1xf32>
    %328 = vector.broadcast %327 : vector<16x1xf32> to vector<16x16xf32>
    %329 = arith.mulf %324, %328 : vector<16x16xf32>
    %cst_118 = arith.constant dense<0.000000e+00> : vector<16x16xf32>
    %330 = tpu.matmul %329, %315, %cst_118 {dimension_numbers = #tpu.dot_dimension_numbers<[1], [0], [0], [1], [0, 0, 1, 1], [], []>} : vector<16x16xf32>, vector<16x16xf32>, vector<16x16xf32> -> vector<16x16xf32>
    %331 = vector.extract_strided_slice %270 {offsets = [0, 48], sizes = [16, 16], strides = [1, 1]} : vector<16x192xf32> to vector<16x16xf32>
    %cst_119 = arith.constant 2.500000e-01 : f32
    %332 = vector.broadcast %cst_119 : f32 to vector<16x16xf32>
    %333 = arith.mulf %331, %332 : vector<16x16xf32>
    %334 = vector.extract_strided_slice %270 {offsets = [0, 112], sizes = [16, 16], strides = [1, 1]} : vector<16x192xf32> to vector<16x16xf32>
    %335 = vector.extract_strided_slice %270 {offsets = [0, 176], sizes = [16, 16], strides = [1, 1]} : vector<16x192xf32> to vector<16x16xf32>
    "tpu.trace_start"() <{level = 10 : i32, message = "td,sd->ts"}> : () -> ()
    %cst_120 = arith.constant dense<0.000000e+00> : vector<16x16xf32>
    %336 = tpu.matmul %333, %334, %cst_120 {dimension_numbers = #tpu.dot_dimension_numbers<[1], [1], [0], [0], [0, 0, 1, 0], [], []>} : vector<16x16xf32>, vector<16x16xf32>, vector<16x16xf32> -> vector<16x16xf32>
    "tpu.trace_stop"() : () -> ()
    %337 = vector.extract_strided_slice %229 {offsets = [3, 0, 0], sizes = [1, 16, 16], strides = [1, 1, 1]} : vector<4x16x16xf32> to vector<1x16x16xf32>
    %338 = vector.shape_cast %337 : vector<1x16x16xf32> to vector<16x16xf32>
    %339 = arith.addf %336, %338 : vector<16x16xf32>
    %cst_121 = arith.constant dense<0xFF800000> : vector<16xf32>
    %340 = vector.multi_reduction <maximumf>, %339, %cst_121 [1] : vector<16x16xf32> to vector<16xf32>
    %341 = vector.shape_cast %340 : vector<16xf32> to vector<16x1xf32>
    %342 = vector.broadcast %341 : vector<16x1xf32> to vector<16x16xf32>
    %343 = arith.subf %339, %342 : vector<16x16xf32>
    %344 = math.exp %343 : vector<16x16xf32>
    %cst_122 = arith.constant dense<0.000000e+00> : vector<16xf32>
    %345 = vector.multi_reduction <add>, %344, %cst_122 [1] : vector<16x16xf32> to vector<16xf32>
    %346 = vector.shape_cast %345 : vector<16xf32> to vector<16x1xf32>
    %347 = tpu.reciprocal %346 {approx = true} : vector<16x1xf32> -> vector<16x1xf32>
    %348 = vector.broadcast %347 : vector<16x1xf32> to vector<16x16xf32>
    %349 = arith.mulf %344, %348 : vector<16x16xf32>
    %cst_123 = arith.constant dense<0.000000e+00> : vector<16x16xf32>
    %350 = tpu.matmul %349, %335, %cst_123 {dimension_numbers = #tpu.dot_dimension_numbers<[1], [0], [0], [1], [0, 0, 1, 1], [], []>} : vector<16x16xf32>, vector<16x16xf32>, vector<16x16xf32> -> vector<16x16xf32>
    %351 = tpu.concatenate %290, %310, %330, %350 in 1 : vector<16x16xf32>, vector<16x16xf32>, vector<16x16xf32>, vector<16x16xf32> -> vector<16x64xf32>
    %cst_124 = arith.constant dense<0.000000e+00> : vector<16x64xf32>
    %352 = tpu.matmul %351, %235, %cst_124 {dimension_numbers = #tpu.dot_dimension_numbers<[1], [0], [0], [1], [0, 0, 1, 1], [], []>} : vector<16x64xf32>, vector<64x64xf32>, vector<16x64xf32> -> vector<16x64xf32>
    %353 = arith.addf %227, %352 : vector<16x64xf32>
    %354 = vector.broadcast %245 : vector<1x64xf32> to vector<16x64xf32>
    %355 = arith.addf %353, %354 : vector<16x64xf32>
    %cst_125 = arith.constant dense<0.000000e+00> : vector<16xf32>
    %356 = vector.multi_reduction <add>, %355, %cst_125 [1] : vector<16x64xf32> to vector<16xf32>
    %357 = vector.shape_cast %356 : vector<16xf32> to vector<16x1xf32>
    %cst_126 = arith.constant 6.400000e+01 : f32
    %358 = vector.broadcast %cst_126 : f32 to vector<16x1xf32>
    %359 = arith.divf %357, %358 : vector<16x1xf32>
    %360 = vector.broadcast %359 : vector<16x1xf32> to vector<16x64xf32>
    %361 = arith.subf %355, %360 : vector<16x64xf32>
    %362 = arith.mulf %361, %361 : vector<16x64xf32>
    %cst_127 = arith.constant dense<0.000000e+00> : vector<16xf32>
    %363 = vector.multi_reduction <add>, %362, %cst_127 [1] : vector<16x64xf32> to vector<16xf32>
    %364 = vector.shape_cast %363 : vector<16xf32> to vector<16x1xf32>
    %cst_128 = arith.constant 6.400000e+01 : f32
    %365 = vector.broadcast %cst_128 : f32 to vector<16x1xf32>
    %366 = arith.divf %364, %365 : vector<16x1xf32>
    %cst_129 = arith.constant 9.99999974E-6 : f32
    %367 = vector.broadcast %cst_129 : f32 to vector<16x1xf32>
    %368 = arith.addf %366, %367 : vector<16x1xf32>
    %369 = math.rsqrt %368 : vector<16x1xf32>
    %370 = vector.broadcast %369 : vector<16x1xf32> to vector<16x64xf32>
    %371 = arith.mulf %361, %370 : vector<16x64xf32>
    %372 = vector.broadcast %242 : vector<1x64xf32> to vector<16x64xf32>
    %373 = arith.mulf %371, %372 : vector<16x64xf32>
    %374 = vector.broadcast %243 : vector<1x64xf32> to vector<16x64xf32>
    %375 = arith.addf %373, %374 : vector<16x64xf32>
    %cst_130 = arith.constant dense<0.000000e+00> : vector<16x256xf32>
    %376 = tpu.matmul %375, %233, %cst_130 {dimension_numbers = #tpu.dot_dimension_numbers<[1], [0], [0], [1], [0, 0, 1, 1], [], []>} : vector<16x64xf32>, vector<64x256xf32>, vector<16x256xf32> -> vector<16x256xf32>
    %377 = vector.broadcast %246 : vector<1x256xf32> to vector<16x256xf32>
    %378 = arith.addf %376, %377 : vector<16x256xf32>
    %cst_131 = arith.constant 5.000000e-01 : f32
    %379 = vector.broadcast %cst_131 : f32 to vector<16x256xf32>
    %380 = arith.mulf %379, %378 : vector<16x256xf32>
    %cst_132 = arith.constant 0.707106769 : f32
    %381 = vector.broadcast %cst_132 : f32 to vector<16x256xf32>
    %382 = arith.mulf %378, %381 : vector<16x256xf32>
    %cst_133 = arith.constant -4.000000e+00 : f32
    %cst_134 = arith.constant 4.000000e+00 : f32
    %383 = vector.broadcast %cst_133 : f32 to vector<16x256xf32>
    %384 = arith.maximumf %383, %382 : vector<16x256xf32>
    %385 = vector.broadcast %cst_134 : f32 to vector<16x256xf32>
    %386 = arith.minimumf %385, %384 : vector<16x256xf32>
    %387 = arith.mulf %386, %386 : vector<16x256xf32>
    %cst_135 = arith.constant -2.72614237E-10 : f32
    %388 = vector.broadcast %cst_135 : f32 to vector<16x256xf32>
    %389 = arith.mulf %388, %387 : vector<16x256xf32>
    %cst_136 = arith.constant 2.77068146E-8 : f32
    %390 = vector.broadcast %cst_136 : f32 to vector<16x256xf32>
    %391 = arith.addf %389, %390 : vector<16x256xf32>
    %392 = arith.mulf %391, %387 : vector<16x256xf32>
    %cst_137 = arith.constant -2.10102394E-6 : f32
    %393 = vector.broadcast %cst_137 : f32 to vector<16x256xf32>
    %394 = arith.addf %392, %393 : vector<16x256xf32>
    %395 = arith.mulf %394, %387 : vector<16x256xf32>
    %cst_138 = arith.constant -5.69250624E-5 : f32
    %396 = vector.broadcast %cst_138 : f32 to vector<16x256xf32>
    %397 = arith.addf %395, %396 : vector<16x256xf32>
    %398 = arith.mulf %397, %387 : vector<16x256xf32>
    %cst_139 = arith.constant -7.34990637E-4 : f32
    %399 = vector.broadcast %cst_139 : f32 to vector<16x256xf32>
    %400 = arith.addf %398, %399 : vector<16x256xf32>
    %401 = arith.mulf %400, %387 : vector<16x256xf32>
    %cst_140 = arith.constant -2.954600e-03 : f32
    %402 = vector.broadcast %cst_140 : f32 to vector<16x256xf32>
    %403 = arith.addf %401, %402 : vector<16x256xf32>
    %404 = arith.mulf %403, %387 : vector<16x256xf32>
    %cst_141 = arith.constant -0.0160960332 : f32
    %405 = vector.broadcast %cst_141 : f32 to vector<16x256xf32>
    %406 = arith.addf %404, %405 : vector<16x256xf32>
    %cst_142 = arith.constant -1.45660715E-5 : f32
    %407 = vector.broadcast %cst_142 : f32 to vector<16x256xf32>
    %408 = arith.mulf %407, %387 : vector<16x256xf32>
    %cst_143 = arith.constant -2.13374049E-4 : f32
    %409 = vector.broadcast %cst_143 : f32 to vector<16x256xf32>
    %410 = arith.addf %408, %409 : vector<16x256xf32>
    %411 = arith.mulf %410, %387 : vector<16x256xf32>
    %cst_144 = arith.constant -0.00168282702 : f32
    %412 = vector.broadcast %cst_144 : f32 to vector<16x256xf32>
    %413 = arith.addf %411, %412 : vector<16x256xf32>
    %414 = arith.mulf %413, %387 : vector<16x256xf32>
    %cst_145 = arith.constant -0.00737332925 : f32
    %415 = vector.broadcast %cst_145 : f32 to vector<16x256xf32>
    %416 = arith.addf %414, %415 : vector<16x256xf32>
    %417 = arith.mulf %416, %387 : vector<16x256xf32>
    %cst_146 = arith.constant -0.0142647391 : f32
    %418 = vector.broadcast %cst_146 : f32 to vector<16x256xf32>
    %419 = arith.addf %417, %418 : vector<16x256xf32>
    %420 = arith.mulf %386, %406 : vector<16x256xf32>
    %421 = tpu.reciprocal %419 {approx = true} : vector<16x256xf32> -> vector<16x256xf32>
    %422 = arith.mulf %420, %421 : vector<16x256xf32>
    %cst_147 = arith.constant 1.000000e+00 : f32
    %423 = vector.broadcast %cst_147 : f32 to vector<16x256xf32>
    %424 = arith.addf %423, %422 : vector<16x256xf32>
    %425 = arith.mulf %380, %424 : vector<16x256xf32>
    %cst_148 = arith.constant dense<0.000000e+00> : vector<16x64xf32>
    %426 = tpu.matmul %425, %237, %cst_148 {dimension_numbers = #tpu.dot_dimension_numbers<[1], [0], [0], [1], [0, 0, 1, 1], [], []>} : vector<16x256xf32>, vector<256x64xf32>, vector<16x64xf32> -> vector<16x64xf32>
    %427 = arith.addf %355, %426 : vector<16x64xf32>
    %428 = vector.broadcast %247 : vector<1x64xf32> to vector<16x64xf32>
    %429 = arith.addf %427, %428 : vector<16x64xf32>
    %c0_149 = arith.constant 0 : index
    %c0_150 = arith.constant 0 : index
    %430 = vector.load %arg11[%c0_149, %c0_150] : memref<3x64xf32, #tpu.memory_space<vmem>>, vector<3x64xf32>
    %431 = vector.extract_strided_slice %430 {offsets = [0, 0], sizes = [1, 64], strides = [1, 1]} : vector<3x64xf32> to vector<1x64xf32>
    %432 = vector.extract_strided_slice %430 {offsets = [1, 0], sizes = [1, 64], strides = [1, 1]} : vector<3x64xf32> to vector<1x64xf32>
    %cst_151 = arith.constant dense<0.000000e+00> : vector<16xf32>
    %433 = vector.multi_reduction <add>, %429, %cst_151 [1] : vector<16x64xf32> to vector<16xf32>
    %434 = vector.shape_cast %433 : vector<16xf32> to vector<16x1xf32>
    %cst_152 = arith.constant 6.400000e+01 : f32
    %435 = vector.broadcast %cst_152 : f32 to vector<16x1xf32>
    %436 = arith.divf %434, %435 : vector<16x1xf32>
    %437 = vector.broadcast %436 : vector<16x1xf32> to vector<16x64xf32>
    %438 = arith.subf %429, %437 : vector<16x64xf32>
    %439 = arith.mulf %438, %438 : vector<16x64xf32>
    %cst_153 = arith.constant dense<0.000000e+00> : vector<16xf32>
    %440 = vector.multi_reduction <add>, %439, %cst_153 [1] : vector<16x64xf32> to vector<16xf32>
    %441 = vector.shape_cast %440 : vector<16xf32> to vector<16x1xf32>
    %cst_154 = arith.constant 6.400000e+01 : f32
    %442 = vector.broadcast %cst_154 : f32 to vector<16x1xf32>
    %443 = arith.divf %441, %442 : vector<16x1xf32>
    %cst_155 = arith.constant 9.99999974E-6 : f32
    %444 = vector.broadcast %cst_155 : f32 to vector<16x1xf32>
    %445 = arith.addf %443, %444 : vector<16x1xf32>
    %446 = math.rsqrt %445 : vector<16x1xf32>
    %447 = vector.broadcast %446 : vector<16x1xf32> to vector<16x64xf32>
    %448 = arith.mulf %438, %447 : vector<16x64xf32>
    %449 = vector.broadcast %431 : vector<1x64xf32> to vector<16x64xf32>
    %450 = arith.mulf %448, %449 : vector<16x64xf32>
    %451 = vector.broadcast %432 : vector<1x64xf32> to vector<16x64xf32>
    %452 = arith.addf %450, %451 : vector<16x64xf32>
    %cst_156 = arith.constant dense<0.000000e+00> : vector<64xf32>
    %453 = vector.multi_reduction <add>, %452, %cst_156 [0] : vector<16x64xf32> to vector<64xf32>
    %454 = vector.shape_cast %453 : vector<64xf32> to vector<1x64xf32>
    %cst_157 = arith.constant 1.600000e+01 : f32
    %455 = vector.broadcast %cst_157 : f32 to vector<1x64xf32>
    %456 = arith.divf %454, %455 : vector<1x64xf32>
    %c0_158 = arith.constant 0 : index
    %c0_159 = arith.constant 0 : index
    %457 = vector.load %arg10[%c0_158, %c0_159] : memref<64x10xf32, #tpu.memory_space<vmem>>, vector<64x10xf32>
    %cst_160 = arith.constant dense<0.000000e+00> : vector<1x10xf32>
    %458 = tpu.matmul %456, %457, %cst_160 {dimension_numbers = #tpu.dot_dimension_numbers<[1], [0], [0], [1], [0, 0, 1, 1], [], []>} : vector<1x64xf32>, vector<64x10xf32>, vector<1x10xf32> -> vector<1x10xf32>
    %459 = vector.extract_strided_slice %430 {offsets = [2, 0], sizes = [1, 10], strides = [1, 1]} : vector<3x64xf32> to vector<1x10xf32>
    %460 = arith.addf %458, %459 : vector<1x10xf32>
    %c0_161 = arith.constant 0 : index
    %c0_162 = arith.constant 0 : index
    %c0_163 = arith.constant 0 : index
    %461 = vector.load %arg12[%c0_161, %c0_162, %c0_163] : memref<1x1x10xf32, #tpu.memory_space<vmem>>, vector<1x1x10xf32>
    %462 = vector.shape_cast %461 : vector<1x1x10xf32> to vector<1x10xf32>
    %463 = vector.shape_cast %460 : vector<1x10xf32> to vector<1x1x10xf32>
    tpu.vector_store %arg12[%c0_161, %c0_162, %c0_163], %463 {strides = array<i32>} : memref<1x1x10xf32, #tpu.memory_space<vmem>>, vector<1x1x10xf32>,
    return
  }
  func.func @transform_0(%arg0: i32) -> (i32, i32) {
    %c0_i32 = arith.constant 0 : i32
    %c0_i32_0 = arith.constant 0 : i32
    return %arg0, %c0_i32 : i32, i32
  }
  func.func @transform_1(%arg0: i32) -> (i32, i32) {
    %c0_i32 = arith.constant 0 : i32
    %c0_i32_0 = arith.constant 0 : i32
    %c0_i32_1 = arith.constant 0 : i32
    return %c0_i32, %c0_i32_0 : i32, i32
  }
  func.func @transform_2(%arg0: i32) -> (i32, i32) {
    %c0_i32 = arith.constant 0 : i32
    %c0_i32_0 = arith.constant 0 : i32
    %c0_i32_1 = arith.constant 0 : i32
    return %c0_i32, %c0_i32_0 : i32, i32
  }
  func.func @transform_3(%arg0: i32) -> (i32, i32, i32, i32) {
    %c0_i32 = arith.constant 0 : i32
    %c0_i32_0 = arith.constant 0 : i32
    %c0_i32_1 = arith.constant 0 : i32
    %c0_i32_2 = arith.constant 0 : i32
    %c0_i32_3 = arith.constant 0 : i32
    return %c0_i32, %c0_i32_0, %c0_i32_1, %c0_i32_2 : i32, i32, i32, i32
  }
  func.func @transform_4(%arg0: i32) -> (i32, i32, i32) {
    %c0_i32 = arith.constant 0 : i32
    %c0_i32_0 = arith.constant 0 : i32
    %c0_i32_1 = arith.constant 0 : i32
    %c0_i32_2 = arith.constant 0 : i32
    return %c0_i32, %c0_i32_0, %c0_i32_1 : i32, i32, i32
  }
  func.func @transform_5(%arg0: i32) -> (i32, i32, i32) {
    %c0_i32 = arith.constant 0 : i32
    %c0_i32_0 = arith.constant 0 : i32
    %c0_i32_1 = arith.constant 0 : i32
    %c0_i32_2 = arith.constant 0 : i32
    return %c0_i32, %c0_i32_0, %c0_i32_1 : i32, i32, i32
  }
  func.func @transform_6(%arg0: i32) -> (i32, i32, i32) {
    %c0_i32 = arith.constant 0 : i32
    %c0_i32_0 = arith.constant 0 : i32
    %c0_i32_1 = arith.constant 0 : i32
    %c0_i32_2 = arith.constant 0 : i32
    return %c0_i32, %c0_i32_0, %c0_i32_1 : i32, i32, i32
  }
  func.func @transform_7(%arg0: i32) -> (i32, i32, i32) {
    %c0_i32 = arith.constant 0 : i32
    %c0_i32_0 = arith.constant 0 : i32
    %c0_i32_1 = arith.constant 0 : i32
    %c0_i32_2 = arith.constant 0 : i32
    return %c0_i32, %c0_i32_0, %c0_i32_1 : i32, i32, i32
  }
  func.func @transform_8(%arg0: i32) -> (i32, i32, i32) {
    %c0_i32 = arith.constant 0 : i32
    %c0_i32_0 = arith.constant 0 : i32
    %c0_i32_1 = arith.constant 0 : i32
    %c0_i32_2 = arith.constant 0 : i32
    return %c0_i32, %c0_i32_0, %c0_i32_1 : i32, i32, i32
  }
  func.func @transform_9(%arg0: i32) -> (i32, i32) {
    %c0_i32 = arith.constant 0 : i32
    %c0_i32_0 = arith.constant 0 : i32
    %c0_i32_1 = arith.constant 0 : i32
    return %c0_i32, %c0_i32_0 : i32, i32
  }
  func.func @transform_10(%arg0: i32) -> (i32, i32) {
    %c0_i32 = arith.constant 0 : i32
    %c0_i32_0 = arith.constant 0 : i32
    %c0_i32_1 = arith.constant 0 : i32
    return %c0_i32, %c0_i32_0 : i32, i32
  }
  func.func @transform_11(%arg0: i32) -> (i32, i32, i32) {
    %c0_i32 = arith.constant 0 : i32
    %c0_i32_0 = arith.constant 0 : i32
    %c0_i32_1 = arith.constant 0 : i32
    return %arg0, %c0_i32, %c0_i32_0 : i32, i32, i32
  }
}

</mosaic_0001>

<bundles_post_ra>
// kernel: swin_forward.3
= control target key start
LH: loop header
LB: loop body
LE: loop exit
PB: predicated region body
PF: predicated region fallthrough
CT: control target
= control target key end

     0   :  { %s4154_s0 = inlined_call_operand.vmem [shape: f32[32,128], index: 0, kind: input, shape index: {}]   ;;  %s4155_s1 = inlined_call_operand.vmem [shape: f32[128,64], index: 1, kind: input, shape index: {}]   ;;  %s4156_s2 = inlined_call_operand.vmem [shape: f32[2,128], index: 2, kind: input, shape index: {}]   ;;  %s4157_s3 = inlined_call_operand.vmem [shape: f32[2,4,16,16], index: 3, kind: input, shape index: {}]   ;;  %s4158_s4 = inlined_call_operand.vmem [shape: f32[2,64,192], index: 4, kind: input, shape index: {}]   ;;  %s4159_s5 = inlined_call_operand.vmem [shape: f32[2,64,256], index: 5, kind: input, shape index: {}]   ;;  %s4160_s6 = inlined_call_operand.vmem [shape: f32[2,64,64], index: 6, kind: input, shape index: {}]   ;;  %s4161_s7 = inlined_call_operand.vmem [shape: f32[2,256,64], index: 7, kind: input, shape index: {}]   ;;  %s4162_s8 = inlined_call_operand.vmem [shape: f32[2,8,256], index: 8, kind: input, shape index: {}]   ;;  %s4163_s9 = inlined_call_operand.vmem [shape: f32[64,10], index: 9, kind: input, shape index: {}]   ;;  %s4164_s10 = inlined_call_operand.vmem [shape: f32[3,64], index: 10, kind: input, shape index: {}]   ;;  %s4165_s11 = inlined_call_operand.hbm [shape: f32[2,1,10], index: 11, kind: output, shape index: {}]  }
   0x1   :  { %4180 = sst [smem:[#allocation5_spill]] %s4154_s0 }
   0x2   :  { %4181 = sst [smem:[#allocation6_spill]] %s4155_s1 }
   0x3   :  { %16 = vsyncpa [#allocation3], 0 }
   0x4   :  { %18 = vsyncpa [#allocation3 + $0x1], 0  ;;  %s2978_s17 = smov 0   ;;  %s2980_s18 = smov 0  }
   0x5   :  { %s2982_s19 = smov 0   ;;  %s2984_s20 = smov 0  }
   0x6 LB: > { %s2999_s21 = sadd.s32 4294967295, %s2906_s20   ;;  %s2484_s22 = sadd.s32 4294967294, %s2906_s20   ;;  %s2906_s20 = sphi %s2984_s20, %s4196_s20   ;;  %s2902_s19 = sphi %s2982_s19, %s4195_s19   ;;  %s2898_s18 = sphi %s2980_s18, %s4194_s18   ;;  %s2894_s17 = sphi %s2978_s17, %s4193_s17  }
   0x7   : > { %s3003_s23 = sadd.s32 1, %s2906_s20   ;;  %s267_s24 = sadd.s32 1, %s2902_s19 }
   0x8   : > { %s264_s25 = ssub.s32 %s2906_s20, %s3003_s23  ;;  %p277_p0 = scmp.ne.s32.totalorder %s2902_s19, %s2898_s18 }
   0x9   : > { %p265_p1 = scmp.eq.s32.totalorder %s264_s25, 0  ;;  %p278_p2 = scmp.eq.s32.totalorder %s2999_s21, 1 }
   0xa   : > { %p283_p3 = scmp.ne.s32.totalorder %s2898_s18, %s2894_s17  ;;  %p284_p4 = scmp.eq.s32.totalorder %s2484_s22, 1 }
   0xb   : > { %s3014_s26 = scalar_select %p265_p1, %s2902_s19, %s267_s24  }
   0xc   : > { %p3016_p5 = por %p278_p2, %p277_p0  ;;  %p3020_p6 = por %p284_p4, %p283_p3 }
   0xd   : > { %p2487_p7 = scmp.ge.s32.totalorder %s2906_s20, 1  ;;  %p341_p8 = scmp.lt.s32.totalorder %s2906_s20, 3 }
   0xf   : > { %p342_p9 = pnand %p2487_p7, %p341_p8 }
  0x10   : > { %s2488_s29 = sshll.u32 (!%p342_p9), %s2999_s21, 1  ;;  %s4184_s0 = sld [smem:[#allocation5_spill]] (!%p342_p9) }
  0x11   : > { %345 = sbr.rel (%p342_p9) target bundleno = 5015 (0x1397), region = 64  ;;  %p381_p10 = scmp.lt.s32.totalorder (!%p342_p9), %s2488_s29, 3 }
  0x12   : > { %s4185_s1 = sld [smem:[#allocation6_spill]] (!%p342_p9)  ;;  %s4178_s13 = smov (!%p342_p9), 48  }
  0x13   : > { %s4176_s15 = smov (!%p342_p9), 112   ;;  %s4172_s16 = smov (!%p342_p9), 32  }
  0x14   : > { %s4170_s22 = smov (!%p342_p9), 96   ;;  %s4174_s24 = smov (!%p342_p9), 16  }
  0x15   : > { %s4168_s25 = smov (!%p342_p9), 80   ;;  %s4187_s12 = smov (!%p342_p9), 112  }
  0x16   : > { %s4198_s29 = smov (!%p381_p10, %s2488_s29), 3  ;;  %v2908_v2 = vmov 128.0   ;;  %v388_v44 = vld [vmem:[%s4156_s2] sm:$0x3]  ;;  %vm563_vm7 = vcmask 523264   ;;  %vm683_vm15 = vcmask 130048  }
  0x17   : > { %s2489_s30 = sshll.u32 %s4198_s29, 3  ;;  %2732 = vrcp.f32 %v2908_v2  ;;  %v436_v48 = vperm.slane %v388_v44, 0  ;;  %v439_v52 = vperm.slane %v388_v44, 1  ;;  %v2909_v2 = vmov 64.0   ;;  %s4188_s29 = smov 64  }
  0x18   : > { %s384_s14 = scalar_lea.vmem %s4184_s0, %s2489_s30  ;;  %v457_v5 = vld [vmem:[%s4185_s1 + $0x78] sm:$0xff]  ;;  %v456_v6 = vld [vmem:[%s4185_s1 + $0x70] sm:$0xff]  ;;  %v455_v19 = vld [vmem:[%s4185_s1 + $0x68] sm:$0xff]  ;;  %s4189_s30 = smov 16  }
  0x19   : > { %v386_v0 = vld [vmem:[%s384_s14] sm:$0xff]  ;;  %v387_v1 = vld [vmem:[%s384_s14 + $0x8] sm:$0xff]  ;;  %458 = vmatpush.msra.mxu0 %v457_v5  ;;  %v453_v21 = vld [vmem:[%s4185_s1 + $0x58] sm:$0xff]  ;;  %s4166_s14 = smov 64   ;;  %s2425_s0 = scalar_lea.hbm %s4165_s11, %s2999_s21 }
  0x1a   : > { %389 = vadd.xlane.f32.xlu0 %v386_v0  ;;  %v454_v20 = vld [vmem:[%s4185_s1 + $0x60] sm:$0xff]  ;;  %v452_v22 = vld [vmem:[%s4185_s1 + $0x50] sm:$0xff]  ;;  %v451_v23 = vld [vmem:[%s4185_s1 + $0x48] sm:$0xff] }
  0x1b   : > { %459 = vmatpush.msra.mxu0 %v456_v6  ;;  %v450_v24 = vld [vmem:[%s4185_s1 + $0x40] sm:$0xff]  ;;  %v449_v25 = vld [vmem:[%s4185_s1 + $0x38] sm:$0xff]  ;;  %v448_v26 = vld [vmem:[%s4185_s1 + $0x30] sm:$0xff] }
  0x1c   : > { %v447_v27 = vld [vmem:[%s4185_s1 + $0x28] sm:$0xff]  ;;  %v446_v28 = vld [vmem:[%s4185_s1 + $0x20] sm:$0xff]  ;;  %v445_v29 = vld [vmem:[%s4185_s1 + $0x18] sm:$0xff] }
  0x1d   : > { %v2733_v3 = vpop.eup %2732  ;;  %460 = vmatpush.msra.mxu0 %v455_v19  ;;  %v444_v30 = vld [vmem:[%s4185_s1 + $0x10] sm:$0xff]  ;;  %v443_v31 = vld [vmem:[%s4185_s1 + $0x8] sm:$0xff]  ;;  %v442_v32 = vld [vmem:[%s4185_s1] sm:$0xff] }
  0x1e   : > { %v394_v4 = vmul.f32 128.0, %v2733_v3  ;;  %vm398_vm0 = vweird.f32 %v2733_v3  ;;  %v503_v19 = vld [vmem:[%s4158_s4 + $0x70] sm:$0xff] }
  0x1f   : > { %461 = vmatpush.msra.mxu0 %v454_v20  ;;  %v504_v20 = vld [vmem:[%s4158_s4 + $0x78] sm:$0xff]  ;;  %637 = vmatpush.msra.mxu1 %v503_v19 }
  0x20   : > { %v395_v7 = vsub.f32 1.0, %v394_v4  ;;  %660 = vmatpush.msra.mxu2 %v504_v20 }
  0x21   : > { %462 = vmatpush.msra.mxu0 %v453_v21  ;;  %v501_v21 = vld [vmem:[%s4158_s4 + $0x60] sm:$0xff] }
  0x22   : > { %391 = vadd.xlane.f32.xlu0 %v387_v1  ;;  %v396_v8 = vmul.f32 %v2733_v3, %v395_v7  ;;  %638 = vmatpush.msra.mxu1 %v501_v21 }
  0x23   : > { %463 = vmatpush.msra.mxu0 %v452_v22  ;;  %v502_v22 = vld [vmem:[%s4158_s4 + $0x68] sm:$0xff] }
  0x24   : > { %v397_v9 = vadd.f32 %v2733_v3, %v396_v8  ;;  %661 = vmatpush.msra.mxu2 %v502_v22 }
  0x25   : > { %464 = vmatpush.msra.mxu0 %v451_v23  ;;  %v499_v23 = vld [vmem:[%s4158_s4 + $0x50] sm:$0xff] }
  0x26   : > { %v399_v10 = vsel %vm398_vm0, %v2733_v3, %v397_v9  ;;  %639 = vmatpush.msra.mxu1 %v499_v23  ;;  %v481_v23 = vld [vmem:[%s4157_s3] sm:$0xff]  ;;  %vm1084_vm0 = vcmask 261120  }
  0x27   : > { %465 = vmatpush.msra.mxu0 %v450_v24  ;;  %v500_v24 = vld [vmem:[%s4158_s4 + $0x58] sm:$0xff] }
  0x28   : > { %662 = vmatpush.msra.mxu2 %v500_v24 }
  0x29   : > { %466 = vmatpush.msra.mxu0 %v449_v25  ;;  %v497_v25 = vld [vmem:[%s4158_s4 + $0x40] sm:$0xff] }
  0x2a   : > { %640 = vmatpush.msra.mxu1 %v497_v25 }
  0x2b   : > { %467 = vmatpush.msra.mxu0 %v448_v26  ;;  %v498_v26 = vld [vmem:[%s4158_s4 + $0x48] sm:$0xff] }
  0x2c   : > { %663 = vmatpush.msra.mxu2 %v498_v26 }
  0x2d   : > { %468 = vmatpush.msra.mxu0 %v447_v27  ;;  %v495_v27 = vld [vmem:[%s4158_s4 + $0x30] sm:$0xff] }
  0x2e   : > { %641 = vmatpush.msra.mxu1 %v495_v27  ;;  %v482_v27 = vld [vmem:[%s4157_s3 + $0x8] sm:$0xff] }
  0x2f   : > { %469 = vmatpush.msra.mxu0 %v446_v28  ;;  %v496_v28 = vld [vmem:[%s4158_s4 + $0x38] sm:$0xff] }
  0x30   : > { %664 = vmatpush.msra.mxu2 %v496_v28 }
  0x31   : > { %470 = vmatpush.msra.mxu0 %v445_v29  ;;  %v493_v29 = vld [vmem:[%s4158_s4 + $0x20] sm:$0xff] }
  0x32   : > { %642 = vmatpush.msra.mxu1 %v493_v29 }
  0x33   : > { %471 = vmatpush.msra.mxu0 %v444_v30  ;;  %v494_v30 = vld [vmem:[%s4158_s4 + $0x28] sm:$0xff] }
  0x34   : > { %665 = vmatpush.msra.mxu2 %v494_v30 }
  0x35   : > { %472 = vmatpush.msra.mxu0 %v443_v31  ;;  %v491_v31 = vld [vmem:[%s4158_s4 + $0x10] sm:$0xff] }
  0x36   : > { %643 = vmatpush.msra.mxu1 %v491_v31 }
  0x37   : > { %473 = vmatpush.msra.mxu0 %v442_v32  ;;  %v492_v32 = vld [vmem:[%s4158_s4 + $0x18] sm:$0xff] }
  0x38   : > { %666 = vmatpush.msra.mxu2 %v492_v32 }
  0x8d   : > { %v390_v11 = vpop.xlane.xlu0 %389 }
  0x8e   : > { %v400_v12 = vmul.f32 %v399_v10, %v390_v11 }
  0x90   : > { %v402_v13 = vsub.f32 %v386_v0, %v400_v12 }
  0x92   : > { %v404_v14 = vmul.f32 %v402_v13, %v402_v13 }
  0x94   : > { %406 = vadd.xlane.f32.xlu1 %v404_v14 }
  0x95   : > { %v392_v15 = vpop.xlane.xlu0 %391 }
  0x96   : > { %v401_v16 = vmul.f32 %v399_v10, %v392_v15 }
  0x98   : > { %v3036_v17 = vsub.f32 %v387_v1, %v401_v16 }
  0x9a   : > { %v405_v18 = vmul.f32 %v3036_v17, %v3036_v17 }
  0x9c   : > { %408 = vadd.xlane.f32.xlu1 %v405_v18 }
 0x107   : > { %v407_v33 = vpop.xlane.xlu1 %406 }
 0x108   : > { %v410_v34 = vmul.f32 %v407_v33, %v399_v10  ;;  %v489_v33 = vld [vmem:[%s4158_s4] sm:$0xff] }
 0x109   : > { %644 = vmatpush.msra.mxu1 %v489_v33 }
 0x10a   : > { %v412_v35 = vadd.f32 1e-05, %v410_v34  ;;  %v490_v34 = vld [vmem:[%s4158_s4 + $0x8] sm:$0xff] }
 0x10b   : > { %667 = vmatpush.msra.mxu2 %v490_v34 }
 0x10c   : > { %2734 = vrsqrt.f32 %v412_v35  ;;  %vm420_vm2 = vweird.f32 %v412_v35 }
 0x10f   : > { %v409_v36 = vpop.xlane.xlu1 %408 }
 0x110   : > { %v411_v37 = vmul.f32 %v409_v36, %v399_v10 }
 0x112   : > { %v2735_v38 = vpop.eup %2734  ;;  %v413_v39 = vadd.f32 1e-05, %v411_v37 }
 0x113   : > { %v415_v40 = vmul.f32 %v2735_v38, %v412_v35  ;;  %vm421_vm1 = vweird.f32 %v2735_v38 }
 0x114   : > { %2736 = vrsqrt.f32 %v413_v39  ;;  %vm422_vm3 = vmor %vm420_vm2, %vm421_vm1  ;;  %vm430_vm4 = vweird.f32 %v413_v39  ;;  %vm1087_vm1 = vcmask 392192  }
 0x115   : > { %v416_v41 = vmul.f32 %v2735_v38, %v415_v40  ;;  %2738 = vrcp.f32 %v2909_v2 }
 0x117   : > { %v417_v42 = vmul.f32 0.5, %v416_v41 }
 0x119   : > { %v418_v43 = vsub.f32 1.5, %v417_v42 }
 0x11a   : > { %v2737_v45 = vpop.eup %2736 }
 0x11b   : > { %v419_v46 = vmul.f32 %v2735_v38, %v418_v43  ;;  %v425_v47 = vmul.f32 %v2737_v45, %v413_v39  ;;  %vm431_vm5 = vweird.f32 %v2737_v45  ;;  %v2739_v3 = vpop.eup %2738 }
 0x11c   : > { %vm432_vm6 = vmor %vm430_vm4, %vm431_vm5  ;;  %v571_v4 = vmul.f32 64.0, %v2739_v3  ;;  %vm575_vm8 = vweird.f32 %v2739_v3 }
 0x11d   : > { %v426_v49 = vmul.f32 %v2737_v45, %v425_v47  ;;  %v423_v50 = vsel %vm422_vm3, %v2735_v38, %v419_v46  ;;  %v3163_v46 = vld [vmem:[%s4162_s8] sm:$0xff] }
 0x11e   : > { %v434_v51 = vmul.f32 %v423_v50, %v402_v13  ;;  %v572_v5 = vsub.f32 1.0, %v571_v4  ;;  %v615_v50 = vperm.slane %v3163_v46, 0  ;;  %v621_v2 = vperm.slane %v3163_v46, 4 }
 0x11f   : > { %v427_v53 = vmul.f32 0.5, %v426_v49 }
 0x120   : > { %v437_v54 = vmul.f32 %v436_v48, %v434_v51  ;;  %v573_v6 = vmul.f32 %v2739_v3, %v572_v5 }
 0x121   : > { %v428_v55 = vsub.f32 1.5, %v427_v53 }
 0x122   : > { %v440_v56 = vadd.f32 %v439_v52, %v437_v54  ;;  %v574_v7 = vadd.f32 %v2739_v3, %v573_v6  ;;  %v618_v54 = vperm.slane %v3163_v46, 1 }
 0x123   : > { %v429_v57 = vmul.f32 %v2737_v45, %v428_v55 }
 0x124   : > { %474 = vmatmul.f32.vlgmr.msra.gmra.mxu0 %v440_v56  ;;  %v3094_v8 = vsel %vm575_vm8, %v2739_v3, %v574_v7 }
 0x125   : > { %v433_v58 = vsel %vm432_vm6, %v2737_v45, %v429_v57 }
 0x126   : > { %v435_v59 = vmul.f32 %v433_v58, %v3036_v17 }
 0x128   : > { %v438_v60 = vmul.f32 %v436_v48, %v435_v59 }
 0x12a   : > { %v441_v61 = vadd.f32 %v439_v52, %v438_v60 }
 0x12c   : > { %477 = vmatmul.f32.gmra.mxu0 %v441_v61 }
 0x1a1   : > { %v3086_v62 = vpop.f32.mrf.mxu0 }
 0x1a2   : > { %v564_v63 = vsel %vm563_vm7, %v3086_v62, 0.0 }
 0x1a3   : > { %565 = vadd.xlane.f32.xlu2 %v564_v63 }
 0x1a9   : > { %v3090_v0 = vpop.f32.mrf.mxu0 }
 0x1aa   : > { %v567_v1 = vsel %vm563_vm7, %v3090_v0, 0.0 }
 0x1ab   : > { %568 = vadd.xlane.f32.xlu2 %v567_v1 }
 0x216   : > { %v566_v9 = vpop.xlane.xlu2 %565 }
 0x217   : > { %v577_v10 = vmul.f32 %v3094_v8, %v566_v9 }
 0x219   : > { %v3098_v11 = vsub.f32 %v3086_v62, %v577_v10 }
 0x21b   : > { %v581_v12 = vmul.f32 %v3098_v11, %v3098_v11 }
 0x21d   : > { %v583_v13 = vsel %vm563_vm7, %v581_v12, 0.0  ;;  %v3199_v12 = vld [vmem:[%s4162_s8 + $0x8] sm:$0xff] }
 0x21e   : > { %584 = vadd.xlane.f32.xlu0 %v583_v13  ;;  %v569_v14 = vpop.xlane.xlu2 %568 }
 0x21f   : > { %v578_v15 = vmul.f32 %v3094_v8, %v569_v14  ;;  %v622_v14 = vperm.slane %v3199_v12, 4 }
 0x221   : > { %v3105_v16 = vsub.f32 %v3090_v0, %v578_v15 }
 0x223   : > { %v582_v17 = vmul.f32 %v3105_v16, %v3105_v16 }
 0x225   : > { %v586_v18 = vsel %vm563_vm7, %v582_v17, 0.0 }
 0x226   : > { %587 = vadd.xlane.f32.xlu1 %v586_v18 }
 0x291   : > { %v585_v35 = vpop.xlane.xlu0 %584 }
 0x292   : > { %v589_v36 = vmul.f32 %v585_v35, %v3094_v8 }
 0x294   : > { %v591_v37 = vadd.f32 1e-05, %v589_v36 }
 0x296   : > { %2740 = vrsqrt.f32 %v591_v37  ;;  %vm599_vm10 = vweird.f32 %v591_v37 }
 0x299   : > { %v588_v38 = vpop.xlane.xlu1 %587 }
 0x29a   : > { %v590_v39 = vmul.f32 %v588_v38, %v3094_v8 }
 0x29c   : > { %v2741_v40 = vpop.eup %2740  ;;  %v592_v41 = vadd.f32 1e-05, %v590_v39 }
 0x29d   : > { %v594_v42 = vmul.f32 %v2741_v40, %v591_v37  ;;  %vm600_vm9 = vweird.f32 %v2741_v40 }
 0x29e   : > { %2742 = vrsqrt.f32 %v592_v41  ;;  %vm601_vm11 = vmor %vm599_vm10, %vm600_vm9  ;;  %vm609_vm13 = vweird.f32 %v592_v41 }
 0x29f   : > { %v595_v43 = vmul.f32 %v2741_v40, %v594_v42  ;;  %v483_v42 = vld [vmem:[%s4157_s3 + $0x10] sm:$0xff] }
 0x2a1   : > { %v596_v44 = vmul.f32 0.5, %v595_v43 }
 0x2a3   : > { %v597_v45 = vsub.f32 1.5, %v596_v44 }
 0x2a4   : > { %v2743_v47 = vpop.eup %2742 }
 0x2a5   : > { %v598_v48 = vmul.f32 %v2741_v40, %v597_v45  ;;  %v604_v49 = vmul.f32 %v2743_v47, %v592_v41  ;;  %vm610_vm12 = vweird.f32 %v2743_v47 }
 0x2a6   : > { %vm611_vm14 = vmor %vm609_vm13, %vm610_vm12 }
 0x2a7   : > { %v602_v51 = vsel %vm601_vm11, %v2741_v40, %v598_v48  ;;  %v605_v52 = vmul.f32 %v2743_v47, %v604_v49 }
 0x2a8   : > { %v613_v53 = vmul.f32 %v602_v51, %v3098_v11 }
 0x2a9   : > { %v606_v55 = vmul.f32 0.5, %v605_v52 }
 0x2aa   : > { %v616_v56 = vmul.f32 %v615_v50, %v613_v53 }
 0x2ab   : > { %v607_v57 = vsub.f32 1.5, %v606_v55 }
 0x2ac   : > { %v619_v58 = vadd.f32 %v618_v54, %v616_v56 }
 0x2ad   : > { %v608_v59 = vmul.f32 %v2743_v47, %v607_v57  ;;  %v484_v57 = vld [vmem:[%s4157_s3 + $0x18] sm:$0xff] }
 0x2ae   : > { %2490 = vmatmul.msk.f32.vlgmr.msra.gmra.mxu1 %vm563_vm7, %v619_v58  ;;  %2492 = vmatmul.msk.f32.vlgmr.msra.gmra.mxu2 %vm563_vm7, %v619_v58 }
 0x2af   : > { %v612_v60 = vsel %vm611_vm14, %v2743_v47, %v608_v59 }
 0x2b0   : > { %v614_v61 = vmul.f32 %v612_v60, %v3105_v16 }
 0x2b2   : > { %v617_v63 = vmul.f32 %v615_v50, %v614_v61 }
 0x2b4   : > { %v620_v1 = vadd.f32 %v618_v54, %v617_v63 }
 0x2b6   : > { %2491 = vmatmul.msk.f32.gmra.mxu1 %vm563_vm7, %v620_v1  ;;  %2493 = vmatmul.msk.f32.gmra.mxu2 %vm563_vm7, %v620_v1 }
 0x32b   : > { %v646_v3 = vpop.f32.mrf.mxu1 }
 0x32c   : > { %v647_v4 = vadd.f32 %v646_v3, %v621_v2  ;;  %v485_v3 = vld [vmem:[%s4157_s3 + $0x20] sm:$0xff] }
 0x32e   : > { %772 = vrot.lane.b32.xlu1 %v647_v4, %s4178_s13  ;;  %679 = vrot.lane.b32.xlu0 %v647_v4, %s4166_s14  ;;  %v3178_v7 = vmul.f32 0.25, %v647_v4 }
 0x331   : > { %v669_v11 = vpop.f32.mrf.mxu2 }
 0x332   : > { %v3207_v17 = vadd.f32 %v669_v11, %v622_v14 }
 0x333   : > { %v649_v5 = vpop.f32.mrf.mxu1 }
 0x334   : > { %v3176_v6 = vadd.f32 %v649_v5, %v621_v2  ;;  %v487_v5 = vld [vmem:[%s4157_s3 + $0x30] sm:$0xff] }
 0x336   : > { %681 = vrot.lane.b32.xlu2 %v3176_v6, %s4166_s14  ;;  %768 = vrot.lane.b32.xlu0 %v3178_v7, %s4176_s15  ;;  %v676_v9 = vmul.f32 0.25, %v3176_v6 }
 0x339   : > { %v672_v13 = vpop.f32.mrf.mxu2 }
 0x33a   : > { %v3202_v15 = vadd.f32 %v672_v13, %v622_v14 }
 0x33e   : > { %774 = vrot.lane.b32.xlu0 %v3176_v6, %s4178_s13 }
 0x346   : > { %870 = vrot.lane.b32.xlu0 %v647_v4, %s4172_s16 }
 0x34e   : > { %872 = vrot.lane.b32.xlu0 %v3176_v6, %s4172_s16 }
 0x356   : > { %866 = vrot.lane.b32.xlu0 %v3178_v7, %s4170_s22 }
 0x35e   : > { %966 = vrot.lane.b32.xlu0 %v647_v4, %s4174_s24 }
 0x366   : > { %964 = vrot.lane.b32.xlu0 %v676_v9, %s4168_s25 }
 0x390   : > { %v682_v10 = vpop.permute.xlu2 %681 }
 0x391   : > { %2494 = vmatpush.xpose.msk.msrb.mxu1 %vm683_vm15, %v682_v10  ;;  %2651 = vmatpush.xpose.msk.msra.mxu3 %vm683_vm15, %v682_v10 }
 0x3a0   : > { %v680_v16 = vpop.permute.xlu0 %679  ;;  %v773_v20 = vpop.permute.xlu1 %772 }
 0x3a1   : > { %2495 = vmatpush.xpose.msk.msrb.mxu1 %vm683_vm15, %v680_v16  ;;  %2652 = vmatpush.xpose.msk.msra.mxu3 %vm683_vm15, %v680_v16 }
 0x3a4   : > { %2496 = vmatmul.msk.f32.vlgmr.msrb.gmra.mxu1 %vm683_vm15, %v3178_v7  ;;  %2497 = vmatmul.msk.f32.vlgmr.msra.gmra.mxu3 %vm683_vm15, %v676_v9 }
 0x3a5   : > { %759 = vmatpush.msrb.mxu3 %v3202_v15 }
 0x3a7   : > { %760 = vmatpush.msrb.mxu3 %v3207_v17 }
 0x3a8   : > { %v769_v18 = vpop.permute.xlu0 %768 }
 0x3b0   : > { %v775_v19 = vpop.permute.xlu0 %774 }
 0x3b1   : > { %2500 = vmatpush.xpose.msk.msra.mxu1 %vm683_vm15, %v775_v19 }
 0x3b5   : > { %2501 = vmatpush.xpose.msk.msra.mxu1 %vm683_vm15, %v773_v20  ;;  %v486_v20 = vld [vmem:[%s4157_s3 + $0x28] sm:$0xff] }
 0x3b8   : > { %v871_v21 = vpop.permute.xlu0 %870  ;;  %2502 = vmatmul.msk.f32.vlgmr.msra.gmra.mxu1 %vm683_vm15, %v769_v18 }
 0x3c0   : > { %v873_v22 = vpop.permute.xlu0 %872 }
 0x3c1   : > { %2506 = vmatpush.xpose.msk.msra.mxu3 %vm683_vm15, %v873_v22  ;;  %v488_v22 = vld [vmem:[%s4157_s3 + $0x38] sm:$0xff] }
 0x3c5   : > { %2507 = vmatpush.xpose.msk.msra.mxu3 %vm683_vm15, %v871_v21 }
 0x3c8   : > { %v867_v51 = vpop.permute.xlu0 %866 }
 0x3d0   : > { %v967_v55 = vpop.permute.xlu0 %966 }
 0x3d8   : > { %v965_v63 = vpop.permute.xlu0 %964 }
 0x421   : > { %v711_v24 = vpop.f32.mrf.mxu1 }
 0x422   : > { %v712_v25 = vadd.f32 %v711_v24, %v481_v23 }
 0x424   : > { %v717_v26 = vsel %vm683_vm15, %v712_v25, -inf }
 0x425   : > { %718 = vmax.xlane.f32.xlu1 %v717_v26 }
 0x427   : > { %v714_v28 = vpop.f32.mrf.mxu3 }
 0x428   : > { %v715_v29 = vadd.f32 %v714_v28, %v482_v27 }
 0x42a   : > { %v720_v30 = vsel %vm683_vm15, %v715_v29, -inf }
 0x42d   : > { %721 = vmax.xlane.f32.xlu1 %v720_v30 }
 0x435   : > { %v801_v43 = vpop.f32.mrf.mxu1 }
 0x436   : > { %v802_v44 = vadd.f32 %v801_v43, %v483_v42 }
 0x438   : > { %v807_v45 = vsel %vm683_vm15, %v802_v44, -inf }
 0x446   : > { %770 = vrot.lane.b32.xlu1 %v676_v9, %s4176_s15 }
 0x498   : > { %v719_v31 = vpop.xlane.xlu1 %718 }
 0x499   : > { %v723_v32 = vsub.f32 %v712_v25, %v719_v31 }
 0x49b   : > { %v725_v33 = vmul.f32 1.442695, %v723_v32 }
 0x49d   : > { %2744 = vpow2.f32 %v725_v33  ;;  %v2702_v33 = vpack.i.bf16 %v3207_v17, %v3202_v15 }
 0x4a0   : > { %v722_v34 = vpop.xlane.xlu1 %721 }
 0x4a1   : > { %v724_v35 = vsub.f32 %v715_v29, %v722_v34 }
 0x4a3   : > { %v2745_v36 = vpop.eup %2744  ;;  %v727_v37 = vmul.f32 1.442695, %v724_v35 }
 0x4a4   : > { %v729_v38 = vsel %vm683_vm15, %v2745_v36, 0.0 }
 0x4a5   : > { %2746 = vpow2.f32 %v727_v37  ;;  %730 = vadd.xlane.f32.xlu1 %v729_v38 }
 0x4ab   : > { %v2747_v39 = vpop.eup %2746 }
 0x4ac   : > { %v732_v40 = vsel %vm683_vm15, %v2747_v39, 0.0 }
 0x4ad   : > { %733 = vadd.xlane.f32.xlu2 %v732_v40 }
 0x4b8   : > { %v771_v41 = vpop.permute.xlu1 %770 }
 0x4b9   : > { %2503 = vmatmul.msk.f32.gmra.mxu1 %vm683_vm15, %v771_v41 }
 0x4be   : > { %868 = vrot.lane.b32.xlu1 %v676_v9, %s4170_s22 }
 0x4c5   : > { %968 = vrot.lane.b32.xlu2 %v3176_v6, %s4174_s24 }
 0x4c6   : > { %962 = vrot.lane.b32.xlu1 %v3178_v7, %s4168_s25 }
 0x4f0   : > { %808 = vmax.xlane.f32.xlu1 %v807_v45 }
 0x518   : > { %v731_v47 = vpop.xlane.xlu1 %730 }
 0x519   : > { %2748 = vrcp.f32 %v731_v47 }
 0x51f   : > { %v2749_v48 = vpop.eup %2748 }
 0x520   : > { %v734_v49 = vpop.xlane.xlu2 %733  ;;  %v737_v50 = vmul.f32 %v2749_v48, %v2745_v36 }
 0x521   : > { %2750 = vrcp.f32 %v734_v49 }
 0x522   : > { %2498 = vmatmul.msk.f32.vlgmr.msrb.gmra.mxu3 %vm683_vm15, %v737_v50 }
 0x527   : > { %v2751_v52 = vpop.eup %2750 }
 0x528   : > { %v969_v53 = vpop.permute.xlu2 %968  ;;  %v738_v54 = vmul.f32 %v2751_v52, %v2747_v39 }
 0x529   : > { %2512 = vmatpush.xpose.msk.msrb.mxu1 %vm683_vm15, %v969_v53 }
 0x52a   : > { %2499 = vmatmul.msk.f32.gmra.mxu3 %vm683_vm15, %v738_v54 }
 0x52d   : > { %2513 = vmatpush.xpose.msk.msrb.mxu1 %vm683_vm15, %v967_v55 }
 0x530   : > { %v869_v56 = vpop.permute.xlu1 %868 }
 0x532   : > { %2508 = vmatmul.msk.f32.vlgmr.msra.gmra.mxu3 %vm683_vm15, %v867_v51 }
 0x536   : > { %v804_v58 = vpop.f32.mrf.mxu1 }
 0x537   : > { %v805_v59 = vadd.f32 %v804_v58, %v484_v57 }
 0x538   : > { %v963_v60 = vpop.permute.xlu1 %962 }
 0x539   : > { %2514 = vmatmul.msk.f32.vlgmr.msrb.gmra.mxu1 %vm683_vm15, %v963_v60  ;;  %v810_v61 = vsel %vm683_vm15, %v805_v59, -inf }
 0x53a   : > { %811 = vmax.xlane.f32.xlu0 %v810_v61  ;;  %2509 = vmatmul.msk.f32.gmra.mxu3 %vm683_vm15, %v869_v56 }
 0x541   : > { %2515 = vmatmul.msk.f32.gmra.mxu1 %vm683_vm15, %v965_v63 }
 0x563   : > { %v809_v4 = vpop.xlane.xlu1 %808 }
 0x564   : > { %v813_v11 = vsub.f32 %v802_v44, %v809_v4 }
 0x566   : > { %v815_v19 = vmul.f32 1.442695, %v813_v11 }
 0x568   : > { %2752 = vpow2.f32 %v815_v19 }
 0x56e   : > { %v2753_v29 = vpop.eup %2752 }
 0x56f   : > { %v819_v31 = vsel %vm683_vm15, %v2753_v29, 0.0 }
 0x5a5   : > { %v3251_v1 = vpop.f32.mrf.mxu3 }
 0x5ad   : > { %v3253_v2 = vpop.f32.mrf.mxu3  ;;  %v812_v6 = vpop.xlane.xlu0 %811 }
 0x5ae   : > { %v814_v14 = vsub.f32 %v805_v59, %v812_v6 }
 0x5b0   : > { %v817_v21 = vmul.f32 1.442695, %v814_v14 }
 0x5b2   : > { %2754 = vpow2.f32 %v817_v21 }
 0x5b5   : > { %v899_v7 = vpop.f32.mrf.mxu3 }
 0x5b6   : > { %v900_v9 = vadd.f32 %v899_v7, %v485_v3  ;;  %v995_v10 = vpop.f32.mrf.mxu1 }
 0x5b7   : > { %v996_v13 = vadd.f32 %v995_v10, %v487_v5 }
 0x5b8   : > { %v905_v16 = vsel %vm683_vm15, %v900_v9, -inf  ;;  %v2755_v30 = vpop.eup %2754 }
 0x5b9   : > { %906 = vmax.xlane.f32.xlu2 %v905_v16  ;;  %v1001_v18 = vsel %vm683_vm15, %v996_v13, -inf  ;;  %v822_v32 = vsel %vm683_vm15, %v2755_v30, 0.0 }
 0x5ba   : > { %1002 = vmax.xlane.f32.xlu0 %v1001_v18 }
 0x5bd   : > { %v902_v23 = vpop.f32.mrf.mxu3 }
 0x5be   : > { %v903_v24 = vadd.f32 %v902_v23, %v486_v20  ;;  %v998_v25 = vpop.f32.mrf.mxu1 }
 0x5bf   : > { %v999_v26 = vadd.f32 %v998_v25, %v488_v22 }
 0x5c0   : > { %v908_v27 = vsel %vm683_vm15, %v903_v24, -inf }
 0x5c1   : > { %909 = vmax.xlane.f32.xlu1 %v908_v27  ;;  %v1004_v28 = vsel %vm683_vm15, %v999_v26, -inf }
 0x5c2   : > { %1005 = vmax.xlane.f32.xlu2 %v1004_v28 }
 0x5c9   : > { %820 = vadd.xlane.f32.xlu1 %v819_v31  ;;  %v527_v31 = vld [vmem:[%s4160_s6 + $0x30] sm:$0xff] }
 0x5ca   : > { %823 = vadd.xlane.f32.xlu2 %v822_v32  ;;  %v526_v32 = vld [vmem:[%s4160_s6 + $0x28] sm:$0xff] }
 0x5ce   : > { %2703 = vrot.lane.b32.xlu0 %v2702_v33, %s4176_s15  ;;  %s2429_s15 = sshll.u32 %s2425_s0, 4  ;;  %s2430_s15 = int_to_ptr.hbm [resolvable:$true] %s2429_s15 }
 0x5e2   : > { %2708 = vrot.lane.b32.xlu2 %v2702_v33, %s4170_s22  ;;  %s4190_s22 = smov 32  }
 0x62c   : > { %v907_v34 = vpop.xlane.xlu2 %906 }
 0x62d   : > { %v911_v35 = vsub.f32 %v900_v9, %v907_v34  ;;  %v1003_v36 = vpop.xlane.xlu0 %1002  ;;  %v524_v34 = vld [vmem:[%s4160_s6 + $0x18] sm:$0xff] }
 0x62e   : > { %v1007_v37 = vsub.f32 %v996_v13, %v1003_v36  ;;  %v522_v36 = vld [vmem:[%s4160_s6 + $0x8] sm:$0xff] }
 0x62f   : > { %v913_v38 = vmul.f32 1.442695, %v911_v35  ;;  %v523_v35 = vld [vmem:[%s4160_s6 + $0x10] sm:$0xff] }
 0x630   : > { %v1009_v39 = vmul.f32 1.442695, %v1007_v37  ;;  %v521_v37 = vld [vmem:[%s4160_s6] sm:$0xff] }
 0x631   : > { %2756 = vpow2.f32 %v913_v38 }
 0x632   : > { %2758 = vpow2.f32 %v1009_v39 }
 0x634   : > { %v910_v40 = vpop.xlane.xlu1 %909 }
 0x635   : > { %v912_v41 = vsub.f32 %v903_v24, %v910_v40  ;;  %v1006_v42 = vpop.xlane.xlu2 %1005 }
 0x636   : > { %v1008_v43 = vsub.f32 %v999_v26, %v1006_v42 }
 0x637   : > { %v2757_v44 = vpop.eup %2756  ;;  %v915_v45 = vmul.f32 1.442695, %v912_v41 }
 0x638   : > { %v2759_v47 = vpop.eup %2758  ;;  %v1011_v15 = vmul.f32 1.442695, %v1008_v43  ;;  %v917_v17 = vsel %vm683_vm15, %v2757_v44, 0.0 }
 0x639   : > { %2760 = vpow2.f32 %v915_v45  ;;  %918 = vadd.xlane.f32.xlu1 %v917_v17  ;;  %v1013_v48 = vsel %vm683_vm15, %v2759_v47, 0.0 }
 0x63a   : > { %2762 = vpow2.f32 %v1011_v15  ;;  %1014 = vadd.xlane.f32.xlu0 %v1013_v48 }
 0x63c   : > { %v821_v49 = vpop.xlane.xlu1 %820 }
 0x63d   : > { %2764 = vrcp.f32 %v821_v49  ;;  %v824_v50 = vpop.xlane.xlu2 %823 }
 0x63e   : > { %2766 = vrcp.f32 %v824_v50 }
 0x63f   : > { %v2761_v51 = vpop.eup %2760 }
 0x640   : > { %v2763_v52 = vpop.eup %2762  ;;  %v2704_v53 = vpop.permute.xlu0 %2703  ;;  %v920_v54 = vsel %vm683_vm15, %v2761_v51, 0.0 }
 0x641   : > { %921 = vadd.xlane.f32.xlu1 %v920_v54  ;;  %v1016_v55 = vsel %vm683_vm15, %v2763_v52, 0.0  ;;  %v2705_v56 = vunpack.i.l.bf16 %v2704_v53  ;;  %v2706_v58 = vunpack.i.h.bf16 %v2704_v53 }
 0x642   : > { %1017 = vadd.xlane.f32.xlu2 %v1016_v55 }
 0x643   : > { %v2765_v57 = vpop.eup %2764  ;;  %857 = vmatpush.msrb.mxu2 %v2705_v56 }
 0x644   : > { %v827_v59 = vmul.f32 %v2765_v57, %v2753_v29  ;;  %v2767_v3 = vpop.eup %2766 }
 0x645   : > { %v2709_v60 = vpop.permute.xlu2 %2708  ;;  %858 = vmatpush.msrb.mxu2 %v2706_v58  ;;  %v828_v4 = vmul.f32 %v2767_v3, %v2755_v30  ;;  %v528_v30 = vld [vmem:[%s4160_s6 + $0x38] sm:$0xff] }
 0x646   : > { %v2710_v61 = vunpack.i.l.bf16 %v2709_v60  ;;  %2504 = vmatmul.msk.f32.vlgmr.msrb.gmra.mxu2 %vm683_vm15, %v827_v59  ;;  %v2711_v63 = vunpack.i.h.bf16 %v2709_v60  ;;  %1104 = vmatpush.msrb.mxu3 %v528_v30 }
 0x648   : > { %953 = vmatpush.msra.mxu2 %v2710_v61  ;;  %1105 = vmatpush.msrb.mxu3 %v527_v31 }
 0x64a   : > { %954 = vmatpush.msra.mxu2 %v2711_v63  ;;  %1106 = vmatpush.msrb.mxu3 %v526_v32 }
 0x64e   : > { %2505 = vmatmul.msk.f32.gmra.mxu2 %vm683_vm15, %v828_v4  ;;  %v519_v4 = vld [vmem:[%s4159_s5 + $0x70] sm:$0xff] }
 0x64f   : > { %1190 = vmatpush.msrb.mxu0 %v519_v4  ;;  %v553_v4 = vld [vmem:[%s4161_s7 + $0xc0] sm:$0xff] }
 0x65a   : > { %2713 = vrot.lane.b32.xlu1 %v2702_v33, %s4168_s25  ;;  %v525_v33 = vld [vmem:[%s4160_s6 + $0x20] sm:$0xff] }
 0x65b   : > { %1107 = vmatpush.msrb.mxu3 %v525_v33 }
 0x65d   : > { %1108 = vmatpush.msrb.mxu3 %v524_v34 }
 0x65f   : > { %1109 = vmatpush.msrb.mxu3 %v523_v35 }
 0x661   : > { %1110 = vmatpush.msrb.mxu3 %v522_v36 }
 0x663   : > { %1111 = vmatpush.msrb.mxu3 %v521_v37 }
 0x6ac   : > { %v919_v5 = vpop.xlane.xlu1 %918 }
 0x6ad   : > { %2768 = vrcp.f32 %v919_v5  ;;  %v1015_v13 = vpop.xlane.xlu0 %1014  ;;  %v520_v5 = vld [vmem:[%s4159_s5 + $0x78] sm:$0xff] }
 0x6ae   : > { %1213 = vmatpush.msra.mxu1 %v520_v5  ;;  %v536_v5 = vld [vmem:[%s4161_s7 + $0x38] sm:$0xff] }
 0x6b3   : > { %v2769_v6 = vpop.eup %2768 }
 0x6b4   : > { %v925_v7 = vmul.f32 %v2769_v6, %v2757_v44  ;;  %v922_v9 = vpop.xlane.xlu1 %921  ;;  %v517_v6 = vld [vmem:[%s4159_s5 + $0x60] sm:$0xff] }
 0x6b5   : > { %2770 = vrcp.f32 %v922_v9  ;;  %v1018_v16 = vpop.xlane.xlu2 %1017  ;;  %1191 = vmatpush.msrb.mxu0 %v517_v6  ;;  %v515_v9 = vld [vmem:[%s4159_s5 + $0x50] sm:$0xff]  ;;  %v552_v6 = vld [vmem:[%s4161_s7 + $0xb8] sm:$0xff] }
 0x6b6   : > { %2510 = vmatmul.msk.f32.vlgmr.msra.gmra.mxu2 %vm683_vm15, %v925_v7  ;;  %2772 = vrcp.f32 %v1015_v13  ;;  %v518_v7 = vld [vmem:[%s4159_s5 + $0x68] sm:$0xff] }
 0x6b7   : > { %2774 = vrcp.f32 %v1018_v16  ;;  %1214 = vmatpush.msra.mxu1 %v518_v7  ;;  %1192 = vmatpush.msrb.mxu0 %v515_v9  ;;  %v514_v13 = vld [vmem:[%s4159_s5 + $0x48] sm:$0xff]  ;;  %v512_v16 = vld [vmem:[%s4159_s5 + $0x38] sm:$0xff]  ;;  %v1174_v7 = vperm.slane %v3163_v46, 6  ;;  %v1175_v9 = vperm.slane %v3199_v12, 6 }
 0x6b8   : > { %v550_v12 = vld [vmem:[%s4161_s7 + $0xa8] sm:$0xff] }
 0x6bb   : > { %v2771_v10 = vpop.eup %2770 }
 0x6bc   : > { %v926_v11 = vmul.f32 %v2771_v10, %v2761_v51  ;;  %v2773_v19 = vpop.eup %2772  ;;  %v516_v10 = vld [vmem:[%s4159_s5 + $0x58] sm:$0xff] }
 0x6bd   : > { %v1021_v22 = vmul.f32 %v2773_v19, %v2759_v47  ;;  %v2775_v23 = vpop.eup %2774  ;;  %1215 = vmatpush.msra.mxu1 %v516_v10  ;;  %v510_v19 = vld [vmem:[%s4159_s5 + $0x28] sm:$0xff]  ;;  %v535_v10 = vld [vmem:[%s4161_s7 + $0x30] sm:$0xff] }
 0x6be   : > { %2511 = vmatmul.msk.f32.gmra.mxu2 %vm683_vm15, %v926_v11  ;;  %v1022_v24 = vmul.f32 %v2775_v23, %v2763_v52  ;;  %v513_v11 = vld [vmem:[%s4159_s5 + $0x40] sm:$0xff]  ;;  %v506_v23 = vld [vmem:[%s4159_s5 + $0x8] sm:$0xff] }
 0x6bf   : > { %1193 = vmatpush.msrb.mxu0 %v513_v11  ;;  %1216 = vmatpush.msra.mxu1 %v514_v13  ;;  %v551_v11 = vld [vmem:[%s4161_s7 + $0xb0] sm:$0xff] }
 0x6c1   : > { %1217 = vmatpush.msra.mxu1 %v512_v16 }
 0x6c3   : > { %1218 = vmatpush.msra.mxu1 %v510_v19  ;;  %v533_v19 = vld [vmem:[%s4161_s7 + $0x20] sm:$0xff] }
 0x6c9   : > { %v860_v14 = vpop.f32.mrf.mxu2 }
 0x6ca   : > { %1060 = vrot.lane.b32.xlu1 %v860_v14, %s4174_s24  ;;  %v511_v14 = vld [vmem:[%s4159_s5 + $0x30] sm:$0xff] }
 0x6cb   : > { %1194 = vmatpush.msrb.mxu0 %v511_v14 }
 0x6cc   : > { %v2714_v18 = vpop.permute.xlu1 %2713 }
 0x6cd   : > { %v2715_v20 = vunpack.i.l.bf16 %v2714_v18  ;;  %v2716_v21 = vunpack.i.h.bf16 %v2714_v18  ;;  %v509_v18 = vld [vmem:[%s4159_s5 + $0x20] sm:$0xff] }
 0x6ce   : > { %1195 = vmatpush.msrb.mxu0 %v509_v18 }
 0x6cf   : > { %1049 = vmatpush.msrb.mxu2 %v2715_v20  ;;  %v507_v20 = vld [vmem:[%s4159_s5 + $0x10] sm:$0xff] }
 0x6d0   : > { %1196 = vmatpush.msrb.mxu0 %v507_v20  ;;  %v549_v20 = vld [vmem:[%s4161_s7 + $0xa0] sm:$0xff] }
 0x6d1   : > { %1050 = vmatpush.msrb.mxu2 %v2716_v21  ;;  %v863_v25 = vpop.f32.mrf.mxu2  ;;  %v508_v21 = vld [vmem:[%s4159_s5 + $0x18] sm:$0xff] }
 0x6d2   : > { %2516 = vmatmul.msk.f32.vlgmr.msrb.gmra.mxu2 %vm683_vm15, %v1021_v22  ;;  %1219 = vmatpush.msra.mxu1 %v508_v21  ;;  %v505_v22 = vld [vmem:[%s4159_s5] sm:$0xff] }
 0x6d3   : > { %1197 = vmatpush.msrb.mxu0 %v505_v22 }
 0x6d4   : > { %1220 = vmatpush.msra.mxu1 %v506_v23  ;;  %v532_v23 = vld [vmem:[%s4161_s7 + $0x18] sm:$0xff] }
 0x6da   : > { %2517 = vmatmul.msk.f32.gmra.mxu2 %vm683_vm15, %v1022_v24 }
 0x739   : > { %v956_v26 = vpop.f32.mrf.mxu2 }
 0x73a   : > { %1068 = vrot.lane.b32.xlu1 %v956_v26, %s4172_s16 }
 0x73c   : > { %v1061_v38 = vpop.permute.xlu1 %1060 }
 0x73d   : > { %v1082_v41 = vsel %vm683_vm15, %v3251_v1, %v1061_v38  ;;  %v1121_v1 = vperm.slane %v3163_v46, 5  ;;  %v1168_v38 = vperm.slane %v3163_v46, 2 }
 0x741   : > { %v959_v27 = vpop.f32.mrf.mxu2 }
 0x742   : > { %1062 = vrot.lane.b32.xlu1 %v863_v25, %s4174_s24  ;;  %s4186_s24 = smov 48  }
 0x74a   : > { %1070 = vrot.lane.b32.xlu1 %v959_v27, %s4172_s16  ;;  %s4191_s16 = smov 96  }
 0x755   : > { %v1052_v28 = vpop.f32.mrf.mxu2 }
 0x756   : > { %1076 = vrot.lane.b32.xlu0 %v1052_v28, %s4178_s13 }
 0x75d   : > { %v1055_v29 = vpop.f32.mrf.mxu2 }
 0x75e   : > { %1078 = vrot.lane.b32.xlu2 %v1055_v29, %s4178_s13  ;;  %s4192_s13 = smov 80  }
 0x7ac   : > { %v1069_v39 = vpop.permute.xlu1 %1068 }
 0x7ad   : > { %v1085_v42 = vsel %vm1084_vm0, %v1082_v41, %v1069_v39 }
 0x7b4   : > { %v1063_v40 = vpop.permute.xlu1 %1062 }
 0x7b5   : > { %v1083_v47 = vsel %vm683_vm15, %v3253_v2, %v1063_v40 }
 0x7b8   : > { %v1079_v17 = vpop.permute.xlu2 %1078 }
 0x7bc   : > { %v1071_v45 = vpop.permute.xlu1 %1070 }
 0x7bd   : > { %v1086_v15 = vsel %vm1084_vm0, %v1083_v47, %v1071_v45 }
 0x7be   : > { %v1089_v48 = vsel %vm1087_vm1, %v1086_v15, %v1079_v17 }
 0x7c8   : > { %v1077_v43 = vpop.permute.xlu0 %1076 }
 0x7c9   : > { %v1088_v44 = vsel %vm1087_vm1, %v1085_v42, %v1077_v43  ;;  %v1171_v42 = vperm.slane %v3163_v46, 3  ;;  %v534_v46 = vld [vmem:[%s4161_s7 + $0x28] sm:$0xff] }
 0x7ca   : > { %2518 = vmatmul.msk.f32.vlgmr.msrb.gmra.mxu3 %vm563_vm7, %v1088_v44 }
 0x7d2   : > { %2519 = vmatmul.msk.f32.gmra.mxu3 %vm563_vm7, %v1089_v48 }
 0x84d   : > { %v1113_v49 = vpop.f32.mrf.mxu3 }
 0x84e   : > { %v1119_v50 = vadd.f32 %v1113_v49, %v3086_v62 }
 0x850   : > { %v3330_v51 = vadd.f32 %v1121_v1, %v1119_v50  ;;  %v544_v50 = vld [vmem:[%s4161_s7 + $0x78] sm:$0xff] }
 0x851   : > { %1348 = vmatpush.msra.mxu2 %v544_v50 }
 0x852   : > { %v1124_v52 = vsel %vm563_vm7, %v3330_v51, 0.0 }
 0x853   : > { %1125 = vadd.xlane.f32.xlu1 %v1124_v52  ;;  %v560_v52 = vld [vmem:[%s4161_s7 + $0xf8] sm:$0xff] }
 0x854   : > { %1371 = vmatpush.msra.mxu3 %v560_v52 }
 0x855   : > { %v1116_v53 = vpop.f32.mrf.mxu3 }
 0x856   : > { %v1120_v2 = vadd.f32 %v1116_v53, %v3090_v0  ;;  %v543_v53 = vld [vmem:[%s4161_s7 + $0x70] sm:$0xff] }
 0x857   : > { %1349 = vmatpush.msra.mxu2 %v543_v53 }
 0x858   : > { %v3335_v54 = vadd.f32 %v1121_v1, %v1120_v2  ;;  %v559_v2 = vld [vmem:[%s4161_s7 + $0xf0] sm:$0xff] }
 0x859   : > { %1372 = vmatpush.msra.mxu3 %v559_v2 }
 0x85a   : > { %v1127_v55 = vsel %vm563_vm7, %v3335_v54, 0.0 }
 0x85b   : > { %1128 = vadd.xlane.f32.xlu0 %v1127_v55  ;;  %v542_v55 = vld [vmem:[%s4161_s7 + $0x68] sm:$0xff] }
 0x85c   : > { %1350 = vmatpush.msra.mxu2 %v542_v55 }
 0x8c6   : > { %v1126_v56 = vpop.xlane.xlu1 %1125 }
 0x8c7   : > { %v1130_v57 = vmul.f32 %v1126_v56, %v3094_v8  ;;  %v558_v56 = vld [vmem:[%s4161_s7 + $0xe8] sm:$0xff] }
 0x8c8   : > { %1373 = vmatpush.msra.mxu3 %v558_v56 }
 0x8c9   : > { %v3341_v62 = vsub.f32 %v3330_v51, %v1130_v57  ;;  %v541_v57 = vld [vmem:[%s4161_s7 + $0x60] sm:$0xff] }
 0x8ca   : > { %1351 = vmatpush.msra.mxu2 %v541_v57 }
 0x8cb   : > { %v1134_v58 = vmul.f32 %v3341_v62, %v3341_v62 }
 0x8cd   : > { %v1136_v59 = vsel %vm563_vm7, %v1134_v58, 0.0  ;;  %v540_v58 = vld [vmem:[%s4161_s7 + $0x58] sm:$0xff] }
 0x8ce   : > { %1137 = vadd.xlane.f32.xlu2 %v1136_v59  ;;  %v1129_v60 = vpop.xlane.xlu0 %1128  ;;  %v556_v59 = vld [vmem:[%s4161_s7 + $0xd8] sm:$0xff]  ;;  %1352 = vmatpush.msra.mxu2 %v540_v58 }
 0x8cf   : > { %v1131_v0 = vmul.f32 %v1129_v60, %v3094_v8  ;;  %v539_v60 = vld [vmem:[%s4161_s7 + $0x50] sm:$0xff] }
 0x8d0   : > { %1353 = vmatpush.msra.mxu2 %v539_v60 }
 0x8d1   : > { %v3348_v61 = vsub.f32 %v3335_v54, %v1131_v0  ;;  %v555_v0 = vld [vmem:[%s4161_s7 + $0xd0] sm:$0xff] }
 0x8d3   : > { %v1135_v63 = vmul.f32 %v3348_v61, %v3348_v61 }
 0x8d5   : > { %v1139_v3 = vsel %vm563_vm7, %v1135_v63, 0.0  ;;  %v554_v63 = vld [vmem:[%s4161_s7 + $0xc8] sm:$0xff] }
 0x8d6   : > { %1140 = vadd.xlane.f32.xlu1 %v1139_v3  ;;  %v537_v3 = vld [vmem:[%s4161_s7 + $0x40] sm:$0xff] }
 0x941   : > { %v1138_v24 = vpop.xlane.xlu2 %1137 }
 0x942   : > { %v1142_v25 = vmul.f32 %v1138_v24, %v3094_v8  ;;  %v548_v24 = vld [vmem:[%s4161_s7 + $0x98] sm:$0xff] }
 0x944   : > { %v1144_v26 = vadd.f32 1e-05, %v1142_v25 }
 0x946   : > { %2776 = vrsqrt.f32 %v1144_v26  ;;  %vm1152_vm3 = vweird.f32 %v1144_v26 }
 0x949   : > { %v1141_v27 = vpop.xlane.xlu1 %1140 }
 0x94a   : > { %v1143_v28 = vmul.f32 %v1141_v27, %v3094_v8  ;;  %v531_v27 = vld [vmem:[%s4161_s7 + $0x10] sm:$0xff] }
 0x94c   : > { %v2777_v29 = vpop.eup %2776  ;;  %v1145_v30 = vadd.f32 1e-05, %v1143_v28  ;;  %v547_v28 = vld [vmem:[%s4161_s7 + $0x90] sm:$0xff] }
 0x94d   : > { %v1147_v31 = vmul.f32 %v2777_v29, %v1144_v26  ;;  %vm1153_vm2 = vweird.f32 %v2777_v29 }
 0x94e   : > { %2778 = vrsqrt.f32 %v1145_v30  ;;  %vm1154_vm4 = vmor %vm1152_vm3, %vm1153_vm2  ;;  %vm1162_vm6 = vweird.f32 %v1145_v30 }
 0x94f   : > { %v1148_v32 = vmul.f32 %v2777_v29, %v1147_v31 }
 0x951   : > { %v1149_v33 = vmul.f32 0.5, %v1148_v32 }
 0x953   : > { %v1150_v34 = vsub.f32 1.5, %v1149_v33  ;;  %v530_v33 = vld [vmem:[%s4161_s7 + $0x8] sm:$0xff] }
 0x954   : > { %v2779_v35 = vpop.eup %2778 }
 0x955   : > { %v1151_v36 = vmul.f32 %v2777_v29, %v1150_v34  ;;  %v1157_v37 = vmul.f32 %v2779_v35, %v1145_v30  ;;  %vm1163_vm5 = vweird.f32 %v2779_v35  ;;  %v546_v34 = vld [vmem:[%s4161_s7 + $0x88] sm:$0xff] }
 0x956   : > { %vm1164_vm8 = vmor %vm1162_vm6, %vm1163_vm5 }
 0x957   : > { %v1155_v39 = vsel %vm1154_vm4, %v2777_v29, %v1151_v36  ;;  %v1158_v40 = vmul.f32 %v2779_v35, %v1157_v37 }
 0x958   : > { %v1166_v41 = vmul.f32 %v1155_v39, %v3341_v62  ;;  %v557_v62 = vld [vmem:[%s4161_s7 + $0xe0] sm:$0xff] }
 0x959   : > { %v1159_v43 = vmul.f32 0.5, %v1158_v40  ;;  %1374 = vmatpush.msra.mxu3 %v557_v62 }
 0x95a   : > { %v1169_v44 = vmul.f32 %v1168_v38, %v1166_v41  ;;  %v529_v41 = vld [vmem:[%s4161_s7] sm:$0xff] }
 0x95b   : > { %v1160_v45 = vsub.f32 1.5, %v1159_v43  ;;  %1375 = vmatpush.msra.mxu3 %v556_v59 }
 0x95c   : > { %v1172_v47 = vadd.f32 %v1171_v42, %v1169_v44 }
 0x95d   : > { %v1161_v15 = vmul.f32 %v2779_v35, %v1160_v45  ;;  %1376 = vmatpush.msra.mxu3 %v555_v0 }
 0x95e   : > { %2520 = vmatmul.msk.f32.vlgmr.msrb.gmra.mxu0 %vm563_vm7, %v1172_v47  ;;  %2522 = vmatmul.msk.f32.vlgmr.msra.gmra.mxu1 %vm563_vm7, %v1172_v47 }
 0x95f   : > { %v1165_v17 = vsel %vm1164_vm8, %v2779_v35, %v1161_v15  ;;  %1377 = vmatpush.msra.mxu3 %v554_v63 }
 0x960   : > { %v1167_v48 = vmul.f32 %v1165_v17, %v3348_v61  ;;  %v538_v61 = vld [vmem:[%s4161_s7 + $0x48] sm:$0xff] }
 0x961   : > { %1354 = vmatpush.msra.mxu2 %v538_v61  ;;  %1378 = vmatpush.msra.mxu3 %v553_v4 }
 0x962   : > { %v1170_v1 = vmul.f32 %v1168_v38, %v1167_v48 }
 0x963   : > { %1355 = vmatpush.msra.mxu2 %v537_v3  ;;  %1379 = vmatpush.msra.mxu3 %v552_v6 }
 0x964   : > { %v1173_v49 = vadd.f32 %v1171_v42, %v1170_v1  ;;  %v545_v42 = vld [vmem:[%s4161_s7 + $0x80] sm:$0xff] }
 0x965   : > { %1356 = vmatpush.msra.mxu2 %v536_v5  ;;  %1380 = vmatpush.msra.mxu3 %v551_v11 }
 0x966   : > { %2521 = vmatmul.msk.f32.gmra.mxu0 %vm563_vm7, %v1173_v49  ;;  %2523 = vmatmul.msk.f32.gmra.mxu1 %vm563_vm7, %v1173_v49 }
 0x967   : > { %1357 = vmatpush.msra.mxu2 %v535_v10  ;;  %1381 = vmatpush.msra.mxu3 %v550_v12 }
 0x969   : > { %1358 = vmatpush.msra.mxu2 %v534_v46  ;;  %1382 = vmatpush.msra.mxu3 %v549_v20 }
 0x96b   : > { %1359 = vmatpush.msra.mxu2 %v533_v19  ;;  %1383 = vmatpush.msra.mxu3 %v548_v24 }
 0x96d   : > { %1360 = vmatpush.msra.mxu2 %v532_v23  ;;  %1384 = vmatpush.msra.mxu3 %v547_v28 }
 0x96f   : > { %1361 = vmatpush.msra.mxu2 %v531_v27  ;;  %1385 = vmatpush.msra.mxu3 %v546_v34 }
 0x971   : > { %1362 = vmatpush.msra.mxu2 %v530_v33  ;;  %1386 = vmatpush.msra.mxu3 %v545_v42 }
 0x973   : > { %1363 = vmatpush.msra.mxu2 %v529_v41 }
 0x9db   : > { %v1199_v13 = vpop.f32.mrf.mxu0  ;;  %v1222_v14 = vpop.f32.mrf.mxu1 }
 0x9dc   : > { %v3479_v16 = vadd.f32 %v1199_v13, %v1174_v7  ;;  %v3481_v18 = vadd.f32 %v1222_v14, %v1175_v9 }
 0x9de   : > { %v1232_v21 = vmul.f32 0.70710677, %v3479_v16  ;;  %v1233_v22 = vmul.f32 0.70710677, %v3481_v18 }
 0x9e0   : > { %v3497_v25 = vclamps-f32 %v1232_v21, 4.0  ;;  %v3499_v26 = vclamps-f32 %v1233_v22, 4.0 }
 0x9e2   : > { %v3509_v29 = vmul.f32 %v3497_v25, %v3497_v25  ;;  %v3513_v30 = vmul.f32 %v3499_v26, %v3499_v26 }
 0x9e3   : > { %v1202_v31 = vpop.f32.mrf.mxu0  ;;  %v1225_v32 = vpop.f32.mrf.mxu1 }
 0x9e4   : > { %v1248_v35 = vmul.f32 -2.7261424e-10, %v3509_v29  ;;  %v1296_v36 = vmul.f32 -1.45660715e-05, %v3509_v29  ;;  %v1249_v37 = vmul.f32 -2.7261424e-10, %v3513_v30  ;;  %v3524_v38 = vadd.f32 %v1202_v31, %v1174_v7 }
 0x9e5   : > { %v1297_v39 = vmul.f32 -1.45660715e-05, %v3513_v30  ;;  %v3527_v40 = vadd.f32 %v1225_v32, %v1175_v9 }
 0x9e6   : > { %v1252_v43 = vadd.f32 2.7706815e-08, %v1248_v35  ;;  %v1300_v44 = vadd.f32 -0.00021337405, %v1296_v36  ;;  %v1253_v45 = vadd.f32 2.7706815e-08, %v1249_v37 }
 0x9e7   : > { %v1301_v47 = vadd.f32 -0.00021337405, %v1297_v39  ;;  %v1234_v15 = vmul.f32 0.70710677, %v3524_v38  ;;  %v1235_v49 = vmul.f32 0.70710677, %v3527_v40 }
 0x9e8   : > { %v1256_v17 = vmul.f32 %v1252_v43, %v3509_v29  ;;  %v1304_v48 = vmul.f32 %v1300_v44, %v3509_v29  ;;  %v1257_v1 = vmul.f32 %v1253_v45, %v3513_v30 }
 0x9e9   : > { %v1305_v50 = vmul.f32 %v1301_v47, %v3513_v30  ;;  %v3541_v52 = vclamps-f32 %v1234_v15, 4.0  ;;  %v3547_v62 = vclamps-f32 %v1235_v49, 4.0 }
 0x9ea   : > { %v1260_v53 = vadd.f32 -2.101024e-06, %v1256_v17  ;;  %v1308_v2 = vadd.f32 -0.001682827, %v1304_v48  ;;  %v1261_v55 = vadd.f32 -2.101024e-06, %v1257_v1 }
 0x9eb   : > { %v1309_v56 = vadd.f32 -0.001682827, %v1305_v50  ;;  %v3545_v57 = vmul.f32 %v3541_v52, %v3541_v52  ;;  %v3556_v63 = vmul.f32 %v3547_v62, %v3547_v62 }
 0x9ec   : > { %v1264_v58 = vmul.f32 %v1260_v53, %v3509_v29  ;;  %v1312_v59 = vmul.f32 %v1308_v2, %v3509_v29  ;;  %v1265_v60 = vmul.f32 %v1261_v55, %v3513_v30 }
 0x9ed   : > { %v1313_v0 = vmul.f32 %v1309_v56, %v3513_v30  ;;  %v1250_v61 = vmul.f32 -2.7261424e-10, %v3545_v57  ;;  %v1298_v3 = vmul.f32 -1.45660715e-05, %v3545_v57  ;;  %v1251_v10 = vmul.f32 -2.7261424e-10, %v3556_v63 }
 0x9ee   : > { %v1268_v4 = vadd.f32 -5.6925062e-05, %v1264_v58  ;;  %v1316_v5 = vadd.f32 -0.0073733293, %v1312_v59  ;;  %v1269_v6 = vadd.f32 -5.6925062e-05, %v1265_v60 }
 0x9ef   : > { %v1317_v7 = vadd.f32 -0.0073733293, %v1313_v0  ;;  %v1254_v9 = vadd.f32 2.7706815e-08, %v1250_v61  ;;  %v1302_v46 = vadd.f32 -0.00021337405, %v1298_v3 }
 0x9f0   : > { %v1272_v11 = vmul.f32 %v1268_v4, %v3509_v29  ;;  %v1320_v13 = vmul.f32 %v1316_v5, %v3509_v29  ;;  %v1273_v14 = vmul.f32 %v1269_v6, %v3513_v30  ;;  %v1255_v20 = vadd.f32 2.7706815e-08, %v1251_v10 }
 0x9f1   : > { %v1321_v12 = vmul.f32 %v1317_v7, %v3513_v30  ;;  %v1258_v19 = vmul.f32 %v1254_v9, %v3545_v57  ;;  %v1299_v21 = vmul.f32 -1.45660715e-05, %v3556_v63  ;;  %v1306_v27 = vmul.f32 %v1302_v46, %v3545_v57 }
 0x9f2   : > { %v1276_v22 = vadd.f32 -0.00073499064, %v1272_v11  ;;  %v1324_v23 = vadd.f32 -0.014264739, %v1320_v13  ;;  %v1277_v24 = vadd.f32 -0.00073499064, %v1273_v14  ;;  %v1259_v32 = vmul.f32 %v1255_v20, %v3556_v63 }
 0x9f3   : > { %v1325_v28 = vadd.f32 -0.014264739, %v1321_v12  ;;  %v1262_v31 = vadd.f32 -2.101024e-06, %v1258_v19  ;;  %v1303_v33 = vadd.f32 -0.00021337405, %v1299_v21 }
 0x9f4   : > { %v1280_v34 = vmul.f32 %v1276_v22, %v3509_v29  ;;  %v1281_v35 = vmul.f32 %v1277_v24, %v3513_v30  ;;  %v1310_v36 = vadd.f32 -0.001682827, %v1306_v27  ;;  %v1263_v39 = vadd.f32 -2.101024e-06, %v1259_v32 }
 0x9f5   : > { %v1266_v37 = vmul.f32 %v1262_v31, %v3545_v57  ;;  %v1307_v41 = vmul.f32 %v1303_v33, %v3556_v63  ;;  %2780 = vrcp.f32 %v1324_v23  ;;  %v1228_v10 = vmul.f32 0.5, %v3479_v16 }
 0x9f6   : > { %v1284_v42 = vadd.f32 -0.0029546, %v1280_v34  ;;  %v1285_v43 = vadd.f32 -0.0029546, %v1281_v35  ;;  %v1314_v44 = vmul.f32 %v1310_v36, %v3545_v57  ;;  %2782 = vrcp.f32 %v1325_v28 }
 0x9f7   : > { %v1270_v45 = vadd.f32 -5.6925062e-05, %v1266_v37  ;;  %v1267_v47 = vmul.f32 %v1263_v39, %v3556_v63  ;;  %v1311_v15 = vadd.f32 -0.001682827, %v1307_v41  ;;  %v1230_v32 = vmul.f32 0.5, %v3524_v38 }
 0x9f8   : > { %v1288_v17 = vmul.f32 %v1284_v42, %v3509_v29  ;;  %v1289_v48 = vmul.f32 %v1285_v43, %v3513_v30  ;;  %v1318_v1 = vadd.f32 -0.0073733293, %v1314_v44  ;;  %v1231_v34 = vmul.f32 0.5, %v3527_v40 }
 0x9f9   : > { %v1274_v49 = vmul.f32 %v1270_v45, %v3545_v57  ;;  %v1271_v50 = vadd.f32 -5.6925062e-05, %v1267_v47  ;;  %v1315_v53 = vmul.f32 %v1311_v15, %v3556_v63 }
 0x9fa   : > { %v1292_v2 = vadd.f32 -0.016096033, %v1288_v17  ;;  %v1293_v55 = vadd.f32 -0.016096033, %v1289_v48  ;;  %v1322_v56 = vmul.f32 %v1318_v1, %v3545_v57 }
 0x9fb   : > { %v1278_v58 = vadd.f32 -0.00073499064, %v1274_v49  ;;  %v1275_v59 = vmul.f32 %v1271_v50, %v3556_v63  ;;  %v1319_v60 = vadd.f32 -0.0073733293, %v1315_v53  ;;  %v2781_v0 = vpop.eup %2780 }
 0x9fc   : > { %v1328_v61 = vmul.f32 %v3497_v25, %v1292_v2  ;;  %v1329_v29 = vmul.f32 %v3499_v26, %v1293_v55  ;;  %v1326_v30 = vadd.f32 -0.014264739, %v1322_v56  ;;  %v2783_v3 = vpop.eup %2782  ;;  %v1229_v25 = vmul.f32 0.5, %v3481_v18 }
 0x9fd   : > { %v1282_v4 = vmul.f32 %v1278_v58, %v3545_v57  ;;  %v1279_v5 = vadd.f32 -0.00073499064, %v1275_v59  ;;  %v1323_v6 = vmul.f32 %v1319_v60, %v3556_v63  ;;  %v2550_v58 = vld [vmem:[%s4158_s4 + $0xf0] sm:$0xff]  ;;  %v2551_v59 = vld [vmem:[%s4158_s4 + $0xf8] sm:$0xff]  ;;  %v2548_v60 = vld [vmem:[%s4158_s4 + $0xe0] sm:$0xff] }
 0x9fe   : > { %v1336_v7 = vmul.f32 %v2781_v0, %v1328_v61  ;;  %v1337_v9 = vmul.f32 %v2783_v3, %v1329_v29  ;;  %2784 = vrcp.f32 %v1326_v30  ;;  %1553 = vmatpush.msra.mxu0 %v2550_v58  ;;  %1576 = vmatpush.msrb.mxu1 %v2551_v59  ;;  %v2549_v0 = vld [vmem:[%s4158_s4 + $0xe8] sm:$0xff]  ;;  %v2546_v61 = vld [vmem:[%s4158_s4 + $0xd0] sm:$0xff]  ;;  %v2547_v29 = vld [vmem:[%s4158_s4 + $0xd8] sm:$0xff] }
 0x9ff   : > { %v1286_v11 = vadd.f32 -0.0029546, %v1282_v4  ;;  %v1283_v13 = vmul.f32 %v1279_v5, %v3556_v63  ;;  %v1327_v14 = vadd.f32 -0.014264739, %v1323_v6  ;;  %v2544_v30 = vld [vmem:[%s4158_s4 + $0xc0] sm:$0xff]  ;;  %v2545_v3 = vld [vmem:[%s4158_s4 + $0xc8] sm:$0xff] }
 0xa00   : > { %v1340_v46 = vadd.f32 1.0, %v1336_v7  ;;  %v1341_v12 = vadd.f32 1.0, %v1337_v9  ;;  %1554 = vmatpush.msra.mxu0 %v2548_v60  ;;  %1577 = vmatpush.msrb.mxu1 %v2549_v0  ;;  %v2542_v4 = vld [vmem:[%s4158_s4 + $0xb0] sm:$0xff]  ;;  %v2543_v5 = vld [vmem:[%s4158_s4 + $0xb8] sm:$0xff]  ;;  %v2540_v6 = vld [vmem:[%s4158_s4 + $0xa0] sm:$0xff] }
 0xa01   : > { %v1290_v26 = vmul.f32 %v1286_v11, %v3545_v57  ;;  %v1287_v19 = vadd.f32 -0.0029546, %v1283_v13  ;;  %2786 = vrcp.f32 %v1327_v14  ;;  %v2541_v7 = vld [vmem:[%s4158_s4 + $0xa8] sm:$0xff]  ;;  %v2538_v9 = vld [vmem:[%s4158_s4 + $0x90] sm:$0xff]  ;;  %v2536_v13 = vld [vmem:[%s4158_s4 + $0x80] sm:$0xff] }
 0xa02   : > { %v1344_v20 = vmul.f32 %v1340_v46, %v1228_v10  ;;  %v1345_v21 = vmul.f32 %v1341_v12, %v1229_v25  ;;  %1555 = vmatpush.msra.mxu0 %v2546_v61  ;;  %1578 = vmatpush.msrb.mxu1 %v2547_v29  ;;  %v2539_v10 = vld [vmem:[%s4158_s4 + $0x98] sm:$0xff]  ;;  %v2537_v14 = vld [vmem:[%s4158_s4 + $0x88] sm:$0xff] }
 0xa03   : > { %v1294_v22 = vadd.f32 -0.016096033, %v1290_v26  ;;  %v1291_v23 = vmul.f32 %v1287_v19, %v3556_v63 }
 0xa04   : > { %1364 = vmatmul.f32.vlgmr.msra.gmra.mxu2 %v1344_v20  ;;  %1387 = vmatmul.f32.vlgmr.msra.gmra.mxu3 %v1345_v21  ;;  %v2785_v27 = vpop.eup %2784 }
 0xa05   : > { %v1330_v16 = vmul.f32 %v3541_v52, %v1294_v22  ;;  %v1295_v24 = vadd.f32 -0.016096033, %v1291_v23  ;;  %1556 = vmatpush.msra.mxu0 %v2544_v30  ;;  %1579 = vmatpush.msrb.mxu1 %v2545_v3 }
 0xa07   : > { %v1331_v28 = vmul.f32 %v3547_v62, %v1295_v24  ;;  %v1338_v18 = vmul.f32 %v2785_v27, %v1330_v16  ;;  %v2787_v31 = vpop.eup %2786  ;;  %v2842_v62 = vld [vmem:[%s4162_s8] sm:$0xff]  ;;  %1557 = vmatpush.msra.mxu0 %v2542_v4  ;;  %1580 = vmatpush.msrb.mxu1 %v2543_v5  ;;  %v3673_v16 = vld [vmem:[%s4162_s8 + $0x10] sm:$0xff] }
 0xa08   : > { %v1396_v41 = vperm.slane %v2842_v62, 7 }
 0xa09   : > { %v1342_v57 = vadd.f32 1.0, %v1338_v18  ;;  %v1339_v33 = vmul.f32 %v2787_v31, %v1331_v28  ;;  %1558 = vmatpush.msra.mxu0 %v2540_v6  ;;  %1581 = vmatpush.msrb.mxu1 %v2541_v7  ;;  %v1531_v28 = vperm.slane %v3673_v16, 0 }
 0xa0b   : > { %v1346_v35 = vmul.f32 %v1342_v57, %v1230_v32  ;;  %v1343_v36 = vadd.f32 1.0, %v1339_v33  ;;  %1559 = vmatpush.msra.mxu0 %v2538_v9  ;;  %1582 = vmatpush.msrb.mxu1 %v2539_v10  ;;  %v1534_v33 = vperm.slane %v3673_v16, 1  ;;  %v2530_v9 = vld [vmem:[%s4157_s3 + $0x50] sm:$0xff] }
 0xa0d   : > { %1367 = vmatmul.f32.gmra.mxu2 %v1346_v35  ;;  %v1347_v63 = vmul.f32 %v1343_v36, %v1231_v34  ;;  %1560 = vmatpush.msra.mxu0 %v2536_v13 }
 0xa0e   : > { %1583 = vmatpush.msrb.mxu1 %v2537_v14 }
 0xa0f   : > { %1390 = vmatmul.f32.gmra.mxu3 %v1347_v63 }
 0xa87   : > { %v1365_v37 = vpop.f32.mrf.mxu2  ;;  %v1388_v39 = vpop.f32.mrf.mxu3 }
 0xa88   : > { %v1389_v52 = vadd.f32 %v1388_v39, %v1365_v37 }
 0xa8a   : > { %v1394_v42 = vadd.f32 %v1389_v52, %v3330_v51 }
 0xa8c   : > { %v3597_v38 = vadd.f32 %v1396_v41, %v1394_v42 }
 0xa8e   : > { %v1487_v40 = vsel %vm563_vm7, %v3597_v38, 0.0 }
 0xa8f   : > { %1488 = vadd.xlane.f32.xlu0 %v1487_v40  ;;  %v1537_v40 = vperm.slane %v3673_v16, 4 }
 0xa90   : > { %v1368_v43 = vpop.f32.mrf.mxu2 }
 0xa92   : > { %v1391_v44 = vpop.f32.mrf.mxu3 }
 0xa93   : > { %v1392_v45 = vadd.f32 %v1391_v44, %v1368_v43 }
 0xa95   : > { %v1395_v47 = vadd.f32 %v1392_v45, %v3335_v54 }
 0xa97   : > { %v3602_v15 = vadd.f32 %v1396_v41, %v1395_v47 }
 0xa99   : > { %v1490_v17 = vsel %vm563_vm7, %v3602_v15, 0.0 }
 0xa9a   : > { %1491 = vadd.xlane.f32.xlu1 %v1490_v17  ;;  %v3688_v17 = vld [vmem:[%s4162_s8 + $0x18] sm:$0xff] }
 0xb02   : > { %v1489_v48 = vpop.xlane.xlu0 %1488 }
 0xb03   : > { %v1493_v51 = vmul.f32 %v1489_v48, %v3094_v8  ;;  %v1538_v48 = vperm.slane %v3688_v17, 4 }
 0xb05   : > { %v3608_v1 = vsub.f32 %v3597_v38, %v1493_v51 }
 0xb07   : > { %v1497_v49 = vmul.f32 %v3608_v1, %v3608_v1 }
 0xb09   : > { %v1499_v50 = vsel %vm563_vm7, %v1497_v49, 0.0 }
 0xb0a   : > { %1500 = vadd.xlane.f32.xlu0 %v1499_v50 }
 0xb0d   : > { %v1492_v53 = vpop.xlane.xlu1 %1491 }
 0xb0e   : > { %v1494_v54 = vmul.f32 %v1492_v53, %v3094_v8 }
 0xb10   : > { %v3615_v2 = vsub.f32 %v3602_v15, %v1494_v54 }
 0xb12   : > { %v1498_v55 = vmul.f32 %v3615_v2, %v3615_v2 }
 0xb14   : > { %v1502_v56 = vsel %vm563_vm7, %v1498_v55, 0.0 }
 0xb15   : > { %1503 = vadd.xlane.f32.xlu1 %v1502_v56 }
 0xb7d   : > { %v1501_v11 = vpop.xlane.xlu0 %1500 }
 0xb7e   : > { %v1505_v46 = vmul.f32 %v1501_v11, %v3094_v8  ;;  %v2528_v11 = vld [vmem:[%s4157_s3 + $0x40] sm:$0xff] }
 0xb80   : > { %v1507_v25 = vadd.f32 1e-05, %v1505_v46 }
 0xb82   : > { %2788 = vrsqrt.f32 %v1507_v25  ;;  %vm1515_vm10 = vweird.f32 %v1507_v25 }
 0xb88   : > { %v2789_v12 = vpop.eup %2788  ;;  %v1504_v26 = vpop.xlane.xlu1 %1503 }
 0xb89   : > { %v1510_v19 = vmul.f32 %v2789_v12, %v1507_v25  ;;  %v1506_v20 = vmul.f32 %v1504_v26, %v3094_v8  ;;  %vm1516_vm9 = vweird.f32 %v2789_v12  ;;  %v2531_v26 = vld [vmem:[%s4157_s3 + $0x58] sm:$0xff] }
 0xb8a   : > { %vm1517_vm11 = vmor %vm1515_vm10, %vm1516_vm9 }
 0xb8b   : > { %v1511_v21 = vmul.f32 %v2789_v12, %v1510_v19  ;;  %v1508_v22 = vadd.f32 1e-05, %v1506_v20  ;;  %v2529_v19 = vld [vmem:[%s4157_s3 + $0x48] sm:$0xff] }
 0xb8d   : > { %v1512_v23 = vmul.f32 0.5, %v1511_v21  ;;  %2790 = vrsqrt.f32 %v1508_v22  ;;  %vm1525_vm13 = vweird.f32 %v1508_v22 }
 0xb8f   : > { %v1513_v24 = vsub.f32 1.5, %v1512_v23 }
 0xb91   : > { %v1514_v27 = vmul.f32 %v2789_v12, %v1513_v24 }
 0xb93   : > { %v2791_v18 = vpop.eup %2790  ;;  %v1518_v31 = vsel %vm1517_vm11, %v2789_v12, %v1514_v27 }
 0xb94   : > { %v1529_v32 = vmul.f32 %v1518_v31, %v3608_v1  ;;  %v1520_v57 = vmul.f32 %v2791_v18, %v1508_v22  ;;  %vm1526_vm12 = vweird.f32 %v2791_v18 }
 0xb95   : > { %vm1527_vm14 = vmor %vm1525_vm13, %vm1526_vm12  ;;  %vm2414_vm13 = vcmask 73728  }
 0xb96   : > { %v1532_v34 = vmul.f32 %v1531_v28, %v1529_v32  ;;  %v1521_v35 = vmul.f32 %v2791_v18, %v1520_v57 }
 0xb98   : > { %v1522_v36 = vmul.f32 0.5, %v1521_v35  ;;  %v1535_v63 = vadd.f32 %v1534_v33, %v1532_v34 }
 0xb9a   : > { %v1523_v37 = vsub.f32 1.5, %v1522_v36  ;;  %2610 = vmatmul.msk.f32.vlgmr.msra.gmra.mxu0 %vm563_vm7, %v1535_v63  ;;  %2612 = vmatmul.msk.f32.vlgmr.msrb.gmra.mxu1 %vm563_vm7, %v1535_v63  ;;  %v2535_v36 = vld [vmem:[%s4157_s3 + $0x78] sm:$0xff]  ;;  %v2533_v63 = vld [vmem:[%s4157_s3 + $0x68] sm:$0xff] }
 0xb9c   : > { %v1524_v39 = vmul.f32 %v2791_v18, %v1523_v37 }
 0xb9e   : > { %v1528_v52 = vsel %vm1527_vm14, %v2791_v18, %v1524_v39  ;;  %v2532_v18 = vld [vmem:[%s4157_s3 + $0x60] sm:$0xff] }
 0xb9f   : > { %v1530_v62 = vmul.f32 %v1528_v52, %v3615_v2 }
 0xba1   : > { %v1533_v41 = vmul.f32 %v1531_v28, %v1530_v62  ;;  %v2534_v28 = vld [vmem:[%s4157_s3 + $0x70] sm:$0xff] }
 0xba3   : > { %v1536_v42 = vadd.f32 %v1534_v33, %v1533_v41 }
 0xba5   : > { %2611 = vmatmul.msk.f32.gmra.mxu0 %vm563_vm7, %v1536_v42  ;;  %2613 = vmatmul.msk.f32.gmra.mxu1 %vm563_vm7, %v1536_v42 }
 0xc17   : > { %v1562_v43 = vpop.f32.mrf.mxu0  ;;  %v1585_v45 = vpop.f32.mrf.mxu1 }
 0xc18   : > { %v1563_v44 = vadd.f32 %v1562_v43, %v1537_v40  ;;  %v1586_v49 = vadd.f32 %v1585_v45, %v1538_v48 }
 0xc1a   : > { %1687 = vrot.lane.b32.xlu2 %v1563_v44, %s4186_s24  ;;  %v1591_v47 = vmul.f32 0.25, %v1563_v44 }
 0xc1c   : > { %1683 = vrot.lane.b32.xlu1 %v1591_v47, %s4187_s12 }
 0xc22   : > { %v1565_v51 = vpop.f32.mrf.mxu0  ;;  %v1588_v1 = vpop.f32.mrf.mxu1  ;;  %1595 = vrot.lane.b32.xlu2 %v1563_v44, %s4188_s29 }
 0xc23   : > { %v1566_v50 = vadd.f32 %v1565_v51, %v1537_v40  ;;  %v1589_v53 = vadd.f32 %v1588_v1, %v1538_v48 }
 0xc25   : > { %1674 = vmatpush.msra.mxu1 %v1589_v53  ;;  %1689 = vrot.lane.b32.xlu0 %v1566_v50, %s4186_s24  ;;  %v3694_v54 = vpack.i.bf16 %v1586_v49, %v1589_v53  ;;  %v1592_v2 = vmul.f32 0.25, %v1566_v50 }
 0xc26   : > { %1883 = vrot.lane.b32.xlu1 %v1566_v50, %s4189_s30 }
 0xc27   : > { %1675 = vmatpush.msra.mxu1 %v1586_v49 }
 0xc2a   : > { %1881 = vrot.lane.b32.xlu2 %v1563_v44, %s4189_s30 }
 0xc2d   : > { %1597 = vrot.lane.b32.xlu0 %v1566_v50, %s4188_s29  ;;  %s2864_s29 = scalar_lea.hbm %s4165_s11, 2 }
 0xc2e   : > { %1787 = vrot.lane.b32.xlu1 %v1566_v50, %s4190_s22 }
 0xc32   : > { %1785 = vrot.lane.b32.xlu2 %v1563_v44, %s4190_s22 }
 0xc35   : > { %1685 = vrot.lane.b32.xlu0 %v1592_v2, %s4187_s12 }
 0xc36   : > { %1781 = vrot.lane.b32.xlu1 %v1591_v47, %s4191_s16 }
 0xc3a   : > { %1783 = vrot.lane.b32.xlu2 %v1592_v2, %s4191_s16 }
 0xc3d   : > { %1877 = vrot.lane.b32.xlu0 %v1591_v47, %s4192_s13 }
 0xc45   : > { %1879 = vrot.lane.b32.xlu0 %v1592_v2, %s4192_s13 }
 0xc74   : > { %v1688_v55 = vpop.permute.xlu2 %1687 }
 0xc7c   : > { %v1596_v58 = vpop.permute.xlu2 %1595 }
 0xc84   : > { %v1882_v0 = vpop.permute.xlu2 %1881 }
 0xc8c   : > { %v1786_v3 = vpop.permute.xlu2 %1785 }
 0xc8e   : > { %v1684_v56 = vpop.permute.xlu1 %1683 }
 0xc94   : > { %v1784_v7 = vpop.permute.xlu2 %1783 }
 0xc97   : > { %v1690_v59 = vpop.permute.xlu0 %1689 }
 0xc98   : > { %2620 = vmatpush.xpose.msk.msrb.mxu2 %vm683_vm15, %v1690_v59  ;;  %v1884_v60 = vpop.permute.xlu1 %1883 }
 0xc9c   : > { %2621 = vmatpush.xpose.msk.msrb.mxu2 %vm683_vm15, %v1688_v55 }
 0xc9f   : > { %v1598_v61 = vpop.permute.xlu0 %1597  ;;  %2622 = vmatmul.msk.f32.vlgmr.msrb.gmra.mxu2 %vm683_vm15, %v1684_v56 }
 0xca0   : > { %2632 = vmatpush.xpose.msk.msra.mxu2 %vm683_vm15, %v1884_v60  ;;  %2614 = vmatpush.xpose.msk.msrb.mxu0 %vm683_vm15, %v1598_v61  ;;  %v1788_v29 = vpop.permute.xlu1 %1787 }
 0xca4   : > { %2633 = vmatpush.xpose.msk.msra.mxu2 %vm683_vm15, %v1882_v0  ;;  %2615 = vmatpush.xpose.msk.msrb.mxu0 %vm683_vm15, %v1596_v58 }
 0xca7   : > { %2616 = vmatmul.msk.f32.vlgmr.msrb.gmra.mxu0 %vm683_vm15, %v1591_v47  ;;  %v1686_v30 = vpop.permute.xlu0 %1685 }
 0xca8   : > { %2626 = vmatpush.xpose.msk.msra.mxu0 %vm683_vm15, %v1788_v29  ;;  %2623 = vmatmul.msk.f32.gmra.mxu2 %vm683_vm15, %v1686_v30  ;;  %v1782_v5 = vpop.permute.xlu1 %1781 }
 0xcac   : > { %2627 = vmatpush.xpose.msk.msra.mxu0 %vm683_vm15, %v1786_v3 }
 0xcaf   : > { %v1878_v4 = vpop.permute.xlu0 %1877  ;;  %2617 = vmatmul.msk.f32.gmra.mxu0 %vm683_vm15, %v1592_v2 }
 0xcb0   : > { %2634 = vmatmul.msk.f32.vlgmr.msra.gmra.mxu2 %vm683_vm15, %v1878_v4 }
 0xcb7   : > { %v1880_v6 = vpop.permute.xlu0 %1879  ;;  %2628 = vmatmul.msk.f32.vlgmr.msra.gmra.mxu0 %vm683_vm15, %v1782_v5 }
 0xcb8   : > { %2635 = vmatmul.msk.f32.gmra.mxu2 %vm683_vm15, %v1880_v6 }
 0xcbf   : > { %2629 = vmatmul.msk.f32.gmra.mxu0 %vm683_vm15, %v1784_v7 }
 0xd22   : > { %v1716_v10 = vpop.f32.mrf.mxu2 }
 0xd23   : > { %v1717_v13 = vadd.f32 %v2530_v9, %v1716_v10 }
 0xd24   : > { %v1626_v14 = vpop.f32.mrf.mxu0 }
 0xd25   : > { %v1627_v46 = vadd.f32 %v2528_v11, %v1626_v14  ;;  %v1722_v25 = vsel %vm683_vm15, %v1717_v13, -inf }
 0xd26   : > { %1723 = vmax.xlane.f32.xlu0 %v1722_v25 }
 0xd27   : > { %v1632_v12 = vsel %vm683_vm15, %v1627_v46, -inf }
 0xd28   : > { %1633 = vmax.xlane.f32.xlu1 %v1632_v12 }
 0xd2b   : > { %v1719_v20 = vpop.f32.mrf.mxu2 }
 0xd2c   : > { %v1720_v21 = vadd.f32 %v2531_v26, %v1719_v20  ;;  %v1629_v22 = vpop.f32.mrf.mxu0 }
 0xd2d   : > { %v1630_v23 = vadd.f32 %v2529_v19, %v1629_v22 }
 0xd2e   : > { %v1725_v24 = vsel %vm683_vm15, %v1720_v21, -inf }
 0xd2f   : > { %1726 = vmax.xlane.f32.xlu2 %v1725_v24  ;;  %v1635_v27 = vsel %vm683_vm15, %v1630_v23, -inf }
 0xd30   : > { %1636 = vmax.xlane.f32.xlu0 %v1635_v27 }
 0xd33   : > { %v1910_v31 = vpop.f32.mrf.mxu2 }
 0xd34   : > { %v1911_v32 = vadd.f32 %v2534_v28, %v1910_v31  ;;  %v1814_v57 = vpop.f32.mrf.mxu0 }
 0xd35   : > { %v1815_v33 = vadd.f32 %v2532_v18, %v1814_v57 }
 0xd36   : > { %v1916_v34 = vsel %vm683_vm15, %v1911_v32, -inf }
 0xd37   : > { %1917 = vmax.xlane.f32.xlu1 %v1916_v34  ;;  %v1820_v35 = vsel %vm683_vm15, %v1815_v33, -inf }
 0xd38   : > { %1821 = vmax.xlane.f32.xlu2 %v1820_v35 }
 0xd3b   : > { %v1913_v37 = vpop.f32.mrf.mxu2 }
 0xd3c   : > { %v1914_v39 = vadd.f32 %v2535_v36, %v1913_v37  ;;  %v1817_v52 = vpop.f32.mrf.mxu0 }
 0xd3d   : > { %v1818_v62 = vadd.f32 %v2533_v63, %v1817_v52 }
 0xd3e   : > { %v1919_v41 = vsel %vm683_vm15, %v1914_v39, -inf }
 0xd3f   : > { %1920 = vmax.xlane.f32.xlu0 %v1919_v41  ;;  %v1823_v42 = vsel %vm683_vm15, %v1818_v62, -inf }
 0xd40   : > { %1824 = vmax.xlane.f32.xlu1 %v1823_v42 }
 0xd59   : > { %2718 = vrot.lane.b32.xlu1 %v3694_v54, %s4187_s12  ;;  %s378_s12 = sand.u32 1, %s2898_s18  }
 0xd5a   : > { %s2417_s25 = scalar_lea.sflag [#allocation3], %s378_s12 }
 0xd61   : > { %2728 = vrot.lane.b32.xlu1 %v3694_v54, %s4191_s16 }
 0xd99   : > { %v1724_v40 = vpop.xlane.xlu0 %1723 }
 0xd9a   : > { %v1728_v43 = vsub.f32 %v1717_v13, %v1724_v40 }
 0xd9b   : > { %v1634_v44 = vpop.xlane.xlu1 %1633 }
 0xd9c   : > { %v1730_v45 = vmul.f32 1.442695, %v1728_v43  ;;  %v1638_v47 = vsub.f32 %v1627_v46, %v1634_v44 }
 0xd9e   : > { %2792 = vpow2.f32 %v1730_v45  ;;  %v1640_v48 = vmul.f32 1.442695, %v1638_v47 }
 0xda0   : > { %2794 = vpow2.f32 %v1640_v48 }
 0xda2   : > { %v1727_v51 = vpop.xlane.xlu2 %1726 }
 0xda3   : > { %v1729_v1 = vsub.f32 %v1720_v21, %v1727_v51  ;;  %v1637_v49 = vpop.xlane.xlu0 %1636 }
 0xda4   : > { %v2793_v50 = vpop.eup %2792  ;;  %v1639_v53 = vsub.f32 %v1630_v23, %v1637_v49 }
 0xda5   : > { %v1732_v2 = vmul.f32 1.442695, %v1729_v1  ;;  %v1734_v55 = vsel %vm683_vm15, %v2793_v50, 0.0 }
 0xda6   : > { %v2795_v56 = vpop.eup %2794  ;;  %v1642_v58 = vmul.f32 1.442695, %v1639_v53  ;;  %1735 = vadd.xlane.f32.xlu2 %v1734_v55 }
 0xda7   : > { %2796 = vpow2.f32 %v1732_v2  ;;  %v1644_v59 = vsel %vm683_vm15, %v2795_v56, 0.0 }
 0xda8   : > { %2798 = vpow2.f32 %v1642_v58  ;;  %1645 = vadd.xlane.f32.xlu0 %v1644_v59 }
 0xdaa   : > { %v1918_v60 = vpop.xlane.xlu1 %1917 }
 0xdab   : > { %v1922_v0 = vsub.f32 %v1911_v32, %v1918_v60  ;;  %v1822_v61 = vpop.xlane.xlu2 %1821 }
 0xdac   : > { %v1826_v29 = vsub.f32 %v1815_v33, %v1822_v61 }
 0xdad   : > { %v2797_v30 = vpop.eup %2796  ;;  %v1924_v3 = vmul.f32 1.442695, %v1922_v0 }
 0xdae   : > { %v2799_v4 = vpop.eup %2798  ;;  %v1828_v5 = vmul.f32 1.442695, %v1826_v29  ;;  %v1737_v6 = vsel %vm683_vm15, %v2797_v30, 0.0 }
 0xdaf   : > { %2800 = vpow2.f32 %v1924_v3  ;;  %1738 = vadd.xlane.f32.xlu2 %v1737_v6  ;;  %v1647_v7 = vsel %vm683_vm15, %v2799_v4, 0.0  ;;  %v2573_v6 = vld [vmem:[%s4160_s6 + $0x68] sm:$0xff] }
 0xdb0   : > { %2802 = vpow2.f32 %v1828_v5  ;;  %1648 = vadd.xlane.f32.xlu0 %v1647_v7  ;;  %v2574_v5 = vld [vmem:[%s4160_s6 + $0x70] sm:$0xff]  ;;  %v2572_v7 = vld [vmem:[%s4160_s6 + $0x60] sm:$0xff] }
 0xdb2   : > { %v1921_v9 = vpop.xlane.xlu0 %1920 }
 0xdb3   : > { %v1923_v10 = vsub.f32 %v1914_v39, %v1921_v9  ;;  %v1825_v11 = vpop.xlane.xlu1 %1824  ;;  %v2571_v9 = vld [vmem:[%s4160_s6 + $0x58] sm:$0xff] }
 0xdb4   : > { %v1827_v25 = vsub.f32 %v1818_v62, %v1825_v11  ;;  %v2569_v11 = vld [vmem:[%s4160_s6 + $0x48] sm:$0xff] }
 0xdb5   : > { %v2801_v13 = vpop.eup %2800  ;;  %v1926_v14 = vmul.f32 1.442695, %v1923_v10  ;;  %v2570_v10 = vld [vmem:[%s4160_s6 + $0x50] sm:$0xff] }
 0xdb6   : > { %v2803_v46 = vpop.eup %2802  ;;  %v1928_v12 = vsel %vm683_vm15, %v2801_v13, 0.0  ;;  %v1830_v19 = vmul.f32 1.442695, %v1827_v25 }
 0xdb7   : > { %2804 = vpow2.f32 %v1926_v14  ;;  %1929 = vadd.xlane.f32.xlu2 %v1928_v12  ;;  %v1832_v26 = vsel %vm683_vm15, %v2803_v46, 0.0 }
 0xdb8   : > { %1833 = vadd.xlane.f32.xlu0 %v1832_v26  ;;  %2806 = vpow2.f32 %v1830_v19 }
 0xdbd   : > { %v2805_v20 = vpop.eup %2804 }
 0xdbe   : > { %v1931_v21 = vsel %vm683_vm15, %v2805_v20, 0.0  ;;  %v2807_v22 = vpop.eup %2806 }
 0xdbf   : > { %v1835_v23 = vsel %vm683_vm15, %v2807_v22, 0.0 }
 0xdc0   : > { %1932 = vadd.xlane.f32.xlu0 %v1931_v21 }
 0xdc8   : > { %1836 = vadd.xlane.f32.xlu0 %v1835_v23 }
 0xdcb   : > { %v2719_v24 = vpop.permute.xlu1 %2718 }
 0xdcc   : > { %v2720_v27 = vunpack.i.l.bf16 %v2719_v24  ;;  %v2721_v28 = vunpack.i.h.bf16 %v2719_v24 }
 0xdce   : > { %1772 = vmatpush.msrb.mxu3 %v2720_v27 }
 0xdcf   : > { %2723 = vrot.lane.b32.xlu2 %v3694_v54, %s4192_s13 }
 0xdd0   : > { %1773 = vmatpush.msrb.mxu3 %v2721_v28  ;;  %v2034_v28 = vperm.slane %v3673_v16, 5 }
 0xdd3   : > { %v2729_v18 = vpop.permute.xlu1 %2728 }
 0xdd4   : > { %v2730_v31 = vunpack.i.l.bf16 %v2729_v18  ;;  %v2731_v32 = vunpack.i.h.bf16 %v2729_v18 }
 0xdd6   : > { %1868 = vmatpush.msrb.mxu1 %v2730_v31 }
 0xdd8   : > { %1869 = vmatpush.msrb.mxu1 %v2731_v32 }
 0xe19   : > { %v1736_v57 = vpop.xlane.xlu2 %1735 }
 0xe1a   : > { %2808 = vrcp.f32 %v1736_v57 }
 0xe1b   : > { %v1646_v33 = vpop.xlane.xlu0 %1645 }
 0xe1c   : > { %2810 = vrcp.f32 %v1646_v33 }
 0xe20   : > { %v2809_v34 = vpop.eup %2808 }
 0xe21   : > { %v1742_v35 = vmul.f32 %v2809_v34, %v2793_v50 }
 0xe22   : > { %v2811_v36 = vpop.eup %2810  ;;  %v1739_v63 = vpop.xlane.xlu2 %1738 }
 0xe23   : > { %v1652_v37 = vmul.f32 %v2811_v36, %v2795_v56  ;;  %2812 = vrcp.f32 %v1739_v63  ;;  %v1649_v39 = vpop.xlane.xlu0 %1648  ;;  %2624 = vmatmul.msk.f32.vlgmr.msrb.gmra.mxu3 %vm683_vm15, %v1742_v35 }
 0xe24   : > { %2814 = vrcp.f32 %v1649_v39 }
 0xe25   : > { %2618 = vmatmul.msk.f32.vlgmr.msra.gmra.mxu1 %vm683_vm15, %v1652_v37 }
 0xe29   : > { %v2813_v54 = vpop.eup %2812 }
 0xe2a   : > { %v2815_v52 = vpop.eup %2814  ;;  %v1930_v62 = vpop.xlane.xlu2 %1929  ;;  %v1743_v41 = vmul.f32 %v2813_v54, %v2797_v30 }
 0xe2b   : > { %v1834_v42 = vpop.xlane.xlu0 %1833  ;;  %v1653_v40 = vmul.f32 %v2815_v52, %v2799_v4  ;;  %v2575_v4 = vld [vmem:[%s4160_s6 + $0x78] sm:$0xff] }
 0xe2c   : > { %2816 = vrcp.f32 %v1834_v42  ;;  %2625 = vmatmul.msk.f32.gmra.mxu3 %vm683_vm15, %v1743_v41  ;;  %2017 = vmatpush.msrb.mxu0 %v2575_v4 }
 0xe2d   : > { %2818 = vrcp.f32 %v1930_v62  ;;  %2619 = vmatmul.msk.f32.gmra.mxu1 %vm683_vm15, %v1653_v40  ;;  %v2566_v40 = vld [vmem:[%s4159_s5 + $0xf0] sm:$0xff] }
 0xe2e   : > { %2018 = vmatpush.msrb.mxu0 %v2574_v5  ;;  %2103 = vmatpush.msra.mxu1 %v2566_v40  ;;  %v2087_v40 = vperm.slane %v3673_v16, 6 }
 0xe30   : > { %2019 = vmatpush.msrb.mxu0 %v2573_v6 }
 0xe32   : > { %v2817_v43 = vpop.eup %2816  ;;  %v2724_v44 = vpop.permute.xlu2 %2723  ;;  %2020 = vmatpush.msrb.mxu0 %v2572_v7 }
 0xe33   : > { %v2819_v45 = vpop.eup %2818  ;;  %v1840_v47 = vmul.f32 %v2817_v43, %v2803_v46  ;;  %v2725_v48 = vunpack.i.l.bf16 %v2724_v44  ;;  %v1933_v51 = vpop.xlane.xlu0 %1932  ;;  %v2726_v1 = vunpack.i.h.bf16 %v2724_v44  ;;  %v2567_v43 = vld [vmem:[%s4159_s5 + $0xf8] sm:$0xff]  ;;  %v2564_v44 = vld [vmem:[%s4159_s5 + $0xe0] sm:$0xff] }
 0xe34   : > { %2820 = vrcp.f32 %v1933_v51  ;;  %v1936_v49 = vmul.f32 %v2819_v45, %v2801_v13  ;;  %2021 = vmatpush.msrb.mxu0 %v2571_v9  ;;  %v2568_v13 = vld [vmem:[%s4160_s6 + $0x40] sm:$0xff]  ;;  %2126 = vmatpush.msrb.mxu2 %v2567_v43  ;;  %v2565_v45 = vld [vmem:[%s4159_s5 + $0xe8] sm:$0xff]  ;;  %v2582_v43 = vld [vmem:[%s4161_s7 + $0x130] sm:$0xff] }
 0xe35   : > { %2630 = vmatmul.msk.f32.vlgmr.msrb.gmra.mxu1 %vm683_vm15, %v1840_v47  ;;  %1964 = vmatpush.msra.mxu3 %v2725_v48  ;;  %v2562_v47 = vld [vmem:[%s4159_s5 + $0xd0] sm:$0xff]  ;;  %v2563_v48 = vld [vmem:[%s4159_s5 + $0xd8] sm:$0xff]  ;;  %v2560_v51 = vld [vmem:[%s4159_s5 + $0xc0] sm:$0xff] }
 0xe36   : > { %2022 = vmatpush.msrb.mxu0 %v2570_v10  ;;  %2104 = vmatpush.msra.mxu1 %v2564_v44  ;;  %v2601_v44 = vld [vmem:[%s4161_s7 + $0x1c8] sm:$0xff] }
 0xe37   : > { %1965 = vmatpush.msra.mxu3 %v2726_v1  ;;  %2127 = vmatpush.msrb.mxu2 %v2565_v45  ;;  %v2561_v1 = vld [vmem:[%s4159_s5 + $0xc8] sm:$0xff] }
 0xe38   : > { %2636 = vmatmul.msk.f32.vlgmr.msra.gmra.mxu3 %vm683_vm15, %v1936_v49  ;;  %2023 = vmatpush.msrb.mxu0 %v2569_v11  ;;  %v2558_v49 = vld [vmem:[%s4159_s5 + $0xb0] sm:$0xff]  ;;  %v2581_v45 = vld [vmem:[%s4161_s7 + $0x128] sm:$0xff] }
 0xe39   : > { %2105 = vmatpush.msra.mxu1 %v2562_v47  ;;  %2128 = vmatpush.msrb.mxu2 %v2563_v48  ;;  %v2600_v47 = vld [vmem:[%s4161_s7 + $0x1c0] sm:$0xff] }
 0xe3a   : > { %v2821_v50 = vpop.eup %2820  ;;  %2024 = vmatpush.msrb.mxu0 %v2568_v13  ;;  %v2081_v13 = vperm.slane %v3673_v16, 2 }
 0xe3b   : > { %v1837_v53 = vpop.xlane.xlu0 %1836  ;;  %v1937_v2 = vmul.f32 %v2821_v50, %v2805_v20  ;;  %2106 = vmatpush.msra.mxu1 %v2560_v51  ;;  %2129 = vmatpush.msrb.mxu2 %v2561_v1  ;;  %v2559_v50 = vld [vmem:[%s4159_s5 + $0xb8] sm:$0xff]  ;;  %v2580_v51 = vld [vmem:[%s4161_s7 + $0x120] sm:$0xff] }
 0xe3c   : > { %2822 = vrcp.f32 %v1837_v53  ;;  %v2556_v53 = vld [vmem:[%s4159_s5 + $0xa0] sm:$0xff]  ;;  %v2599_v1 = vld [vmem:[%s4161_s7 + $0x1b8] sm:$0xff] }
 0xe3d   : > { %2107 = vmatpush.msra.mxu1 %v2558_v49  ;;  %2130 = vmatpush.msrb.mxu2 %v2559_v50  ;;  %v2088_v50 = vperm.slane %v3688_v17, 6  ;;  %v2597_v17 = vld [vmem:[%s4161_s7 + $0x1a8] sm:$0xff] }
 0xe3f   : > { %2108 = vmatpush.msra.mxu1 %v2556_v53  ;;  %v2579_v53 = vld [vmem:[%s4161_s7 + $0x118] sm:$0xff] }
 0xe40   : > { %2637 = vmatmul.msk.f32.gmra.mxu3 %vm683_vm15, %v1937_v2  ;;  %v2557_v2 = vld [vmem:[%s4159_s5 + $0xa8] sm:$0xff] }
 0xe41   : > { %2131 = vmatpush.msrb.mxu2 %v2557_v2  ;;  %v2598_v2 = vld [vmem:[%s4161_s7 + $0x1b0] sm:$0xff] }
 0xe42   : > { %v2823_v55 = vpop.eup %2822 }
 0xe43   : > { %v1841_v56 = vmul.f32 %v2823_v55, %v2807_v22  ;;  %v2554_v55 = vld [vmem:[%s4159_s5 + $0x90] sm:$0xff] }
 0xe44   : > { %2109 = vmatpush.msra.mxu1 %v2554_v55 }
 0xe45   : > { %2631 = vmatmul.msk.f32.gmra.mxu1 %vm683_vm15, %v1841_v56  ;;  %v2555_v56 = vld [vmem:[%s4159_s5 + $0x98] sm:$0xff] }
 0xe46   : > { %2132 = vmatpush.msrb.mxu2 %v2555_v56  ;;  %v2578_v56 = vld [vmem:[%s4161_s7 + $0x110] sm:$0xff] }
 0xea2   : > { %v1677_v58 = vpop.f32.mrf.mxu1 }
 0xea6   : > { %v1775_v59 = vpop.f32.mrf.mxu3 }
 0xea7   : > { %1975 = vrot.lane.b32.xlu1 %v1775_v59, %s4189_s30  ;;  %v2553_v59 = vld [vmem:[%s4159_s5 + $0x88] sm:$0xff] }
 0xea8   : > { %2133 = vmatpush.msrb.mxu2 %v2553_v59 }
 0xeaa   : > { %v1680_v60 = vpop.f32.mrf.mxu1 }
 0xeaf   : > { %v1778_v0 = vpop.f32.mrf.mxu3 }
 0xeb0   : > { %1977 = vrot.lane.b32.xlu2 %v1778_v0, %s4189_s30  ;;  %s379_s30 = scalar_lea.vmem [#allocation2], %s378_s12 }
 0xeb1   : > { %s2427_s1 = sshll.u32 %s379_s30, 4  ;;  %s2428_s1 = int_to_ptr.vmem [resolvable:$true] %s2427_s1 }
 0xeb2   : > { %v1871_v61 = vpop.f32.mrf.mxu1 }
 0xeb3   : > { %1983 = vrot.lane.b32.xlu0 %v1871_v61, %s4190_s22 }
 0xebb   : > { %v1967_v29 = vpop.f32.mrf.mxu3 }
 0xebc   : > { %1991 = vrot.lane.b32.xlu1 %v1967_v29, %s4186_s24 }
 0xec2   : > { %v1874_v30 = vpop.f32.mrf.mxu1 }
 0xec3   : > { %v1970_v3 = vpop.f32.mrf.mxu3 }
 0xec4   : > { %1985 = vrot.lane.b32.xlu1 %v1874_v30, %s4190_s22  ;;  %1993 = vrot.lane.b32.xlu2 %v1970_v3, %s4186_s24  ;;  %s2858_s24 = sshra.s32 %s2430_s15, 4  ;;  %s2859_s24 = int_to_ptr.hbm [resolvable:$true] %s2858_s24 }
 0xec5   : > { %s2860_s22 = scalar_lea.hbm %s2859_s24, 1  ;;  %p2865_p0 = scmp.lt.s32.totalorder %s2859_s24, %s4165_s11 }
 0xec6   : > { %p2861_p11 = scmp.ne.s32.totalorder %s2859_s24, %s2860_s22  ;;  %p2866_p1 = scmp.lt.s32.totalorder %s2864_s29, %s2860_s22 }
 0xec8   : > { %p2862_p12 = pnand %p2861_p11, %p3016_p5  ;;  %p2867_p2 = por %p2866_p1, %p2865_p0 }
 0xeca   : > { %p2863_p13 = pneg %p2862_p12 }
 0xecc   : > { %p2868_p3 = pnand %p2867_p2, %p2863_p13 }
 0xf0a   : > { %v1978_v19 = vpop.permute.xlu2 %1977 }
 0xf0b   : > { %v1998_v21 = vsel %vm683_vm15, %v1680_v60, %v1978_v19 }
 0xf19   : > { %v1976_v14 = vpop.permute.xlu1 %1975 }
 0xf1a   : > { %v1997_v25 = vsel %vm683_vm15, %v1677_v58, %v1976_v14  ;;  %v2552_v58 = vld [vmem:[%s4159_s5 + $0x80] sm:$0xff] }
 0xf1b   : > { %2110 = vmatpush.msra.mxu1 %v2552_v58 }
 0xf1e   : > { %v1994_v23 = vpop.permute.xlu2 %1993 }
 0xf25   : > { %v1984_v46 = vpop.permute.xlu0 %1983 }
 0xf26   : > { %v1999_v12 = vsel %vm1084_vm0, %v1997_v25, %v1984_v46 }
 0xf2e   : > { %v1992_v26 = vpop.permute.xlu1 %1991 }
 0xf2f   : > { %v2001_v20 = vsel %vm1087_vm1, %v1999_v12, %v1992_v26  ;;  %v2084_v26 = vperm.slane %v3673_v16, 3 }
 0xf30   : > { %2638 = vmatmul.msk.f32.vlgmr.msrb.gmra.mxu0 %vm563_vm7, %v2001_v20 }
 0xf36   : > { %v1986_v22 = vpop.permute.xlu1 %1985 }
 0xf37   : > { %v2000_v24 = vsel %vm1084_vm0, %v1998_v21, %v1986_v22 }
 0xf38   : > { %v2002_v27 = vsel %vm1087_vm1, %v2000_v24, %v1994_v23 }
 0xf39   : > { %2639 = vmatmul.msk.f32.gmra.mxu0 %vm563_vm7, %v2002_v27 }
 0xfad   : > { %v2026_v18 = vpop.f32.mrf.mxu0 }
 0xfae   : > { %v2032_v31 = vadd.f32 %v2026_v18, %v3597_v38 }
 0xfb0   : > { %v3816_v32 = vadd.f32 %v2034_v28, %v2032_v31  ;;  %v2591_v31 = vld [vmem:[%s4161_s7 + $0x178] sm:$0xff] }
 0xfb1   : > { %2261 = vmatpush.msrb.mxu3 %v2591_v31 }
 0xfb2   : > { %v2037_v57 = vsel %vm563_vm7, %v3816_v32, 0.0 }
 0xfb3   : > { %2038 = vadd.xlane.f32.xlu1 %v2037_v57  ;;  %v2590_v57 = vld [vmem:[%s4161_s7 + $0x170] sm:$0xff] }
 0xfb4   : > { %2262 = vmatpush.msrb.mxu3 %v2590_v57 }
 0xfb6   : > { %v2029_v33 = vpop.f32.mrf.mxu0 }
 0xfb7   : > { %v2033_v34 = vadd.f32 %v2029_v33, %v3602_v15  ;;  %v2589_v33 = vld [vmem:[%s4161_s7 + $0x168] sm:$0xff] }
 0xfb8   : > { %2263 = vmatpush.msrb.mxu3 %v2589_v33 }
 0xfb9   : > { %v3821_v35 = vadd.f32 %v2034_v28, %v2033_v34  ;;  %v2588_v34 = vld [vmem:[%s4161_s7 + $0x160] sm:$0xff] }
 0xfba   : > { %2264 = vmatpush.msrb.mxu3 %v2588_v34 }
 0xfbb   : > { %v2040_v36 = vsel %vm563_vm7, %v3821_v35, 0.0 }
 0xfbc   : > { %2041 = vadd.xlane.f32.xlu0 %v2040_v36  ;;  %v2607_v36 = vld [vmem:[%s4161_s7 + $0x1f8] sm:$0xff] }
 0xfbd   : > { %2284 = vmatpush.msra.mxu0 %v2607_v36 }
0x1026   : > { %v2039_v63 = vpop.xlane.xlu1 %2038 }
0x1027   : > { %v2043_v37 = vmul.f32 %v2039_v63, %v3094_v8  ;;  %v2587_v63 = vld [vmem:[%s4161_s7 + $0x158] sm:$0xff] }
0x1028   : > { %2265 = vmatpush.msrb.mxu3 %v2587_v63 }
0x1029   : > { %v3827_v38 = vsub.f32 %v3816_v32, %v2043_v37  ;;  %v2606_v37 = vld [vmem:[%s4161_s7 + $0x1f0] sm:$0xff] }
0x102a   : > { %2285 = vmatpush.msra.mxu0 %v2606_v37 }
0x102b   : > { %v2047_v39 = vmul.f32 %v3827_v38, %v3827_v38 }
0x102d   : > { %v2049_v54 = vsel %vm563_vm7, %v2047_v39, 0.0  ;;  %v2605_v39 = vld [vmem:[%s4161_s7 + $0x1e8] sm:$0xff] }
0x102e   : > { %2050 = vadd.xlane.f32.xlu2 %v2049_v54  ;;  %2286 = vmatpush.msra.mxu0 %v2605_v39  ;;  %v2585_v54 = vld [vmem:[%s4161_s7 + $0x148] sm:$0xff] }
0x102f   : > { %v2042_v52 = vpop.xlane.xlu0 %2041 }
0x1030   : > { %v2044_v15 = vmul.f32 %v2042_v52, %v3094_v8  ;;  %v2604_v52 = vld [vmem:[%s4161_s7 + $0x1e0] sm:$0xff] }
0x1031   : > { %2287 = vmatpush.msra.mxu0 %v2604_v52 }
0x1032   : > { %v3834_v62 = vsub.f32 %v3821_v35, %v2044_v15  ;;  %v2584_v15 = vld [vmem:[%s4161_s7 + $0x140] sm:$0xff] }
0x1034   : > { %v2048_v41 = vmul.f32 %v3834_v62, %v3834_v62 }
0x1036   : > { %v2052_v42 = vsel %vm563_vm7, %v2048_v41, 0.0  ;;  %v2583_v41 = vld [vmem:[%s4161_s7 + $0x138] sm:$0xff] }
0x1037   : > { %2053 = vadd.xlane.f32.xlu1 %v2052_v42  ;;  %v2602_v42 = vld [vmem:[%s4161_s7 + $0x1d0] sm:$0xff] }
0x10a1   : > { %v2051_v60 = vpop.xlane.xlu2 %2050 }
0x10a2   : > { %v2055_v0 = vmul.f32 %v2051_v60, %v3094_v8 }
0x10a4   : > { %v2057_v61 = vadd.f32 1e-05, %v2055_v0  ;;  %v2577_v0 = vld [vmem:[%s4161_s7 + $0x108] sm:$0xff] }
0x10a6   : > { %2824 = vrsqrt.f32 %v2057_v61  ;;  %vm2065_vm0 = vweird.f32 %v2057_v61 }
0x10aa   : > { %v2054_v29 = vpop.xlane.xlu1 %2053 }
0x10ab   : > { %v2056_v30 = vmul.f32 %v2054_v29, %v3094_v8 }
0x10ac   : > { %v2825_v3 = vpop.eup %2824 }
0x10ad   : > { %v2060_v4 = vmul.f32 %v2825_v3, %v2057_v61  ;;  %v2058_v5 = vadd.f32 1e-05, %v2056_v30  ;;  %vm2066_vm15 = vweird.f32 %v2825_v3  ;;  %v2596_v61 = vld [vmem:[%s4161_s7 + $0x1a0] sm:$0xff] }
0x10ae   : > { %vm2067_vm1 = vmor %vm2065_vm0, %vm2066_vm15 }
0x10af   : > { %v2061_v6 = vmul.f32 %v2825_v3, %v2060_v4  ;;  %2826 = vrsqrt.f32 %v2058_v5  ;;  %vm2075_vm3 = vweird.f32 %v2058_v5  ;;  %v2576_v4 = vld [vmem:[%s4161_s7 + $0x100] sm:$0xff] }
0x10b1   : > { %v2062_v7 = vmul.f32 0.5, %v2061_v6 }
0x10b3   : > { %v2063_v9 = vsub.f32 1.5, %v2062_v7  ;;  %v2595_v7 = vld [vmem:[%s4161_s7 + $0x198] sm:$0xff] }
0x10b5   : > { %v2827_v10 = vpop.eup %2826  ;;  %v2064_v11 = vmul.f32 %v2825_v3, %v2063_v9 }
0x10b6   : > { %v2070_v14 = vmul.f32 %v2827_v10, %v2058_v5  ;;  %vm2076_vm2 = vweird.f32 %v2827_v10 }
0x10b7   : > { %v2068_v46 = vsel %vm2067_vm1, %v2825_v3, %v2064_v11  ;;  %vm2077_vm4 = vmor %vm2075_vm3, %vm2076_vm2  ;;  %v2594_v11 = vld [vmem:[%s4161_s7 + $0x190] sm:$0xff] }
0x10b8   : > { %v2079_v25 = vmul.f32 %v2068_v46, %v3827_v38  ;;  %v2071_v12 = vmul.f32 %v2827_v10, %v2070_v14  ;;  %v2586_v38 = vld [vmem:[%s4161_s7 + $0x150] sm:$0xff] }
0x10b9   : > { %2266 = vmatpush.msrb.mxu3 %v2586_v38 }
0x10ba   : > { %v2082_v19 = vmul.f32 %v2081_v13, %v2079_v25  ;;  %v2072_v20 = vmul.f32 0.5, %v2071_v12  ;;  %v2593_v12 = vld [vmem:[%s4161_s7 + $0x188] sm:$0xff] }
0x10bb   : > { %2267 = vmatpush.msrb.mxu3 %v2585_v54 }
0x10bc   : > { %v2073_v21 = vsub.f32 1.5, %v2072_v20  ;;  %v2085_v22 = vadd.f32 %v2084_v26, %v2082_v19 }
0x10bd   : > { %2268 = vmatpush.msrb.mxu3 %v2584_v15 }
0x10be   : > { %v2074_v23 = vmul.f32 %v2827_v10, %v2073_v21  ;;  %2640 = vmatmul.msk.f32.vlgmr.msra.gmra.mxu1 %vm563_vm7, %v2085_v22  ;;  %2642 = vmatmul.msk.f32.vlgmr.msrb.gmra.mxu2 %vm563_vm7, %v2085_v22 }
0x10bf   : > { %2269 = vmatpush.msrb.mxu3 %v2583_v41 }
0x10c0   : > { %v2078_v24 = vsel %vm2077_vm4, %v2827_v10, %v2074_v23  ;;  %v2592_v23 = vld [vmem:[%s4161_s7 + $0x180] sm:$0xff] }
0x10c1   : > { %v2080_v27 = vmul.f32 %v2078_v24, %v3834_v62  ;;  %v2603_v62 = vld [vmem:[%s4161_s7 + $0x1d8] sm:$0xff]  ;;  %2270 = vmatpush.msrb.mxu3 %v2582_v43 }
0x10c2   : > { %2288 = vmatpush.msra.mxu0 %v2603_v62 }
0x10c3   : > { %v2083_v28 = vmul.f32 %v2081_v13, %v2080_v27  ;;  %2271 = vmatpush.msrb.mxu3 %v2581_v45 }
0x10c4   : > { %2289 = vmatpush.msra.mxu0 %v2602_v42 }
0x10c5   : > { %v2086_v18 = vadd.f32 %v2084_v26, %v2083_v28  ;;  %2272 = vmatpush.msrb.mxu3 %v2580_v51 }
0x10c6   : > { %2290 = vmatpush.msra.mxu0 %v2601_v44 }
0x10c7   : > { %2641 = vmatmul.msk.f32.gmra.mxu1 %vm563_vm7, %v2086_v18  ;;  %2643 = vmatmul.msk.f32.gmra.mxu2 %vm563_vm7, %v2086_v18 }
0x10c8   : > { %2291 = vmatpush.msra.mxu0 %v2600_v47  ;;  %2273 = vmatpush.msrb.mxu3 %v2579_v53 }
0x10ca   : > { %2292 = vmatpush.msra.mxu0 %v2599_v1  ;;  %2274 = vmatpush.msrb.mxu3 %v2578_v56 }
0x10cc   : > { %2293 = vmatpush.msra.mxu0 %v2598_v2  ;;  %2275 = vmatpush.msrb.mxu3 %v2577_v0 }
0x10ce   : > { %2294 = vmatpush.msra.mxu0 %v2597_v17  ;;  %2276 = vmatpush.msrb.mxu3 %v2576_v4 }
0x10d0   : > { %2295 = vmatpush.msra.mxu0 %v2596_v61 }
0x10d2   : > { %2296 = vmatpush.msra.mxu0 %v2595_v7 }
0x10d4   : > { %2297 = vmatpush.msra.mxu0 %v2594_v11 }
0x10d6   : > { %2298 = vmatpush.msra.mxu0 %v2593_v12 }
0x10d8   : > { %2299 = vmatpush.msra.mxu0 %v2592_v23 }
0x113b   : > { %v2112_v48 = vpop.f32.mrf.mxu1 }
0x113c   : > { %v3955_v16 = vadd.f32 %v2112_v48, %v2087_v40 }
0x113e   : > { %v2145_v49 = vmul.f32 0.70710677, %v3955_v16 }
0x1140   : > { %v3971_v55 = vclamps-f32 %v2145_v49, 4.0 }
0x1141   : > { %v2135_v58 = vpop.f32.mrf.mxu2 }
0x1142   : > { %v3981_v59 = vmul.f32 %v3971_v55, %v3971_v55  ;;  %v3983_v60 = vadd.f32 %v2135_v58, %v2088_v50 }
0x1144   : > { %v2161_v29 = vmul.f32 -2.7261424e-10, %v3981_v59  ;;  %v2209_v30 = vmul.f32 -1.45660715e-05, %v3981_v59  ;;  %v2115_v3 = vpop.f32.mrf.mxu1  ;;  %v2146_v5 = vmul.f32 0.70710677, %v3983_v60 }
0x1145   : > { %v3997_v6 = vadd.f32 %v2115_v3, %v2087_v40 }
0x1146   : > { %v2165_v9 = vadd.f32 2.7706815e-08, %v2161_v29  ;;  %v2213_v10 = vadd.f32 -0.00021337405, %v2209_v30  ;;  %v4005_v13 = vclamps-f32 %v2146_v5, 4.0 }
0x1147   : > { %v2147_v14 = vmul.f32 0.70710677, %v3997_v6 }
0x1148   : > { %v2169_v46 = vmul.f32 %v2165_v9, %v3981_v59  ;;  %v2217_v25 = vmul.f32 %v2213_v10, %v3981_v59  ;;  %v4015_v26 = vmul.f32 %v4005_v13, %v4005_v13 }
0x1149   : > { %v4017_v19 = vclamps-f32 %v2147_v14, 4.0 }
0x114a   : > { %v2173_v20 = vadd.f32 -2.101024e-06, %v2169_v46  ;;  %v2221_v21 = vadd.f32 -0.001682827, %v2217_v25  ;;  %v2138_v22 = vpop.f32.mrf.mxu2  ;;  %v2162_v24 = vmul.f32 -2.7261424e-10, %v4015_v26 }
0x114b   : > { %v2210_v27 = vmul.f32 -1.45660715e-05, %v4015_v26  ;;  %v4026_v28 = vmul.f32 %v4017_v19, %v4017_v19  ;;  %v4028_v18 = vadd.f32 %v2138_v22, %v2088_v50 }
0x114c   : > { %v2177_v31 = vmul.f32 %v2173_v20, %v3981_v59  ;;  %v2225_v57 = vmul.f32 %v2221_v21, %v3981_v59  ;;  %v2166_v33 = vadd.f32 2.7706815e-08, %v2162_v24 }
0x114d   : > { %v2214_v34 = vadd.f32 -0.00021337405, %v2210_v27  ;;  %v2163_v36 = vmul.f32 -2.7261424e-10, %v4026_v28  ;;  %v2148_v52 = vmul.f32 0.70710677, %v4028_v18 }
0x114e   : > { %v2181_v63 = vadd.f32 -5.6925062e-05, %v2177_v31  ;;  %v2229_v37 = vadd.f32 -0.0073733293, %v2225_v57  ;;  %v2170_v38 = vmul.f32 %v2166_v33, %v4015_v26  ;;  %v2211_v41 = vmul.f32 -1.45660715e-05, %v4026_v28 }
0x114f   : > { %v2218_v39 = vmul.f32 %v2214_v34, %v4015_v26  ;;  %v2167_v54 = vadd.f32 2.7706815e-08, %v2163_v36  ;;  %v4040_v44 = vclamps-f32 %v2148_v52, 4.0 }
0x1150   : > { %v2185_v15 = vmul.f32 %v2181_v63, %v3981_v59  ;;  %v2233_v62 = vmul.f32 %v2229_v37, %v3981_v59  ;;  %v2174_v42 = vadd.f32 -2.101024e-06, %v2170_v38  ;;  %v2215_v48 = vadd.f32 -0.00021337405, %v2211_v41 }
0x1151   : > { %v2222_v40 = vadd.f32 -0.001682827, %v2218_v39  ;;  %v2171_v43 = vmul.f32 %v2167_v54, %v4026_v28  ;;  %v4046_v50 = vmul.f32 %v4040_v44, %v4040_v44 }
0x1152   : > { %v2189_v45 = vadd.f32 -0.00073499064, %v2185_v15  ;;  %v2237_v47 = vadd.f32 -0.014264739, %v2233_v62  ;;  %v2178_v51 = vmul.f32 %v2174_v42, %v4015_v26  ;;  %v2219_v2 = vmul.f32 %v2215_v48, %v4026_v28 }
0x1153   : > { %v2226_v1 = vmul.f32 %v2222_v40, %v4015_v26  ;;  %v2175_v49 = vadd.f32 -2.101024e-06, %v2171_v43  ;;  %v2164_v0 = vmul.f32 -2.7261424e-10, %v4046_v50  ;;  %v2212_v30 = vmul.f32 -1.45660715e-05, %v4046_v50 }
0x1154   : > { %v2193_v53 = vmul.f32 %v2189_v45, %v3981_v59  ;;  %v2182_v56 = vadd.f32 -5.6925062e-05, %v2178_v51  ;;  %2828 = vrcp.f32 %v2237_v47  ;;  %v2223_v29 = vadd.f32 -0.001682827, %v2219_v2 }
0x1155   : > { %v2230_v17 = vadd.f32 -0.0073733293, %v2226_v1  ;;  %v2179_v58 = vmul.f32 %v2175_v49, %v4026_v28  ;;  %v2168_v7 = vadd.f32 2.7706815e-08, %v2164_v0  ;;  %v2216_v11 = vadd.f32 -0.00021337405, %v2212_v30 }
0x1156   : > { %v2197_v61 = vadd.f32 -0.0029546, %v2193_v53  ;;  %v2186_v3 = vmul.f32 %v2182_v56, %v4015_v26  ;;  %v2227_v10 = vmul.f32 %v2223_v29, %v4026_v28  ;;  %v2141_v62 = vmul.f32 0.5, %v3955_v16 }
0x1157   : > { %v2234_v4 = vmul.f32 %v2230_v17, %v4015_v26  ;;  %v2183_v5 = vadd.f32 -5.6925062e-05, %v2179_v58  ;;  %v2172_v25 = vmul.f32 %v2168_v7, %v4046_v50  ;;  %v2220_v22 = vmul.f32 %v2216_v11, %v4046_v50 }
0x1158   : > { %v2201_v9 = vmul.f32 %v2197_v61, %v3981_v59  ;;  %v2190_v14 = vadd.f32 -0.00073499064, %v2186_v3  ;;  %v2231_v21 = vadd.f32 -0.0073733293, %v2227_v10 }
0x1159   : > { %v2187_v46 = vmul.f32 %v2183_v5, %v4026_v28  ;;  %v2238_v20 = vadd.f32 -0.014264739, %v2234_v4  ;;  %v2176_v27 = vadd.f32 -2.101024e-06, %v2172_v25  ;;  %v2224_v33 = vadd.f32 -0.001682827, %v2220_v22 }
0x115a   : > { %v2205_v12 = vadd.f32 -0.016096033, %v2201_v9  ;;  %v2194_v23 = vmul.f32 %v2190_v14, %v4015_v26  ;;  %v2829_v31 = vpop.eup %2828  ;;  %v2235_v57 = vmul.f32 %v2231_v21, %v4026_v28 }
0x115b   : > { %v2191_v24 = vadd.f32 -0.00073499064, %v2187_v46  ;;  %v2180_v63 = vmul.f32 %v2176_v27, %v4046_v50  ;;  %2830 = vrcp.f32 %v2238_v20  ;;  %v2228_v39 = vmul.f32 %v2224_v33, %v4046_v50 }
0x115c   : > { %v2241_v59 = vmul.f32 %v3971_v55, %v2205_v12  ;;  %v2198_v34 = vadd.f32 -0.0029546, %v2194_v23  ;;  %v2239_v38 = vadd.f32 -0.014264739, %v2235_v57 }
0x115d   : > { %v2195_v36 = vmul.f32 %v2191_v24, %v4026_v28  ;;  %v2184_v15 = vadd.f32 -5.6925062e-05, %v2180_v63  ;;  %v2232_v41 = vadd.f32 -0.0073733293, %v2228_v39 }
0x115e   : > { %v2249_v37 = vmul.f32 %v2829_v31, %v2241_v59  ;;  %v2202_v54 = vmul.f32 %v2198_v34, %v4015_v26  ;;  %2832 = vrcp.f32 %v2239_v38 }
0x115f   : > { %v2199_v52 = vadd.f32 -0.0029546, %v2195_v36  ;;  %v2188_v43 = vmul.f32 %v2184_v15, %v4046_v50  ;;  %v2236_v47 = vmul.f32 %v2232_v41, %v4046_v50  ;;  %v2386_v15 = vld [vmem:[%s4163_s9 + $0x30] sm:$0xff]  ;;  %v2385_v41 = vld [vmem:[%s4163_s9 + $0x28] sm:$0xff] }
0x1160   : > { %v2253_v55 = vadd.f32 1.0, %v2249_v37  ;;  %v2206_v42 = vadd.f32 -0.016096033, %v2202_v54  ;;  %v2387_v54 = vld [vmem:[%s4163_s9 + $0x38] sm:$0xff] }
0x1161   : > { %v2203_v40 = vmul.f32 %v2199_v52, %v4026_v28  ;;  %v2192_v1 = vadd.f32 -0.00073499064, %v2188_v43  ;;  %v2831_v26 = vpop.eup %2830  ;;  %v2240_v49 = vadd.f32 -0.014264739, %v2236_v47  ;;  %v2142_v28 = vmul.f32 0.5, %v3983_v60  ;;  %2402 = vmatpush.msrb.mxu1 %v2387_v54  ;;  %v2384_v43 = vld [vmem:[%s4163_s9 + $0x20] sm:$0xff] }
0x1162   : > { %v2257_v45 = vmul.f32 %v2253_v55, %v2141_v62  ;;  %v2242_v48 = vmul.f32 %v4005_v13, %v2206_v42  ;;  %v2143_v13 = vmul.f32 0.5, %v3997_v6  ;;  %v2144_v60 = vmul.f32 0.5, %v4028_v18  ;;  %v2843_v6 = vld [vmem:[%s4162_s8 + $0x10] sm:$0xff]  ;;  %v2383_v47 = vld [vmem:[%s4163_s9 + $0x18] sm:$0xff] }
0x1163   : > { %v2207_v51 = vadd.f32 -0.016096033, %v2203_v40  ;;  %v2196_v2 = vmul.f32 %v2192_v1, %v4046_v50  ;;  %2834 = vrcp.f32 %v2240_v49  ;;  %2403 = vmatpush.msrb.mxu1 %v2386_v15  ;;  %v2381_v1 = vld [vmem:[%s4163_s9 + $0x8] sm:$0xff] }
0x1164   : > { %2277 = vmatmul.f32.vlgmr.msrb.gmra.mxu3 %v2257_v45  ;;  %v2250_v53 = vmul.f32 %v2831_v26, %v2242_v48  ;;  %v2833_v56 = vpop.eup %2832 }
0x1165   : > { %v2243_v16 = vmul.f32 %v4017_v19, %v2207_v51  ;;  %v2200_v58 = vadd.f32 -0.0029546, %v2196_v2  ;;  %2404 = vmatpush.msrb.mxu1 %v2385_v41  ;;  %v2312_v2 = vld [vmem:[%s4164_s10] sm:$0x7] }
0x1166   : > { %v2254_v17 = vadd.f32 1.0, %v2250_v53  ;;  %v2380_v53 = vld [vmem:[%s4163_s9] sm:$0xff] }
0x1167   : > { %v2251_v0 = vmul.f32 %v2833_v56, %v2243_v16  ;;  %v2204_v29 = vmul.f32 %v2200_v58, %v4046_v50  ;;  %v2309_v50 = vperm.slane %v2843_v6, 7  ;;  %2405 = vmatpush.msrb.mxu1 %v2384_v43  ;;  %v2917_v58 = vmov 16.0  }
0x1168   : > { %v2258_v61 = vmul.f32 %v2254_v17, %v2142_v28 }
0x1169   : > { %v2255_v30 = vadd.f32 1.0, %v2251_v0  ;;  %v2208_v3 = vadd.f32 -0.016096033, %v2204_v29  ;;  %v2835_v5 = vpop.eup %2834  ;;  %2406 = vmatpush.msrb.mxu1 %v2383_v47  ;;  %v2357_v0 = vperm.slane %v2312_v2, 0 }
0x116a   : > { %2300 = vmatmul.f32.vlgmr.msra.gmra.mxu0 %v2258_v61 }
0x116b   : > { %v2259_v4 = vmul.f32 %v2255_v30, %v2143_v13  ;;  %v2244_v19 = vmul.f32 %v4040_v44, %v2208_v3  ;;  %v2360_v30 = vperm.slane %v2312_v2, 1 }
0x116d   : > { %2280 = vmatmul.f32.gmra.mxu3 %v2259_v4  ;;  %v2252_v7 = vmul.f32 %v2835_v5, %v2244_v19 }
0x116f   : > { %v2256_v9 = vadd.f32 1.0, %v2252_v7 }
0x1171   : > { %v2260_v10 = vmul.f32 %v2256_v9, %v2144_v60 }
0x1173   : > { %2303 = vmatmul.f32.gmra.mxu0 %v2260_v10 }
0x11e7   : > { %v2278_v11 = vpop.f32.mrf.mxu3  ;;  %v2301_v14 = vpop.f32.mrf.mxu0 }
0x11e8   : > { %v2302_v46 = vadd.f32 %v2301_v14, %v2278_v11 }
0x11ea   : > { %v2307_v25 = vadd.f32 %v2302_v46, %v3816_v32 }
0x11ec   : > { %v2310_v12 = vadd.f32 %v2309_v50, %v2307_v25 }
0x11ee   : > { %v2313_v44 = vsel %vm563_vm7, %v2310_v12, 0.0 }
0x11ef   : > { %2314 = vadd.xlane.f32.xlu0 %v2313_v44 }
0x11f0   : > { %v2281_v20 = vpop.f32.mrf.mxu3  ;;  %v2304_v21 = vpop.f32.mrf.mxu0 }
0x11f1   : > { %v2305_v18 = vadd.f32 %v2304_v21, %v2281_v20 }
0x11f3   : > { %v2308_v22 = vadd.f32 %v2305_v18, %v3821_v35 }
0x11f5   : > { %v2311_v23 = vadd.f32 %v2309_v50, %v2308_v22 }
0x11f7   : > { %v2316_v24 = vsel %vm563_vm7, %v2311_v23, 0.0 }
0x11f8   : > { %2317 = vadd.xlane.f32.xlu2 %v2316_v24 }
0x1262   : > { %v2315_v27 = vpop.xlane.xlu0 %2314 }
0x1263   : > { %v2319_v31 = vmul.f32 %v2315_v27, %v3094_v8  ;;  %v2389_v27 = vrot.slane %v2312_v2, 2 }
0x1265   : > { %v2321_v59 = vsub.f32 %v2310_v12, %v2319_v31 }
0x1267   : > { %v2323_v57 = vmul.f32 %v2321_v59, %v2321_v59 }
0x1269   : > { %v2325_v32 = vsel %vm563_vm7, %v2323_v57, 0.0 }
0x126a   : > { %2326 = vadd.xlane.f32.xlu1 %v2325_v32 }
0x126b   : > { %v2318_v33 = vpop.xlane.xlu2 %2317 }
0x126c   : > { %v2320_v34 = vmul.f32 %v2318_v33, %v3094_v8 }
0x126e   : > { %v2322_v36 = vsub.f32 %v2311_v23, %v2320_v34 }
0x1270   : > { %v2324_v63 = vmul.f32 %v2322_v36, %v2322_v36 }
0x1272   : > { %v2328_v37 = vsel %vm563_vm7, %v2324_v63, 0.0 }
0x1273   : > { %2329 = vadd.xlane.f32.xlu0 %v2328_v37 }
0x12dd   : > { %v2327_v35 = vpop.xlane.xlu1 %2326 }
0x12de   : > { %v2331_v38 = vmul.f32 %v2327_v35, %v3094_v8 }
0x12e0   : > { %v2333_v39 = vadd.f32 1e-05, %v2331_v38 }
0x12e2   : > { %2836 = vrsqrt.f32 %v2333_v39  ;;  %vm2341_vm6 = vweird.f32 %v2333_v39 }
0x12e6   : > { %v2330_v52 = vpop.xlane.xlu0 %2329 }
0x12e7   : > { %v2332_v55 = vmul.f32 %v2330_v52, %v3094_v8  ;;  %v2382_v8 = vld [vmem:[%s4163_s9 + $0x10] sm:$0xff] }
0x12e8   : > { %v2837_v62 = vpop.eup %2836  ;;  %2407 = vmatpush.msrb.mxu1 %v2382_v8 }
0x12e9   : > { %v2336_v42 = vmul.f32 %v2837_v62, %v2333_v39  ;;  %v2334_v40 = vadd.f32 1e-05, %v2332_v55  ;;  %vm2342_vm5 = vweird.f32 %v2837_v62 }
0x12ea   : > { %2408 = vmatpush.msrb.mxu1 %v2381_v1  ;;  %vm2343_vm8 = vmor %vm2341_vm6, %vm2342_vm5 }
0x12eb   : > { %v2337_v45 = vmul.f32 %v2837_v62, %v2336_v42  ;;  %2838 = vrsqrt.f32 %v2334_v40  ;;  %vm2351_vm10 = vweird.f32 %v2334_v40 }
0x12ec   : > { %2409 = vmatpush.msrb.mxu1 %v2380_v53  ;;  %2840 = vrcp.f32 %v2917_v58 }
0x12ed   : > { %v2338_v48 = vmul.f32 0.5, %v2337_v45 }
0x12ef   : > { %v2339_v51 = vsub.f32 1.5, %v2338_v48 }
0x12f1   : > { %v2340_v26 = vmul.f32 %v2837_v62, %v2339_v51  ;;  %v2839_v49 = vpop.eup %2838 }
0x12f2   : > { %v2346_v16 = vmul.f32 %v2839_v49, %v2334_v40  ;;  %vm2352_vm9 = vweird.f32 %v2839_v49  ;;  %v2841_v4 = vpop.eup %2840 }
0x12f3   : > { %v2344_v56 = vsel %vm2343_vm8, %v2837_v62, %v2340_v26  ;;  %vm2353_vm11 = vmor %vm2351_vm10, %vm2352_vm9  ;;  %v2373_v9 = vmul.f32 16.0, %v2841_v4  ;;  %vm2377_vm12 = vweird.f32 %v2841_v4 }
0x12f4   : > { %v2347_v28 = vmul.f32 %v2839_v49, %v2346_v16  ;;  %v2355_v61 = vmul.f32 %v2344_v56, %v2321_v59 }
0x12f5   : > { %v2374_v46 = vsub.f32 1.0, %v2373_v9 }
0x12f6   : > { %v2348_v17 = vmul.f32 0.5, %v2347_v28  ;;  %v2358_v3 = vmul.f32 %v2357_v0, %v2355_v61 }
0x12f7   : > { %v2375_v25 = vmul.f32 %v2841_v4, %v2374_v46 }
0x12f8   : > { %v2349_v13 = vsub.f32 1.5, %v2348_v17  ;;  %v2361_v7 = vadd.f32 %v2360_v30, %v2358_v3 }
0x12f9   : > { %v2376_v20 = vadd.f32 %v2841_v4, %v2375_v25 }
0x12fa   : > { %v2350_v29 = vmul.f32 %v2839_v49, %v2349_v13  ;;  %v2363_v11 = vsel %vm563_vm7, %v2361_v7, 0.0 }
0x12fb   : > { %v2378_v22 = vsel %vm2377_vm12, %v2841_v4, %v2376_v20 }
0x12fc   : > { %v2354_v19 = vsel %vm2353_vm11, %v2839_v49, %v2350_v29 }
0x12fd   : > { %v2356_v5 = vmul.f32 %v2354_v19, %v2322_v36 }
0x12ff   : > { %v2359_v60 = vmul.f32 %v2357_v0, %v2356_v5 }
0x1301   : > { %v2362_v10 = vadd.f32 %v2360_v30, %v2359_v60 }
0x1303   : > { %v2364_v14 = vsel %vm563_vm7, %v2362_v10, 0.0 }
0x1304   : > { %v2365_v6 = vadd.f32 %v2364_v14, %v2363_v11 }
0x1306   : > { %v2366_v50 = vrot.slane %v2365_v6, 4 }
0x1308   : > { %v2367_v12 = vadd.f32 %v2366_v50, %v2365_v6 }
0x130a   : > { %v2368_v44 = vrot.slane %v2367_v12, 2 }
0x130c   : > { %v2369_v21 = vadd.f32 %v2368_v44, %v2367_v12 }
0x130e   : > { %v2370_v18 = vrot.slane %v2369_v21, 1 }
0x1310   : > { %v2371_v23 = vadd.f32 %v2370_v18, %v2369_v21 }
0x1312   : > { %v2379_v24 = vmul.f32 %v2378_v22, %v2371_v23 }
0x1314   : > { %2648 = vmatmul.msk.f32.vlgmr.msrb.gmra.mxu1 %vm563_vm7, %v2379_v24 }
0x1391   : > { %v2411_v31 = vpop.f32.mrf.mxu1 }
0x1392   : > { %v2412_v59 = vadd.f32 %v2411_v31, %v2389_v27 }
0x1394   : > { %2415 = vst.msk [vmem:[%s379_s30] sm:$0x1] %vm2414_vm13, %v2412_v59 }
0x1395   : > { %2871 = shalt.err (!%p2868_p3)
}
0x1396   : > { %2653 = dma.vmem_to_hbm [thread:$0]  (%p3016_p5), %s2428_s1, 16, %s2430_s15, %s2417_s25  }
0x1397 PF: > { %p2659_p4 = scmp.ge.s32.totalorder %s2906_s20, 2  ;;  %s2441_s12 = sand.u32 1, %s2894_s17  }
0x1398   : > { %s2442_s0 = scalar_lea.sflag [#allocation3], %s2441_s12 }
0x1399   : > { %p2656_p7 = pnand %p2659_p4, %p3020_p6 }
0x139b   : > { %p2657_p8 = pneg %p2656_p7 }
0x139d   : > { %2889 = dma.done.wait (%p2657_p8), %s2442_s0, 16  }
0x139e   : > { %2891 = vsyncadd (%p2657_p8), %s2442_s0, 4294967280  ;;  %p21_p9 = scmp.ge.s32.totalorder %s3003_s23, 4   ;;  %s4193_s17 = smov %s2898_s18 }
0x139f   : > { %s4194_s18 = smov %s2902_s19  ;;  %s4195_s19 = smov %s3014_s26 }
0x13a0   : > { %s4196_s20 = smov %s3003_s23  ;;  %23 = sbr.rel (!%p21_p9) target bundleno = 6 (0x6), region = 105 }
0x13a5   :  { %2447 = vsyncpa [#allocation3], 1 }
0x13a6   :  { %2449 = vsyncpa [#allocation3 + $0x1], 1 }

// kernel: swin_forward.2
= control target key start
LH: loop header
LB: loop body
LE: loop exit
PB: predicated region body
PF: predicated region fallthrough
CT: control target
= control target key end

     0   :  { %s4452_s30 = smov 0   ;;  %s6240_s0 = inlined_call_operand.vmem [shape: f32[128,48], index: 0, kind: input, shape index: {}]   ;;  %s6241_s1 = inlined_call_operand.vmem [shape: f32[48,32], index: 1, kind: input, shape index: {}]   ;;  %s6242_s2 = inlined_call_operand.vmem [shape: f32[3,32], index: 2, kind: input, shape index: {}]   ;;  %s6243_s3 = inlined_call_operand.vmem [shape: f32[2,2,64,64], index: 3, kind: input, shape index: {}]   ;;  %s6244_s4 = inlined_call_operand.vmem [shape: f32[2,32,96], index: 4, kind: input, shape index: {}]   ;;  %s6245_s5 = inlined_call_operand.vmem [shape: f32[2,32,128], index: 5, kind: input, shape index: {}]   ;;  %s6246_s6 = inlined_call_operand.vmem [shape: f32[2,32,32], index: 6, kind: input, shape index: {}]   ;;  %s6247_s7 = inlined_call_operand.vmem [shape: f32[2,128,32], index: 7, kind: input, shape index: {}]   ;;  %s6248_s8 = inlined_call_operand.vmem [shape: f32[2,8,128], index: 8, kind: input, shape index: {}]   ;;  %s6249_s9 = inlined_call_operand.vmem [shape: f32[128,32], index: 9, kind: output, shape index: {}]  }
   0x1 LB: > { %s3806_s10 = sadd.s32 4294967295, %s4393_s30   ;;  %p3810_p0 = scmp.ge.s32.totalorder %s4393_s30, 1  ;;  %s4393_s30 = sphi %s4452_s30, %s19_s30  }
   0x2   : > { %p288_p1 = scmp.lt.s32.totalorder %s4393_s30, 3 }
   0x4   : > { %p289_p2 = pnand %p3810_p0, %p288_p1 }
   0x5   : > { %s3811_s15 = sshll.u32 (!%p289_p2), %s3806_s10, 3  ;;  %s4396_s22 = smov (!%p289_p2), 96  }
   0x6   : > { %292 = sbr.rel (%p289_p2) target bundleno = 4853 (0x12f5), region = 56  ;;  %p325_p3 = scmp.lt.s32.totalorder (!%p289_p2), %s3811_s15, 15 }
   0x7   : > { %s4397_s23 = smov (!%p289_p2), 80   ;;  %s4398_s24 = smov (!%p289_p2), 64  }
   0x8   : > { %s4399_s13 = smov (!%p289_p2), 112   ;;  %s4400_s11 = smov (!%p289_p2), 48  }
   0x9   : > { %s4401_s10 = smov (!%p289_p2), 16  }
   0xb   : > { %v350_v0 = vld [vmem:[%s6241_s1 + $0x28] sm:$0xff]  ;;  %v349_v1 = vld [vmem:[%s6241_s1 + $0x20] sm:$0xff]  ;;  %v348_v2 = vld [vmem:[%s6241_s1 + $0x18] sm:$0xff]  ;;  %s6251_s15 = smov (!%p325_p3, %s3811_s15), 15  ;;  %vm352_vm0 = vcmask 392192   ;;  %vm418_vm1 = vcmask 261120  }
   0xc   : > { %387 = vmatpush.msra.mxu0 %v350_v0  ;;  %v347_v3 = vld [vmem:[%s6241_s1 + $0x10] sm:$0xff]  ;;  %s3812_s20 = sshll.u32 %s6251_s15, 3  ;;  %v346_v4 = vld [vmem:[%s6241_s1 + $0x8] sm:$0xff]  ;;  %v345_v5 = vld [vmem:[%s6241_s1] sm:$0xff]  ;;  %v4395_v40 = vmov 32.0  }
   0xd   : > { %s328_s25 = scalar_lea.vmem %s6240_s0, %s3812_s20  ;;  %v4497_v16 = vld [vmem:[%s6242_s2] sm:$0x7]  ;;  %4141 = vrcp.f32 %v4395_v40 }
   0xe   : > { %388 = vmatpush.msra.mxu0 %v349_v1  ;;  %v336_v6 = vld [vmem:[%s328_s25] sm:$0xff]  ;;  %v337_v7 = vld [vmem:[%s328_s25 + $0x8] sm:$0xff]  ;;  %v338_v8 = vld [vmem:[%s328_s25 + $0x10] sm:$0xff]  ;;  %v351_v17 = vperm.slane %v4497_v16, 0 }
   0xf   : > { %v339_v9 = vld [vmem:[%s328_s25 + $0x18] sm:$0xff]  ;;  %v340_v10 = vld [vmem:[%s328_s25 + $0x20] sm:$0xff]  ;;  %v341_v11 = vld [vmem:[%s328_s25 + $0x28] sm:$0xff] }
  0x10   : > { %389 = vmatpush.msra.mxu0 %v348_v2  ;;  %v342_v12 = vld [vmem:[%s328_s25 + $0x30] sm:$0xff]  ;;  %v343_v13 = vld [vmem:[%s328_s25 + $0x38] sm:$0xff] }
  0x12   : > { %390 = vmatpush.msra.mxu0 %v347_v3 }
  0x13   : > { %v4142_v41 = vpop.eup %4141 }
  0x14   : > { %391 = vmatpush.msra.mxu0 %v346_v4  ;;  %v444_v42 = vmul.f32 32.0, %v4142_v41  ;;  %vm448_vm2 = vweird.f32 %v4142_v41 }
  0x16   : > { %392 = vmatpush.msra.mxu0 %v345_v5  ;;  %v445_v43 = vsub.f32 1.0, %v444_v42  ;;  %v4565_v42 = vperm.slane %v4497_v16, 2 }
  0x17   : > { %3815 = vmatmul.msk.f32.vlgmr.msra.gmra.mxu0 %vm352_vm0, %v336_v6 }
  0x18   : > { %v446_v44 = vmul.f32 %v4142_v41, %v445_v43 }
  0x1a   : > { %v447_v45 = vadd.f32 %v4142_v41, %v446_v44 }
  0x1c   : > { %v4508_v46 = vsel %vm448_vm2, %v4142_v41, %v447_v45 }
  0x1f   : > { %3816 = vmatmul.msk.f32.gmra.mxu0 %vm352_vm0, %v337_v7 }
  0x27   : > { %3817 = vmatmul.msk.f32.gmra.mxu0 %vm352_vm0, %v338_v8 }
  0x2f   : > { %3818 = vmatmul.msk.f32.gmra.mxu0 %vm352_vm0, %v339_v9 }
  0x37   : > { %3819 = vmatmul.msk.f32.gmra.mxu0 %vm352_vm0, %v340_v10 }
  0x3f   : > { %3820 = vmatmul.msk.f32.gmra.mxu0 %vm352_vm0, %v341_v11 }
  0x47   : > { %3821 = vmatmul.msk.f32.gmra.mxu0 %vm352_vm0, %v342_v12 }
  0x4f   : > { %3822 = vmatmul.msk.f32.gmra.mxu0 %vm352_vm0, %v343_v13 }
  0x94   : > { %v394_v14 = vpop.f32.mrf.mxu0 }
  0x95   : > { %v395_v33 = vadd.f32 %v394_v14, %v351_v17 }
  0x97   : > { %v419_v37 = vsel %vm418_vm1, %v395_v33, 0.0 }
  0x9c   : > { %v397_v15 = vpop.f32.mrf.mxu0 }
  0x9d   : > { %v398_v38 = vadd.f32 %v397_v15, %v351_v17 }
  0x9f   : > { %v422_v39 = vsel %vm418_vm1, %v398_v38, 0.0 }
  0xa4   : > { %v400_v18 = vpop.f32.mrf.mxu0 }
  0xa5   : > { %v401_v19 = vadd.f32 %v400_v18, %v351_v17 }
  0xa7   : > { %v425_v20 = vsel %vm418_vm1, %v401_v19, 0.0 }
  0xa8   : > { %426 = vadd.xlane.f32.xlu0 %v425_v20 }
  0xac   : > { %v403_v21 = vpop.f32.mrf.mxu0 }
  0xad   : > { %v404_v22 = vadd.f32 %v403_v21, %v351_v17 }
  0xaf   : > { %v428_v23 = vsel %vm418_vm1, %v404_v22, 0.0 }
  0xb0   : > { %429 = vadd.xlane.f32.xlu1 %v428_v23 }
  0xb4   : > { %v406_v24 = vpop.f32.mrf.mxu0 }
  0xb5   : > { %v407_v25 = vadd.f32 %v406_v24, %v351_v17 }
  0xb7   : > { %v431_v26 = vsel %vm418_vm1, %v407_v25, 0.0 }
  0xb8   : > { %432 = vadd.xlane.f32.xlu2 %v431_v26 }
  0xbc   : > { %v409_v27 = vpop.f32.mrf.mxu0 }
  0xbd   : > { %v410_v28 = vadd.f32 %v409_v27, %v351_v17 }
  0xbf   : > { %v434_v29 = vsel %vm418_vm1, %v410_v28, 0.0 }
  0xc0   : > { %435 = vadd.xlane.f32.xlu2 %v434_v29 }
  0xc4   : > { %v412_v30 = vpop.f32.mrf.mxu0 }
  0xc5   : > { %v413_v31 = vadd.f32 %v412_v30, %v351_v17 }
  0xc7   : > { %v437_v32 = vsel %vm418_vm1, %v413_v31, 0.0 }
  0xc8   : > { %438 = vadd.xlane.f32.xlu0 %v437_v32 }
  0xcc   : > { %v415_v34 = vpop.f32.mrf.mxu0 }
  0xcd   : > { %v416_v35 = vadd.f32 %v415_v34, %v351_v17 }
  0xcf   : > { %v440_v36 = vsel %vm418_vm1, %v416_v35, 0.0 }
  0xd0   : > { %441 = vadd.xlane.f32.xlu1 %v440_v36  ;;  %420 = vadd.xlane.f32.xlu0 %v419_v37 }
  0xd8   : > { %423 = vadd.xlane.f32.xlu1 %v422_v39 }
 0x11b   : > { %v427_v47 = vpop.xlane.xlu0 %426 }
 0x11c   : > { %v452_v48 = vmul.f32 %v4508_v46, %v427_v47 }
 0x11e   : > { %v4511_v49 = vsub.f32 %v401_v19, %v452_v48 }
 0x120   : > { %v468_v50 = vmul.f32 %v4511_v49, %v4511_v49 }
 0x122   : > { %v480_v51 = vsel %vm418_vm1, %v468_v50, 0.0 }
 0x123   : > { %v430_v52 = vpop.xlane.xlu1 %429  ;;  %481 = vadd.xlane.f32.xlu2 %v480_v51 }
 0x124   : > { %v453_v53 = vmul.f32 %v4508_v46, %v430_v52 }
 0x126   : > { %v4517_v54 = vsub.f32 %v404_v22, %v453_v53 }
 0x128   : > { %v469_v55 = vmul.f32 %v4517_v54, %v4517_v54 }
 0x12a   : > { %v483_v56 = vsel %vm418_vm1, %v469_v55, 0.0 }
 0x12b   : > { %v433_v57 = vpop.xlane.xlu2 %432  ;;  %484 = vadd.xlane.f32.xlu1 %v483_v56 }
 0x12c   : > { %v454_v1 = vmul.f32 %v4508_v46, %v433_v57 }
 0x12e   : > { %v4534_v4 = vsub.f32 %v407_v25, %v454_v1 }
 0x130   : > { %v470_v11 = vmul.f32 %v4534_v4, %v4534_v4 }
 0x132   : > { %v486_v15 = vsel %vm418_vm1, %v470_v11, 0.0 }
 0x133   : > { %v436_v58 = vpop.xlane.xlu2 %435 }
 0x134   : > { %v455_v59 = vmul.f32 %v4508_v46, %v436_v58 }
 0x136   : > { %v4523_v60 = vsub.f32 %v410_v28, %v455_v59 }
 0x138   : > { %v471_v61 = vmul.f32 %v4523_v60, %v4523_v60 }
 0x13a   : > { %v489_v62 = vsel %vm418_vm1, %v471_v61, 0.0 }
 0x13b   : > { %v439_v63 = vpop.xlane.xlu0 %438  ;;  %490 = vadd.xlane.f32.xlu1 %v489_v62 }
 0x13c   : > { %v456_v0 = vmul.f32 %v4508_v46, %v439_v63 }
 0x13e   : > { %v4530_v2 = vsub.f32 %v413_v31, %v456_v0 }
 0x140   : > { %v472_v3 = vmul.f32 %v4530_v2, %v4530_v2 }
 0x142   : > { %v492_v5 = vsel %vm418_vm1, %v472_v3, 0.0 }
 0x143   : > { %v442_v6 = vpop.xlane.xlu1 %441  ;;  %493 = vadd.xlane.f32.xlu0 %v492_v5  ;;  %v421_v7 = vpop.xlane.xlu0 %420 }
 0x144   : > { %v457_v8 = vmul.f32 %v4508_v46, %v442_v6  ;;  %v450_v10 = vmul.f32 %v4508_v46, %v421_v7 }
 0x146   : > { %v4538_v9 = vsub.f32 %v416_v35, %v457_v8  ;;  %v4545_v13 = vsub.f32 %v395_v33, %v450_v10 }
 0x148   : > { %v473_v12 = vmul.f32 %v4538_v9, %v4538_v9  ;;  %v466_v20 = vmul.f32 %v4545_v13, %v4545_v13 }
 0x14a   : > { %v495_v14 = vsel %vm418_vm1, %v473_v12, 0.0  ;;  %v474_v23 = vsel %vm418_vm1, %v466_v20, 0.0 }
 0x14b   : > { %496 = vadd.xlane.f32.xlu2 %v495_v14  ;;  %v424_v17 = vpop.xlane.xlu1 %423  ;;  %487 = vadd.xlane.f32.xlu0 %v486_v15 }
 0x14c   : > { %v451_v18 = vmul.f32 %v4508_v46, %v424_v17 }
 0x14e   : > { %v4550_v19 = vsub.f32 %v398_v38, %v451_v18  ;;  %v4561_v38 = vperm.slane %v4497_v16, 1 }
 0x150   : > { %v467_v21 = vmul.f32 %v4550_v19, %v4550_v19 }
 0x152   : > { %v477_v22 = vsel %vm418_vm1, %v467_v21, 0.0 }
 0x153   : > { %478 = vadd.xlane.f32.xlu0 %v477_v22  ;;  %475 = vadd.xlane.f32.xlu2 %v474_v23 }
 0x196   : > { %v482_v24 = vpop.xlane.xlu2 %481 }
 0x197   : > { %v500_v25 = vmul.f32 %v482_v24, %v4508_v46 }
 0x199   : > { %v508_v26 = vadd.f32 1e-05, %v500_v25 }
 0x19b   : > { %4143 = vrsqrt.f32 %v508_v26  ;;  %vm540_vm4 = vweird.f32 %v508_v26 }
 0x19e   : > { %v485_v27 = vpop.xlane.xlu1 %484 }
 0x19f   : > { %v501_v28 = vmul.f32 %v485_v27, %v4508_v46 }
 0x1a1   : > { %v4144_v29 = vpop.eup %4143  ;;  %v509_v30 = vadd.f32 1e-05, %v501_v28 }
 0x1a2   : > { %v535_v31 = vmul.f32 %v4144_v29, %v508_v26  ;;  %vm541_vm3 = vweird.f32 %v4144_v29 }
 0x1a3   : > { %4145 = vrsqrt.f32 %v509_v30  ;;  %vm542_vm5 = vmor %vm540_vm4, %vm541_vm3  ;;  %vm550_vm7 = vweird.f32 %v509_v30 }
 0x1a4   : > { %v536_v32 = vmul.f32 %v4144_v29, %v535_v31 }
 0x1a6   : > { %v537_v33 = vmul.f32 0.5, %v536_v32 }
 0x1a8   : > { %v538_v34 = vsub.f32 1.5, %v537_v33 }
 0x1a9   : > { %v4146_v35 = vpop.eup %4145 }
 0x1aa   : > { %v539_v36 = vmul.f32 %v4144_v29, %v538_v34  ;;  %v545_v37 = vmul.f32 %v4146_v35, %v509_v30  ;;  %vm551_vm6 = vweird.f32 %v4146_v35 }
 0x1ab   : > { %vm552_vm8 = vmor %vm550_vm7, %vm551_vm6 }
 0x1ac   : > { %v546_v39 = vmul.f32 %v4146_v35, %v545_v37  ;;  %v543_v40 = vsel %vm542_vm5, %v4144_v29, %v539_v36 }
 0x1ad   : > { %v596_v41 = vmul.f32 %v543_v40, %v4511_v49 }
 0x1ae   : > { %v547_v43 = vmul.f32 0.5, %v546_v39  ;;  %v491_v44 = vpop.xlane.xlu1 %490 }
 0x1af   : > { %v503_v45 = vmul.f32 %v491_v44, %v4508_v46  ;;  %v605_v47 = vmul.f32 %v4561_v38, %v596_v41 }
 0x1b0   : > { %v548_v48 = vsub.f32 1.5, %v547_v43 }
 0x1b1   : > { %v511_v50 = vadd.f32 1e-05, %v503_v45  ;;  %v4570_v51 = vadd.f32 %v4565_v42, %v605_v47 }
 0x1b2   : > { %v549_v52 = vmul.f32 %v4146_v35, %v548_v48 }
 0x1b3   : > { %4147 = vrsqrt.f32 %v511_v50  ;;  %v671_v16 = vsel %vm418_vm1, %v4570_v51, 0.0  ;;  %vm570_vm10 = vweird.f32 %v511_v50 }
 0x1b4   : > { %672 = vadd.xlane.f32.xlu1 %v671_v16  ;;  %v553_v49 = vsel %vm552_vm8, %v4146_v35, %v549_v52 }
 0x1b5   : > { %v597_v53 = vmul.f32 %v553_v49, %v4517_v54 }
 0x1b6   : > { %v494_v55 = vpop.xlane.xlu0 %493 }
 0x1b7   : > { %v504_v56 = vmul.f32 %v494_v55, %v4508_v46  ;;  %v606_v57 = vmul.f32 %v4561_v38, %v597_v53 }
 0x1b9   : > { %v4148_v58 = vpop.eup %4147  ;;  %v512_v59 = vadd.f32 1e-05, %v504_v56  ;;  %v4578_v61 = vadd.f32 %v4565_v42, %v606_v57 }
 0x1ba   : > { %v565_v62 = vmul.f32 %v4148_v58, %v511_v50  ;;  %vm571_vm9 = vweird.f32 %v4148_v58 }
 0x1bb   : > { %4149 = vrsqrt.f32 %v512_v59  ;;  %v674_v63 = vsel %vm418_vm1, %v4578_v61, 0.0  ;;  %vm572_vm11 = vmor %vm570_vm10, %vm571_vm9  ;;  %vm580_vm13 = vweird.f32 %v512_v59 }
 0x1bc   : > { %v566_v0 = vmul.f32 %v4148_v58, %v565_v62  ;;  %675 = vadd.xlane.f32.xlu0 %v674_v63 }
 0x1be   : > { %v567_v1 = vmul.f32 0.5, %v566_v0  ;;  %v497_v3 = vpop.xlane.xlu2 %496  ;;  %v488_v54 = vpop.xlane.xlu0 %487 }
 0x1bf   : > { %v505_v5 = vmul.f32 %v497_v3, %v4508_v46  ;;  %v502_v6 = vmul.f32 %v488_v54, %v4508_v46 }
 0x1c0   : > { %v568_v7 = vsub.f32 1.5, %v567_v1 }
 0x1c1   : > { %v4150_v8 = vpop.eup %4149  ;;  %v513_v10 = vadd.f32 1e-05, %v505_v5  ;;  %v510_v11 = vadd.f32 1e-05, %v502_v6 }
 0x1c2   : > { %v569_v12 = vmul.f32 %v4148_v58, %v568_v7  ;;  %v575_v14 = vmul.f32 %v4150_v8, %v512_v59  ;;  %vm581_vm12 = vweird.f32 %v4150_v8 }
 0x1c3   : > { %4151 = vrsqrt.f32 %v513_v10  ;;  %vm582_vm14 = vmor %vm580_vm13, %vm581_vm12  ;;  %vm590_vm2 = vweird.f32 %v513_v10  ;;  %vm560_vm4 = vweird.f32 %v510_v11 }
 0x1c4   : > { %v576_v15 = vmul.f32 %v4150_v8, %v575_v14  ;;  %4153 = vrsqrt.f32 %v510_v11  ;;  %v573_v17 = vsel %vm572_vm11, %v4148_v58, %v569_v12 }
 0x1c5   : > { %v599_v18 = vmul.f32 %v573_v17, %v4523_v60 }
 0x1c6   : > { %v577_v20 = vmul.f32 0.5, %v576_v15  ;;  %v476_v21 = vpop.xlane.xlu2 %475  ;;  %v479_v22 = vpop.xlane.xlu0 %478 }
 0x1c7   : > { %v498_v23 = vmul.f32 %v476_v21, %v4508_v46  ;;  %v499_v24 = vmul.f32 %v479_v22, %v4508_v46  ;;  %v608_v25 = vmul.f32 %v4561_v38, %v599_v18 }
 0x1c8   : > { %v578_v26 = vsub.f32 1.5, %v577_v20 }
 0x1c9   : > { %v4152_v27 = vpop.eup %4151  ;;  %v506_v28 = vadd.f32 1e-05, %v498_v23  ;;  %v507_v29 = vadd.f32 1e-05, %v499_v24  ;;  %v4589_v30 = vadd.f32 %v4565_v42, %v608_v25 }
 0x1ca   : > { %v4154_v31 = vpop.eup %4153  ;;  %v579_v32 = vmul.f32 %v4150_v8, %v578_v26  ;;  %v585_v60 = vmul.f32 %v4152_v27, %v513_v10  ;;  %vm591_vm15 = vweird.f32 %v4152_v27 }
 0x1cb   : > { %v555_v33 = vmul.f32 %v4154_v31, %v510_v11  ;;  %4155 = vrsqrt.f32 %v506_v28  ;;  %v680_v35 = vsel %vm418_vm1, %v4589_v30, 0.0  ;;  %vm561_vm0 = vweird.f32 %v4154_v31  ;;  %vm592_vm3 = vmor %vm590_vm2, %vm591_vm15 }
 0x1cc   : > { %v586_v34 = vmul.f32 %v4152_v27, %v585_v60  ;;  %4157 = vrsqrt.f32 %v507_v29  ;;  %681 = vadd.xlane.f32.xlu0 %v680_v35  ;;  %v583_v37 = vsel %vm582_vm14, %v4150_v8, %v579_v32  ;;  %vm562_vm5 = vmor %vm560_vm4, %vm561_vm0  ;;  %vm520_vm8 = vweird.f32 %v506_v28 }
 0x1cd   : > { %v556_v36 = vmul.f32 %v4154_v31, %v555_v33  ;;  %v600_v40 = vmul.f32 %v583_v37, %v4530_v2  ;;  %vm530_vm10 = vweird.f32 %v507_v29 }
 0x1ce   : > { %v587_v39 = vmul.f32 0.5, %v586_v34 }
 0x1cf   : > { %v557_v41 = vmul.f32 0.5, %v556_v36  ;;  %v609_v44 = vmul.f32 %v4561_v38, %v600_v40 }
 0x1d0   : > { %v588_v43 = vsub.f32 1.5, %v587_v39 }
 0x1d1   : > { %v4156_v45 = vpop.eup %4155  ;;  %v558_v47 = vsub.f32 1.5, %v557_v41  ;;  %v4596_v16 = vadd.f32 %v4565_v42, %v609_v44 }
 0x1d2   : > { %v4158_v48 = vpop.eup %4157  ;;  %v589_v50 = vmul.f32 %v4152_v27, %v588_v43  ;;  %v515_v52 = vmul.f32 %v4156_v45, %v506_v28  ;;  %vm521_vm6 = vweird.f32 %v4156_v45 }
 0x1d3   : > { %v559_v49 = vmul.f32 %v4154_v31, %v558_v47  ;;  %v525_v53 = vmul.f32 %v4158_v48, %v507_v29  ;;  %v683_v55 = vsel %vm418_vm1, %v4596_v16, 0.0  ;;  %vm531_vm7 = vweird.f32 %v4158_v48  ;;  %vm522_vm9 = vmor %vm520_vm8, %vm521_vm6 }
 0x1d4   : > { %v516_v2 = vmul.f32 %v4156_v45, %v515_v52  ;;  %v593_v56 = vsel %vm592_vm3, %v4152_v27, %v589_v50  ;;  %684 = vadd.xlane.f32.xlu2 %v683_v55  ;;  %vm532_vm11 = vmor %vm530_vm10, %vm531_vm7 }
 0x1d5   : > { %v526_v57 = vmul.f32 %v4158_v48, %v525_v53  ;;  %v601_v58 = vmul.f32 %v593_v56, %v4538_v9  ;;  %v563_v59 = vsel %vm562_vm5, %v4154_v31, %v559_v49 }
 0x1d6   : > { %v517_v62 = vmul.f32 0.5, %v516_v2  ;;  %v598_v63 = vmul.f32 %v563_v59, %v4534_v4 }
 0x1d7   : > { %v527_v0 = vmul.f32 0.5, %v526_v57  ;;  %v610_v1 = vmul.f32 %v4561_v38, %v601_v58 }
 0x1d8   : > { %v518_v3 = vsub.f32 1.5, %v517_v62  ;;  %v607_v54 = vmul.f32 %v4561_v38, %v598_v63 }
 0x1d9   : > { %v528_v5 = vsub.f32 1.5, %v527_v0  ;;  %v4605_v6 = vadd.f32 %v4565_v42, %v610_v1 }
 0x1da   : > { %v519_v7 = vmul.f32 %v4156_v45, %v518_v3  ;;  %v4608_v9 = vadd.f32 %v4565_v42, %v607_v54  ;;  %v639_v3 = vld [vmem:[%s6244_s4 + $0x18] sm:$0xff]  ;;  %v638_v54 = vld [vmem:[%s6244_s4 + $0x10] sm:$0xff] }
 0x1db   : > { %v529_v8 = vmul.f32 %v4158_v48, %v528_v5  ;;  %v686_v4 = vsel %vm418_vm1, %v4605_v6, 0.0  ;;  %4030 = vmatpush.msra.mxu1 %v639_v3  ;;  %896 = vmatpush.msrb.mxu0 %v639_v3  ;;  %v637_v5 = vld [vmem:[%s6244_s4 + $0x8] sm:$0xff] }
 0x1dc   : > { %687 = vadd.xlane.f32.xlu1 %v686_v4  ;;  %v677_v10 = vsel %vm418_vm1, %v4608_v9, 0.0  ;;  %v523_v11 = vsel %vm522_vm9, %v4156_v45, %v519_v7  ;;  %4031 = vmatpush.msra.mxu3 %v639_v3  ;;  %v636_v7 = vld [vmem:[%s6244_s4] sm:$0xff] }
 0x1dd   : > { %678 = vadd.xlane.f32.xlu2 %v677_v10  ;;  %v594_v12 = vmul.f32 %v523_v11, %v4545_v13  ;;  %v533_v14 = vsel %vm532_vm11, %v4158_v48, %v529_v8  ;;  %4032 = vmatpush.msra.mxu1 %v638_v54 }
 0x1de   : > { %v595_v15 = vmul.f32 %v533_v14, %v4550_v19  ;;  %897 = vmatpush.msrb.mxu0 %v638_v54  ;;  %4033 = vmatpush.msra.mxu3 %v638_v54 }
 0x1df   : > { %v603_v17 = vmul.f32 %v4561_v38, %v594_v12  ;;  %4034 = vmatpush.msra.mxu1 %v637_v5 }
 0x1e0   : > { %v604_v18 = vmul.f32 %v4561_v38, %v595_v15  ;;  %898 = vmatpush.msrb.mxu0 %v637_v5  ;;  %4035 = vmatpush.msra.mxu3 %v637_v5 }
 0x1e1   : > { %v4619_v20 = vadd.f32 %v4565_v42, %v603_v17  ;;  %4036 = vmatpush.msra.mxu1 %v636_v7 }
 0x1e2   : > { %v4622_v21 = vadd.f32 %v4565_v42, %v604_v18  ;;  %899 = vmatpush.msrb.mxu0 %v636_v7  ;;  %4037 = vmatpush.msra.mxu3 %v636_v7 }
 0x1e3   : > { %v665_v22 = vsel %vm418_vm1, %v4619_v20, 0.0 }
 0x1e4   : > { %666 = vadd.xlane.f32.xlu1 %v665_v22  ;;  %v668_v13 = vsel %vm418_vm1, %v4622_v21, 0.0 }
 0x1e5   : > { %669 = vadd.xlane.f32.xlu2 %v668_v13 }
 0x227   : > { %v673_v23 = vpop.xlane.xlu1 %672 }
 0x228   : > { %v691_v19 = vmul.f32 %v673_v23, %v4508_v46  ;;  %v4701_v23 = vld [vmem:[%s6248_s8] sm:$0xff] }
 0x22a   : > { %v4630_v24 = vsub.f32 %v4570_v51, %v691_v19 }
 0x22c   : > { %v707_v38 = vmul.f32 %v4630_v24, %v4630_v24 }
 0x22e   : > { %v719_v42 = vsel %vm418_vm1, %v707_v38, 0.0 }
 0x22f   : > { %720 = vadd.xlane.f32.xlu0 %v719_v42  ;;  %v676_v25 = vpop.xlane.xlu0 %675 }
 0x230   : > { %v692_v26 = vmul.f32 %v676_v25, %v4508_v46  ;;  %v4704_v25 = vperm.slane %v4701_v23, 0 }
 0x232   : > { %v4637_v27 = vsub.f32 %v4578_v61, %v692_v26 }
 0x234   : > { %v708_v28 = vmul.f32 %v4637_v27, %v4637_v27 }
 0x236   : > { %v722_v29 = vsel %vm418_vm1, %v708_v28, 0.0 }
 0x237   : > { %723 = vadd.xlane.f32.xlu2 %v722_v29 }
 0x23f   : > { %v682_v31 = vpop.xlane.xlu0 %681 }
 0x240   : > { %v694_v32 = vmul.f32 %v682_v31, %v4508_v46  ;;  %v4708_v31 = vperm.slane %v4701_v23, 1 }
 0x242   : > { %v4644_v60 = vsub.f32 %v4589_v30, %v694_v32 }
 0x244   : > { %v710_v33 = vmul.f32 %v4644_v60, %v4644_v60 }
 0x246   : > { %v728_v34 = vsel %vm418_vm1, %v710_v33, 0.0 }
 0x247   : > { %v685_v35 = vpop.xlane.xlu2 %684  ;;  %729 = vadd.xlane.f32.xlu2 %v728_v34 }
 0x248   : > { %v695_v36 = vmul.f32 %v685_v35, %v4508_v46 }
 0x24a   : > { %v4651_v37 = vsub.f32 %v4596_v16, %v695_v36 }
 0x24c   : > { %v711_v39 = vmul.f32 %v4651_v37, %v4651_v37 }
 0x24e   : > { %v731_v41 = vsel %vm418_vm1, %v711_v39, 0.0 }
 0x24f   : > { %v688_v40 = vpop.xlane.xlu1 %687  ;;  %732 = vadd.xlane.f32.xlu1 %v731_v41 }
 0x250   : > { %v696_v43 = vmul.f32 %v688_v40, %v4508_v46  ;;  %v679_v44 = vpop.xlane.xlu2 %678 }
 0x251   : > { %v693_v45 = vmul.f32 %v679_v44, %v4508_v46 }
 0x252   : > { %v4659_v47 = vsub.f32 %v4605_v6, %v696_v43 }
 0x253   : > { %v4662_v48 = vsub.f32 %v4608_v9, %v693_v45 }
 0x254   : > { %v712_v50 = vmul.f32 %v4659_v47, %v4659_v47 }
 0x255   : > { %v709_v52 = vmul.f32 %v4662_v48, %v4662_v48 }
 0x256   : > { %v734_v49 = vsel %vm418_vm1, %v712_v50, 0.0 }
 0x257   : > { %735 = vadd.xlane.f32.xlu0 %v734_v49  ;;  %v667_v53 = vpop.xlane.xlu1 %666  ;;  %v725_v2 = vsel %vm418_vm1, %v709_v52, 0.0 }
 0x258   : > { %v689_v55 = vmul.f32 %v667_v53, %v4508_v46  ;;  %726 = vadd.xlane.f32.xlu1 %v725_v2  ;;  %v670_v56 = vpop.xlane.xlu2 %669 }
 0x259   : > { %v690_v57 = vmul.f32 %v670_v56, %v4508_v46 }
 0x25a   : > { %v4673_v58 = vsub.f32 %v4619_v20, %v689_v55 }
 0x25b   : > { %v4676_v59 = vsub.f32 %v4622_v21, %v690_v57 }
 0x25c   : > { %v705_v62 = vmul.f32 %v4673_v58, %v4673_v58 }
 0x25d   : > { %v706_v63 = vmul.f32 %v4676_v59, %v4676_v59 }
 0x25e   : > { %v713_v0 = vsel %vm418_vm1, %v705_v62, 0.0 }
 0x25f   : > { %714 = vadd.xlane.f32.xlu0 %v713_v0  ;;  %v716_v1 = vsel %vm418_vm1, %v706_v63, 0.0 }
 0x260   : > { %717 = vadd.xlane.f32.xlu1 %v716_v1 }
 0x2a2   : > { %v721_v8 = vpop.xlane.xlu0 %720 }
 0x2a3   : > { %v739_v4 = vmul.f32 %v721_v8, %v4508_v46 }
 0x2a5   : > { %v747_v10 = vadd.f32 1e-05, %v739_v4 }
 0x2a7   : > { %4159 = vrsqrt.f32 %v747_v10  ;;  %vm779_vm13 = vweird.f32 %v747_v10 }
 0x2aa   : > { %v724_v11 = vpop.xlane.xlu2 %723 }
 0x2ab   : > { %v740_v12 = vmul.f32 %v724_v11, %v4508_v46 }
 0x2ad   : > { %v4160_v14 = vpop.eup %4159  ;;  %v748_v15 = vadd.f32 1e-05, %v740_v12 }
 0x2ae   : > { %v774_v17 = vmul.f32 %v4160_v14, %v747_v10  ;;  %vm780_vm12 = vweird.f32 %v4160_v14 }
 0x2af   : > { %4161 = vrsqrt.f32 %v748_v15  ;;  %vm781_vm14 = vmor %vm779_vm13, %vm780_vm12  ;;  %vm789_vm0 = vweird.f32 %v748_v15 }
 0x2b0   : > { %v775_v18 = vmul.f32 %v4160_v14, %v774_v17 }
 0x2b2   : > { %v776_v22 = vmul.f32 0.5, %v775_v18 }
 0x2b4   : > { %v777_v13 = vsub.f32 1.5, %v776_v22 }
 0x2b5   : > { %v4162_v19 = vpop.eup %4161 }
 0x2b6   : > { %v778_v38 = vmul.f32 %v4160_v14, %v777_v13  ;;  %v784_v42 = vmul.f32 %v4162_v19, %v748_v15  ;;  %vm790_vm15 = vweird.f32 %v4162_v19 }
 0x2b7   : > { %vm791_vm2 = vmor %vm789_vm0, %vm790_vm15 }
 0x2b8   : > { %v785_v26 = vmul.f32 %v4162_v19, %v784_v42  ;;  %v782_v28 = vsel %vm781_vm14, %v4160_v14, %v778_v38 }
 0x2b9   : > { %v835_v29 = vmul.f32 %v782_v28, %v4630_v24 }
 0x2ba   : > { %v786_v32 = vmul.f32 0.5, %v785_v26  ;;  %v730_v33 = vpop.xlane.xlu2 %729 }
 0x2bb   : > { %v844_v34 = vmul.f32 %v4704_v25, %v835_v29  ;;  %v742_v36 = vmul.f32 %v730_v33, %v4508_v46 }
 0x2bc   : > { %v787_v35 = vsub.f32 1.5, %v786_v32 }
 0x2bd   : > { %v853_v39 = vadd.f32 %v4708_v31, %v844_v34  ;;  %v4714_v41 = vadd.f32 1e-05, %v742_v36 }
 0x2be   : > { %v788_v40 = vmul.f32 %v4162_v19, %v787_v35 }
 0x2bf   : > { %3825 = vmatmul.msk.f32.vlgmr.msra.gmra.mxu1 %vm418_vm1, %v853_v39  ;;  %4163 = vrsqrt.f32 %v4714_v41  ;;  %vm809_vm12 = vweird.f32 %v4714_v41 }
 0x2c0   : > { %v792_v24 = vsel %vm791_vm2, %v4162_v19, %v788_v40 }
 0x2c1   : > { %v836_v43 = vmul.f32 %v792_v24, %v4637_v27 }
 0x2c2   : > { %v733_v44 = vpop.xlane.xlu1 %732 }
 0x2c3   : > { %v845_v45 = vmul.f32 %v4704_v25, %v836_v43  ;;  %v743_v50 = vmul.f32 %v733_v44, %v4508_v46 }
 0x2c5   : > { %v854_v52 = vadd.f32 %v4708_v31, %v845_v45  ;;  %v751_v49 = vadd.f32 1e-05, %v743_v50  ;;  %v4722_v53 = vpop.eup %4163 }
 0x2c6   : > { %v804_v57 = vmul.f32 %v4722_v53, %v4714_v41  ;;  %vm810_vm7 = vweird.f32 %v4722_v53 }
 0x2c7   : > { %3826 = vmatmul.msk.f32.gmra.mxu1 %vm418_vm1, %v854_v52  ;;  %4165 = vrsqrt.f32 %v751_v49  ;;  %vm819_vm4 = vweird.f32 %v751_v49  ;;  %vm811_vm14 = vmor %vm809_vm12, %vm810_vm7  ;;  %vm1039_vm7 = vcmask 523264  }
 0x2c8   : > { %v805_v3 = vmul.f32 %v4722_v53, %v804_v57 }
 0x2ca   : > { %v736_v2 = vpop.xlane.xlu0 %735  ;;  %v806_v12 = vmul.f32 0.5, %v805_v3 }
 0x2cb   : > { %v727_v55 = vpop.xlane.xlu1 %726  ;;  %v744_v56 = vmul.f32 %v736_v2, %v4508_v46 }
 0x2cc   : > { %v741_v27 = vmul.f32 %v727_v55, %v4508_v46  ;;  %v807_v42 = vsub.f32 1.5, %v806_v12 }
 0x2cd   : > { %v752_v62 = vadd.f32 1e-05, %v744_v56  ;;  %v4166_v63 = vpop.eup %4165 }
 0x2ce   : > { %v749_v0 = vadd.f32 1e-05, %v741_v27  ;;  %v814_v1 = vmul.f32 %v4166_v63, %v751_v49  ;;  %vm820_vm3 = vweird.f32 %v4166_v63  ;;  %v808_v39 = vmul.f32 %v4722_v53, %v807_v42 }
 0x2cf   : > { %4167 = vrsqrt.f32 %v752_v62  ;;  %vm821_vm5 = vmor %vm819_vm4, %vm820_vm3  ;;  %vm829_vm9 = vweird.f32 %v752_v62 }
 0x2d0   : > { %4169 = vrsqrt.f32 %v749_v0  ;;  %v815_v54 = vmul.f32 %v4166_v63, %v814_v1  ;;  %vm799_vm10 = vweird.f32 %v749_v0 }
 0x2d2   : > { %v715_v5 = vpop.xlane.xlu0 %714  ;;  %v816_v7 = vmul.f32 0.5, %v815_v54 }
 0x2d3   : > { %v718_v8 = vpop.xlane.xlu1 %717  ;;  %v737_v4 = vmul.f32 %v715_v5, %v4508_v46 }
 0x2d4   : > { %v738_v10 = vmul.f32 %v718_v8, %v4508_v46  ;;  %v817_v14 = vsub.f32 1.5, %v816_v7 }
 0x2d5   : > { %v4168_v11 = vpop.eup %4167  ;;  %v745_v15 = vadd.f32 1e-05, %v737_v4 }
 0x2d6   : > { %v4170_v17 = vpop.eup %4169  ;;  %v824_v18 = vmul.f32 %v4168_v11, %v752_v62  ;;  %v746_v22 = vadd.f32 1e-05, %v738_v10  ;;  %v818_v13 = vmul.f32 %v4166_v63, %v817_v14  ;;  %vm830_vm6 = vweird.f32 %v4168_v11 }
 0x2d7   : > { %v794_v19 = vmul.f32 %v4170_v17, %v749_v0  ;;  %4171 = vrsqrt.f32 %v745_v15  ;;  %vm800_vm8 = vweird.f32 %v4170_v17  ;;  %vm831_vm11 = vmor %vm829_vm9, %vm830_vm6  ;;  %v812_v62 = vsel %vm811_vm14, %v4722_v53, %v808_v39 }
 0x2d8   : > { %v825_v38 = vmul.f32 %v4168_v11, %v824_v18  ;;  %4173 = vrsqrt.f32 %v746_v22  ;;  %v822_v28 = vsel %vm821_vm5, %v4166_v63, %v818_v13  ;;  %vm801_vm13 = vmor %vm799_vm10, %vm800_vm8  ;;  %v838_v5 = vmul.f32 %v812_v62, %v4644_v60 }
 0x2d9   : > { %v795_v26 = vmul.f32 %v4170_v17, %v794_v19  ;;  %v839_v32 = vmul.f32 %v822_v28, %v4651_v37  ;;  %vm759_vm2 = vweird.f32 %v745_v15  ;;  %vm769_vm4 = vweird.f32 %v746_v22 }
 0x2da   : > { %v826_v29 = vmul.f32 0.5, %v825_v38  ;;  %v847_v4 = vmul.f32 %v4704_v25, %v838_v5  ;;  %vm957_vm6 = vcmask 130048  }
 0x2db   : > { %v796_v33 = vmul.f32 0.5, %v795_v26  ;;  %v848_v35 = vmul.f32 %v4704_v25, %v839_v32 }
 0x2dc   : > { %v827_v34 = vsub.f32 1.5, %v826_v29  ;;  %v856_v14 = vadd.f32 %v4708_v31, %v847_v4 }
 0x2dd   : > { %v4172_v36 = vpop.eup %4171  ;;  %v797_v40 = vsub.f32 1.5, %v796_v33  ;;  %v857_v45 = vadd.f32 %v4708_v31, %v848_v35 }
 0x2de   : > { %v4174_v24 = vpop.eup %4173  ;;  %v828_v43 = vmul.f32 %v4168_v11, %v827_v34  ;;  %v754_v44 = vmul.f32 %v4172_v36, %v745_v15  ;;  %vm760_vm15 = vweird.f32 %v4172_v36 }
 0x2df   : > { %v798_v50 = vmul.f32 %v4170_v17, %v797_v40  ;;  %v764_v37 = vmul.f32 %v4174_v24, %v746_v22  ;;  %3829 = vmatmul.msk.f32.vlgmr.msra.gmra.mxu3 %vm418_vm1, %v857_v45  ;;  %vm770_vm0 = vweird.f32 %v4174_v24  ;;  %vm761_vm3 = vmor %vm759_vm2, %vm760_vm15  ;;  %v859_v22 = vperm.slane %v4701_v23, 4 }
 0x2e0   : > { %v755_v52 = vmul.f32 %v4172_v36, %v754_v44  ;;  %v832_v49 = vsel %vm831_vm11, %v4168_v11, %v828_v43  ;;  %vm771_vm5 = vmor %vm769_vm4, %vm770_vm0 }
 0x2e1   : > { %v765_v2 = vmul.f32 %v4174_v24, %v764_v37  ;;  %v802_v55 = vsel %vm801_vm13, %v4170_v17, %v798_v50  ;;  %v840_v56 = vmul.f32 %v832_v49, %v4659_v47 }
 0x2e2   : > { %v756_v27 = vmul.f32 0.5, %v755_v52  ;;  %v837_v57 = vmul.f32 %v802_v55, %v4662_v48 }
 0x2e3   : > { %v766_v63 = vmul.f32 0.5, %v765_v2  ;;  %v849_v41 = vmul.f32 %v4704_v25, %v840_v56 }
 0x2e4   : > { %v757_v0 = vsub.f32 1.5, %v756_v27  ;;  %v846_v1 = vmul.f32 %v4704_v25, %v837_v57 }
 0x2e5   : > { %v767_v3 = vsub.f32 1.5, %v766_v63  ;;  %v858_v54 = vadd.f32 %v4708_v31, %v849_v41 }
 0x2e6   : > { %v758_v7 = vmul.f32 %v4172_v36, %v757_v0  ;;  %v855_v47 = vadd.f32 %v4708_v31, %v846_v1 }
 0x2e7   : > { %v768_v48 = vmul.f32 %v4174_v24, %v767_v3  ;;  %3830 = vmatmul.msk.f32.gmra.mxu3 %vm418_vm1, %v858_v54 }
 0x2e8   : > { %v762_v53 = vsel %vm761_vm3, %v4172_v36, %v758_v7  ;;  %3827 = vmatmul.msk.f32.gmra.mxu1 %vm418_vm1, %v855_v47 }
 0x2e9   : > { %v833_v8 = vmul.f32 %v762_v53, %v4673_v58  ;;  %v772_v10 = vsel %vm771_vm5, %v4174_v24, %v768_v48 }
 0x2ea   : > { %v834_v12 = vmul.f32 %v772_v10, %v4676_v59 }
 0x2eb   : > { %v842_v60 = vmul.f32 %v4704_v25, %v833_v8 }
 0x2ec   : > { %v843_v15 = vmul.f32 %v4704_v25, %v834_v12 }
 0x2ed   : > { %v851_v11 = vadd.f32 %v4708_v31, %v842_v60 }
 0x2ee   : > { %v852_v17 = vadd.f32 %v4708_v31, %v843_v15 }
 0x2ef   : > { %3823 = vmatmul.msk.f32.vlgmr.msrb.gmra.mxu0 %vm418_vm1, %v851_v11 }
 0x2f0   : > { %3828 = vmatmul.msk.f32.gmra.mxu1 %vm418_vm1, %v856_v14 }
 0x2f7   : > { %3824 = vmatmul.msk.f32.gmra.mxu0 %vm418_vm1, %v852_v17 }
 0x33c   : > { %v907_v58 = vpop.f32.mrf.mxu1 }
 0x33d   : > { %v4795_v36 = vadd.f32 %v907_v58, %v859_v22 }
 0x33f   : > { %v4846_v4 = vmul.f32 0.25, %v4795_v36 }
 0x344   : > { %v910_v18 = vpop.f32.mrf.mxu1 }
 0x345   : > { %v4766_v42 = vadd.f32 %v910_v18, %v859_v22  ;;  %v620_v18 = vld [vmem:[%s6243_s3] sm:$0xff] }
 0x347   : > { %v4805_v39 = vpack.i.bf16 %v4795_v36, %v4766_v42  ;;  %v4854_v12 = vmul.f32 0.25, %v4766_v42 }
 0x362   : > { %v919_v13 = vpop.f32.mrf.mxu3 }
 0x363   : > { %v4762_v19 = vadd.f32 %v919_v13, %v859_v22 }
 0x365   : > { %v913_v59 = vpop.f32.mrf.mxu1  ;;  %953 = vrot.lane.b32.xlu0 %v4762_v19, %s4396_s22  ;;  %v4876_v17 = vmul.f32 0.25, %v4762_v19 }
 0x366   : > { %v4770_v28 = vadd.f32 %v913_v59, %v859_v22 }
 0x368   : > { %v4862_v14 = vmul.f32 0.25, %v4770_v28 }
 0x36a   : > { %v922_v38 = vpop.f32.mrf.mxu3 }
 0x36b   : > { %v4768_v25 = vadd.f32 %v922_v38, %v859_v22 }
 0x36c   : > { %v901_v31 = vpop.f32.mrf.mxu0 }
 0x36d   : > { %v916_v26 = vpop.f32.mrf.mxu1  ;;  %947 = vrot.lane.b32.xlu0 %v4766_v42, %s4396_s22  ;;  %955 = vrot.lane.b32.xlu2 %v4768_v25, %s4396_s22  ;;  %v4780_v23 = vpack.i.bf16 %v4762_v19, %v4768_v25  ;;  %v4788_v33 = vadd.f32 %v901_v31, %v859_v22  ;;  %v4881_v58 = vmul.f32 0.25, %v4768_v25  ;;  %v622_v31 = vld [vmem:[%s6243_s3 + $0x10] sm:$0xff] }
 0x36e   : > { %v4772_v29 = vadd.f32 %v916_v26, %v859_v22 }
 0x36f   : > { %v4836_v41 = vmul.f32 0.25, %v4788_v33 }
 0x370   : > { %951 = vrot.lane.b32.xlu1 %v4772_v29, %s4396_s22  ;;  %v4786_v32 = vpack.i.bf16 %v4770_v28, %v4772_v29  ;;  %v4869_v15 = vmul.f32 0.25, %v4772_v29 }
 0x374   : > { %v904_v34 = vpop.f32.mrf.mxu0 }
 0x375   : > { %v905_v35 = vadd.f32 %v904_v34, %v859_v22  ;;  %949 = vrot.lane.b32.xlu2 %v4770_v28, %s4396_s22  ;;  %941 = vrot.lane.b32.xlu0 %v4788_v33, %s4396_s22  ;;  %v623_v34 = vld [vmem:[%s6243_s3 + $0x18] sm:$0xff] }
 0x377   : > { %v4818_v40 = vpack.i.bf16 %v4788_v33, %v905_v35  ;;  %v926_v7 = vmul.f32 0.25, %v905_v35 }
 0x378   : > { %943 = vrot.lane.b32.xlu1 %v905_v35, %s4396_s22 }
 0x37d   : > { %945 = vrot.lane.b32.xlu2 %v4795_v36, %s4396_s22  ;;  %1245 = vrot.lane.b32.xlu0 %v4762_v19, %s4397_s23  ;;  %v621_v19 = vld [vmem:[%s6243_s3 + $0x8] sm:$0xff] }
 0x380   : > { %1239 = vrot.lane.b32.xlu1 %v4766_v42, %s4397_s23 }
 0x385   : > { %4062 = vrot.lane.b32.xlu2 %v4786_v32, %s4398_s24  ;;  %4067 = vrot.lane.b32.xlu0 %v4805_v39, %s4398_s24 }
 0x388   : > { %4077 = vrot.lane.b32.xlu1 %v4780_v23, %s4398_s24 }
 0x38d   : > { %1243 = vrot.lane.b32.xlu2 %v4772_v29, %s4397_s23  ;;  %1241 = vrot.lane.b32.xlu0 %v4770_v28, %s4397_s23 }
 0x395   : > { %1237 = vrot.lane.b32.xlu2 %v4795_v36, %s4397_s23  ;;  %4072 = vrot.lane.b32.xlu0 %v4818_v40, %s4398_s24 }
 0x39d   : > { %1247 = vrot.lane.b32.xlu2 %v4768_v25, %s4397_s23  ;;  %1235 = vrot.lane.b32.xlu0 %v905_v35, %s4397_s23 }
 0x3c7   : > { %v956_v24 = vpop.permute.xlu2 %955 }
 0x3c8   : > { %3831 = vmatpush.xpose.msk.msra.mxu2 %vm957_vm6, %v956_v24 }
 0x3cf   : > { %v950_v43 = vpop.permute.xlu2 %949 }
 0x3d7   : > { %v946_v44 = vpop.permute.xlu2 %945  ;;  %v954_v45 = vpop.permute.xlu0 %953 }
 0x3d8   : > { %3832 = vmatpush.xpose.msk.msra.mxu2 %vm957_vm6, %v954_v45  ;;  %v624_v45 = vld [vmem:[%s6243_s3 + $0x20] sm:$0xff] }
 0x3df   : > { %v4063_v50 = vpop.permute.xlu2 %4062  ;;  %v948_v37 = vpop.permute.xlu0 %947 }
 0x3e0   : > { %v4064_v54 = vunpack.i.l.bf16 %v4063_v50  ;;  %v4065_v47 = vunpack.i.h.bf16 %v4063_v50 }
 0x3e2   : > { %v952_v52 = vpop.permute.xlu1 %951 }
 0x3e3   : > { %3833 = vmatpush.xpose.msk.msra.mxu2 %vm957_vm6, %v952_v52 }
 0x3e7   : > { %3834 = vmatpush.xpose.msk.msra.mxu2 %vm957_vm6, %v950_v43  ;;  %v1244_v49 = vpop.permute.xlu2 %1243  ;;  %v942_v2 = vpop.permute.xlu0 %941 }
 0x3ea   : > { %v944_v55 = vpop.permute.xlu1 %943 }
 0x3eb   : > { %3835 = vmatpush.xpose.msk.msra.mxu2 %vm957_vm6, %v948_v37  ;;  %v625_v37 = vld [vmem:[%s6243_s3 + $0x28] sm:$0xff] }
 0x3ef   : > { %3836 = vmatpush.xpose.msk.msra.mxu2 %vm957_vm6, %v946_v44  ;;  %v1238_v56 = vpop.permute.xlu2 %1237  ;;  %v1246_v27 = vpop.permute.xlu0 %1245 }
 0x3f2   : > { %v1240_v57 = vpop.permute.xlu1 %1239 }
 0x3f3   : > { %3837 = vmatpush.xpose.msk.msra.mxu2 %vm957_vm6, %v944_v55 }
 0x3f7   : > { %3838 = vmatpush.xpose.msk.msra.mxu2 %vm957_vm6, %v942_v2  ;;  %v1248_v62 = vpop.permute.xlu2 %1247  ;;  %v4068_v63 = vpop.permute.xlu0 %4067 }
 0x3f8   : > { %3855 = vmatpush.xpose.msk.msrb.mxu1 %vm957_vm6, %v1248_v62  ;;  %v4069_v48 = vunpack.i.l.bf16 %v4068_v63  ;;  %v4070_v53 = vunpack.i.h.bf16 %v4068_v63 }
 0x3fa   : > { %v4078_v0 = vpop.permute.xlu1 %4077  ;;  %3839 = vmatmul.msk.f32.vlgmr.msra.gmra.mxu2 %vm957_vm6, %v4836_v41 }
 0x3fb   : > { %v4079_v1 = vunpack.i.l.bf16 %v4078_v0  ;;  %v4080_v3 = vunpack.i.h.bf16 %v4078_v0 }
 0x3fc   : > { %3856 = vmatpush.xpose.msk.msrb.mxu1 %vm957_vm6, %v1246_v27 }
 0x3fd   : > { %1184 = vmatpush.msrb.mxu3 %v4079_v1 }
 0x3ff   : > { %1185 = vmatpush.msrb.mxu3 %v4080_v3  ;;  %v1242_v5 = vpop.permute.xlu0 %1241 }
 0x400   : > { %3857 = vmatpush.xpose.msk.msrb.mxu1 %vm957_vm6, %v1244_v49 }
 0x401   : > { %1186 = vmatpush.msrb.mxu3 %v4064_v54 }
 0x402   : > { %3840 = vmatmul.msk.f32.gmra.mxu2 %vm957_vm6, %v926_v7 }
 0x403   : > { %1187 = vmatpush.msrb.mxu3 %v4065_v47 }
 0x404   : > { %3858 = vmatpush.xpose.msk.msrb.mxu1 %vm957_vm6, %v1242_v5 }
 0x405   : > { %1188 = vmatpush.msrb.mxu3 %v4069_v48 }
 0x407   : > { %1189 = vmatpush.msrb.mxu3 %v4070_v53  ;;  %v4073_v8 = vpop.permute.xlu0 %4072 }
 0x408   : > { %3859 = vmatpush.xpose.msk.msrb.mxu1 %vm957_vm6, %v1240_v57  ;;  %v4074_v10 = vunpack.i.l.bf16 %v4073_v8  ;;  %v4075_v60 = vunpack.i.h.bf16 %v4073_v8 }
 0x40a   : > { %3841 = vmatmul.msk.f32.gmra.mxu2 %vm957_vm6, %v4846_v4  ;;  %1190 = vmatpush.msrb.mxu3 %v4074_v10 }
 0x40c   : > { %1191 = vmatpush.msrb.mxu3 %v4075_v60  ;;  %3860 = vmatpush.xpose.msk.msrb.mxu1 %vm957_vm6, %v1238_v56 }
 0x40e   : > { %4038 = vmatpush.xpose.msk.msra.mxu3 %vm957_vm6, %v1248_v62 }
 0x40f   : > { %v1236_v11 = vpop.permute.xlu0 %1235 }
 0x410   : > { %3861 = vmatpush.xpose.msk.msrb.mxu1 %vm957_vm6, %v1236_v11 }
 0x412   : > { %3842 = vmatmul.msk.f32.gmra.mxu2 %vm957_vm6, %v4854_v12  ;;  %4039 = vmatpush.xpose.msk.msra.mxu3 %vm957_vm6, %v1246_v27  ;;  %v627_v27 = vld [vmem:[%s6243_s3 + $0x38] sm:$0xff] }
 0x416   : > { %4040 = vmatpush.xpose.msk.msra.mxu3 %vm957_vm6, %v1244_v49 }
 0x41a   : > { %3843 = vmatmul.msk.f32.gmra.mxu2 %vm957_vm6, %v4862_v14  ;;  %4041 = vmatpush.xpose.msk.msra.mxu3 %vm957_vm6, %v1242_v5 }
 0x41e   : > { %4042 = vmatpush.xpose.msk.msra.mxu3 %vm957_vm6, %v1240_v57 }
 0x422   : > { %3844 = vmatmul.msk.f32.gmra.mxu2 %vm957_vm6, %v4869_v15  ;;  %4043 = vmatpush.xpose.msk.msra.mxu3 %vm957_vm6, %v1238_v56 }
 0x426   : > { %4044 = vmatpush.xpose.msk.msra.mxu3 %vm957_vm6, %v1236_v11 }
 0x42a   : > { %3845 = vmatmul.msk.f32.gmra.mxu2 %vm957_vm6, %v4876_v17 }
 0x432   : > { %3846 = vmatmul.msk.f32.gmra.mxu2 %vm957_vm6, %v4881_v58 }
 0x47d   : > { %v1015_v22 = vpop.f32.mrf.mxu2 }
 0x47e   : > { %v1016_v13 = vadd.f32 %v1015_v22, %v620_v18 }
 0x480   : > { %v1040_v59 = vsel %vm1039_vm7, %v1016_v13, -inf }
 0x481   : > { %1041 = vmax.xlane.f32.xlu2 %v1040_v59 }
 0x485   : > { %v1018_v38 = vpop.f32.mrf.mxu2 }
 0x486   : > { %v1019_v42 = vadd.f32 %v1018_v38, %v621_v19 }
 0x488   : > { %v1043_v25 = vsel %vm1039_vm7, %v1019_v42, -inf }
 0x489   : > { %1044 = vmax.xlane.f32.xlu1 %v1043_v25 }
 0x48d   : > { %v1021_v26 = vpop.f32.mrf.mxu2 }
 0x48e   : > { %v1022_v28 = vadd.f32 %v1021_v26, %v622_v31 }
 0x490   : > { %v1046_v29 = vsel %vm1039_vm7, %v1022_v28, -inf }
 0x491   : > { %1047 = vmax.xlane.f32.xlu0 %v1046_v29 }
 0x495   : > { %v1024_v35 = vpop.f32.mrf.mxu2 }
 0x496   : > { %v1025_v36 = vadd.f32 %v1024_v35, %v623_v34 }
 0x498   : > { %v1049_v24 = vsel %vm1039_vm7, %v1025_v36, -inf }
 0x499   : > { %1050 = vmax.xlane.f32.xlu2 %v1049_v24 }
 0x49d   : > { %v1027_v43 = vpop.f32.mrf.mxu2 }
 0x49e   : > { %v1028_v50 = vadd.f32 %v1027_v43, %v624_v45 }
 0x4a0   : > { %v1052_v2 = vsel %vm1039_vm7, %v1028_v50, -inf }
 0x4a2   : > { %1219 = vrot.lane.b32.xlu1 %v926_v7, %s4399_s13 }
 0x4a5   : > { %1217 = vrot.lane.b32.xlu0 %v4836_v41, %s4399_s13  ;;  %v1030_v44 = vpop.f32.mrf.mxu2 }
 0x4a6   : > { %v1031_v49 = vadd.f32 %v1030_v44, %v625_v37 }
 0x4a8   : > { %v1055_v55 = vsel %vm1039_vm7, %v1031_v49, -inf }
 0x4ad   : > { %v1033_v52 = vpop.f32.mrf.mxu2 }
 0x4b1   : > { %1233 = vrot.lane.b32.xlu2 %v4788_v33, %s4397_s23  ;;  %v626_v33 = vld [vmem:[%s6243_s3 + $0x30] sm:$0xff] }
 0x4b2   : > { %v1034_v56 = vadd.f32 %v1033_v52, %v626_v33 }
 0x4b4   : > { %v1058_v63 = vsel %vm1039_vm7, %v1034_v56, -inf }
 0x4b5   : > { %v1036_v57 = vpop.f32.mrf.mxu2 }
 0x4b6   : > { %v1037_v62 = vadd.f32 %v1036_v57, %v627_v27 }
 0x4b8   : > { %v1061_v41 = vsel %vm1039_vm7, %v1037_v62, -inf }
 0x4cc   : > { %1053 = vmax.xlane.f32.xlu1 %v1052_v2 }
 0x4cf   : > { %1056 = vmax.xlane.f32.xlu0 %v1055_v55 }
 0x4d7   : > { %1059 = vmax.xlane.f32.xlu0 %v1058_v63 }
 0x4da   : > { %1062 = vmax.xlane.f32.xlu2 %v1061_v41 }
 0x4f4   : > { %v1042_v0 = vpop.xlane.xlu2 %1041 }
 0x4f5   : > { %v1064_v1 = vsub.f32 %v1016_v13, %v1042_v0 }
 0x4f7   : > { %v1072_v3 = vmul.f32 1.442695, %v1064_v1 }
 0x4f9   : > { %4175 = vpow2.f32 %v1072_v3 }
 0x4fc   : > { %v1045_v54 = vpop.xlane.xlu1 %1044 }
 0x4fd   : > { %v1065_v5 = vsub.f32 %v1019_v42, %v1045_v54 }
 0x4ff   : > { %v4922_v7 = vpop.eup %4175  ;;  %v1074_v47 = vmul.f32 1.442695, %v1065_v5 }
 0x500   : > { %v1088_v48 = vsel %vm1039_vm7, %v4922_v7, 0.0 }
 0x501   : > { %4177 = vpow2.f32 %v1074_v47  ;;  %1089 = vadd.xlane.f32.xlu1 %v1088_v48  ;;  %v629_v48 = vld [vmem:[%s6243_s3 + $0x48] sm:$0xff] }
 0x504   : > { %v1048_v53 = vpop.xlane.xlu0 %1047 }
 0x505   : > { %v1066_v8 = vsub.f32 %v1022_v28, %v1048_v53 }
 0x507   : > { %v4926_v10 = vpop.eup %4177  ;;  %v1076_v60 = vmul.f32 1.442695, %v1066_v8 }
 0x508   : > { %v1091_v11 = vsel %vm1039_vm7, %v4926_v10, 0.0 }
 0x509   : > { %4179 = vpow2.f32 %v1076_v60  ;;  %1092 = vadd.xlane.f32.xlu0 %v1091_v11 }
 0x50c   : > { %v1051_v18 = vpop.xlane.xlu2 %1050 }
 0x50d   : > { %v1067_v22 = vsub.f32 %v1025_v36, %v1051_v18 }
 0x50f   : > { %v4930_v13 = vpop.eup %4179  ;;  %v1078_v59 = vmul.f32 1.442695, %v1067_v22 }
 0x510   : > { %v1094_v19 = vsel %vm1039_vm7, %v4930_v13, 0.0 }
 0x511   : > { %4181 = vpow2.f32 %v1078_v59  ;;  %1095 = vadd.xlane.f32.xlu1 %v1094_v19 }
 0x514   : > { %v1234_v38 = vpop.permute.xlu2 %1233  ;;  %v1220_v26 = vpop.permute.xlu1 %1219 }
 0x515   : > { %3862 = vmatpush.xpose.msk.msrb.mxu1 %vm957_vm6, %v1234_v38  ;;  %4045 = vmatpush.xpose.msk.msra.mxu3 %vm957_vm6, %v1234_v38 }
 0x517   : > { %v4182_v42 = vpop.eup %4181  ;;  %v1218_v25 = vpop.permute.xlu0 %1217 }
 0x518   : > { %3863 = vmatmul.msk.f32.vlgmr.msrb.gmra.mxu1 %vm957_vm6, %v1218_v25  ;;  %v1097_v31 = vsel %vm1039_vm7, %v4182_v42, 0.0 }
 0x519   : > { %1098 = vadd.xlane.f32.xlu2 %v1097_v31 }
 0x51d   : > { %1223 = vrot.lane.b32.xlu0 %v4854_v12, %s4399_s13 }
 0x520   : > { %3864 = vmatmul.msk.f32.gmra.mxu1 %vm957_vm6, %v1220_v26 }
 0x52a   : > { %1221 = vrot.lane.b32.xlu1 %v4846_v4, %s4399_s13 }
 0x53f   : > { %v1054_v28 = vpop.xlane.xlu1 %1053 }
 0x540   : > { %v1068_v29 = vsub.f32 %v1028_v50, %v1054_v28 }
 0x542   : > { %v1080_v34 = vmul.f32 1.442695, %v1068_v29  ;;  %v1057_v35 = vpop.xlane.xlu0 %1056 }
 0x543   : > { %v1069_v36 = vsub.f32 %v1031_v49, %v1057_v35 }
 0x544   : > { %4183 = vpow2.f32 %v1080_v34 }
 0x545   : > { %v1082_v24 = vmul.f32 1.442695, %v1069_v36 }
 0x547   : > { %4185 = vpow2.f32 %v1082_v24 }
 0x54a   : > { %v4943_v43 = vpop.eup %4183  ;;  %v1060_v44 = vpop.xlane.xlu0 %1059 }
 0x54b   : > { %v1070_v45 = vsub.f32 %v1034_v56, %v1060_v44  ;;  %v1100_v12 = vsel %vm1039_vm7, %v4943_v43, 0.0 }
 0x54c   : > { %1101 = vadd.xlane.f32.xlu0 %v1100_v12 }
 0x54d   : > { %v4947_v37 = vpop.eup %4185  ;;  %v1084_v52 = vmul.f32 1.442695, %v1070_v45  ;;  %v1063_v4 = vpop.xlane.xlu2 %1062 }
 0x54e   : > { %v1071_v2 = vsub.f32 %v1037_v62, %v1063_v4  ;;  %v1103_v50 = vsel %vm1039_vm7, %v4947_v37, 0.0 }
 0x54f   : > { %4187 = vpow2.f32 %v1084_v52  ;;  %1104 = vadd.xlane.f32.xlu2 %v1103_v50 }
 0x550   : > { %v1086_v49 = vmul.f32 1.442695, %v1071_v2 }
 0x552   : > { %4189 = vpow2.f32 %v1086_v49 }
 0x555   : > { %v4951_v55 = vpop.eup %4187 }
 0x556   : > { %v1106_v33 = vsel %vm1039_vm7, %v4951_v55, 0.0 }
 0x557   : > { %1107 = vadd.xlane.f32.xlu2 %v1106_v33 }
 0x558   : > { %v4955_v56 = vpop.eup %4189 }
 0x559   : > { %v1109_v27 = vsel %vm1039_vm7, %v4955_v56, 0.0 }
 0x55a   : > { %1110 = vadd.xlane.f32.xlu1 %v1109_v27  ;;  %v632_v27 = vld [vmem:[%s6243_s3 + $0x60] sm:$0xff] }
 0x560   : > { %1227 = vrot.lane.b32.xlu0 %v4869_v15, %s4399_s13 }
 0x568   : > { %1231 = vrot.lane.b32.xlu0 %v4881_v58, %s4399_s13 }
 0x56f   : > { %1225 = vrot.lane.b32.xlu2 %v4862_v14, %s4399_s13 }
 0x574   : > { %v1090_v57 = vpop.xlane.xlu1 %1089 }
 0x575   : > { %4191 = vrcp.f32 %v1090_v57 }
 0x577   : > { %1229 = vrot.lane.b32.xlu2 %v4876_v17, %s4399_s13 }
 0x57b   : > { %v4192_v62 = vpop.eup %4191 }
 0x57c   : > { %v1093_v63 = vpop.xlane.xlu0 %1092  ;;  %v1120_v41 = vmul.f32 %v4192_v62, %v4922_v7  ;;  %v628_v7 = vld [vmem:[%s6243_s3 + $0x40] sm:$0xff] }
 0x57d   : > { %4193 = vrcp.f32 %v1093_v63 }
 0x57e   : > { %3847 = vmatmul.msk.f32.vlgmr.msrb.gmra.mxu3 %vm1039_vm7, %v1120_v41 }
 0x583   : > { %v4194_v0 = vpop.eup %4193 }
 0x584   : > { %v1096_v15 = vpop.xlane.xlu1 %1095  ;;  %v1121_v1 = vmul.f32 %v4194_v0, %v4926_v10  ;;  %v633_v0 = vld [vmem:[%s6243_s3 + $0x68] sm:$0xff] }
 0x585   : > { %4195 = vrcp.f32 %v1096_v15 }
 0x586   : > { %3848 = vmatmul.msk.f32.gmra.mxu3 %vm1039_vm7, %v1121_v1 }
 0x58b   : > { %v4196_v14 = vpop.eup %4195 }
 0x58c   : > { %v1099_v58 = vpop.xlane.xlu2 %1098  ;;  %v1122_v3 = vmul.f32 %v4196_v14, %v4930_v13 }
 0x58d   : > { %4197 = vrcp.f32 %v1099_v58 }
 0x58e   : > { %3849 = vmatmul.msk.f32.gmra.mxu3 %vm1039_vm7, %v1122_v3 }
 0x58f   : > { %v1224_v18 = vpop.permute.xlu0 %1223 }
 0x593   : > { %v4198_v17 = vpop.eup %4197 }
 0x594   : > { %v1123_v54 = vmul.f32 %v4198_v17, %v4182_v42 }
 0x595   : > { %v1298_v5 = vpop.f32.mrf.mxu1 }
 0x596   : > { %3850 = vmatmul.msk.f32.gmra.mxu3 %vm1039_vm7, %v1123_v54  ;;  %v4977_v47 = vadd.f32 %v1298_v5, %v628_v7  ;;  %v634_v5 = vld [vmem:[%s6243_s3 + $0x70] sm:$0xff] }
 0x598   : > { %v1322_v60 = vsel %vm1039_vm7, %v4977_v47, -inf }
 0x59c   : > { %v1222_v53 = vpop.permute.xlu1 %1221 }
 0x59d   : > { %v1301_v8 = vpop.f32.mrf.mxu1  ;;  %3865 = vmatmul.msk.f32.gmra.mxu1 %vm957_vm6, %v1222_v53 }
 0x59e   : > { %v4983_v10 = vadd.f32 %v1301_v8, %v629_v48 }
 0x5a0   : > { %1323 = vmax.xlane.f32.xlu2 %v1322_v60  ;;  %v1325_v11 = vsel %vm1039_vm7, %v4983_v10, -inf }
 0x5a1   : > { %1326 = vmax.xlane.f32.xlu0 %v1325_v11 }
 0x5a5   : > { %3866 = vmatmul.msk.f32.gmra.mxu1 %vm957_vm6, %v1224_v18 }
 0x5b5   : > { %4087 = vrot.lane.b32.xlu0 %v4786_v32, %s4400_s11 }
 0x5bf   : > { %v1102_v22 = vpop.xlane.xlu0 %1101 }
 0x5c0   : > { %4199 = vrcp.f32 %v1102_v22 }
 0x5c2   : > { %v1105_v13 = vpop.xlane.xlu2 %1104 }
 0x5c3   : > { %4201 = vrcp.f32 %v1105_v13 }
 0x5c6   : > { %v4200_v59 = vpop.eup %4199 }
 0x5c7   : > { %v1124_v19 = vmul.f32 %v4200_v59, %v4943_v43  ;;  %v630_v43 = vld [vmem:[%s6243_s3 + $0x50] sm:$0xff] }
 0x5c9   : > { %3851 = vmatmul.msk.f32.gmra.mxu3 %vm1039_vm7, %v1124_v19  ;;  %v4202_v42 = vpop.eup %4201 }
 0x5ca   : > { %v1108_v38 = vpop.xlane.xlu2 %1107  ;;  %v1125_v25 = vmul.f32 %v4202_v42, %v4947_v37  ;;  %v631_v37 = vld [vmem:[%s6243_s3 + $0x58] sm:$0xff] }
 0x5cb   : > { %4203 = vrcp.f32 %v1108_v38 }
 0x5cd   : > { %v1111_v26 = vpop.xlane.xlu1 %1110 }
 0x5ce   : > { %4205 = vrcp.f32 %v1111_v26 }
 0x5d1   : > { %3852 = vmatmul.msk.f32.gmra.mxu3 %vm1039_vm7, %v1125_v25  ;;  %v4204_v32 = vpop.eup %4203 }
 0x5d2   : > { %v1226_v31 = vpop.permute.xlu2 %1225  ;;  %v1126_v28 = vmul.f32 %v4204_v32, %v4951_v55  ;;  %v1228_v29 = vpop.permute.xlu0 %1227 }
 0x5d3   : > { %3867 = vmatmul.msk.f32.gmra.mxu1 %vm957_vm6, %v1226_v31 }
 0x5d4   : > { %v4206_v34 = vpop.eup %4205 }
 0x5d5   : > { %v1127_v35 = vmul.f32 %v4206_v34, %v4955_v56 }
 0x5d9   : > { %3853 = vmatmul.msk.f32.gmra.mxu3 %vm1039_vm7, %v1126_v28 }
 0x5da   : > { %v1230_v36 = vpop.permute.xlu2 %1229  ;;  %v1232_v24 = vpop.permute.xlu0 %1231 }
 0x5db   : > { %3868 = vmatmul.msk.f32.gmra.mxu1 %vm957_vm6, %v1228_v29 }
 0x5e1   : > { %3854 = vmatmul.msk.f32.gmra.mxu3 %vm1039_vm7, %v1127_v35 }
 0x5e3   : > { %3869 = vmatmul.msk.f32.gmra.mxu1 %vm957_vm6, %v1230_v36 }
 0x5e9   : > { %3870 = vmatmul.msk.f32.vlgmr.msra.gmra.mxu3 %vm957_vm6, %v1232_v24 }
 0x601   : > { %v5012_v50 = vpop.f32.mrf.mxu3 }
 0x609   : > { %v5014_v49 = vpop.f32.mrf.mxu3 }
 0x611   : > { %v5016_v55 = vpop.f32.mrf.mxu3 }
 0x613   : > { %v1324_v15 = vpop.xlane.xlu2 %1323 }
 0x614   : > { %v1346_v58 = vsub.f32 %v4977_v47, %v1324_v15  ;;  %v635_v47 = vld [vmem:[%s6243_s3 + $0x78] sm:$0xff]  ;;  %v1327_v19 = vpop.xlane.xlu0 %1326 }
 0x615   : > { %v1347_v38 = vsub.f32 %v4983_v10, %v1327_v19 }
 0x616   : > { %v1354_v54 = vmul.f32 1.442695, %v1346_v58 }
 0x617   : > { %v1356_v42 = vmul.f32 1.442695, %v1347_v38 }
 0x618   : > { %4207 = vpow2.f32 %v1354_v54 }
 0x619   : > { %v5018_v33 = vpop.f32.mrf.mxu3  ;;  %4209 = vpow2.f32 %v1356_v42 }
 0x61a   : > { %v1304_v44 = vpop.f32.mrf.mxu1 }
 0x61b   : > { %v1305_v45 = vadd.f32 %v1304_v44, %v630_v43 }
 0x61d   : > { %v1328_v12 = vsel %vm1039_vm7, %v1305_v45, -inf }
 0x61e   : > { %1329 = vmax.xlane.f32.xlu1 %v1328_v12  ;;  %v5041_v60 = vpop.eup %4207 }
 0x61f   : > { %v1370_v11 = vsel %vm1039_vm7, %v5041_v60, 0.0  ;;  %v5056_v29 = vpop.eup %4209 }
 0x622   : > { %v1307_v52 = vpop.f32.mrf.mxu1 }
 0x623   : > { %v1308_v4 = vadd.f32 %v1307_v52, %v631_v37 }
 0x625   : > { %v1331_v2 = vsel %vm1039_vm7, %v1308_v4, -inf }
 0x626   : > { %1332 = vmax.xlane.f32.xlu1 %v1331_v2 }
 0x64c   : > { %v5020_v56 = vpop.f32.mrf.mxu3 }
 0x650   : > { %v1310_v57 = vpop.f32.mrf.mxu1 }
 0x651   : > { %v1311_v62 = vadd.f32 %v1310_v57, %v632_v27  ;;  %v4088_v57 = vpop.permute.xlu0 %4087 }
 0x653   : > { %v1334_v63 = vsel %vm1039_vm7, %v1311_v62, -inf }
 0x654   : > { %1335 = vmax.xlane.f32.xlu1 %v1334_v63  ;;  %v5026_v41 = vpop.f32.mrf.mxu3 }
 0x658   : > { %v1313_v1 = vpop.f32.mrf.mxu1 }
 0x659   : > { %v1314_v14 = vadd.f32 %v1313_v1, %v633_v0 }
 0x65b   : > { %v1337_v3 = vsel %vm1039_vm7, %v1314_v14, -inf }
 0x65c   : > { %1338 = vmax.xlane.f32.xlu1 %v1337_v3  ;;  %v5033_v17 = vpop.f32.mrf.mxu3 }
 0x660   : > { %v1316_v7 = vpop.f32.mrf.mxu1 }
 0x661   : > { %v1317_v48 = vadd.f32 %v1316_v7, %v634_v5  ;;  %v4089_v7 = vunpack.i.l.bf16 %v4088_v57 }
 0x663   : > { %v1340_v53 = vsel %vm1039_vm7, %v1317_v48, -inf }
 0x664   : > { %1341 = vmax.xlane.f32.xlu2 %v1340_v53  ;;  %v5039_v8 = vpop.f32.mrf.mxu3 }
 0x66c   : > { %1371 = vadd.xlane.f32.xlu2 %v1370_v11  ;;  %v1319_v18 = vpop.f32.mrf.mxu3 }
 0x66d   : > { %v1320_v22 = vadd.f32 %v1319_v18, %v635_v47  ;;  %v4090_v47 = vunpack.i.h.bf16 %v4088_v57 }
 0x66f   : > { %v1343_v13 = vsel %vm1039_vm7, %v1320_v22, -inf }
 0x670   : > { %1344 = vmax.xlane.f32.xlu0 %v1343_v13 }
 0x675   : > { %4082 = vrot.lane.b32.xlu1 %v4780_v23, %s4400_s11 }
 0x67d   : > { %4097 = vrot.lane.b32.xlu1 %v4818_v40, %s4400_s11  ;;  %v1373_v40 = vsel %vm1039_vm7, %v5056_v29, 0.0 }
 0x684   : > { %4092 = vrot.lane.b32.xlu2 %v4805_v39, %s4400_s11 }
 0x691   : > { %v1330_v59 = vpop.xlane.xlu1 %1329 }
 0x692   : > { %v1348_v26 = vsub.f32 %v1305_v45, %v1330_v59 }
 0x694   : > { %v1358_v28 = vmul.f32 1.442695, %v1348_v26 }
 0x699   : > { %v1333_v25 = vpop.xlane.xlu1 %1332 }
 0x69a   : > { %v1349_v31 = vsub.f32 %v1308_v4, %v1333_v25 }
 0x69c   : > { %v1360_v32 = vmul.f32 1.442695, %v1349_v31 }
 0x69e   : > { %4211 = vpow2.f32 %v1360_v32 }
 0x69f   : > { %4213 = vpow2.f32 %v1358_v28 }
 0x6a4   : > { %v5058_v23 = vpop.eup %4211 }
 0x6a5   : > { %v1379_v39 = vsel %vm1039_vm7, %v5058_v23, 0.0  ;;  %v5064_v10 = vpop.eup %4213 }
 0x6a6   : > { %1380 = vadd.xlane.f32.xlu0 %v1379_v39  ;;  %v1376_v34 = vsel %vm1039_vm7, %v5064_v10, 0.0 }
 0x6a7   : > { %1374 = vadd.xlane.f32.xlu1 %v1373_v40 }
 0x6ad   : > { %1377 = vadd.xlane.f32.xlu2 %v1376_v34 }
 0x6c7   : > { %v1336_v35 = vpop.xlane.xlu1 %1335 }
 0x6c8   : > { %v1350_v36 = vsub.f32 %v1311_v62, %v1336_v35 }
 0x6ca   : > { %v1362_v24 = vmul.f32 1.442695, %v1350_v36 }
 0x6cc   : > { %4215 = vpow2.f32 %v1362_v24 }
 0x6cf   : > { %v1339_v43 = vpop.xlane.xlu1 %1338 }
 0x6d0   : > { %v1351_v44 = vsub.f32 %v1314_v14, %v1339_v43 }
 0x6d2   : > { %v5068_v45 = vpop.eup %4215  ;;  %v1364_v12 = vmul.f32 1.442695, %v1351_v44 }
 0x6d3   : > { %v1382_v37 = vsel %vm1039_vm7, %v5068_v45, 0.0 }
 0x6d4   : > { %4217 = vpow2.f32 %v1364_v12  ;;  %1383 = vadd.xlane.f32.xlu0 %v1382_v37 }
 0x6d7   : > { %v1342_v52 = vpop.xlane.xlu2 %1341 }
 0x6d8   : > { %v1352_v4 = vsub.f32 %v1317_v48, %v1342_v52 }
 0x6da   : > { %v5072_v2 = vpop.eup %4217  ;;  %v1366_v27 = vmul.f32 1.442695, %v1352_v4 }
 0x6db   : > { %v1385_v62 = vsel %vm1039_vm7, %v5072_v2, 0.0 }
 0x6dc   : > { %4219 = vpow2.f32 %v1366_v27  ;;  %1386 = vadd.xlane.f32.xlu1 %v1385_v62  ;;  %v647_v62 = vld [vmem:[%s6246_s6 + $0x18] sm:$0xff] }
 0x6dd   : > { %1575 = vmatpush.msrb.mxu3 %v647_v62 }
 0x6df   : > { %v1372_v1 = vpop.xlane.xlu2 %1371 }
 0x6e2   : > { %v4220_v63 = vpop.eup %4219 }
 0x6e3   : > { %v1345_v0 = vpop.xlane.xlu0 %1344  ;;  %v1388_v15 = vsel %vm1039_vm7, %v4220_v63, 0.0 }
 0x6e4   : > { %v1353_v14 = vsub.f32 %v1320_v22, %v1345_v0  ;;  %1389 = vadd.xlane.f32.xlu2 %v1388_v15  ;;  %v645_v0 = vld [vmem:[%s6246_s6 + $0x8] sm:$0xff]  ;;  %v644_v15 = vld [vmem:[%s6246_s6] sm:$0xff] }
 0x6e6   : > { %v1368_v58 = vmul.f32 1.442695, %v1353_v14 }
 0x6e7   : > { %v4083_v3 = vpop.permute.xlu1 %4082  ;;  %v4093_v53 = vpop.permute.xlu2 %4092 }
 0x6e8   : > { %4221 = vpow2.f32 %v1368_v58  ;;  %v4084_v54 = vunpack.i.l.bf16 %v4083_v3  ;;  %v4085_v5 = vunpack.i.h.bf16 %v4083_v3  ;;  %v4094_v18 = vunpack.i.l.bf16 %v4093_v53 }
 0x6e9   : > { %4223 = vrcp.f32 %v1372_v1  ;;  %v4095_v13 = vunpack.i.h.bf16 %v4093_v53 }
 0x6ea   : > { %1466 = vmatpush.msra.mxu0 %v4084_v54 }
 0x6ec   : > { %1467 = vmatpush.msra.mxu0 %v4085_v5 }
 0x6ee   : > { %v4222_v48 = vpop.eup %4221  ;;  %1468 = vmatpush.msra.mxu0 %v4089_v7 }
 0x6ef   : > { %v1391_v11 = vsel %vm1039_vm7, %v4222_v48, 0.0  ;;  %v4098_v22 = vpop.permute.xlu1 %4097  ;;  %v4224_v59 = vpop.eup %4223 }
 0x6f0   : > { %1392 = vadd.xlane.f32.xlu0 %v1391_v11  ;;  %1469 = vmatpush.msra.mxu0 %v4090_v47  ;;  %v4099_v19 = vunpack.i.l.bf16 %v4098_v22  ;;  %v4100_v38 = vunpack.i.h.bf16 %v4098_v22  ;;  %v1402_v42 = vmul.f32 %v4224_v59, %v5041_v60 }
 0x6f2   : > { %1470 = vmatpush.msra.mxu0 %v4094_v18 }
 0x6f4   : > { %1471 = vmatpush.msra.mxu0 %v4095_v13 }
 0x6f6   : > { %1472 = vmatpush.msra.mxu0 %v4099_v19 }
 0x6f8   : > { %1473 = vmatpush.msra.mxu0 %v4100_v38 }
 0x6f9   : > { %3871 = vmatmul.msk.f32.vlgmr.msra.gmra.mxu0 %vm1039_vm7, %v1402_v42 }
 0x719   : > { %v1381_v28 = vpop.xlane.xlu0 %1380 }
 0x71a   : > { %v1375_v25 = vpop.xlane.xlu1 %1374 }
 0x71b   : > { %4225 = vrcp.f32 %v1375_v25 }
 0x720   : > { %v1378_v31 = vpop.xlane.xlu2 %1377 }
 0x721   : > { %v4226_v26 = vpop.eup %4225  ;;  %4227 = vrcp.f32 %v1378_v31 }
 0x722   : > { %v1403_v32 = vmul.f32 %v4226_v26, %v5056_v29  ;;  %4229 = vrcp.f32 %v1381_v28 }
 0x724   : > { %3872 = vmatmul.msk.f32.gmra.mxu0 %vm1039_vm7, %v1403_v32 }
 0x727   : > { %v4228_v39 = vpop.eup %4227 }
 0x728   : > { %v1404_v40 = vmul.f32 %v4228_v39, %v5064_v10  ;;  %v4230_v60 = vpop.eup %4229 }
 0x729   : > { %v1405_v34 = vmul.f32 %v4230_v60, %v5058_v23 }
 0x72c   : > { %3873 = vmatmul.msk.f32.gmra.mxu0 %vm1039_vm7, %v1404_v40 }
 0x734   : > { %3874 = vmatmul.msk.f32.gmra.mxu0 %vm1039_vm7, %v1405_v34 }
 0x747   : > { %v1384_v35 = vpop.xlane.xlu0 %1383 }
 0x748   : > { %4231 = vrcp.f32 %v1384_v35 }
 0x74e   : > { %v4232_v36 = vpop.eup %4231 }
 0x74f   : > { %v1387_v24 = vpop.xlane.xlu1 %1386  ;;  %v1406_v29 = vmul.f32 %v4232_v36, %v5068_v45 }
 0x750   : > { %4233 = vrcp.f32 %v1387_v24 }
 0x751   : > { %3875 = vmatmul.msk.f32.gmra.mxu0 %vm1039_vm7, %v1406_v29 }
 0x756   : > { %v4234_v43 = vpop.eup %4233 }
 0x757   : > { %v1390_v44 = vpop.xlane.xlu2 %1389  ;;  %v1407_v10 = vmul.f32 %v4234_v43, %v5072_v2 }
 0x758   : > { %4235 = vrcp.f32 %v1390_v44 }
 0x759   : > { %3876 = vmatmul.msk.f32.gmra.mxu0 %vm1039_vm7, %v1407_v10 }
 0x75e   : > { %v4236_v12 = vpop.eup %4235 }
 0x75f   : > { %v1408_v23 = vmul.f32 %v4236_v12, %v4220_v63  ;;  %v646_v63 = vld [vmem:[%s6246_s6 + $0x10] sm:$0xff] }
 0x760   : > { %1576 = vmatpush.msrb.mxu3 %v646_v63 }
 0x761   : > { %3877 = vmatmul.msk.f32.gmra.mxu0 %vm1039_vm7, %v1408_v23 }
 0x762   : > { %1577 = vmatpush.msrb.mxu3 %v645_v0 }
 0x763   : > { %v1393_v37 = vpop.xlane.xlu0 %1392 }
 0x764   : > { %4237 = vrcp.f32 %v1393_v37  ;;  %1578 = vmatpush.msrb.mxu3 %v644_v15 }
 0x76a   : > { %v4238_v52 = vpop.eup %4237 }
 0x76b   : > { %v1409_v4 = vmul.f32 %v4238_v52, %v4222_v48 }
 0x76d   : > { %3878 = vmatmul.msk.f32.gmra.mxu0 %vm1039_vm7, %v1409_v4 }
 0x776   : > { %v1475_v45 = vpop.f32.mrf.mxu0 }
 0x777   : > { %1507 = vrot.lane.b32.xlu1 %v1475_v45, %s4401_s10 }
 0x7a1   : > { %v1478_v27 = vpop.f32.mrf.mxu0 }
 0x7a2   : > { %1509 = vrot.lane.b32.xlu2 %v1478_v27, %s4401_s10 }
 0x7a9   : > { %v1481_v2 = vpop.f32.mrf.mxu0 }
 0x7aa   : > { %1511 = vrot.lane.b32.xlu0 %v1481_v2, %s4401_s10 }
 0x7b1   : > { %v1484_v57 = vpop.f32.mrf.mxu0 }
 0x7b2   : > { %1513 = vrot.lane.b32.xlu1 %v1484_v57, %s4401_s10 }
 0x7ce   : > { %v1487_v1 = vpop.f32.mrf.mxu0 }
 0x7cf   : > { %1515 = vrot.lane.b32.xlu0 %v1487_v1, %s4401_s10 }
 0x7d6   : > { %v1490_v14 = vpop.f32.mrf.mxu0 }
 0x7d7   : > { %1517 = vrot.lane.b32.xlu2 %v1490_v14, %s4401_s10 }
 0x7de   : > { %v1493_v58 = vpop.f32.mrf.mxu0 }
 0x7df   : > { %1519 = vrot.lane.b32.xlu1 %v1493_v58, %s4401_s10 }
 0x7e9   : > { %v1508_v3 = vpop.permute.xlu1 %1507 }
 0x7ea   : > { %v1496_v54 = vpop.f32.mrf.mxu0  ;;  %v1531_v5 = vsel %vm957_vm6, %v5012_v50, %v1508_v3 }
 0x7eb   : > { %1521 = vrot.lane.b32.xlu0 %v1496_v54, %s4401_s10  ;;  %3879 = vmatmul.msk.f32.vlgmr.msrb.gmra.mxu3 %vm418_vm1, %v1531_v5 }
 0x7fc   : > { %v1510_v7 = vpop.permute.xlu2 %1509 }
 0x7fd   : > { %v1532_v48 = vsel %vm957_vm6, %v5014_v49, %v1510_v7 }
 0x7fe   : > { %3880 = vmatmul.msk.f32.gmra.mxu3 %vm418_vm1, %v1532_v48 }
 0x81c   : > { %v1512_v53 = vpop.permute.xlu0 %1511 }
 0x81d   : > { %v1533_v47 = vsel %vm957_vm6, %v5016_v55, %v1512_v53 }
 0x81e   : > { %3881 = vmatmul.msk.f32.gmra.mxu3 %vm418_vm1, %v1533_v47 }
 0x824   : > { %v1514_v11 = vpop.permute.xlu1 %1513 }
 0x825   : > { %v1534_v50 = vsel %vm957_vm6, %v5018_v33, %v1514_v11 }
 0x826   : > { %3882 = vmatmul.msk.f32.gmra.mxu3 %vm418_vm1, %v1534_v50  ;;  %v643_v50 = vld [vmem:[%s6245_s5 + $0x18] sm:$0xff] }
 0x827   : > { %1852 = vmatpush.msrb.mxu2 %v643_v50 }
 0x831   : > { %v1518_v49 = vpop.permute.xlu2 %1517 }
 0x832   : > { %v1536_v13 = vsel %vm957_vm6, %v5026_v41, %v1518_v49 }
 0x841   : > { %v1516_v18 = vpop.permute.xlu0 %1515 }
 0x842   : > { %v1535_v22 = vsel %vm957_vm6, %v5020_v56, %v1516_v18  ;;  %v5139_v56 = vld [vmem:[%s6248_s8] sm:$0xff] }
 0x843   : > { %3883 = vmatmul.msk.f32.gmra.mxu3 %vm418_vm1, %v1535_v22  ;;  %v1612_v41 = vperm.slane %v5139_v56, 5 }
 0x84b   : > { %3884 = vmatmul.msk.f32.gmra.mxu3 %vm418_vm1, %v1536_v13 }
 0x851   : > { %v1520_v55 = vpop.permute.xlu1 %1519 }
 0x852   : > { %v1537_v59 = vsel %vm957_vm6, %v5033_v17, %v1520_v55 }
 0x853   : > { %3885 = vmatmul.msk.f32.gmra.mxu3 %vm418_vm1, %v1537_v59 }
 0x85d   : > { %v1522_v33 = vpop.permute.xlu0 %1521 }
 0x85e   : > { %v1538_v19 = vsel %vm957_vm6, %v5039_v8, %v1522_v33 }
 0x85f   : > { %3886 = vmatmul.msk.f32.gmra.mxu3 %vm418_vm1, %v1538_v19 }
 0x86e   : > { %v1580_v38 = vpop.f32.mrf.mxu3 }
 0x86f   : > { %v1604_v42 = vadd.f32 %v1580_v38, %v4619_v20 }
 0x871   : > { %v5143_v25 = vadd.f32 %v1612_v41, %v1604_v42 }
 0x873   : > { %v1621_v17 = vsel %vm418_vm1, %v5143_v25, 0.0 }
 0x874   : > { %1622 = vadd.xlane.f32.xlu2 %v1621_v17 }
 0x881   : > { %v1583_v31 = vpop.f32.mrf.mxu3 }
 0x882   : > { %v1605_v8 = vadd.f32 %v1583_v31, %v4622_v21 }
 0x884   : > { %v5148_v26 = vadd.f32 %v1612_v41, %v1605_v8 }
 0x886   : > { %v1624_v32 = vsel %vm418_vm1, %v5148_v26, 0.0 }
 0x887   : > { %1625 = vadd.xlane.f32.xlu1 %v1624_v32 }
 0x8a1   : > { %v1586_v28 = vpop.f32.mrf.mxu3 }
 0x8a2   : > { %v1606_v39 = vadd.f32 %v1586_v28, %v4570_v51  ;;  %v642_v28 = vld [vmem:[%s6245_s5 + $0x10] sm:$0xff] }
 0x8a3   : > { %1853 = vmatpush.msrb.mxu2 %v642_v28 }
 0x8a4   : > { %v5153_v40 = vadd.f32 %v1612_v41, %v1606_v39  ;;  %v641_v39 = vld [vmem:[%s6245_s5 + $0x8] sm:$0xff] }
 0x8a5   : > { %1854 = vmatpush.msrb.mxu2 %v641_v39 }
 0x8a6   : > { %v1627_v20 = vsel %vm418_vm1, %v5153_v40, 0.0 }
 0x8a7   : > { %1628 = vadd.xlane.f32.xlu0 %v1627_v20  ;;  %v640_v20 = vld [vmem:[%s6245_s5] sm:$0xff] }
 0x8a8   : > { %1855 = vmatpush.msrb.mxu2 %v640_v20 }
 0x8a9   : > { %v1589_v60 = vpop.f32.mrf.mxu3 }
 0x8aa   : > { %v1607_v34 = vadd.f32 %v1589_v60, %v4578_v61 }
 0x8ac   : > { %v5158_v35 = vadd.f32 %v1612_v41, %v1607_v34 }
 0x8ae   : > { %v1630_v21 = vsel %vm418_vm1, %v5158_v35, 0.0 }
 0x8af   : > { %1631 = vadd.xlane.f32.xlu2 %v1630_v21 }
 0x8c6   : > { %v1592_v36 = vpop.f32.mrf.mxu3 }
 0x8c7   : > { %v1608_v24 = vadd.f32 %v1592_v36, %v4608_v9 }
 0x8c9   : > { %v5163_v29 = vadd.f32 %v1612_v41, %v1608_v24 }
 0x8cb   : > { %v1633_v51 = vsel %vm418_vm1, %v5163_v29, 0.0 }
 0x8cc   : > { %1634 = vadd.xlane.f32.xlu1 %v1633_v51 }
 0x8ce   : > { %v1595_v43 = vpop.f32.mrf.mxu3 }
 0x8cf   : > { %v1609_v44 = vadd.f32 %v1595_v43, %v4589_v30 }
 0x8d1   : > { %v5168_v10 = vadd.f32 %v1612_v41, %v1609_v44 }
 0x8d3   : > { %v1636_v61 = vsel %vm418_vm1, %v5168_v10, 0.0 }
 0x8d4   : > { %1637 = vadd.xlane.f32.xlu0 %v1636_v61 }
 0x8d6   : > { %v1598_v12 = vpop.f32.mrf.mxu3 }
 0x8d7   : > { %v1610_v23 = vadd.f32 %v1598_v12, %v4596_v16 }
 0x8d9   : > { %v5173_v37 = vadd.f32 %v1612_v41, %v1610_v23 }
 0x8db   : > { %v1639_v9 = vsel %vm418_vm1, %v5173_v37, 0.0 }
 0x8dc   : > { %1640 = vadd.xlane.f32.xlu1 %v1639_v9 }
 0x8e2   : > { %v1601_v45 = vpop.f32.mrf.mxu3 }
 0x8e3   : > { %v1611_v2 = vadd.f32 %v1601_v45, %v4605_v6 }
 0x8e5   : > { %v5185_v57 = vadd.f32 %v1612_v41, %v1611_v2 }
 0x8e7   : > { %v1623_v52 = vpop.xlane.xlu2 %1622  ;;  %v1642_v62 = vsel %vm418_vm1, %v5185_v57, 0.0 }
 0x8e8   : > { %v1645_v4 = vmul.f32 %v1623_v52, %v4508_v46 }
 0x8ea   : > { %v5179_v30 = vsub.f32 %v5143_v25, %v1645_v4 }
 0x8ec   : > { %v1661_v27 = vmul.f32 %v5179_v30, %v5179_v30 }
 0x8ee   : > { %v1669_v16 = vsel %vm418_vm1, %v1661_v27, 0.0 }
 0x8ef   : > { %1670 = vadd.xlane.f32.xlu2 %v1669_v16  ;;  %v5253_v16 = vperm.slane %v5139_v56, 2 }
 0x8f7   : > { %1643 = vadd.xlane.f32.xlu2 %v1642_v62 }
 0x8fa   : > { %v1626_v63 = vpop.xlane.xlu1 %1625 }
 0x8fb   : > { %v1646_v0 = vmul.f32 %v1626_v63, %v4508_v46 }
 0x8fd   : > { %v5191_v15 = vsub.f32 %v5148_v26, %v1646_v0  ;;  %v5257_v0 = vperm.slane %v5139_v56, 3 }
 0x8ff   : > { %v1662_v1 = vmul.f32 %v5191_v15, %v5191_v15 }
 0x901   : > { %v1672_v6 = vsel %vm418_vm1, %v1662_v1, 0.0 }
 0x902   : > { %1673 = vadd.xlane.f32.xlu0 %v1672_v6 }
 0x91a   : > { %v1629_v14 = vpop.xlane.xlu0 %1628 }
 0x91b   : > { %v1647_v58 = vmul.f32 %v1629_v14, %v4508_v46 }
 0x91d   : > { %v5198_v3 = vsub.f32 %v5153_v40, %v1647_v58 }
 0x91f   : > { %v1663_v54 = vmul.f32 %v5198_v3, %v5198_v3 }
 0x921   : > { %v1675_v5 = vsel %vm418_vm1, %v1663_v54, 0.0 }
 0x922   : > { %v1632_v7 = vpop.xlane.xlu2 %1631  ;;  %1676 = vadd.xlane.f32.xlu1 %v1675_v5 }
 0x923   : > { %v1648_v48 = vmul.f32 %v1632_v7, %v4508_v46 }
 0x925   : > { %v5205_v53 = vsub.f32 %v5158_v35, %v1648_v48 }
 0x927   : > { %v1664_v47 = vmul.f32 %v5205_v53, %v5205_v53 }
 0x929   : > { %v1678_v11 = vsel %vm418_vm1, %v1664_v47, 0.0 }
 0x92a   : > { %1679 = vadd.xlane.f32.xlu0 %v1678_v11 }
 0x93f   : > { %v1635_v18 = vpop.xlane.xlu1 %1634 }
 0x940   : > { %v1649_v22 = vmul.f32 %v1635_v18, %v4508_v46 }
 0x942   : > { %v5215_v49 = vsub.f32 %v5163_v29, %v1649_v22 }
 0x944   : > { %v1665_v13 = vmul.f32 %v5215_v49, %v5215_v49 }
 0x946   : > { %v1681_v55 = vsel %vm418_vm1, %v1665_v13, 0.0 }
 0x947   : > { %1682 = vadd.xlane.f32.xlu2 %v1681_v55  ;;  %v1638_v59 = vpop.xlane.xlu0 %1637 }
 0x948   : > { %v1650_v33 = vmul.f32 %v1638_v59, %v4508_v46 }
 0x94a   : > { %v5222_v19 = vsub.f32 %v5168_v10, %v1650_v33 }
 0x94c   : > { %v1666_v41 = vmul.f32 %v5222_v19, %v5222_v19 }
 0x94e   : > { %v1684_v38 = vsel %vm418_vm1, %v1666_v41, 0.0 }
 0x94f   : > { %v1641_v42 = vpop.xlane.xlu1 %1640  ;;  %1685 = vadd.xlane.f32.xlu1 %v1684_v38 }
 0x950   : > { %v1651_v17 = vmul.f32 %v1641_v42, %v4508_v46 }
 0x952   : > { %v5229_v31 = vsub.f32 %v5173_v37, %v1651_v17 }
 0x954   : > { %v1667_v8 = vmul.f32 %v5229_v31, %v5229_v31 }
 0x956   : > { %v1687_v32 = vsel %vm418_vm1, %v1667_v8, 0.0 }
 0x957   : > { %1688 = vadd.xlane.f32.xlu0 %v1687_v32 }
 0x962   : > { %v1671_v60 = vpop.xlane.xlu2 %1670 }
 0x963   : > { %v1693_v34 = vmul.f32 %v1671_v60, %v4508_v46 }
 0x965   : > { %v1701_v21 = vadd.f32 1e-05, %v1693_v34 }
 0x967   : > { %4239 = vrsqrt.f32 %v1701_v21  ;;  %vm1715_vm9 = vweird.f32 %v1701_v21 }
 0x96a   : > { %v1644_v36 = vpop.xlane.xlu2 %1643 }
 0x96b   : > { %v1652_v24 = vmul.f32 %v1644_v36, %v4508_v46 }
 0x96d   : > { %v4240_v51 = vpop.eup %4239  ;;  %v5246_v43 = vsub.f32 %v5185_v57, %v1652_v24 }
 0x96e   : > { %v1710_v44 = vmul.f32 %v4240_v51, %v1701_v21  ;;  %vm1716_vm8 = vweird.f32 %v4240_v51 }
 0x96f   : > { %v1668_v61 = vmul.f32 %v5246_v43, %v5246_v43  ;;  %vm1717_vm10 = vmor %vm1715_vm9, %vm1716_vm8 }
 0x970   : > { %v1711_v12 = vmul.f32 %v4240_v51, %v1710_v44 }
 0x971   : > { %v1690_v23 = vsel %vm418_vm1, %v1668_v61, 0.0 }
 0x972   : > { %v1712_v9 = vmul.f32 0.5, %v1711_v12  ;;  %1691 = vadd.xlane.f32.xlu2 %v1690_v23 }
 0x974   : > { %v1713_v52 = vsub.f32 1.5, %v1712_v9 }
 0x975   : > { %v1674_v4 = vpop.xlane.xlu0 %1673 }
 0x976   : > { %v1694_v45 = vmul.f32 %v1674_v4, %v4508_v46  ;;  %v1714_v27 = vmul.f32 %v4240_v51, %v1713_v52 }
 0x978   : > { %v1702_v2 = vadd.f32 1e-05, %v1694_v45  ;;  %v1718_v62 = vsel %vm1717_vm10, %v4240_v51, %v1714_v27 }
 0x979   : > { %v1789_v63 = vmul.f32 %v1718_v62, %v5179_v30 }
 0x97a   : > { %4241 = vrsqrt.f32 %v1702_v2  ;;  %vm1725_vm12 = vweird.f32 %v1702_v2 }
 0x97b   : > { %v1798_v1 = vmul.f32 %v5253_v16, %v1789_v63 }
 0x97d   : > { %v1807_v6 = vadd.f32 %v5257_v0, %v1798_v1 }
 0x97f   : > { %3887 = vmatmul.msk.f32.vlgmr.msrb.gmra.mxu2 %vm418_vm1, %v1807_v6 }
 0x980   : > { %v4242_v14 = vpop.eup %4241 }
 0x981   : > { %v1720_v58 = vmul.f32 %v4242_v14, %v1702_v2  ;;  %vm1726_vm11 = vweird.f32 %v4242_v14 }
 0x982   : > { %vm1727_vm13 = vmor %vm1725_vm12, %vm1726_vm11 }
 0x983   : > { %v1721_v54 = vmul.f32 %v4242_v14, %v1720_v58 }
 0x985   : > { %v1722_v5 = vmul.f32 0.5, %v1721_v54 }
 0x987   : > { %v1723_v7 = vsub.f32 1.5, %v1722_v5 }
 0x989   : > { %v1724_v48 = vmul.f32 %v4242_v14, %v1723_v7 }
 0x98b   : > { %v1728_v30 = vsel %vm1727_vm13, %v4242_v14, %v1724_v48 }
 0x98c   : > { %v1790_v47 = vmul.f32 %v1728_v30, %v5191_v15 }
 0x98e   : > { %v1799_v11 = vmul.f32 %v5253_v16, %v1790_v47 }
 0x990   : > { %v1808_v50 = vadd.f32 %v5257_v0, %v1799_v11 }
 0x992   : > { %3888 = vmatmul.msk.f32.gmra.mxu2 %vm418_vm1, %v1808_v50 }
 0x995   : > { %v1677_v18 = vpop.xlane.xlu1 %1676 }
 0x996   : > { %v1695_v22 = vmul.f32 %v1677_v18, %v4508_v46 }
 0x998   : > { %v1703_v13 = vadd.f32 1e-05, %v1695_v22 }
 0x99a   : > { %4243 = vrsqrt.f32 %v1703_v13  ;;  %vm1735_vm15 = vweird.f32 %v1703_v13 }
 0x99d   : > { %v1680_v55 = vpop.xlane.xlu0 %1679 }
 0x99e   : > { %v1696_v59 = vmul.f32 %v1680_v55, %v4508_v46 }
 0x9a0   : > { %v4244_v33 = vpop.eup %4243  ;;  %v1704_v41 = vadd.f32 1e-05, %v1696_v59 }
 0x9a1   : > { %v1730_v38 = vmul.f32 %v4244_v33, %v1703_v13  ;;  %vm1736_vm14 = vweird.f32 %v4244_v33 }
 0x9a2   : > { %4245 = vrsqrt.f32 %v1704_v41  ;;  %vm1737_vm0 = vmor %vm1735_vm15, %vm1736_vm14  ;;  %vm1745_vm3 = vweird.f32 %v1704_v41 }
 0x9a3   : > { %v1731_v42 = vmul.f32 %v4244_v33, %v1730_v38 }
 0x9a5   : > { %v1732_v15 = vmul.f32 0.5, %v1731_v42 }
 0x9a7   : > { %v1733_v17 = vsub.f32 1.5, %v1732_v15 }
 0x9a8   : > { %v4246_v8 = vpop.eup %4245 }
 0x9a9   : > { %v1734_v32 = vmul.f32 %v4244_v33, %v1733_v17  ;;  %v1740_v28 = vmul.f32 %v4246_v8, %v1704_v41  ;;  %vm1746_vm2 = vweird.f32 %v4246_v8 }
 0x9aa   : > { %vm1747_vm4 = vmor %vm1745_vm3, %vm1746_vm2 }
 0x9ab   : > { %v1738_v39 = vsel %vm1737_vm0, %v4244_v33, %v1734_v32  ;;  %v1741_v20 = vmul.f32 %v4246_v8, %v1740_v28 }
 0x9ac   : > { %v1791_v60 = vmul.f32 %v1738_v39, %v5198_v3 }
 0x9ad   : > { %v1742_v34 = vmul.f32 0.5, %v1741_v20 }
 0x9ae   : > { %v1800_v21 = vmul.f32 %v5253_v16, %v1791_v60 }
 0x9af   : > { %v1743_v36 = vsub.f32 1.5, %v1742_v34 }
 0x9b0   : > { %v1809_v24 = vadd.f32 %v5257_v0, %v1800_v21  ;;  %v663_v21 = vld [vmem:[%s6247_s7 + $0x78] sm:$0xff] }
 0x9b1   : > { %v1744_v51 = vmul.f32 %v4246_v8, %v1743_v36  ;;  %2121 = vmatpush.msra.mxu1 %v663_v21  ;;  %v661_v36 = vld [vmem:[%s6247_s7 + $0x68] sm:$0xff] }
 0x9b2   : > { %3889 = vmatmul.msk.f32.gmra.mxu2 %vm418_vm1, %v1809_v24 }
 0x9b3   : > { %v1748_v44 = vsel %vm1747_vm4, %v4246_v8, %v1744_v51 }
 0x9b4   : > { %v1792_v61 = vmul.f32 %v1748_v44, %v5205_v53  ;;  %v660_v44 = vld [vmem:[%s6247_s7 + $0x60] sm:$0xff] }
 0x9b6   : > { %v1801_v12 = vmul.f32 %v5253_v16, %v1792_v61 }
 0x9b8   : > { %v1810_v23 = vadd.f32 %v5257_v0, %v1801_v12  ;;  %v659_v12 = vld [vmem:[%s6247_s7 + $0x58] sm:$0xff] }
 0x9ba   : > { %v1683_v3 = vpop.xlane.xlu2 %1682  ;;  %3890 = vmatmul.msk.f32.gmra.mxu2 %vm418_vm1, %v1810_v23 }
 0x9bb   : > { %v1697_v9 = vmul.f32 %v1683_v3, %v4508_v46  ;;  %v658_v3 = vld [vmem:[%s6247_s7 + $0x50] sm:$0xff] }
 0x9bd   : > { %v1705_v52 = vadd.f32 1e-05, %v1697_v9 }
 0x9bf   : > { %4247 = vrsqrt.f32 %v1705_v52  ;;  %vm1755_vm8 = vweird.f32 %v1705_v52 }
 0x9c2   : > { %v1686_v4 = vpop.xlane.xlu1 %1685 }
 0x9c3   : > { %v1698_v45 = vmul.f32 %v1686_v4, %v4508_v46 }
 0x9c5   : > { %v4248_v27 = vpop.eup %4247  ;;  %v1706_v2 = vadd.f32 1e-05, %v1698_v45  ;;  %v656_v45 = vld [vmem:[%s6247_s7 + $0x40] sm:$0xff] }
 0x9c6   : > { %v1750_v62 = vmul.f32 %v4248_v27, %v1705_v52  ;;  %vm1756_vm5 = vweird.f32 %v4248_v27  ;;  %v657_v52 = vld [vmem:[%s6247_s7 + $0x48] sm:$0xff] }
 0x9c7   : > { %4249 = vrsqrt.f32 %v1706_v2  ;;  %vm1757_vm9 = vmor %vm1755_vm8, %vm1756_vm5  ;;  %vm1765_vm11 = vweird.f32 %v1706_v2 }
 0x9c8   : > { %v1751_v63 = vmul.f32 %v4248_v27, %v1750_v62 }
 0x9ca   : > { %v1752_v53 = vmul.f32 0.5, %v1751_v63  ;;  %v1689_v1 = vpop.xlane.xlu0 %1688  ;;  %v654_v63 = vld [vmem:[%s6247_s7 + $0x30] sm:$0xff] }
 0x9cb   : > { %v1699_v6 = vmul.f32 %v1689_v1, %v4508_v46  ;;  %v5325_v1 = vperm.slane %v5139_v56, 6  ;;  %v651_v56 = vld [vmem:[%s6247_s7 + $0x18] sm:$0xff] }
 0x9cc   : > { %v1753_v14 = vsub.f32 1.5, %v1752_v53 }
 0x9cd   : > { %v4250_v58 = vpop.eup %4249  ;;  %v1707_v54 = vadd.f32 1e-05, %v1699_v6  ;;  %v653_v6 = vld [vmem:[%s6247_s7 + $0x28] sm:$0xff] }
 0x9ce   : > { %v1754_v5 = vmul.f32 %v4248_v27, %v1753_v14  ;;  %v1760_v7 = vmul.f32 %v4250_v58, %v1706_v2  ;;  %vm1766_vm10 = vweird.f32 %v4250_v58  ;;  %v655_v2 = vld [vmem:[%s6247_s7 + $0x38] sm:$0xff] }
 0x9cf   : > { %4251 = vrsqrt.f32 %v1707_v54  ;;  %vm1767_vm12 = vmor %vm1765_vm11, %vm1766_vm10  ;;  %vm1775_vm14 = vweird.f32 %v1707_v54 }
 0x9d0   : > { %v1758_v48 = vsel %vm1757_vm9, %v4248_v27, %v1754_v5  ;;  %v1761_v30 = vmul.f32 %v4250_v58, %v1760_v7  ;;  %v649_v7 = vld [vmem:[%s6247_s7 + $0x8] sm:$0xff] }
 0x9d1   : > { %v1793_v47 = vmul.f32 %v1758_v48, %v5215_v49 }
 0x9d2   : > { %v1762_v11 = vmul.f32 0.5, %v1761_v30  ;;  %v648_v30 = vld [vmem:[%s6247_s7] sm:$0xff] }
 0x9d3   : > { %v1802_v50 = vmul.f32 %v5253_v16, %v1793_v47 }
 0x9d4   : > { %v1763_v18 = vsub.f32 1.5, %v1762_v11 }
 0x9d5   : > { %v4252_v22 = vpop.eup %4251  ;;  %v1811_v13 = vadd.f32 %v5257_v0, %v1802_v50 }
 0x9d6   : > { %v1764_v55 = vmul.f32 %v4250_v58, %v1763_v18  ;;  %v1770_v59 = vmul.f32 %v4252_v22, %v1707_v54  ;;  %vm1776_vm13 = vweird.f32 %v4252_v22 }
 0x9d7   : > { %3891 = vmatmul.msk.f32.gmra.mxu2 %vm418_vm1, %v1811_v13  ;;  %vm1777_vm15 = vmor %vm1775_vm14, %vm1776_vm13 }
 0x9d8   : > { %v1768_v33 = vsel %vm1767_vm12, %v4250_v58, %v1764_v55  ;;  %v1771_v41 = vmul.f32 %v4252_v22, %v1770_v59 }
 0x9d9   : > { %v1794_v38 = vmul.f32 %v1768_v33, %v5222_v19 }
 0x9da   : > { %v1772_v42 = vmul.f32 0.5, %v1771_v41 }
 0x9db   : > { %v1803_v49 = vmul.f32 %v5253_v16, %v1794_v38 }
 0x9dc   : > { %v1773_v15 = vsub.f32 1.5, %v1772_v42 }
 0x9dd   : > { %v1812_v17 = vadd.f32 %v5257_v0, %v1803_v49 }
 0x9de   : > { %v1774_v8 = vmul.f32 %v4252_v22, %v1773_v15 }
 0x9df   : > { %3892 = vmatmul.msk.f32.gmra.mxu2 %vm418_vm1, %v1812_v17 }
 0x9e0   : > { %v1778_v32 = vsel %vm1777_vm15, %v4252_v22, %v1774_v8 }
 0x9e1   : > { %v1795_v28 = vmul.f32 %v1778_v32, %v5229_v31  ;;  %v662_v31 = vld [vmem:[%s6247_s7 + $0x70] sm:$0xff] }
 0x9e2   : > { %2122 = vmatpush.msra.mxu1 %v662_v31 }
 0x9e3   : > { %v1804_v39 = vmul.f32 %v5253_v16, %v1795_v28 }
 0x9e4   : > { %2123 = vmatpush.msra.mxu1 %v661_v36 }
 0x9e5   : > { %v1813_v20 = vadd.f32 %v5257_v0, %v1804_v39  ;;  %v1692_v19 = vpop.xlane.xlu2 %1691 }
 0x9e6   : > { %v1700_v60 = vmul.f32 %v1692_v19, %v4508_v46  ;;  %2124 = vmatpush.msra.mxu1 %v660_v44 }
 0x9e7   : > { %3893 = vmatmul.msk.f32.gmra.mxu2 %vm418_vm1, %v1813_v20 }
 0x9e8   : > { %v1708_v34 = vadd.f32 1e-05, %v1700_v60  ;;  %2125 = vmatpush.msra.mxu1 %v659_v12 }
 0x9ea   : > { %4253 = vrsqrt.f32 %v1708_v34  ;;  %2126 = vmatpush.msra.mxu1 %v658_v3  ;;  %vm1785_vm2 = vweird.f32 %v1708_v34 }
 0x9ec   : > { %2127 = vmatpush.msra.mxu1 %v657_v52 }
 0x9ee   : > { %2128 = vmatpush.msra.mxu1 %v656_v45 }
 0x9f0   : > { %v4254_v24 = vpop.eup %4253  ;;  %2129 = vmatpush.msra.mxu1 %v655_v2 }
 0x9f1   : > { %v1780_v51 = vmul.f32 %v4254_v24, %v1708_v34  ;;  %vm1786_vm0 = vweird.f32 %v4254_v24 }
 0x9f2   : > { %vm1787_vm3 = vmor %vm1785_vm2, %vm1786_vm0  ;;  %2130 = vmatpush.msra.mxu1 %v654_v63 }
 0x9f3   : > { %v1781_v61 = vmul.f32 %v4254_v24, %v1780_v51 }
 0x9f4   : > { %2131 = vmatpush.msra.mxu1 %v653_v6 }
 0x9f5   : > { %v1782_v23 = vmul.f32 0.5, %v1781_v61 }
 0x9f7   : > { %v1783_v9 = vsub.f32 1.5, %v1782_v23 }
 0x9f9   : > { %v1784_v4 = vmul.f32 %v4254_v24, %v1783_v9 }
 0x9fb   : > { %v1788_v27 = vsel %vm1787_vm3, %v4254_v24, %v1784_v4 }
 0x9fc   : > { %v1796_v62 = vmul.f32 %v1788_v27, %v5246_v43  ;;  %v652_v43 = vld [vmem:[%s6247_s7 + $0x20] sm:$0xff] }
 0x9fd   : > { %2132 = vmatpush.msra.mxu1 %v652_v43 }
 0x9fe   : > { %v1805_v53 = vmul.f32 %v5253_v16, %v1796_v62 }
 0x9ff   : > { %2133 = vmatpush.msra.mxu1 %v651_v56 }
 0xa00   : > { %v1814_v14 = vadd.f32 %v5257_v0, %v1805_v53  ;;  %v650_v0 = vld [vmem:[%s6247_s7 + $0x10] sm:$0xff] }
 0xa01   : > { %2134 = vmatpush.msra.mxu1 %v650_v0 }
 0xa02   : > { %v1857_v58 = vpop.f32.mrf.mxu2  ;;  %3894 = vmatmul.msk.f32.gmra.mxu2 %vm418_vm1, %v1814_v14 }
 0xa03   : > { %v1858_v16 = vadd.f32 %v1857_v58, %v5325_v1  ;;  %2135 = vmatpush.msra.mxu1 %v649_v7 }
 0xa05   : > { %v1889_v54 = vmul.f32 0.70710677, %v1858_v16  ;;  %2136 = vmatpush.msra.mxu1 %v648_v30  ;;  %v1881_v2 = vmul.f32 0.5, %v1858_v16 }
 0xa07   : > { %v3895_v5 = vclamps-f32 %v1889_v54, 4.0 }
 0xa09   : > { %v1913_v48 = vmul.f32 %v3895_v5, %v3895_v5 }
 0xa0b   : > { %v1921_v47 = vmul.f32 -2.7261424e-10, %v1913_v48  ;;  %v2017_v11 = vmul.f32 -1.45660715e-05, %v1913_v48 }
 0xa0d   : > { %v1929_v50 = vadd.f32 2.7706815e-08, %v1921_v47  ;;  %v2025_v18 = vadd.f32 -0.00021337405, %v2017_v11 }
 0xa0f   : > { %v1937_v22 = vmul.f32 %v1929_v50, %v1913_v48  ;;  %v2033_v13 = vmul.f32 %v2025_v18, %v1913_v48 }
 0xa11   : > { %v1945_v55 = vadd.f32 -2.101024e-06, %v1937_v22  ;;  %v2041_v59 = vadd.f32 -0.001682827, %v2033_v13 }
 0xa13   : > { %v1953_v33 = vmul.f32 %v1945_v55, %v1913_v48  ;;  %v2049_v41 = vmul.f32 %v2041_v59, %v1913_v48 }
 0xa15   : > { %v1860_v38 = vpop.f32.mrf.mxu2  ;;  %v1961_v42 = vadd.f32 -5.6925062e-05, %v1953_v33  ;;  %v2057_v49 = vadd.f32 -0.0073733293, %v2049_v41 }
 0xa16   : > { %v1861_v15 = vadd.f32 %v1860_v38, %v5325_v1 }
 0xa17   : > { %v1969_v17 = vmul.f32 %v1961_v42, %v1913_v48  ;;  %v2065_v8 = vmul.f32 %v2057_v49, %v1913_v48 }
 0xa18   : > { %v1890_v32 = vmul.f32 0.70710677, %v1861_v15  ;;  %v1882_v18 = vmul.f32 0.5, %v1861_v15 }
 0xa19   : > { %v1977_v28 = vadd.f32 -0.00073499064, %v1969_v17  ;;  %v2073_v20 = vadd.f32 -0.014264739, %v2065_v8 }
 0xa1a   : > { %v3896_v39 = vclamps-f32 %v1890_v32, 4.0 }
 0xa1b   : > { %v1985_v19 = vmul.f32 %v1977_v28, %v1913_v48  ;;  %4255 = vrcp.f32 %v2073_v20 }
 0xa1c   : > { %v1914_v60 = vmul.f32 %v3896_v39, %v3896_v39 }
 0xa1d   : > { %v1993_v34 = vadd.f32 -0.0029546, %v1985_v19 }
 0xa1e   : > { %v1922_v21 = vmul.f32 -2.7261424e-10, %v1914_v60  ;;  %v2018_v31 = vmul.f32 -1.45660715e-05, %v1914_v60 }
 0xa1f   : > { %v2001_v36 = vmul.f32 %v1993_v34, %v1913_v48 }
 0xa20   : > { %v1930_v24 = vadd.f32 2.7706815e-08, %v1922_v21  ;;  %v2026_v51 = vadd.f32 -0.00021337405, %v2018_v31 }
 0xa21   : > { %v2009_v44 = vadd.f32 -0.016096033, %v2001_v36  ;;  %v4256_v52 = vpop.eup %4255 }
 0xa22   : > { %v1938_v61 = vmul.f32 %v1930_v24, %v1914_v60  ;;  %v2034_v12 = vmul.f32 %v2026_v51, %v1914_v60 }
 0xa23   : > { %v2081_v23 = vmul.f32 %v3895_v5, %v2009_v44 }
 0xa24   : > { %v1946_v3 = vadd.f32 -2.101024e-06, %v1938_v61  ;;  %v2042_v9 = vadd.f32 -0.001682827, %v2034_v12 }
 0xa25   : > { %v2097_v4 = vmul.f32 %v4256_v52, %v2081_v23 }
 0xa26   : > { %v1954_v45 = vmul.f32 %v1946_v3, %v1914_v60  ;;  %v2050_v27 = vmul.f32 %v2042_v9, %v1914_v60 }
 0xa27   : > { %v2105_v62 = vadd.f32 1.0, %v2097_v4 }
 0xa28   : > { %v1962_v63 = vadd.f32 -5.6925062e-05, %v1954_v45  ;;  %v2058_v53 = vadd.f32 -0.0073733293, %v2050_v27 }
 0xa29   : > { %v2113_v6 = vmul.f32 %v2105_v62, %v1881_v2 }
 0xa2a   : > { %v1970_v14 = vmul.f32 %v1962_v63, %v1914_v60  ;;  %v2066_v43 = vmul.f32 %v2058_v53, %v1914_v60 }
 0xa2b   : > { %2137 = vmatmul.f32.vlgmr.msra.gmra.mxu1 %v2113_v6 }
 0xa2c   : > { %v1978_v58 = vadd.f32 -0.00073499064, %v1970_v14  ;;  %v2074_v56 = vadd.f32 -0.014264739, %v2066_v43 }
 0xa2e   : > { %v1986_v54 = vmul.f32 %v1978_v58, %v1914_v60  ;;  %4257 = vrcp.f32 %v2074_v56 }
 0xa30   : > { %v1994_v0 = vadd.f32 -0.0029546, %v1986_v54 }
 0xa32   : > { %v2002_v5 = vmul.f32 %v1994_v0, %v1914_v60 }
 0xa34   : > { %v2010_v7 = vadd.f32 -0.016096033, %v2002_v5  ;;  %v4258_v11 = vpop.eup %4257 }
 0xa35   : > { %v1863_v48 = vpop.f32.mrf.mxu2 }
 0xa36   : > { %v2082_v30 = vmul.f32 %v3896_v39, %v2010_v7  ;;  %v1864_v47 = vadd.f32 %v1863_v48, %v5325_v1 }
 0xa38   : > { %v1891_v16 = vmul.f32 0.70710677, %v1864_v47  ;;  %v2098_v50 = vmul.f32 %v4258_v11, %v2082_v30 }
 0xa3a   : > { %v3897_v22 = vclamps-f32 %v1891_v16, 4.0  ;;  %v2106_v13 = vadd.f32 1.0, %v2098_v50  ;;  %v1883_v16 = vmul.f32 0.5, %v1864_v47 }
 0xa3c   : > { %v1915_v55 = vmul.f32 %v3897_v22, %v3897_v22  ;;  %v2114_v59 = vmul.f32 %v2106_v13, %v1882_v18 }
 0xa3d   : > { %v1866_v33 = vpop.f32.mrf.mxu2 }
 0xa3e   : > { %v1923_v41 = vmul.f32 -2.7261424e-10, %v1915_v55  ;;  %v1867_v38 = vadd.f32 %v1866_v33, %v5325_v1  ;;  %2140 = vmatmul.f32.gmra.mxu1 %v2114_v59  ;;  %v2019_v42 = vmul.f32 -1.45660715e-05, %v1915_v55 }
 0xa40   : > { %v1931_v49 = vadd.f32 2.7706815e-08, %v1923_v41  ;;  %v1892_v17 = vmul.f32 0.70710677, %v1867_v38  ;;  %v2027_v8 = vadd.f32 -0.00021337405, %v2019_v42 }
 0xa42   : > { %v1939_v32 = vmul.f32 %v1931_v49, %v1915_v55  ;;  %v3898_v28 = vclamps-f32 %v1892_v17, 4.0  ;;  %v2035_v39 = vmul.f32 %v2027_v8, %v1915_v55 }
 0xa44   : > { %v1947_v20 = vadd.f32 -2.101024e-06, %v1939_v32  ;;  %v1916_v19 = vmul.f32 %v3898_v28, %v3898_v28  ;;  %v2043_v60 = vadd.f32 -0.001682827, %v2035_v39  ;;  %v1884_v32 = vmul.f32 0.5, %v1867_v38 }
 0xa46   : > { %v1955_v15 = vmul.f32 %v1947_v20, %v1915_v55  ;;  %v1924_v34 = vmul.f32 -2.7261424e-10, %v1916_v19  ;;  %v2020_v21 = vmul.f32 -1.45660715e-05, %v1916_v19  ;;  %v2051_v31 = vmul.f32 %v2043_v60, %v1915_v55 }
 0xa48   : > { %v1963_v36 = vadd.f32 -5.6925062e-05, %v1955_v15  ;;  %v1932_v24 = vadd.f32 2.7706815e-08, %v1924_v34  ;;  %v2028_v51 = vadd.f32 -0.00021337405, %v2020_v21 }
 0xa49   : > { %v2059_v44 = vadd.f32 -0.0073733293, %v2051_v31 }
 0xa4a   : > { %v1971_v61 = vmul.f32 %v1963_v36, %v1915_v55  ;;  %v1940_v12 = vmul.f32 %v1932_v24, %v1916_v19  ;;  %v2036_v23 = vmul.f32 %v2028_v51, %v1916_v19 }
 0xa4b   : > { %v2067_v3 = vmul.f32 %v2059_v44, %v1915_v55 }
 0xa4c   : > { %v1979_v9 = vadd.f32 -0.00073499064, %v1971_v61  ;;  %v1948_v52 = vadd.f32 -2.101024e-06, %v1940_v12  ;;  %v2044_v4 = vadd.f32 -0.001682827, %v2036_v23 }
 0xa4d   : > { %v2075_v45 = vadd.f32 -0.014264739, %v2067_v3 }
 0xa4e   : > { %v1987_v27 = vmul.f32 %v1979_v9, %v1915_v55  ;;  %v1956_v2 = vmul.f32 %v1948_v52, %v1916_v19  ;;  %v2052_v62 = vmul.f32 %v2044_v4, %v1916_v19 }
 0xa4f   : > { %4259 = vrcp.f32 %v2075_v45 }
 0xa50   : > { %v1995_v63 = vadd.f32 -0.0029546, %v1987_v27  ;;  %v1964_v53 = vadd.f32 -5.6925062e-05, %v1956_v2  ;;  %v2060_v6 = vadd.f32 -0.0073733293, %v2052_v62 }
 0xa52   : > { %v2003_v14 = vmul.f32 %v1995_v63, %v1915_v55  ;;  %v1972_v43 = vmul.f32 %v1964_v53, %v1916_v19  ;;  %v2068_v58 = vmul.f32 %v2060_v6, %v1916_v19 }
 0xa54   : > { %v2011_v56 = vadd.f32 -0.016096033, %v2003_v14  ;;  %v1980_v54 = vadd.f32 -0.00073499064, %v1972_v43  ;;  %v2076_v0 = vadd.f32 -0.014264739, %v2068_v58 }
 0xa55   : > { %v4260_v48 = vpop.eup %4259 }
 0xa56   : > { %v2083_v5 = vmul.f32 %v3897_v22, %v2011_v56  ;;  %v1988_v7 = vmul.f32 %v1980_v54, %v1916_v19  ;;  %4261 = vrcp.f32 %v2076_v0 }
 0xa58   : > { %v1996_v30 = vadd.f32 -0.0029546, %v1988_v7  ;;  %v2099_v11 = vmul.f32 %v4260_v48, %v2083_v5 }
 0xa5a   : > { %v2004_v50 = vmul.f32 %v1996_v30, %v1916_v19  ;;  %v1869_v18 = vpop.f32.mrf.mxu2  ;;  %v2107_v13 = vadd.f32 1.0, %v2099_v11 }
 0xa5b   : > { %v5352_v59 = vadd.f32 %v1869_v18, %v5325_v1 }
 0xa5c   : > { %v2012_v33 = vadd.f32 -0.016096033, %v2004_v50  ;;  %v2115_v55 = vmul.f32 %v2107_v13, %v1883_v16  ;;  %v4262_v49 = vpop.eup %4261 }
 0xa5d   : > { %v1893_v41 = vmul.f32 0.70710677, %v5352_v59 }
 0xa5e   : > { %v2084_v42 = vmul.f32 %v3898_v28, %v2012_v33  ;;  %2143 = vmatmul.f32.gmra.mxu1 %v2115_v55 }
 0xa5f   : > { %v3899_v22 = vclamps-f32 %v1893_v41, 4.0 }
 0xa60   : > { %v2100_v17 = vmul.f32 %v4262_v49, %v2084_v42 }
 0xa61   : > { %v1917_v8 = vmul.f32 %v3899_v22, %v3899_v22 }
 0xa62   : > { %v1872_v39 = vpop.f32.mrf.mxu2  ;;  %v2108_v20 = vadd.f32 1.0, %v2100_v17 }
 0xa63   : > { %v1925_v47 = vmul.f32 -2.7261424e-10, %v1917_v8  ;;  %v5356_v19 = vadd.f32 %v1872_v39, %v5325_v1  ;;  %v2021_v60 = vmul.f32 -1.45660715e-05, %v1917_v8 }
 0xa64   : > { %v2116_v15 = vmul.f32 %v2108_v20, %v1884_v32 }
 0xa65   : > { %v1933_v34 = vadd.f32 2.7706815e-08, %v1925_v47  ;;  %v1894_v21 = vmul.f32 0.70710677, %v5356_v19  ;;  %v2029_v31 = vadd.f32 -0.00021337405, %v2021_v60 }
 0xa66   : > { %2146 = vmatmul.f32.gmra.mxu1 %v2116_v15 }
 0xa67   : > { %v1941_v28 = vmul.f32 %v1933_v34, %v1917_v8  ;;  %v5359_v36 = vclamps-f32 %v1894_v21, 4.0  ;;  %v2037_v24 = vmul.f32 %v2029_v31, %v1917_v8 }
 0xa69   : > { %v1949_v51 = vadd.f32 -2.101024e-06, %v1941_v28  ;;  %v1918_v38 = vmul.f32 %v5359_v36, %v5359_v36  ;;  %v2045_v61 = vadd.f32 -0.001682827, %v2037_v24 }
 0xa6a   : > { %v1875_v44 = vpop.f32.mrf.mxu2 }
 0xa6b   : > { %v1957_v12 = vmul.f32 %v1949_v51, %v1917_v8  ;;  %v1926_v23 = vmul.f32 -2.7261424e-10, %v1918_v38  ;;  %v5364_v3 = vadd.f32 %v1875_v44, %v5325_v1  ;;  %v2022_v9 = vmul.f32 -1.45660715e-05, %v1918_v38 }
 0xa6c   : > { %v2053_v52 = vmul.f32 %v2045_v61, %v1917_v8 }
 0xa6d   : > { %v1965_v4 = vadd.f32 -5.6925062e-05, %v1957_v12  ;;  %v1934_v45 = vadd.f32 2.7706815e-08, %v1926_v23  ;;  %v1895_v27 = vmul.f32 0.70710677, %v5364_v3 }
 0xa6e   : > { %v2061_v2 = vadd.f32 -0.0073733293, %v2053_v52  ;;  %v2030_v62 = vadd.f32 -0.00021337405, %v2022_v9 }
 0xa6f   : > { %v1973_v63 = vmul.f32 %v1965_v4, %v1917_v8  ;;  %v1942_v53 = vmul.f32 %v1934_v45, %v1918_v38  ;;  %v5367_v6 = vclamps-f32 %v1895_v27, 4.0 }
 0xa70   : > { %v2069_v14 = vmul.f32 %v2061_v2, %v1917_v8  ;;  %v2038_v43 = vmul.f32 %v2030_v62, %v1918_v38 }
 0xa71   : > { %v1981_v58 = vadd.f32 -0.00073499064, %v1973_v63  ;;  %v1950_v56 = vadd.f32 -2.101024e-06, %v1942_v53  ;;  %v1919_v54 = vmul.f32 %v5367_v6, %v5367_v6 }
 0xa72   : > { %v2077_v0 = vadd.f32 -0.014264739, %v2069_v14  ;;  %v2046_v5 = vadd.f32 -0.001682827, %v2038_v43 }
 0xa73   : > { %v1989_v7 = vmul.f32 %v1981_v58, %v1917_v8  ;;  %v1958_v48 = vmul.f32 %v1950_v56, %v1918_v38  ;;  %v1927_v30 = vmul.f32 -2.7261424e-10, %v1919_v54  ;;  %v2023_v16 = vmul.f32 -1.45660715e-05, %v1919_v54 }
 0xa74   : > { %v2054_v11 = vmul.f32 %v2046_v5, %v1918_v38  ;;  %4263 = vrcp.f32 %v2077_v0  ;;  %v1886_v56 = vmul.f32 0.5, %v5356_v19 }
 0xa75   : > { %v1997_v50 = vadd.f32 -0.0029546, %v1989_v7  ;;  %v1966_v18 = vadd.f32 -5.6925062e-05, %v1958_v48  ;;  %v1935_v13 = vadd.f32 2.7706815e-08, %v1927_v30 }
 0xa76   : > { %v2062_v33 = vadd.f32 -0.0073733293, %v2054_v11  ;;  %v2031_v55 = vadd.f32 -0.00021337405, %v2023_v16 }
 0xa77   : > { %v2005_v41 = vmul.f32 %v1997_v50, %v1917_v8  ;;  %v1974_v42 = vmul.f32 %v1966_v18, %v1918_v38  ;;  %v1943_v49 = vmul.f32 %v1935_v13, %v1919_v54  ;;  %v1885_v8 = vmul.f32 0.5, %v5352_v59 }
 0xa78   : > { %v2070_v17 = vmul.f32 %v2062_v33, %v1918_v38  ;;  %v2039_v32 = vmul.f32 %v2031_v55, %v1919_v54  ;;  %v1887_v33 = vmul.f32 0.5, %v5364_v3 }
 0xa79   : > { %v2013_v39 = vadd.f32 -0.016096033, %v2005_v41  ;;  %v1982_v20 = vadd.f32 -0.00073499064, %v1974_v42  ;;  %v1951_v47 = vadd.f32 -2.101024e-06, %v1943_v49 }
 0xa7a   : > { %v2078_v60 = vadd.f32 -0.014264739, %v2070_v17  ;;  %v2047_v15 = vadd.f32 -0.001682827, %v2039_v32  ;;  %v4264_v31 = vpop.eup %4263 }
 0xa7b   : > { %v2085_v34 = vmul.f32 %v3899_v22, %v2013_v39  ;;  %v1990_v21 = vmul.f32 %v1982_v20, %v1918_v38  ;;  %v1959_v28 = vmul.f32 %v1951_v47, %v1919_v54 }
 0xa7c   : > { %v2055_v24 = vmul.f32 %v2047_v15, %v1919_v54  ;;  %4265 = vrcp.f32 %v2078_v60 }
 0xa7d   : > { %v1998_v51 = vadd.f32 -0.0029546, %v1990_v21  ;;  %v2101_v44 = vmul.f32 %v4264_v31, %v2085_v34  ;;  %v1967_v61 = vadd.f32 -5.6925062e-05, %v1959_v28 }
 0xa7e   : > { %v2063_v12 = vadd.f32 -0.0073733293, %v2055_v24 }
 0xa7f   : > { %v2006_v23 = vmul.f32 %v1998_v51, %v1918_v38  ;;  %v2109_v9 = vadd.f32 1.0, %v2101_v44  ;;  %v1975_v52 = vmul.f32 %v1967_v61, %v1919_v54  ;;  %v4384_v44 = vld [vmem:[%s6248_s8] sm:$0xff] }
 0xa80   : > { %v2071_v4 = vmul.f32 %v2063_v12, %v1919_v54  ;;  %v2170_v61 = vperm.slane %v4384_v44, 7 }
 0xa81   : > { %v2014_v45 = vadd.f32 -0.016096033, %v2006_v23  ;;  %v2117_v27 = vmul.f32 %v2109_v9, %v1885_v8  ;;  %v1983_v2 = vadd.f32 -0.00073499064, %v1975_v52 }
 0xa82   : > { %v2079_v62 = vadd.f32 -0.014264739, %v2071_v4  ;;  %v4266_v63 = vpop.eup %4265 }
 0xa83   : > { %v2086_v22 = vmul.f32 %v5359_v36, %v2014_v45  ;;  %2149 = vmatmul.f32.gmra.mxu1 %v2117_v27  ;;  %v1991_v53 = vmul.f32 %v1983_v2, %v1919_v54 }
 0xa84   : > { %4267 = vrcp.f32 %v2079_v62 }
 0xa85   : > { %v2102_v14 = vmul.f32 %v4266_v63, %v2086_v22  ;;  %v1999_v43 = vadd.f32 -0.0029546, %v1991_v53  ;;  %v1878_v58 = vpop.f32.mrf.mxu2 }
 0xa86   : > { %v1879_v59 = vadd.f32 %v1878_v58, %v5325_v1 }
 0xa87   : > { %v2110_v38 = vadd.f32 1.0, %v2102_v14  ;;  %v2007_v0 = vmul.f32 %v1999_v43, %v1919_v54 }
 0xa88   : > { %v1896_v5 = vmul.f32 0.70710677, %v1879_v59  ;;  %v1888_v9 = vmul.f32 0.5, %v1879_v59 }
 0xa89   : > { %v2118_v7 = vmul.f32 %v2110_v38, %v1886_v56  ;;  %v2015_v48 = vadd.f32 -0.016096033, %v2007_v0 }
 0xa8a   : > { %v3902_v30 = vclamps-f32 %v1896_v5, 4.0  ;;  %v4268_v11 = vpop.eup %4267 }
 0xa8b   : > { %2152 = vmatmul.f32.gmra.mxu1 %v2118_v7  ;;  %v2087_v36 = vmul.f32 %v5367_v6, %v2015_v48 }
 0xa8c   : > { %v1920_v16 = vmul.f32 %v3902_v30, %v3902_v30 }
 0xa8d   : > { %v2103_v50 = vmul.f32 %v4268_v11, %v2087_v36 }
 0xa8e   : > { %v1928_v18 = vmul.f32 -2.7261424e-10, %v1920_v16  ;;  %v2024_v13 = vmul.f32 -1.45660715e-05, %v1920_v16 }
 0xa8f   : > { %v2111_v19 = vadd.f32 1.0, %v2103_v50 }
 0xa90   : > { %v1936_v55 = vadd.f32 2.7706815e-08, %v1928_v18  ;;  %v2032_v1 = vadd.f32 -0.00021337405, %v2024_v13 }
 0xa91   : > { %v2119_v41 = vmul.f32 %v2111_v19, %v1887_v33 }
 0xa92   : > { %v1944_v42 = vmul.f32 %v1936_v55, %v1920_v16  ;;  %v2040_v54 = vmul.f32 %v2032_v1, %v1920_v16 }
 0xa93   : > { %2155 = vmatmul.f32.gmra.mxu1 %v2119_v41 }
 0xa94   : > { %v1952_v49 = vadd.f32 -2.101024e-06, %v1944_v42  ;;  %v2048_v17 = vadd.f32 -0.001682827, %v2040_v54 }
 0xa96   : > { %v1960_v32 = vmul.f32 %v1952_v49, %v1920_v16  ;;  %v2056_v39 = vmul.f32 %v2048_v17, %v1920_v16 }
 0xa98   : > { %v1968_v20 = vadd.f32 -5.6925062e-05, %v1960_v32  ;;  %v2064_v6 = vadd.f32 -0.0073733293, %v2056_v39 }
 0xa9a   : > { %v1976_v47 = vmul.f32 %v1968_v20, %v1920_v16  ;;  %v2072_v60 = vmul.f32 %v2064_v6, %v1920_v16 }
 0xa9c   : > { %v1984_v15 = vadd.f32 -0.00073499064, %v1976_v47  ;;  %v2080_v34 = vadd.f32 -0.014264739, %v2072_v60 }
 0xa9e   : > { %v1992_v21 = vmul.f32 %v1984_v15, %v1920_v16  ;;  %4269 = vrcp.f32 %v2080_v34 }
 0xaa0   : > { %v2000_v31 = vadd.f32 -0.0029546, %v1992_v21 }
 0xaa2   : > { %v2008_v3 = vmul.f32 %v2000_v31, %v1920_v16 }
 0xaa4   : > { %v2016_v28 = vadd.f32 -0.016096033, %v2008_v3  ;;  %v4270_v51 = vpop.eup %4269 }
 0xaa6   : > { %v2088_v24 = vmul.f32 %v3902_v30, %v2016_v28 }
 0xaa8   : > { %v2138_v12 = vpop.f32.mrf.mxu1  ;;  %v2104_v8 = vmul.f32 %v4270_v51, %v2088_v24 }
 0xaa9   : > { %v2162_v23 = vadd.f32 %v2138_v12, %v5143_v25 }
 0xaaa   : > { %v2112_v52 = vadd.f32 1.0, %v2104_v8 }
 0xaab   : > { %v5381_v4 = vadd.f32 %v2170_v61, %v2162_v23 }
 0xaac   : > { %v2120_v45 = vmul.f32 %v2112_v52, %v1888_v9 }
 0xaad   : > { %v2230_v27 = vsel %vm418_vm1, %v5381_v4, 0.0 }
 0xaae   : > { %2231 = vadd.xlane.f32.xlu1 %v2230_v27  ;;  %2158 = vmatmul.f32.gmra.mxu1 %v2120_v45 }
 0xabb   : > { %v2141_v2 = vpop.f32.mrf.mxu1 }
 0xabc   : > { %v2163_v22 = vadd.f32 %v2141_v2, %v5148_v26 }
 0xabe   : > { %v5386_v62 = vadd.f32 %v2170_v61, %v2163_v22  ;;  %v3922_v22 = vld [vmem:[%s6244_s4 + $0x38] sm:$0xff] }
 0xabf   : > { %2461 = vmatpush.msrb.mxu0 %v3922_v22 }
 0xac0   : > { %v2233_v63 = vsel %vm418_vm1, %v5386_v62, 0.0 }
 0xac1   : > { %2234 = vadd.xlane.f32.xlu0 %v2233_v63  ;;  %v3921_v63 = vld [vmem:[%s6244_s4 + $0x30] sm:$0xff] }
 0xac2   : > { %2462 = vmatpush.msrb.mxu0 %v3921_v63 }
 0xadb   : > { %v2144_v25 = vpop.f32.mrf.mxu1 }
 0xadc   : > { %v2164_v53 = vadd.f32 %v2144_v25, %v5153_v40  ;;  %v3920_v25 = vld [vmem:[%s6244_s4 + $0x28] sm:$0xff] }
 0xadd   : > { %2463 = vmatpush.msrb.mxu0 %v3920_v25 }
 0xade   : > { %v5391_v14 = vadd.f32 %v2170_v61, %v2164_v53  ;;  %v3919_v53 = vld [vmem:[%s6244_s4 + $0x20] sm:$0xff] }
 0xadf   : > { %2464 = vmatpush.msrb.mxu0 %v3919_v53 }
 0xae0   : > { %v2236_v43 = vsel %vm418_vm1, %v5391_v14, 0.0 }
 0xae1   : > { %2237 = vadd.xlane.f32.xlu2 %v2236_v43 }
 0xae3   : > { %v2147_v58 = vpop.f32.mrf.mxu1 }
 0xae4   : > { %v2165_v56 = vadd.f32 %v2147_v58, %v5158_v35 }
 0xae6   : > { %v5396_v59 = vadd.f32 %v2170_v61, %v2165_v56 }
 0xae8   : > { %v2239_v26 = vsel %vm418_vm1, %v5396_v59, 0.0 }
 0xae9   : > { %2240 = vadd.xlane.f32.xlu1 %v2239_v26 }
 0xb00   : > { %v2150_v38 = vpop.f32.mrf.mxu1 }
 0xb01   : > { %v2166_v0 = vadd.f32 %v2150_v38, %v5163_v29 }
 0xb03   : > { %v5401_v5 = vadd.f32 %v2170_v61, %v2166_v0 }
 0xb05   : > { %v2242_v40 = vsel %vm418_vm1, %v5401_v5, 0.0 }
 0xb06   : > { %2243 = vadd.xlane.f32.xlu0 %v2242_v40 }
 0xb08   : > { %v2153_v7 = vpop.f32.mrf.mxu1 }
 0xb09   : > { %v2167_v48 = vadd.f32 %v2153_v7, %v5168_v10 }
 0xb0b   : > { %v5406_v30 = vadd.f32 %v2170_v61, %v2167_v48 }
 0xb0d   : > { %v2245_v35 = vsel %vm418_vm1, %v5406_v30, 0.0 }
 0xb0e   : > { %2246 = vadd.xlane.f32.xlu2 %v2245_v35 }
 0xb10   : > { %v2156_v36 = vpop.f32.mrf.mxu1 }
 0xb11   : > { %v2168_v11 = vadd.f32 %v2156_v36, %v5173_v37 }
 0xb13   : > { %v5411_v16 = vadd.f32 %v2170_v61, %v2168_v11 }
 0xb15   : > { %v2248_v29 = vsel %vm418_vm1, %v5411_v16, 0.0 }
 0xb16   : > { %2249 = vadd.xlane.f32.xlu0 %v2248_v29  ;;  %v5492_v29 = vld [vmem:[%s6248_s8 + $0x8] sm:$0xff] }
 0xb21   : > { %v2232_v50 = vpop.xlane.xlu1 %2231 }
 0xb22   : > { %v2254_v18 = vmul.f32 %v2232_v50, %v4508_v46 }
 0xb24   : > { %v5417_v10 = vsub.f32 %v5381_v4, %v2254_v18 }
 0xb26   : > { %v2270_v13 = vmul.f32 %v5417_v10, %v5417_v10 }
 0xb28   : > { %v2278_v33 = vsel %vm418_vm1, %v2270_v13, 0.0 }
 0xb29   : > { %2279 = vadd.xlane.f32.xlu1 %v2278_v33 }
 0xb2b   : > { %v2159_v19 = vpop.f32.mrf.mxu1 }
 0xb2c   : > { %v2169_v37 = vadd.f32 %v2159_v19, %v5185_v57  ;;  %v5496_v19 = vperm.slane %v5492_v29, 0 }
 0xb2e   : > { %v5423_v55 = vadd.f32 %v2170_v61, %v2169_v37 }
 0xb30   : > { %v2251_v1 = vsel %vm418_vm1, %v5423_v55, 0.0 }
 0xb31   : > { %2252 = vadd.xlane.f32.xlu1 %v2251_v1 }
 0xb34   : > { %v2235_v41 = vpop.xlane.xlu0 %2234 }
 0xb35   : > { %v2255_v42 = vmul.f32 %v2235_v41, %v4508_v46 }
 0xb37   : > { %v5429_v54 = vsub.f32 %v5386_v62, %v2255_v42  ;;  %v5500_v42 = vperm.slane %v5492_v29, 1 }
 0xb39   : > { %v2271_v49 = vmul.f32 %v5429_v54, %v5429_v54 }
 0xb3b   : > { %v2281_v17 = vsel %vm418_vm1, %v2271_v49, 0.0 }
 0xb3c   : > { %2282 = vadd.xlane.f32.xlu2 %v2281_v17 }
 0xb54   : > { %v2238_v32 = vpop.xlane.xlu2 %2237 }
 0xb55   : > { %v2256_v57 = vmul.f32 %v2238_v32, %v4508_v46 }
 0xb57   : > { %v5436_v39 = vsub.f32 %v5391_v14, %v2256_v57 }
 0xb59   : > { %v2272_v20 = vmul.f32 %v5436_v39, %v5436_v39 }
 0xb5b   : > { %v2284_v6 = vsel %vm418_vm1, %v2272_v20, 0.0 }
 0xb5c   : > { %v2241_v47 = vpop.xlane.xlu1 %2240  ;;  %2285 = vadd.xlane.f32.xlu0 %v2284_v6 }
 0xb5d   : > { %v2257_v60 = vmul.f32 %v2241_v47, %v4508_v46 }
 0xb5f   : > { %v5443_v15 = vsub.f32 %v5396_v59, %v2257_v60 }
 0xb61   : > { %v2273_v34 = vmul.f32 %v5443_v15, %v5443_v15 }
 0xb63   : > { %v2287_v21 = vsel %vm418_vm1, %v2273_v34, 0.0 }
 0xb64   : > { %2288 = vadd.xlane.f32.xlu2 %v2287_v21 }
 0xb79   : > { %v2244_v31 = vpop.xlane.xlu0 %2243 }
 0xb7a   : > { %v2258_v3 = vmul.f32 %v2244_v31, %v4508_v46 }
 0xb7c   : > { %v5450_v28 = vsub.f32 %v5401_v5, %v2258_v3 }
 0xb7e   : > { %v2274_v24 = vmul.f32 %v5450_v28, %v5450_v28 }
 0xb80   : > { %v2290_v51 = vsel %vm418_vm1, %v2274_v24, 0.0 }
 0xb81   : > { %v2247_v44 = vpop.xlane.xlu2 %2246  ;;  %2291 = vadd.xlane.f32.xlu1 %v2290_v51 }
 0xb82   : > { %v2259_v61 = vmul.f32 %v2247_v44, %v4508_v46 }
 0xb84   : > { %v5457_v12 = vsub.f32 %v5406_v30, %v2259_v61 }
 0xb86   : > { %v2275_v8 = vmul.f32 %v5457_v12, %v5457_v12 }
 0xb88   : > { %v2293_v23 = vsel %vm418_vm1, %v2275_v8, 0.0 }
 0xb89   : > { %2294 = vadd.xlane.f32.xlu0 %v2293_v23  ;;  %v2250_v9 = vpop.xlane.xlu0 %2249 }
 0xb8a   : > { %v2260_v52 = vmul.f32 %v2250_v9, %v4508_v46 }
 0xb8c   : > { %v5464_v45 = vsub.f32 %v5411_v16, %v2260_v52 }
 0xb8e   : > { %v2276_v27 = vmul.f32 %v5464_v45, %v5464_v45 }
 0xb90   : > { %v2296_v2 = vsel %vm418_vm1, %v2276_v27, 0.0 }
 0xb91   : > { %2297 = vadd.xlane.f32.xlu2 %v2296_v2 }
 0xb9c   : > { %v2280_v43 = vpop.xlane.xlu1 %2279 }
 0xb9d   : > { %v2302_v58 = vmul.f32 %v2280_v43, %v4508_v46 }
 0xb9f   : > { %v2310_v56 = vadd.f32 1e-05, %v2302_v58 }
 0xba1   : > { %4271 = vrsqrt.f32 %v2310_v56  ;;  %vm2324_vm5 = vweird.f32 %v2310_v56 }
 0xba4   : > { %v2253_v26 = vpop.xlane.xlu1 %2252 }
 0xba5   : > { %v2261_v38 = vmul.f32 %v2253_v26, %v4508_v46 }
 0xba7   : > { %v4272_v0 = vpop.eup %4271  ;;  %v5484_v40 = vsub.f32 %v5423_v55, %v2261_v38 }
 0xba8   : > { %v2319_v7 = vmul.f32 %v4272_v0, %v2310_v56  ;;  %vm2325_vm4 = vweird.f32 %v4272_v0 }
 0xba9   : > { %v2277_v48 = vmul.f32 %v5484_v40, %v5484_v40  ;;  %vm2326_vm8 = vmor %vm2324_vm5, %vm2325_vm4 }
 0xbaa   : > { %v2320_v35 = vmul.f32 %v4272_v0, %v2319_v7 }
 0xbab   : > { %v2299_v36 = vsel %vm418_vm1, %v2277_v48, 0.0 }
 0xbac   : > { %v2321_v11 = vmul.f32 0.5, %v2320_v35  ;;  %2300 = vadd.xlane.f32.xlu1 %v2299_v36 }
 0xbae   : > { %v2322_v50 = vsub.f32 1.5, %v2321_v11 }
 0xbaf   : > { %v2283_v18 = vpop.xlane.xlu2 %2282 }
 0xbb0   : > { %v2303_v13 = vmul.f32 %v2283_v18, %v4508_v46  ;;  %v2323_v33 = vmul.f32 %v4272_v0, %v2322_v50 }
 0xbb2   : > { %v2311_v37 = vadd.f32 1e-05, %v2303_v13  ;;  %v2327_v1 = vsel %vm2326_vm8, %v4272_v0, %v2323_v33 }
 0xbb3   : > { %v2398_v41 = vmul.f32 %v2327_v1, %v5417_v10 }
 0xbb4   : > { %4273 = vrsqrt.f32 %v2311_v37  ;;  %vm2334_vm10 = vweird.f32 %v2311_v37 }
 0xbb5   : > { %v2407_v49 = vmul.f32 %v5496_v19, %v2398_v41 }
 0xbb7   : > { %v2416_v17 = vadd.f32 %v5500_v42, %v2407_v49 }
 0xbb9   : > { %3948 = vmatmul.msk.f32.vlgmr.msrb.gmra.mxu0 %vm418_vm1, %v2416_v17 }
 0xbba   : > { %v4274_v32 = vpop.eup %4273 }
 0xbbb   : > { %v2329_v57 = vmul.f32 %v4274_v32, %v2311_v37  ;;  %vm2335_vm9 = vweird.f32 %v4274_v32 }
 0xbbc   : > { %vm2336_vm11 = vmor %vm2334_vm10, %vm2335_vm9 }
 0xbbd   : > { %v2330_v20 = vmul.f32 %v4274_v32, %v2329_v57 }
 0xbbf   : > { %v2331_v6 = vmul.f32 0.5, %v2330_v20 }
 0xbc1   : > { %v2332_v47 = vsub.f32 1.5, %v2331_v6 }
 0xbc3   : > { %v2333_v60 = vmul.f32 %v4274_v32, %v2332_v47 }
 0xbc5   : > { %v2337_v10 = vsel %vm2336_vm11, %v4274_v32, %v2333_v60 }
 0xbc6   : > { %v2399_v34 = vmul.f32 %v2337_v10, %v5429_v54 }
 0xbc8   : > { %v2408_v21 = vmul.f32 %v5496_v19, %v2399_v34 }
 0xbca   : > { %v2417_v31 = vadd.f32 %v5500_v42, %v2408_v21 }
 0xbcc   : > { %3949 = vmatmul.msk.f32.gmra.mxu0 %vm418_vm1, %v2417_v31 }
 0xbcf   : > { %v2286_v3 = vpop.xlane.xlu0 %2285 }
 0xbd0   : > { %v2304_v24 = vmul.f32 %v2286_v3, %v4508_v46 }
 0xbd2   : > { %v2312_v51 = vadd.f32 1e-05, %v2304_v24 }
 0xbd4   : > { %4275 = vrsqrt.f32 %v2312_v51  ;;  %vm2344_vm13 = vweird.f32 %v2312_v51 }
 0xbd7   : > { %v2289_v44 = vpop.xlane.xlu2 %2288 }
 0xbd8   : > { %v2305_v61 = vmul.f32 %v2289_v44, %v4508_v46 }
 0xbda   : > { %v4276_v8 = vpop.eup %4275  ;;  %v2313_v23 = vadd.f32 1e-05, %v2305_v61 }
 0xbdb   : > { %v2339_v9 = vmul.f32 %v4276_v8, %v2312_v51  ;;  %vm2345_vm12 = vweird.f32 %v4276_v8 }
 0xbdc   : > { %4277 = vrsqrt.f32 %v2313_v23  ;;  %vm2346_vm14 = vmor %vm2344_vm13, %vm2345_vm12  ;;  %vm2354_vm0 = vweird.f32 %v2313_v23 }
 0xbdd   : > { %v2340_v52 = vmul.f32 %v4276_v8, %v2339_v9 }
 0xbdf   : > { %v2341_v54 = vmul.f32 0.5, %v2340_v52 }
 0xbe1   : > { %v2342_v27 = vsub.f32 1.5, %v2341_v54 }
 0xbe2   : > { %v4278_v2 = vpop.eup %4277 }
 0xbe3   : > { %v2343_v22 = vmul.f32 %v4276_v8, %v2342_v27  ;;  %v2349_v63 = vmul.f32 %v4278_v2, %v2313_v23  ;;  %vm2355_vm15 = vweird.f32 %v4278_v2 }
 0xbe4   : > { %vm2356_vm2 = vmor %vm2354_vm0, %vm2355_vm15 }
 0xbe5   : > { %v2347_v25 = vsel %vm2346_vm14, %v4276_v8, %v2343_v22  ;;  %v2350_v53 = vmul.f32 %v4278_v2, %v2349_v63 }
 0xbe6   : > { %v2400_v43 = vmul.f32 %v2347_v25, %v5436_v39 }
 0xbe7   : > { %v2351_v58 = vmul.f32 0.5, %v2350_v53 }
 0xbe8   : > { %v2409_v56 = vmul.f32 %v5496_v19, %v2400_v43 }
 0xbe9   : > { %v2352_v26 = vsub.f32 1.5, %v2351_v58 }
 0xbea   : > { %v2418_v38 = vadd.f32 %v5500_v42, %v2409_v56 }
 0xbeb   : > { %v2353_v0 = vmul.f32 %v4278_v2, %v2352_v26 }
 0xbec   : > { %3950 = vmatmul.msk.f32.gmra.mxu0 %vm418_vm1, %v2418_v38 }
 0xbed   : > { %v2357_v7 = vsel %vm2356_vm2, %v4278_v2, %v2353_v0 }
 0xbee   : > { %v2401_v48 = vmul.f32 %v2357_v7, %v5443_v15 }
 0xbf0   : > { %v2410_v35 = vmul.f32 %v5496_v19, %v2401_v48 }
 0xbf2   : > { %v2419_v36 = vadd.f32 %v5500_v42, %v2410_v35 }
 0xbf4   : > { %v2292_v39 = vpop.xlane.xlu1 %2291  ;;  %3951 = vmatmul.msk.f32.gmra.mxu0 %vm418_vm1, %v2419_v36 }
 0xbf5   : > { %v2306_v11 = vmul.f32 %v2292_v39, %v4508_v46 }
 0xbf7   : > { %v2314_v50 = vadd.f32 1e-05, %v2306_v11 }
 0xbf9   : > { %4279 = vrsqrt.f32 %v2314_v50  ;;  %vm2364_vm4 = vweird.f32 %v2314_v50 }
 0xbfc   : > { %v2295_v18 = vpop.xlane.xlu0 %2294 }
 0xbfd   : > { %v2307_v13 = vmul.f32 %v2295_v18, %v4508_v46 }
 0xbff   : > { %v4280_v33 = vpop.eup %4279  ;;  %v2315_v37 = vadd.f32 1e-05, %v2307_v13 }
 0xc00   : > { %v2359_v1 = vmul.f32 %v4280_v33, %v2314_v50  ;;  %vm2365_vm3 = vweird.f32 %v4280_v33 }
 0xc01   : > { %4281 = vrsqrt.f32 %v2315_v37  ;;  %vm2366_vm5 = vmor %vm2364_vm4, %vm2365_vm3  ;;  %vm2374_vm9 = vweird.f32 %v2315_v37 }
 0xc02   : > { %v2360_v41 = vmul.f32 %v4280_v33, %v2359_v1 }
 0xc04   : > { %v2361_v15 = vmul.f32 0.5, %v2360_v41  ;;  %v2298_v49 = vpop.xlane.xlu2 %2297 }
 0xc05   : > { %v2308_v32 = vmul.f32 %v2298_v49, %v4508_v46 }
 0xc06   : > { %v2362_v17 = vsub.f32 1.5, %v2361_v15 }
 0xc07   : > { %v4282_v57 = vpop.eup %4281  ;;  %v2316_v47 = vadd.f32 1e-05, %v2308_v32 }
 0xc08   : > { %v2363_v20 = vmul.f32 %v4280_v33, %v2362_v17  ;;  %v2369_v6 = vmul.f32 %v4282_v57, %v2315_v37  ;;  %vm2375_vm8 = vweird.f32 %v4282_v57  ;;  %v2424_v37 = vperm.slane %v5492_v29, 4 }
 0xc09   : > { %4283 = vrsqrt.f32 %v2316_v47  ;;  %vm2376_vm10 = vmor %vm2374_vm9, %vm2375_vm8  ;;  %vm2384_vm12 = vweird.f32 %v2316_v47 }
 0xc0a   : > { %v2367_v60 = vsel %vm2366_vm5, %v4280_v33, %v2363_v20  ;;  %v2370_v10 = vmul.f32 %v4282_v57, %v2369_v6 }
 0xc0b   : > { %v2402_v34 = vmul.f32 %v2367_v60, %v5450_v28 }
 0xc0c   : > { %v2371_v21 = vmul.f32 0.5, %v2370_v10 }
 0xc0d   : > { %v2411_v31 = vmul.f32 %v5496_v19, %v2402_v34 }
 0xc0e   : > { %v2372_v3 = vsub.f32 1.5, %v2371_v21 }
 0xc0f   : > { %v2420_v24 = vadd.f32 %v5500_v42, %v2411_v31  ;;  %v4284_v51 = vpop.eup %4283 }
 0xc10   : > { %v2373_v44 = vmul.f32 %v4282_v57, %v2372_v3  ;;  %v2379_v61 = vmul.f32 %v4284_v51, %v2316_v47  ;;  %vm2385_vm11 = vweird.f32 %v4284_v51 }
 0xc11   : > { %3952 = vmatmul.msk.f32.gmra.mxu0 %vm418_vm1, %v2420_v24  ;;  %vm2386_vm13 = vmor %vm2384_vm12, %vm2385_vm11 }
 0xc12   : > { %v2377_v8 = vsel %vm2376_vm10, %v4282_v57, %v2373_v44  ;;  %v2380_v23 = vmul.f32 %v4284_v51, %v2379_v61 }
 0xc13   : > { %v2403_v9 = vmul.f32 %v2377_v8, %v5457_v12 }
 0xc14   : > { %v2381_v52 = vmul.f32 0.5, %v2380_v23 }
 0xc15   : > { %v2412_v28 = vmul.f32 %v5496_v19, %v2403_v9 }
 0xc16   : > { %v2382_v54 = vsub.f32 1.5, %v2381_v52 }
 0xc17   : > { %v2421_v27 = vadd.f32 %v5500_v42, %v2412_v28 }
 0xc18   : > { %v2383_v2 = vmul.f32 %v4284_v51, %v2382_v54 }
 0xc19   : > { %3953 = vmatmul.msk.f32.gmra.mxu0 %vm418_vm1, %v2421_v27 }
 0xc1a   : > { %v2387_v22 = vsel %vm2386_vm13, %v4284_v51, %v2383_v2 }
 0xc1b   : > { %v2404_v63 = vmul.f32 %v2387_v22, %v5464_v45 }
 0xc1d   : > { %v2413_v25 = vmul.f32 %v5496_v19, %v2404_v63 }
 0xc1f   : > { %v2301_v53 = vpop.xlane.xlu1 %2300  ;;  %v2422_v12 = vadd.f32 %v5500_v42, %v2413_v25 }
 0xc20   : > { %v2309_v43 = vmul.f32 %v2301_v53, %v4508_v46 }
 0xc21   : > { %3954 = vmatmul.msk.f32.gmra.mxu0 %vm418_vm1, %v2422_v12 }
 0xc22   : > { %v2317_v58 = vadd.f32 1e-05, %v2309_v43 }
 0xc24   : > { %4285 = vrsqrt.f32 %v2317_v58  ;;  %vm2394_vm15 = vweird.f32 %v2317_v58 }
 0xc2a   : > { %v4286_v56 = vpop.eup %4285 }
 0xc2b   : > { %v2389_v26 = vmul.f32 %v4286_v56, %v2317_v58  ;;  %vm2395_vm14 = vweird.f32 %v4286_v56 }
 0xc2c   : > { %vm2396_vm0 = vmor %vm2394_vm15, %vm2395_vm14 }
 0xc2d   : > { %v2390_v38 = vmul.f32 %v4286_v56, %v2389_v26 }
 0xc2f   : > { %v2391_v0 = vmul.f32 0.5, %v2390_v38 }
 0xc31   : > { %v2392_v7 = vsub.f32 1.5, %v2391_v0 }
 0xc33   : > { %v2393_v48 = vmul.f32 %v4286_v56, %v2392_v7 }
 0xc35   : > { %v2397_v45 = vsel %vm2396_vm0, %v4286_v56, %v2393_v48 }
 0xc36   : > { %v2405_v35 = vmul.f32 %v2397_v45, %v5484_v40  ;;  %v2466_v11 = vpop.f32.mrf.mxu0 }
 0xc37   : > { %v2467_v20 = vadd.f32 %v2466_v11, %v2424_v37 }
 0xc38   : > { %v2414_v36 = vmul.f32 %v5496_v19, %v2405_v35 }
 0xc39   : > { %v5552_v6 = vmul.f32 0.25, %v2467_v20 }
 0xc3a   : > { %v2423_v39 = vadd.f32 %v5500_v42, %v2414_v36 }
 0xc3c   : > { %3955 = vmatmul.msk.f32.gmra.mxu0 %vm418_vm1, %v2423_v39 }
 0xc49   : > { %v2469_v50 = vpop.f32.mrf.mxu0 }
 0xc4a   : > { %v2470_v15 = vadd.f32 %v2469_v50, %v2424_v37 }
 0xc4c   : > { %v5561_v60 = vmul.f32 0.25, %v2470_v15  ;;  %v5585_v3 = vpack.i.bf16 %v2467_v20, %v2470_v15 }
 0xc69   : > { %v2472_v18 = vpop.f32.mrf.mxu0 }
 0xc6a   : > { %v2473_v29 = vadd.f32 %v2472_v18, %v2424_v37 }
 0xc6c   : > { %v5570_v34 = vmul.f32 0.25, %v2473_v29 }
 0xc71   : > { %v2475_v13 = vpop.f32.mrf.mxu0 }
 0xc72   : > { %v2476_v19 = vadd.f32 %v2475_v13, %v2424_v37 }
 0xc74   : > { %v5575_v21 = vmul.f32 0.25, %v2476_v19  ;;  %v5600_v8 = vpack.i.bf16 %v2473_v29, %v2476_v19 }
 0xc8e   : > { %v2478_v33 = vpop.f32.mrf.mxu0 }
 0xc8f   : > { %v2479_v42 = vadd.f32 %v2478_v33, %v2424_v37 }
 0xc91   : > { %v5590_v24 = vmul.f32 0.25, %v2479_v42 }
 0xc96   : > { %v2481_v1 = vpop.f32.mrf.mxu0 }
 0xc97   : > { %v2482_v41 = vadd.f32 %v2481_v1, %v2424_v37 }
 0xc99   : > { %2806 = vrot.lane.b32.xlu1 %v2482_v41, %s4397_s23  ;;  %v5557_v47 = vmul.f32 0.25, %v2482_v41  ;;  %v5566_v10 = vpack.i.bf16 %v2479_v42, %v2482_v41 }
 0xc9e   : > { %v2484_v49 = vpop.f32.mrf.mxu0 }
 0xc9f   : > { %v2485_v40 = vadd.f32 %v2484_v49, %v2424_v37 }
 0xca1   : > { %2798 = vrot.lane.b32.xlu1 %v2470_v15, %s4397_s23  ;;  %2808 = vrot.lane.b32.xlu2 %v2485_v40, %s4397_s23  ;;  %v5580_v31 = vmul.f32 0.25, %v2485_v40 }
 0xca9   : > { %2518 = vrot.lane.b32.xlu1 %v2485_v40, %s4396_s22  ;;  %2802 = vrot.lane.b32.xlu2 %v2476_v19, %s4397_s23 }
 0xcb1   : > { %2514 = vrot.lane.b32.xlu1 %v2479_v42, %s4396_s22 }
 0xcb9   : > { %2510 = vrot.lane.b32.xlu1 %v2473_v29, %s4396_s22  ;;  %v2487_v17 = vpop.f32.mrf.mxu0 }
 0xcba   : > { %v2488_v32 = vadd.f32 %v2487_v17, %v2424_v37  ;;  %v3912_v17 = vld [vmem:[%s6243_s3 + $0xc8] sm:$0xff] }
 0xcbc   : > { %2810 = vrot.lane.b32.xlu0 %v2488_v32, %s4397_s23  ;;  %2520 = vrot.lane.b32.xlu2 %v2488_v32, %s4396_s22  ;;  %v5549_v57 = vpack.i.bf16 %v2485_v40, %v2488_v32  ;;  %v5594_v51 = vmul.f32 0.25, %v2488_v32  ;;  %v3911_v40 = vld [vmem:[%s6243_s3 + $0xc0] sm:$0xff] }
 0xcc1   : > { %2506 = vrot.lane.b32.xlu1 %v2467_v20, %s4396_s22 }
 0xcc4   : > { %2804 = vrot.lane.b32.xlu0 %v2479_v42, %s4397_s23  ;;  %2780 = vrot.lane.b32.xlu2 %v5552_v6, %s4399_s13 }
 0xcc9   : > { %2790 = vrot.lane.b32.xlu1 %v5557_v47, %s4399_s13 }
 0xccc   : > { %2800 = vrot.lane.b32.xlu0 %v2473_v29, %s4397_s23  ;;  %2782 = vrot.lane.b32.xlu2 %v5561_v60, %s4399_s13 }
 0xcd1   : > { %4107 = vrot.lane.b32.xlu1 %v5566_v10, %s4400_s11 }
 0xcd4   : > { %2796 = vrot.lane.b32.xlu0 %v2467_v20, %s4397_s23  ;;  %2784 = vrot.lane.b32.xlu2 %v5570_v34, %s4399_s13 }
 0xcdc   : > { %2786 = vrot.lane.b32.xlu2 %v5575_v21, %s4399_s13  ;;  %2516 = vrot.lane.b32.xlu0 %v2482_v41, %s4396_s22 }
 0xce4   : > { %2792 = vrot.lane.b32.xlu2 %v5580_v31, %s4399_s13  ;;  %2512 = vrot.lane.b32.xlu0 %v2476_v19, %s4396_s22 }
 0xcec   : > { %4117 = vrot.lane.b32.xlu2 %v5585_v3, %s4400_s11  ;;  %2508 = vrot.lane.b32.xlu0 %v2470_v15, %s4396_s22 }
 0xcf4   : > { %2788 = vrot.lane.b32.xlu0 %v5590_v24, %s4399_s13 }
 0xcfb   : > { %v2809_v44 = vpop.permute.xlu2 %2808 }
 0xcfc   : > { %2794 = vrot.lane.b32.xlu0 %v5594_v51, %s4399_s13 }
 0xd03   : > { %v2803_v23 = vpop.permute.xlu2 %2802 }
 0xd04   : > { %4102 = vrot.lane.b32.xlu0 %v5549_v57, %s4400_s11 }
 0xd0b   : > { %v2807_v61 = vpop.permute.xlu1 %2806 }
 0xd0c   : > { %4112 = vrot.lane.b32.xlu0 %v5600_v8, %s4400_s11 }
 0xd13   : > { %v2799_v9 = vpop.permute.xlu1 %2798 }
 0xd16   : > { %v2521_v52 = vpop.permute.xlu2 %2520 }
 0xd17   : > { %3956 = vmatpush.xpose.msk.msra.mxu3 %vm957_vm6, %v2521_v52  ;;  %v3904_v52 = vld [vmem:[%s6243_s3 + $0x88] sm:$0xff] }
 0xd1b   : > { %v2519_v28 = vpop.permute.xlu1 %2518 }
 0xd1c   : > { %3957 = vmatpush.xpose.msk.msra.mxu3 %vm957_vm6, %v2519_v28 }
 0xd1e   : > { %v2781_v63 = vpop.permute.xlu2 %2780 }
 0xd23   : > { %v2515_v25 = vpop.permute.xlu1 %2514 }
 0xd26   : > { %v2783_v12 = vpop.permute.xlu2 %2782 }
 0xd2b   : > { %v2511_v58 = vpop.permute.xlu1 %2510 }
 0xd2e   : > { %v2811_v54 = vpop.permute.xlu0 %2810  ;;  %v2785_v56 = vpop.permute.xlu2 %2784 }
 0xd2f   : > { %3980 = vmatpush.xpose.msk.msrb.mxu1 %vm957_vm6, %v2811_v54 }
 0xd33   : > { %3981 = vmatpush.xpose.msk.msrb.mxu1 %vm957_vm6, %v2809_v44  ;;  %v2507_v38 = vpop.permute.xlu1 %2506 }
 0xd36   : > { %v2805_v27 = vpop.permute.xlu0 %2804  ;;  %v2787_v0 = vpop.permute.xlu2 %2786 }
 0xd37   : > { %3982 = vmatpush.xpose.msk.msrb.mxu1 %vm957_vm6, %v2807_v61 }
 0xd3b   : > { %3983 = vmatpush.xpose.msk.msrb.mxu1 %vm957_vm6, %v2805_v27  ;;  %v2791_v48 = vpop.permute.xlu1 %2790  ;;  %v3916_v27 = vld [vmem:[%s6243_s3 + $0xe8] sm:$0xff] }
 0xd3e   : > { %v2801_v2 = vpop.permute.xlu0 %2800  ;;  %v2793_v35 = vpop.permute.xlu2 %2792 }
 0xd3f   : > { %3984 = vmatpush.xpose.msk.msrb.mxu1 %vm957_vm6, %v2803_v23 }
 0xd43   : > { %3985 = vmatpush.xpose.msk.msrb.mxu1 %vm957_vm6, %v2801_v2  ;;  %v4108_v11 = vpop.permute.xlu1 %4107 }
 0xd44   : > { %v4109_v18 = vunpack.i.l.bf16 %v4108_v11  ;;  %v4110_v13 = vunpack.i.h.bf16 %v4108_v11 }
 0xd46   : > { %v2797_v22 = vpop.permute.xlu0 %2796  ;;  %v4118_v1 = vpop.permute.xlu2 %4117 }
 0xd47   : > { %3986 = vmatpush.xpose.msk.msrb.mxu1 %vm957_vm6, %v2799_v9  ;;  %v4119_v15 = vunpack.i.l.bf16 %v4118_v1  ;;  %v4120_v49 = vunpack.i.h.bf16 %v4118_v1  ;;  %v3913_v9 = vld [vmem:[%s6243_s3 + $0xd0] sm:$0xff] }
 0xd4b   : > { %3987 = vmatpush.xpose.msk.msrb.mxu1 %vm957_vm6, %v2797_v22 }
 0xd4e   : > { %v2517_v53 = vpop.permute.xlu0 %2516  ;;  %3988 = vmatmul.msk.f32.vlgmr.msrb.gmra.mxu1 %vm957_vm6, %v2781_v63 }
 0xd4f   : > { %3958 = vmatpush.xpose.msk.msra.mxu3 %vm957_vm6, %v2517_v53 }
 0xd53   : > { %3959 = vmatpush.xpose.msk.msra.mxu3 %vm957_vm6, %v2515_v25 }
 0xd56   : > { %v2513_v43 = vpop.permute.xlu0 %2512  ;;  %3989 = vmatmul.msk.f32.gmra.mxu1 %vm957_vm6, %v2783_v12 }
 0xd57   : > { %3960 = vmatpush.xpose.msk.msra.mxu3 %vm957_vm6, %v2513_v43  ;;  %v3905_v43 = vld [vmem:[%s6243_s3 + $0x90] sm:$0xff] }
 0xd5b   : > { %3961 = vmatpush.xpose.msk.msra.mxu3 %vm957_vm6, %v2511_v58 }
 0xd5e   : > { %v2509_v26 = vpop.permute.xlu0 %2508  ;;  %3990 = vmatmul.msk.f32.gmra.mxu1 %vm957_vm6, %v2785_v56  ;;  %v3917_v56 = vld [vmem:[%s6243_s3 + $0xf0] sm:$0xff] }
 0xd5f   : > { %3962 = vmatpush.xpose.msk.msra.mxu3 %vm957_vm6, %v2509_v26 }
 0xd63   : > { %3963 = vmatpush.xpose.msk.msra.mxu3 %vm957_vm6, %v2507_v38 }
 0xd66   : > { %v2789_v7 = vpop.permute.xlu0 %2788  ;;  %3964 = vmatmul.msk.f32.vlgmr.msra.gmra.mxu3 %vm957_vm6, %v5552_v6  ;;  %3991 = vmatmul.msk.f32.gmra.mxu1 %vm957_vm6, %v2787_v0 }
 0xd6e   : > { %v2795_v45 = vpop.permute.xlu0 %2794  ;;  %3965 = vmatmul.msk.f32.gmra.mxu3 %vm957_vm6, %v5561_v60  ;;  %3992 = vmatmul.msk.f32.gmra.mxu1 %vm957_vm6, %v2789_v7  ;;  %v3914_v60 = vld [vmem:[%s6243_s3 + $0xd8] sm:$0xff] }
 0xd76   : > { %v4103_v36 = vpop.permute.xlu0 %4102  ;;  %3966 = vmatmul.msk.f32.gmra.mxu3 %vm957_vm6, %v5570_v34  ;;  %3993 = vmatmul.msk.f32.gmra.mxu1 %vm957_vm6, %v2791_v48  ;;  %v3915_v48 = vld [vmem:[%s6243_s3 + $0xe0] sm:$0xff] }
 0xd77   : > { %v4104_v39 = vunpack.i.l.bf16 %v4103_v36  ;;  %v4105_v50 = vunpack.i.h.bf16 %v4103_v36 }
 0xd79   : > { %3029 = vmatpush.msra.mxu0 %v4104_v39 }
 0xd7b   : > { %3030 = vmatpush.msra.mxu0 %v4105_v50 }
 0xd7d   : > { %3031 = vmatpush.msra.mxu0 %v4109_v18 }
 0xd7e   : > { %v4113_v33 = vpop.permute.xlu0 %4112  ;;  %3967 = vmatmul.msk.f32.gmra.mxu3 %vm957_vm6, %v5575_v21  ;;  %3994 = vmatmul.msk.f32.gmra.mxu1 %vm957_vm6, %v2793_v35  ;;  %v3906_v35 = vld [vmem:[%s6243_s3 + $0x98] sm:$0xff] }
 0xd7f   : > { %v4114_v37 = vunpack.i.l.bf16 %v4113_v33  ;;  %3032 = vmatpush.msra.mxu0 %v4110_v13  ;;  %v4115_v41 = vunpack.i.h.bf16 %v4113_v33  ;;  %v3918_v13 = vld [vmem:[%s6243_s3 + $0xf8] sm:$0xff] }
 0xd81   : > { %3033 = vmatpush.msra.mxu0 %v4114_v37 }
 0xd83   : > { %3034 = vmatpush.msra.mxu0 %v4115_v41 }
 0xd85   : > { %3035 = vmatpush.msra.mxu0 %v4119_v15  ;;  %v3908_v15 = vld [vmem:[%s6243_s3 + $0xa8] sm:$0xff] }
 0xd86   : > { %3968 = vmatmul.msk.f32.gmra.mxu3 %vm957_vm6, %v5590_v24  ;;  %3995 = vmatmul.msk.f32.gmra.mxu1 %vm957_vm6, %v2795_v45  ;;  %v3903_v24 = vld [vmem:[%s6243_s3 + $0x80] sm:$0xff] }
 0xd87   : > { %3036 = vmatpush.msra.mxu0 %v4120_v49 }
 0xd8e   : > { %3969 = vmatmul.msk.f32.gmra.mxu3 %vm957_vm6, %v5557_v47 }
 0xd96   : > { %3970 = vmatmul.msk.f32.gmra.mxu3 %vm957_vm6, %v5580_v31 }
 0xd9e   : > { %3971 = vmatmul.msk.f32.gmra.mxu3 %vm957_vm6, %v5594_v51 }
 0xdcb   : > { %v2861_v19 = vpop.f32.mrf.mxu1 }
 0xdcc   : > { %v5647_v42 = vadd.f32 %v3911_v40, %v2861_v19 }
 0xdce   : > { %v2885_v29 = vsel %vm1039_vm7, %v5647_v42, -inf }
 0xdcf   : > { %2886 = vmax.xlane.f32.xlu1 %v2885_v29  ;;  %v3909_v29 = vld [vmem:[%s6243_s3 + $0xb0] sm:$0xff] }
 0xdd3   : > { %v2864_v32 = vpop.f32.mrf.mxu1 }
 0xdd4   : > { %v5654_v20 = vadd.f32 %v3912_v17, %v2864_v32 }
 0xdd6   : > { %v2888_v6 = vsel %vm1039_vm7, %v5654_v20, -inf }
 0xdd7   : > { %2889 = vmax.xlane.f32.xlu2 %v2888_v6 }
 0xddb   : > { %v2867_v47 = vpop.f32.mrf.mxu1 }
 0xddc   : > { %v5678_v28 = vadd.f32 %v3913_v9, %v2867_v47  ;;  %v3907_v9 = vld [vmem:[%s6243_s3 + $0xa0] sm:$0xff] }
 0xdde   : > { %v2891_v53 = vsel %vm1039_vm7, %v5678_v28, -inf }
 0xde3   : > { %v2870_v34 = vpop.f32.mrf.mxu1 }
 0xde4   : > { %v5661_v21 = vadd.f32 %v3914_v60, %v2870_v34 }
 0xde6   : > { %v2894_v31 = vsel %vm1039_vm7, %v5661_v21, -inf }
 0xde7   : > { %2895 = vmax.xlane.f32.xlu1 %v2894_v31 }
 0xde9   : > { %v2579_v51 = vpop.f32.mrf.mxu3 }
 0xdea   : > { %v5668_v44 = vadd.f32 %v3903_v24, %v2579_v51 }
 0xdeb   : > { %v2873_v61 = vpop.f32.mrf.mxu1 }
 0xdec   : > { %v2603_v23 = vsel %vm1039_vm7, %v5668_v44, -inf  ;;  %v5713_v36 = vadd.f32 %v3915_v48, %v2873_v61 }
 0xded   : > { %2604 = vmax.xlane.f32.xlu0 %v2603_v23 }
 0xdee   : > { %v2897_v50 = vsel %vm1039_vm7, %v5713_v36, -inf }
 0xdf1   : > { %v2582_v54 = vpop.f32.mrf.mxu3 }
 0xdf2   : > { %v5683_v2 = vadd.f32 %v3904_v52, %v2582_v54 }
 0xdf3   : > { %v2876_v22 = vpop.f32.mrf.mxu1 }
 0xdf4   : > { %v5685_v63 = vadd.f32 %v3916_v27, %v2876_v22  ;;  %v2606_v25 = vsel %vm1039_vm7, %v5683_v2, -inf }
 0xdf5   : > { %2607 = vmax.xlane.f32.xlu2 %v2606_v25  ;;  %2892 = vmax.xlane.f32.xlu0 %v2891_v53 }
 0xdf6   : > { %v2900_v12 = vsel %vm1039_vm7, %v5685_v63, -inf }
 0xdf7   : > { %2901 = vmax.xlane.f32.xlu1 %v2900_v12 }
 0xdf9   : > { %v2585_v58 = vpop.f32.mrf.mxu3 }
 0xdfa   : > { %v5699_v26 = vadd.f32 %v3905_v43, %v2585_v58 }
 0xdfb   : > { %v2879_v38 = vpop.f32.mrf.mxu1 }
 0xdfc   : > { %v5701_v0 = vadd.f32 %v3917_v56, %v2879_v38  ;;  %v2609_v7 = vsel %vm1039_vm7, %v5699_v26, -inf }
 0xdfd   : > { %2610 = vmax.xlane.f32.xlu2 %v2609_v7 }
 0xdfe   : > { %v2903_v45 = vsel %vm1039_vm7, %v5701_v0, -inf }
 0xdff   : > { %2904 = vmax.xlane.f32.xlu1 %v2903_v45 }
 0xe01   : > { %v2588_v39 = vpop.f32.mrf.mxu3 }
 0xe02   : > { %v5715_v11 = vadd.f32 %v3906_v35, %v2588_v39 }
 0xe03   : > { %v2882_v33 = vpop.f32.mrf.mxu1 }
 0xe04   : > { %v2612_v18 = vsel %vm1039_vm7, %v5715_v11, -inf  ;;  %v5724_v37 = vadd.f32 %v3918_v13, %v2882_v33 }
 0xe05   : > { %2898 = vmax.xlane.f32.xlu2 %v2897_v50  ;;  %2613 = vmax.xlane.f32.xlu0 %v2612_v18 }
 0xe06   : > { %v2906_v41 = vsel %vm1039_vm7, %v5724_v37, -inf }
 0xe09   : > { %v2591_v1 = vpop.f32.mrf.mxu3 }
 0xe0d   : > { %2907 = vmax.xlane.f32.xlu2 %v2906_v41 }
 0xe11   : > { %v2594_v49 = vpop.f32.mrf.mxu3 }
 0xe12   : > { %v5731_v40 = vadd.f32 %v3908_v15, %v2594_v49 }
 0xe14   : > { %v2618_v19 = vsel %vm1039_vm7, %v5731_v40, -inf }
 0xe15   : > { %2619 = vmax.xlane.f32.xlu0 %v2618_v19 }
 0xe19   : > { %v2597_v17 = vpop.f32.mrf.mxu3 }
 0xe1a   : > { %v5738_v32 = vadd.f32 %v3909_v29, %v2597_v17 }
 0xe1c   : > { %v2621_v6 = vsel %vm1039_vm7, %v5738_v32, -inf }
 0xe1d   : > { %2622 = vmax.xlane.f32.xlu1 %v2621_v6 }
 0xe21   : > { %v2600_v35 = vpop.f32.mrf.mxu3 }
 0xe29   : > { %4122 = vrot.lane.b32.xlu0 %v5549_v57, %s4398_s24  ;;  %v5753_v57 = vadd.f32 %v3907_v9, %v2591_v1 }
 0xe2b   : > { %v2615_v52 = vsel %vm1039_vm7, %v5753_v57, -inf }
 0xe42   : > { %v2887_v47 = vpop.xlane.xlu1 %2886 }
 0xe43   : > { %v2909_v60 = vsub.f32 %v5647_v42, %v2887_v47 }
 0xe45   : > { %v2917_v34 = vmul.f32 1.442695, %v2909_v60 }
 0xe47   : > { %4287 = vpow2.f32 %v2917_v34 }
 0xe4a   : > { %v2890_v31 = vpop.xlane.xlu2 %2889 }
 0xe4b   : > { %v2910_v24 = vsub.f32 %v5654_v20, %v2890_v31 }
 0xe4d   : > { %v5746_v51 = vpop.eup %4287  ;;  %v2919_v61 = vmul.f32 1.442695, %v2910_v24 }
 0xe4e   : > { %v2933_v23 = vsel %vm1039_vm7, %v5746_v51, 0.0 }
 0xe4f   : > { %4289 = vpow2.f32 %v2919_v61  ;;  %2934 = vadd.xlane.f32.xlu2 %v2933_v23 }
 0xe55   : > { %v5755_v42 = vpop.eup %4289 }
 0xe56   : > { %v2936_v20 = vsel %vm1039_vm7, %v5755_v42, 0.0 }
 0xe57   : > { %2616 = vmax.xlane.f32.xlu2 %v2615_v52  ;;  %2937 = vadd.xlane.f32.xlu1 %v2936_v20 }
 0xe5a   : > { %v2896_v54 = vpop.xlane.xlu1 %2895 }
 0xe5b   : > { %v2912_v27 = vsub.f32 %v5661_v21, %v2896_v54 }
 0xe5d   : > { %v2923_v22 = vmul.f32 1.442695, %v2912_v27 }
 0xe5f   : > { %4291 = vpow2.f32 %v2923_v22 }
 0xe60   : > { %v2605_v25 = vpop.xlane.xlu0 %2604 }
 0xe61   : > { %v2627_v53 = vsub.f32 %v5668_v44, %v2605_v25  ;;  %v3910_v44 = vld [vmem:[%s6243_s3 + $0xb8] sm:$0xff] }
 0xe62   : > { %v5775_v39 = vadd.f32 %v3910_v44, %v2600_v35 }
 0xe63   : > { %v2635_v12 = vmul.f32 1.442695, %v2627_v53 }
 0xe65   : > { %v5763_v43 = vpop.eup %4291  ;;  %4293 = vpow2.f32 %v2635_v12 }
 0xe66   : > { %v2942_v58 = vsel %vm1039_vm7, %v5763_v43, 0.0 }
 0xe67   : > { %2943 = vadd.xlane.f32.xlu1 %v2942_v58 }
 0xe68   : > { %v2608_v56 = vpop.xlane.xlu2 %2607  ;;  %v2893_v38 = vpop.xlane.xlu0 %2892 }
 0xe69   : > { %v2911_v7 = vsub.f32 %v5678_v28, %v2893_v38  ;;  %v2624_v28 = vsel %vm1039_vm7, %v5775_v39, -inf  ;;  %v2628_v9 = vsub.f32 %v5683_v2, %v2608_v56 }
 0xe6a   : > { %v2902_v33 = vpop.xlane.xlu1 %2901 }
 0xe6b   : > { %v5768_v48 = vpop.eup %4293  ;;  %v2921_v21 = vmul.f32 1.442695, %v2911_v7  ;;  %v2914_v15 = vsub.f32 %v5685_v63, %v2902_v33  ;;  %v2637_v54 = vmul.f32 1.442695, %v2628_v9 }
 0xe6c   : > { %v2651_v45 = vsel %vm1039_vm7, %v5768_v48, 0.0 }
 0xe6d   : > { %2652 = vadd.xlane.f32.xlu2 %v2651_v45  ;;  %4295 = vpow2.f32 %v2921_v21  ;;  %v2927_v19 = vmul.f32 1.442695, %v2914_v15 }
 0xe70   : > { %v2611_v50 = vpop.xlane.xlu2 %2610 }
 0xe71   : > { %v2629_v17 = vsub.f32 %v5699_v26, %v2611_v50 }
 0xe72   : > { %v2905_v23 = vpop.xlane.xlu1 %2904 }
 0xe73   : > { %v5777_v18 = vpop.eup %4295  ;;  %v2639_v47 = vmul.f32 1.442695, %v2629_v17  ;;  %v2915_v38 = vsub.f32 %v5701_v0, %v2905_v23 }
 0xe74   : > { %v2939_v13 = vsel %vm1039_vm7, %v5777_v18, 0.0 }
 0xe75   : > { %2625 = vmax.xlane.f32.xlu2 %v2624_v28  ;;  %2940 = vadd.xlane.f32.xlu0 %v2939_v13 }
 0xe78   : > { %v2899_v1 = vpop.xlane.xlu2 %2898  ;;  %v2614_v63 = vpop.xlane.xlu0 %2613 }
 0xe79   : > { %v2913_v41 = vsub.f32 %v5713_v36, %v2899_v1  ;;  %v2630_v24 = vsub.f32 %v5715_v11, %v2614_v63 }
 0xe7b   : > { %v2925_v49 = vmul.f32 1.442695, %v2913_v41 }
 0xe7d   : > { %4297 = vpow2.f32 %v2925_v49 }
 0xe7e   : > { %4299 = vpow2.f32 %v2927_v19 }
 0xe7f   : > { %4301 = vpow2.f32 %v2639_v47 }
 0xe80   : > { %4127 = vrot.lane.b32.xlu1 %v5566_v10, %s4398_s24  ;;  %v2908_v60 = vpop.xlane.xlu2 %2907 }
 0xe81   : > { %v2916_v10 = vsub.f32 %v5724_v37, %v2908_v60  ;;  %v2641_v37 = vmul.f32 1.442695, %v2630_v24 }
 0xe83   : > { %v5787_v29 = vpop.eup %4297  ;;  %v2931_v26 = vmul.f32 1.442695, %v2916_v10 }
 0xe84   : > { %v2945_v6 = vsel %vm1039_vm7, %v5787_v29, 0.0  ;;  %v5792_v36 = vpop.eup %4299 }
 0xe85   : > { %2946 = vadd.xlane.f32.xlu2 %v2945_v6  ;;  %v2948_v34 = vsel %vm1039_vm7, %v5792_v36, 0.0  ;;  %v5799_v31 = vpop.eup %4301  ;;  %4303 = vpow2.f32 %v2931_v26 }
 0xe86   : > { %4305 = vpow2.f32 %v2641_v37 }
 0xe87   : > { %4307 = vpow2.f32 %v2637_v54 }
 0xe88   : > { %v2620_v61 = vpop.xlane.xlu0 %2619 }
 0xe89   : > { %4132 = vrot.lane.b32.xlu0 %v5600_v8, %s4398_s24  ;;  %v2657_v8 = vsel %vm1039_vm7, %v5799_v31, 0.0  ;;  %v2632_v1 = vsub.f32 %v5731_v40, %v2620_v61 }
 0xe8b   : > { %v5807_v52 = vpop.eup %4303  ;;  %v2645_v49 = vmul.f32 1.442695, %v2632_v1 }
 0xe8c   : > { %v5812_v53 = vpop.eup %4305 }
 0xe8d   : > { %2949 = vadd.xlane.f32.xlu2 %v2948_v34  ;;  %v2660_v12 = vsel %vm1039_vm7, %v5812_v53, 0.0  ;;  %v5816_v58 = vpop.eup %4307 }
 0xe8e   : > { %v2654_v56 = vsel %vm1039_vm7, %v5816_v58, 0.0 }
 0xe90   : > { %v2623_v11 = vpop.xlane.xlu1 %2622 }
 0xe91   : > { %4137 = vrot.lane.b32.xlu0 %v5585_v3, %s4398_s24  ;;  %v2954_v3 = vsel %vm1039_vm7, %v5807_v52, 0.0  ;;  %v2633_v25 = vsub.f32 %v5738_v32, %v2623_v11  ;;  %v2929_v32 = vmul.f32 1.442695, %v2915_v38  ;;  %s6212_s24 = scalar_lea.vmem %s6249_s9, %s3812_s20 }
 0xe93   : > { %v2647_v2 = vmul.f32 1.442695, %v2633_v25 }
 0xe95   : > { %2658 = vadd.xlane.f32.xlu2 %v2657_v8  ;;  %4309 = vpow2.f32 %v2647_v2 }
 0xe96   : > { %4311 = vpow2.f32 %v2929_v32 }
 0xe9b   : > { %v4123_v20 = vpop.permute.xlu0 %4122  ;;  %v5821_v7 = vpop.eup %4309 }
 0xe9c   : > { %v4124_v27 = vunpack.i.l.bf16 %v4123_v20  ;;  %v4125_v22 = vunpack.i.h.bf16 %v4123_v20  ;;  %v2669_v21 = vsel %vm1039_vm7, %v5821_v7, 0.0  ;;  %v5825_v45 = vpop.eup %4311 }
 0xe9d   : > { %2955 = vadd.xlane.f32.xlu2 %v2954_v3  ;;  %v2951_v44 = vsel %vm1039_vm7, %v5825_v45, 0.0 }
 0xe9e   : > { %2747 = vmatpush.msra.mxu2 %v4124_v27 }
 0xea0   : > { %2748 = vmatpush.msra.mxu2 %v4125_v22 }
 0xea5   : > { %2661 = vadd.xlane.f32.xlu2 %v2660_v12 }
 0xeaa   : > { %2655 = vadd.xlane.f32.xlu1 %v2654_v56 }
 0xeb2   : > { %2670 = vadd.xlane.f32.xlu1 %v2669_v21 }
 0xebb   : > { %2952 = vadd.xlane.f32.xlu0 %v2951_v44 }
 0xec2   : > { %v2935_v35 = vpop.xlane.xlu2 %2934 }
 0xec3   : > { %4313 = vrcp.f32 %v2935_v35 }
 0xec9   : > { %v4314_v50 = vpop.eup %4313 }
 0xeca   : > { %v2965_v0 = vmul.f32 %v4314_v50, %v5746_v51  ;;  %v2617_v28 = vpop.xlane.xlu2 %2616  ;;  %v2938_v13 = vpop.xlane.xlu1 %2937 }
 0xecb   : > { %v2631_v33 = vsub.f32 %v5753_v57, %v2617_v28  ;;  %4315 = vrcp.f32 %v2938_v13 }
 0xecc   : > { %3996 = vmatmul.msk.f32.vlgmr.msra.gmra.mxu0 %vm1039_vm7, %v2965_v0 }
 0xecd   : > { %v2643_v41 = vmul.f32 1.442695, %v2631_v33 }
 0xecf   : > { %4317 = vpow2.f32 %v2643_v41 }
 0xed0   : > { %4319 = vpow2.f32 %v2645_v49 }
 0xed1   : > { %v4316_v15 = vpop.eup %4315 }
 0xed2   : > { %v2966_v19 = vmul.f32 %v4316_v15, %v5755_v42 }
 0xed4   : > { %3997 = vmatmul.msk.f32.gmra.mxu0 %vm1039_vm7, %v2966_v19 }
 0xed5   : > { %v5835_v17 = vpop.eup %4317 }
 0xed6   : > { %v2663_v51 = vsel %vm1039_vm7, %v5835_v17, 0.0  ;;  %v5839_v57 = vpop.eup %4319 }
 0xed7   : > { %2664 = vadd.xlane.f32.xlu2 %v2663_v51  ;;  %v2666_v40 = vsel %vm1039_vm7, %v5839_v57, 0.0 }
 0xeda   : > { %v2944_v63 = vpop.xlane.xlu1 %2943 }
 0xedf   : > { %2667 = vadd.xlane.f32.xlu2 %v2666_v40 }
 0xee0   : > { %v2653_v6 = vpop.xlane.xlu2 %2652 }
 0xee8   : > { %v2626_v47 = vpop.xlane.xlu2 %2625  ;;  %v2941_v42 = vpop.xlane.xlu0 %2940 }
 0xee9   : > { %v2634_v60 = vsub.f32 %v5775_v39, %v2626_v47  ;;  %4321 = vrcp.f32 %v2941_v42 }
 0xeeb   : > { %v2649_v10 = vmul.f32 1.442695, %v2634_v60 }
 0xeed   : > { %4323 = vpow2.f32 %v2649_v10 }
 0xeee   : > { %4325 = vrcp.f32 %v2944_v63  ;;  %v3929_v63 = vld [vmem:[%s6246_s6 + $0x30] sm:$0xff] }
 0xeef   : > { %v4322_v34 = vpop.eup %4321 }
 0xef0   : > { %v2967_v26 = vmul.f32 %v4322_v34, %v5777_v18 }
 0xef2   : > { %v4128_v24 = vpop.permute.xlu1 %4127  ;;  %3998 = vmatmul.msk.f32.gmra.mxu0 %vm1039_vm7, %v2967_v26 }
 0xef3   : > { %v5845_v61 = vpop.eup %4323  ;;  %v4129_v8 = vunpack.i.l.bf16 %v4128_v24  ;;  %v4130_v37 = vunpack.i.h.bf16 %v4128_v24 }
 0xef4   : > { %v2672_v23 = vsel %vm1039_vm7, %v5845_v61, 0.0  ;;  %v4326_v39 = vpop.eup %4325 }
 0xef5   : > { %2673 = vadd.xlane.f32.xlu0 %v2672_v23  ;;  %2749 = vmatpush.msra.mxu2 %v4129_v8  ;;  %v2968_v20 = vmul.f32 %v4326_v39, %v5763_v43  ;;  %v3927_v8 = vld [vmem:[%s6246_s6 + $0x20] sm:$0xff] }
 0xef7   : > { %2750 = vmatpush.msra.mxu2 %v4130_v37 }
 0xef8   : > { %v2947_v9 = vpop.xlane.xlu2 %2946 }
 0xef9   : > { %4327 = vrcp.f32 %v2947_v9 }
 0xefa   : > { %3999 = vmatmul.msk.f32.gmra.mxu0 %vm1039_vm7, %v2968_v20  ;;  %4329 = vrcp.f32 %v2653_v6 }
 0xefb   : > { %v4133_v18 = vpop.permute.xlu0 %4132 }
 0xefc   : > { %v4134_v54 = vunpack.i.l.bf16 %v4133_v18  ;;  %v4135_v3 = vunpack.i.h.bf16 %v4133_v18 }
 0xefe   : > { %2751 = vmatpush.msra.mxu2 %v4134_v54 }
 0xeff   : > { %v4328_v27 = vpop.eup %4327 }
 0xf00   : > { %v2950_v11 = vpop.xlane.xlu2 %2949  ;;  %v2969_v22 = vmul.f32 %v4328_v27, %v5787_v29  ;;  %2752 = vmatpush.msra.mxu2 %v4135_v3  ;;  %v4330_v2 = vpop.eup %4329 }
 0xf01   : > { %4331 = vrcp.f32 %v2950_v11  ;;  %v2683_v38 = vmul.f32 %v4330_v2, %v5768_v48 }
 0xf02   : > { %4000 = vmatmul.msk.f32.gmra.mxu0 %vm1039_vm7, %v2969_v22 }
 0xf03   : > { %v4138_v25 = vpop.permute.xlu0 %4137 }
 0xf04   : > { %v4139_v12 = vunpack.i.l.bf16 %v4138_v25  ;;  %v4140_v43 = vunpack.i.h.bf16 %v4138_v25 }
 0xf06   : > { %2753 = vmatpush.msra.mxu2 %v4139_v12 }
 0xf07   : > { %v4332_v56 = vpop.eup %4331 }
 0xf08   : > { %v2970_v32 = vmul.f32 %v4332_v56, %v5792_v36  ;;  %2754 = vmatpush.msra.mxu2 %v4140_v43  ;;  %v2659_v29 = vpop.xlane.xlu2 %2658 }
 0xf09   : > { %3972 = vmatmul.msk.f32.vlgmr.msra.gmra.mxu2 %vm1039_vm7, %v2683_v38 }
 0xf0a   : > { %4001 = vmatmul.msk.f32.gmra.mxu0 %vm1039_vm7, %v2970_v32 }
 0xf10   : > { %v2956_v44 = vpop.xlane.xlu2 %2955 }
 0xf18   : > { %v2662_v0 = vpop.xlane.xlu2 %2661 }
 0xf1d   : > { %v2656_v21 = vpop.xlane.xlu1 %2655 }
 0xf1e   : > { %4333 = vrcp.f32 %v2656_v21 }
 0xf1f   : > { %4335 = vrcp.f32 %v2659_v29 }
 0xf20   : > { %4337 = vrcp.f32 %v2662_v0  ;;  %v5913_v0 = vld [vmem:[%s6248_s8 + $0x8] sm:$0xff] }
 0xf24   : > { %v4334_v35 = vpop.eup %4333 }
 0xf25   : > { %v2684_v50 = vmul.f32 %v4334_v35, %v5816_v58  ;;  %v4336_v28 = vpop.eup %4335 }
 0xf26   : > { %v2685_v48 = vmul.f32 %v4336_v28, %v5799_v31  ;;  %v4338_v13 = vpop.eup %4337  ;;  %v3175_v28 = vperm.slane %v5913_v0, 5 }
 0xf27   : > { %3973 = vmatmul.msk.f32.gmra.mxu2 %vm1039_vm7, %v2684_v50  ;;  %v2686_v33 = vmul.f32 %v4338_v13, %v5812_v53 }
 0xf2e   : > { %v2953_v36 = vpop.xlane.xlu0 %2952 }
 0xf2f   : > { %3974 = vmatmul.msk.f32.gmra.mxu2 %vm1039_vm7, %v2685_v48  ;;  %4339 = vrcp.f32 %v2953_v36 }
 0xf30   : > { %4341 = vrcp.f32 %v2956_v44 }
 0xf35   : > { %v4340_v1 = vpop.eup %4339 }
 0xf36   : > { %v2971_v58 = vmul.f32 %v4340_v1, %v5825_v45  ;;  %v4342_v41 = vpop.eup %4341  ;;  %v2671_v45 = vpop.xlane.xlu1 %2670 }
 0xf37   : > { %3975 = vmatmul.msk.f32.gmra.mxu2 %vm1039_vm7, %v2686_v33  ;;  %v2972_v15 = vmul.f32 %v4342_v41, %v5807_v52 }
 0xf38   : > { %4002 = vmatmul.msk.f32.gmra.mxu0 %vm1039_vm7, %v2971_v58 }
 0xf40   : > { %4003 = vmatmul.msk.f32.gmra.mxu0 %vm1039_vm7, %v2972_v15 }
 0xf49   : > { %v3038_v31 = vpop.f32.mrf.mxu0 }
 0xf4a   : > { %v2665_v49 = vpop.xlane.xlu2 %2664  ;;  %3070 = vrot.lane.b32.xlu2 %v3038_v31, %s4401_s10 }
 0xf4b   : > { %4343 = vrcp.f32 %v2665_v49 }
 0xf51   : > { %v4344_v19 = vpop.eup %4343  ;;  %v3041_v53 = vpop.f32.mrf.mxu0 }
 0xf52   : > { %3072 = vrot.lane.b32.xlu1 %v3041_v53, %s4401_s10  ;;  %v2668_v51 = vpop.xlane.xlu2 %2667  ;;  %v2687_v40 = vmul.f32 %v4344_v19, %v5835_v17  ;;  %v3930_v17 = vld [vmem:[%s6246_s6 + $0x38] sm:$0xff] }
 0xf53   : > { %4345 = vrcp.f32 %v2668_v51  ;;  %3138 = vmatpush.msrb.mxu3 %v3930_v17 }
 0xf54   : > { %3976 = vmatmul.msk.f32.gmra.mxu2 %vm1039_vm7, %v2687_v40  ;;  %4347 = vrcp.f32 %v2671_v45 }
 0xf55   : > { %3139 = vmatpush.msrb.mxu3 %v3929_v63 }
 0xf59   : > { %v4346_v6 = vpop.eup %4345 }
 0xf5a   : > { %v2688_v52 = vmul.f32 %v4346_v6, %v5839_v57  ;;  %v4348_v47 = vpop.eup %4347  ;;  %v3928_v57 = vld [vmem:[%s6246_s6 + $0x28] sm:$0xff] }
 0xf5b   : > { %v2689_v60 = vmul.f32 %v4348_v47, %v5821_v7  ;;  %3140 = vmatpush.msrb.mxu3 %v3928_v57 }
 0xf5c   : > { %3977 = vmatmul.msk.f32.gmra.mxu2 %vm1039_vm7, %v2688_v52 }
 0xf5d   : > { %3141 = vmatpush.msrb.mxu3 %v3927_v8 }
 0xf64   : > { %3978 = vmatmul.msk.f32.gmra.mxu2 %vm1039_vm7, %v2689_v60 }
 0xf68   : > { %v2674_v42 = vpop.xlane.xlu0 %2673 }
 0xf69   : > { %4349 = vrcp.f32 %v2674_v42 }
 0xf6f   : > { %v4350_v10 = vpop.eup %4349  ;;  %v3044_v7 = vpop.f32.mrf.mxu0 }
 0xf70   : > { %v2690_v34 = vmul.f32 %v4350_v10, %v5845_v61  ;;  %3074 = vrot.lane.b32.xlu0 %v3044_v7, %s4401_s10 }
 0xf72   : > { %3979 = vmatmul.msk.f32.gmra.mxu2 %vm1039_vm7, %v2690_v34 }
 0xf77   : > { %v3047_v26 = vpop.f32.mrf.mxu0 }
 0xf78   : > { %3076 = vrot.lane.b32.xlu2 %v3047_v26, %s4401_s10 }
 0xf7f   : > { %v3050_v24 = vpop.f32.mrf.mxu0 }
 0xf80   : > { %3078 = vrot.lane.b32.xlu0 %v3050_v24, %s4401_s10 }
 0xf87   : > { %v3053_v23 = vpop.f32.mrf.mxu0 }
 0xf88   : > { %3080 = vrot.lane.b32.xlu1 %v3053_v23, %s4401_s10 }
 0xf8c   : > { %v2756_v61 = vpop.f32.mrf.mxu2 }
 0xfa4   : > { %v3071_v37 = vpop.permute.xlu2 %3070 }
 0xfa5   : > { %v3094_v39 = vsel %vm957_vm6, %v2756_v61, %v3071_v37 }
 0xfa6   : > { %4004 = vmatmul.msk.f32.vlgmr.msrb.gmra.mxu3 %vm418_vm1, %v3094_v39 }
 0xfaa   : > { %v2759_v18 = vpop.f32.mrf.mxu2 }
 0xfb2   : > { %v2762_v3 = vpop.f32.mrf.mxu2 }
 0xfb5   : > { %v3056_v9 = vpop.f32.mrf.mxu0 }
 0xfb6   : > { %3082 = vrot.lane.b32.xlu2 %v3056_v9, %s4401_s10 }
 0xfba   : > { %v2765_v25 = vpop.f32.mrf.mxu2 }
 0xfbd   : > { %v3059_v20 = vpop.f32.mrf.mxu0 }
 0xfbe   : > { %3084 = vrot.lane.b32.xlu0 %v3059_v20, %s4401_s10 }
 0xfc4   : > { %v3073_v54 = vpop.permute.xlu1 %3072 }
 0xfc5   : > { %v3095_v27 = vsel %vm957_vm6, %v2759_v18, %v3073_v54 }
 0xfc6   : > { %4005 = vmatmul.msk.f32.gmra.mxu3 %vm418_vm1, %v3095_v27 }
 0xfd2   : > { %v3077_v2 = vpop.permute.xlu2 %3076 }
 0xfd3   : > { %v3097_v12 = vsel %vm957_vm6, %v2765_v25, %v3077_v2 }
 0xfd7   : > { %v2768_v56 = vpop.f32.mrf.mxu2 }
 0xfdf   : > { %v2771_v32 = vpop.f32.mrf.mxu2 }
 0xfe2   : > { %v3075_v11 = vpop.permute.xlu0 %3074 }
 0xfe3   : > { %v3096_v22 = vsel %vm957_vm6, %v2762_v3, %v3075_v11 }
 0xfe4   : > { %4006 = vmatmul.msk.f32.gmra.mxu3 %vm418_vm1, %v3096_v22 }
 0xfe7   : > { %v2774_v44 = vpop.f32.mrf.mxu2 }
 0xfec   : > { %4007 = vmatmul.msk.f32.gmra.mxu3 %vm418_vm1, %v3097_v12 }
 0xff2   : > { %v3079_v43 = vpop.permute.xlu0 %3078 }
 0xff3   : > { %v3098_v38 = vsel %vm957_vm6, %v2768_v56, %v3079_v43 }
 0xff4   : > { %4008 = vmatmul.msk.f32.gmra.mxu3 %vm418_vm1, %v3098_v38 }
 0xff5   : > { %v2777_v1 = vpop.f32.mrf.mxu2 }
 0xffa   : > { %v3081_v29 = vpop.permute.xlu1 %3080 }
 0xffb   : > { %v3099_v21 = vsel %vm957_vm6, %v2771_v32, %v3081_v29 }
 0xffc   : > { %4009 = vmatmul.msk.f32.gmra.mxu3 %vm418_vm1, %v3099_v21 }
0x1010   : > { %v3083_v35 = vpop.permute.xlu2 %3082 }
0x1011   : > { %v3100_v50 = vsel %vm957_vm6, %v2774_v44, %v3083_v35 }
0x1012   : > { %4010 = vmatmul.msk.f32.gmra.mxu3 %vm418_vm1, %v3100_v50 }
0x1029   : > { %v3143_v48 = vpop.f32.mrf.mxu3 }
0x102a   : > { %v3167_v36 = vadd.f32 %v3143_v48, %v5381_v4 }
0x102c   : > { %v5917_v13 = vadd.f32 %v3175_v28, %v3167_v36 }
0x102e   : > { %v3184_v33 = vsel %vm418_vm1, %v5917_v13, 0.0 }
0x102f   : > { %3185 = vadd.xlane.f32.xlu1 %v3184_v33 }
0x1030   : > { %v3085_v58 = vpop.permute.xlu0 %3084 }
0x1031   : > { %v3101_v41 = vsel %vm957_vm6, %v2777_v1, %v3085_v58 }
0x1032   : > { %4011 = vmatmul.msk.f32.gmra.mxu3 %vm418_vm1, %v3101_v41 }
0x1049   : > { %v3146_v15 = vpop.f32.mrf.mxu3 }
0x104a   : > { %v3168_v31 = vadd.f32 %v3146_v15, %v5386_v62  ;;  %v3926_v15 = vld [vmem:[%s6245_s5 + $0x38] sm:$0xff] }
0x104b   : > { %3415 = vmatpush.msrb.mxu2 %v3926_v15 }
0x104c   : > { %v5924_v49 = vadd.f32 %v3175_v28, %v3168_v31 }
0x104e   : > { %v3187_v4 = vsel %vm418_vm1, %v5924_v49, 0.0 }
0x104f   : > { %3188 = vadd.xlane.f32.xlu2 %v3187_v4  ;;  %v3925_v4 = vld [vmem:[%s6245_s5 + $0x30] sm:$0xff] }
0x1050   : > { %3416 = vmatpush.msrb.mxu2 %v3925_v4 }
0x1067   : > { %v3149_v19 = vpop.f32.mrf.mxu3 }
0x1068   : > { %v3169_v53 = vadd.f32 %v3149_v19, %v5391_v14 }
0x106a   : > { %v5929_v51 = vadd.f32 %v3175_v28, %v3169_v53  ;;  %v3924_v53 = vld [vmem:[%s6245_s5 + $0x28] sm:$0xff] }
0x106b   : > { %3417 = vmatpush.msrb.mxu2 %v3924_v53 }
0x106c   : > { %v3190_v40 = vsel %vm418_vm1, %v5929_v51, 0.0 }
0x106d   : > { %3191 = vadd.xlane.f32.xlu0 %v3190_v40  ;;  %v3923_v40 = vld [vmem:[%s6245_s5 + $0x20] sm:$0xff] }
0x106e   : > { %3418 = vmatpush.msrb.mxu2 %v3923_v40 }
0x106f   : > { %v3152_v45 = vpop.f32.mrf.mxu3 }
0x1070   : > { %v3170_v6 = vadd.f32 %v3152_v45, %v5396_v59 }
0x1072   : > { %v5934_v52 = vadd.f32 %v3175_v28, %v3170_v6 }
0x1074   : > { %v3193_v62 = vsel %vm418_vm1, %v5934_v52, 0.0 }
0x1075   : > { %3194 = vadd.xlane.f32.xlu1 %v3193_v62 }
0x1077   : > { %v3155_v47 = vpop.f32.mrf.mxu3 }
0x1078   : > { %v3171_v60 = vadd.f32 %v3155_v47, %v5401_v5 }
0x107a   : > { %v5939_v42 = vadd.f32 %v3175_v28, %v3171_v60 }
0x107c   : > { %v3196_v14 = vsel %vm418_vm1, %v5939_v42, 0.0 }
0x107d   : > { %3197 = vadd.xlane.f32.xlu2 %v3196_v14 }
0x107f   : > { %v3158_v17 = vpop.f32.mrf.mxu3 }
0x1080   : > { %v3172_v63 = vadd.f32 %v3158_v17, %v5406_v30 }
0x1082   : > { %v5944_v57 = vadd.f32 %v3175_v28, %v3172_v63 }
0x1084   : > { %v3199_v59 = vsel %vm418_vm1, %v5944_v57, 0.0 }
0x1085   : > { %3200 = vadd.xlane.f32.xlu0 %v3199_v59 }
0x1095   : > { %v3161_v10 = vpop.f32.mrf.mxu3 }
0x1096   : > { %v3173_v7 = vadd.f32 %v3161_v10, %v5411_v16 }
0x1098   : > { %v5949_v34 = vadd.f32 %v3175_v28, %v3173_v7 }
0x109a   : > { %v3202_v5 = vsel %vm418_vm1, %v5949_v34, 0.0 }
0x109b   : > { %3203 = vadd.xlane.f32.xlu2 %v3202_v5  ;;  %v6022_v5 = vperm.slane %v5913_v0, 2 }
0x10a2   : > { %v3186_v26 = vpop.xlane.xlu1 %3185 }
0x10a3   : > { %v3208_v24 = vmul.f32 %v3186_v26, %v4508_v46 }
0x10a5   : > { %v5955_v30 = vsub.f32 %v5917_v13, %v3208_v24 }
0x10a7   : > { %v3224_v8 = vmul.f32 %v5955_v30, %v5955_v30 }
0x10a9   : > { %v3232_v23 = vsel %vm418_vm1, %v3224_v8, 0.0  ;;  %v6028_v8 = vperm.slane %v5913_v0, 3 }
0x10aa   : > { %3233 = vadd.xlane.f32.xlu1 %v3232_v23 }
0x10b5   : > { %v3164_v61 = vpop.f32.mrf.mxu3 }
0x10b6   : > { %v3174_v16 = vadd.f32 %v3164_v61, %v5423_v55 }
0x10b8   : > { %v5961_v37 = vadd.f32 %v3175_v28, %v3174_v16 }
0x10ba   : > { %v3205_v39 = vsel %vm418_vm1, %v5961_v37, 0.0 }
0x10bb   : > { %3206 = vadd.xlane.f32.xlu1 %v3205_v39 }
0x10c2   : > { %v3189_v9 = vpop.xlane.xlu2 %3188 }
0x10c3   : > { %v3209_v20 = vmul.f32 %v3189_v9, %v4508_v46 }
0x10c5   : > { %v5967_v18 = vsub.f32 %v5924_v49, %v3209_v20 }
0x10c7   : > { %v3225_v54 = vmul.f32 %v5967_v18, %v5967_v18 }
0x10c9   : > { %v3235_v27 = vsel %vm418_vm1, %v3225_v54, 0.0 }
0x10ca   : > { %3236 = vadd.xlane.f32.xlu0 %v3235_v27 }
0x10e0   : > { %v3192_v3 = vpop.xlane.xlu0 %3191 }
0x10e1   : > { %v3210_v55 = vmul.f32 %v3192_v3, %v4508_v46 }
0x10e3   : > { %v5974_v11 = vsub.f32 %v5929_v51, %v3210_v55 }
0x10e5   : > { %v3226_v22 = vmul.f32 %v5974_v11, %v5974_v11 }
0x10e7   : > { %v3238_v25 = vsel %vm418_vm1, %v3226_v22, 0.0 }
0x10e8   : > { %v3195_v2 = vpop.xlane.xlu1 %3194  ;;  %3239 = vadd.xlane.f32.xlu2 %v3238_v25 }
0x10e9   : > { %v3211_v12 = vmul.f32 %v3195_v2, %v4508_v46 }
0x10eb   : > { %v5981_v56 = vsub.f32 %v5934_v52, %v3211_v12 }
0x10ed   : > { %v3227_v43 = vmul.f32 %v5981_v56, %v5981_v56 }
0x10ef   : > { %v3241_v38 = vsel %vm418_vm1, %v3227_v43, 0.0 }
0x10f0   : > { %v3198_v32 = vpop.xlane.xlu2 %3197  ;;  %3242 = vadd.xlane.f32.xlu0 %v3241_v38 }
0x10f1   : > { %v3212_v29 = vmul.f32 %v3198_v32, %v4508_v46 }
0x10f3   : > { %v5988_v21 = vsub.f32 %v5939_v42, %v3212_v29 }
0x10f5   : > { %v3228_v44 = vmul.f32 %v5988_v21, %v5988_v21 }
0x10f7   : > { %v3244_v35 = vsel %vm418_vm1, %v3228_v44, 0.0 }
0x10f8   : > { %v3201_v50 = vpop.xlane.xlu0 %3200  ;;  %3245 = vadd.xlane.f32.xlu1 %v3244_v35 }
0x10f9   : > { %v3213_v28 = vmul.f32 %v3201_v50, %v4508_v46 }
0x10fb   : > { %v5995_v48 = vsub.f32 %v5944_v57, %v3213_v28 }
0x10fd   : > { %v3229_v36 = vmul.f32 %v5995_v48, %v5995_v48 }
0x10ff   : > { %v3247_v33 = vsel %vm418_vm1, %v3229_v36, 0.0 }
0x1100   : > { %3248 = vadd.xlane.f32.xlu2 %v3247_v33 }
0x110e   : > { %v3204_v1 = vpop.xlane.xlu2 %3203 }
0x110f   : > { %v3214_v58 = vmul.f32 %v3204_v1, %v4508_v46 }
0x1111   : > { %v6002_v41 = vsub.f32 %v5949_v34, %v3214_v58 }
0x1113   : > { %v3230_v31 = vmul.f32 %v6002_v41, %v6002_v41 }
0x1115   : > { %v3250_v19 = vsel %vm418_vm1, %v3230_v31, 0.0 }
0x1116   : > { %3251 = vadd.xlane.f32.xlu0 %v3250_v19 }
0x111d   : > { %v3234_v45 = vpop.xlane.xlu1 %3233 }
0x111e   : > { %v3256_v6 = vmul.f32 %v3234_v45, %v4508_v46 }
0x1120   : > { %v3264_v62 = vadd.f32 1e-05, %v3256_v6 }
0x1122   : > { %4351 = vrsqrt.f32 %v3264_v62  ;;  %vm3278_vm7 = vweird.f32 %v3264_v62 }
0x1128   : > { %v4352_v47 = vpop.eup %4351 }
0x1129   : > { %v3273_v60 = vmul.f32 %v4352_v47, %v3264_v62  ;;  %vm3279_vm6 = vweird.f32 %v4352_v47 }
0x112a   : > { %vm3280_vm2 = vmor %vm3278_vm7, %vm3279_vm6 }
0x112b   : > { %v3274_v14 = vmul.f32 %v4352_v47, %v3273_v60 }
0x112d   : > { %v3275_v17 = vmul.f32 0.5, %v3274_v14 }
0x112e   : > { %v3207_v59 = vpop.xlane.xlu1 %3206 }
0x112f   : > { %v3276_v63 = vsub.f32 1.5, %v3275_v17  ;;  %v3215_v10 = vmul.f32 %v3207_v59, %v4508_v46 }
0x1131   : > { %v3277_v7 = vmul.f32 %v4352_v47, %v3276_v63  ;;  %v6025_v26 = vsub.f32 %v5961_v37, %v3215_v10 }
0x1133   : > { %v3281_v24 = vsel %vm3280_vm2, %v4352_v47, %v3277_v7  ;;  %v3231_v61 = vmul.f32 %v6025_v26, %v6025_v26 }
0x1134   : > { %v3352_v23 = vmul.f32 %v3281_v24, %v5955_v30 }
0x1135   : > { %v3253_v39 = vsel %vm418_vm1, %v3231_v61, 0.0 }
0x1136   : > { %v3361_v16 = vmul.f32 %v6022_v5, %v3352_v23  ;;  %3254 = vadd.xlane.f32.xlu1 %v3253_v39 }
0x1138   : > { %v3370_v9 = vadd.f32 %v6028_v8, %v3361_v16 }
0x113a   : > { %4012 = vmatmul.msk.f32.vlgmr.msrb.gmra.mxu2 %vm418_vm1, %v3370_v9 }
0x113d   : > { %v3237_v20 = vpop.xlane.xlu0 %3236 }
0x113e   : > { %v3257_v54 = vmul.f32 %v3237_v20, %v4508_v46 }
0x1140   : > { %v3265_v27 = vadd.f32 1e-05, %v3257_v54 }
0x1142   : > { %4353 = vrsqrt.f32 %v3265_v27  ;;  %vm3288_vm4 = vweird.f32 %v3265_v27 }
0x1148   : > { %v4354_v3 = vpop.eup %4353 }
0x1149   : > { %v3283_v55 = vmul.f32 %v4354_v3, %v3265_v27  ;;  %vm3289_vm3 = vweird.f32 %v4354_v3 }
0x114a   : > { %vm3290_vm5 = vmor %vm3288_vm4, %vm3289_vm3 }
0x114b   : > { %v3284_v30 = vmul.f32 %v4354_v3, %v3283_v55 }
0x114d   : > { %v3285_v22 = vmul.f32 0.5, %v3284_v30 }
0x114f   : > { %v3286_v25 = vsub.f32 1.5, %v3285_v22 }
0x1151   : > { %v3287_v2 = vmul.f32 %v4354_v3, %v3286_v25 }
0x1153   : > { %v3291_v12 = vsel %vm3290_vm5, %v4354_v3, %v3287_v2 }
0x1154   : > { %v3353_v43 = vmul.f32 %v3291_v12, %v5967_v18 }
0x1156   : > { %v3362_v38 = vmul.f32 %v6022_v5, %v3353_v43 }
0x1158   : > { %v3371_v32 = vadd.f32 %v6028_v8, %v3362_v38 }
0x115a   : > { %4013 = vmatmul.msk.f32.gmra.mxu2 %vm418_vm1, %v3371_v32 }
0x115b   : > { %v3240_v29 = vpop.xlane.xlu2 %3239 }
0x115c   : > { %v3258_v44 = vmul.f32 %v3240_v29, %v4508_v46 }
0x115e   : > { %v3266_v35 = vadd.f32 1e-05, %v3258_v44 }
0x1160   : > { %4355 = vrsqrt.f32 %v3266_v35  ;;  %vm3298_vm9 = vweird.f32 %v3266_v35 }
0x1163   : > { %v3243_v50 = vpop.xlane.xlu0 %3242 }
0x1164   : > { %v3259_v28 = vmul.f32 %v3243_v50, %v4508_v46 }
0x1166   : > { %v4356_v36 = vpop.eup %4355  ;;  %v3267_v33 = vadd.f32 1e-05, %v3259_v28 }
0x1167   : > { %v3293_v1 = vmul.f32 %v4356_v36, %v3266_v35  ;;  %vm3299_vm8 = vweird.f32 %v4356_v36 }
0x1168   : > { %4357 = vrsqrt.f32 %v3267_v33  ;;  %vm3300_vm10 = vmor %vm3298_vm9, %vm3299_vm8  ;;  %vm3308_vm12 = vweird.f32 %v3267_v33 }
0x1169   : > { %v3294_v58 = vmul.f32 %v4356_v36, %v3293_v1 }
0x116b   : > { %v3295_v18 = vmul.f32 0.5, %v3294_v58  ;;  %v3246_v15 = vpop.xlane.xlu1 %3245 }
0x116c   : > { %v3260_v31 = vmul.f32 %v3246_v15, %v4508_v46 }
0x116d   : > { %v3296_v4 = vsub.f32 1.5, %v3295_v18 }
0x116e   : > { %v4358_v19 = vpop.eup %4357  ;;  %v3268_v53 = vadd.f32 1e-05, %v3260_v31 }
0x116f   : > { %v3297_v40 = vmul.f32 %v4356_v36, %v3296_v4  ;;  %v3303_v45 = vmul.f32 %v4358_v19, %v3267_v33  ;;  %vm3309_vm11 = vweird.f32 %v4358_v19 }
0x1170   : > { %4359 = vrsqrt.f32 %v3268_v53  ;;  %vm3310_vm13 = vmor %vm3308_vm12, %vm3309_vm11  ;;  %vm3318_vm15 = vweird.f32 %v3268_v53 }
0x1171   : > { %v3301_v6 = vsel %vm3300_vm10, %v4356_v36, %v3297_v40  ;;  %v3304_v62 = vmul.f32 %v4358_v19, %v3303_v45  ;;  %v3946_v40 = vld [vmem:[%s6247_s7 + $0xf8] sm:$0xff]  ;;  %v3945_v45 = vld [vmem:[%s6247_s7 + $0xf0] sm:$0xff] }
0x1172   : > { %v3354_v47 = vmul.f32 %v3301_v6, %v5974_v11  ;;  %3684 = vmatpush.msra.mxu1 %v3946_v40 }
0x1173   : > { %v3305_v60 = vmul.f32 0.5, %v3304_v62  ;;  %v3249_v14 = vpop.xlane.xlu2 %3248 }
0x1174   : > { %v3261_v17 = vmul.f32 %v3249_v14, %v4508_v46  ;;  %v3363_v63 = vmul.f32 %v6022_v5, %v3354_v47  ;;  %3685 = vmatpush.msra.mxu1 %v3945_v45  ;;  %v3942_v14 = vld [vmem:[%s6247_s7 + $0xd8] sm:$0xff] }
0x1175   : > { %v3306_v59 = vsub.f32 1.5, %v3305_v60  ;;  %v3943_v60 = vld [vmem:[%s6247_s7 + $0xe0] sm:$0xff] }
0x1176   : > { %v4360_v10 = vpop.eup %4359  ;;  %v3269_v7 = vadd.f32 1e-05, %v3261_v17  ;;  %v3372_v24 = vadd.f32 %v6028_v8, %v3363_v63  ;;  %v3940_v17 = vld [vmem:[%s6247_s7 + $0xc8] sm:$0xff] }
0x1177   : > { %v3307_v23 = vmul.f32 %v4358_v19, %v3306_v59  ;;  %v3313_v61 = vmul.f32 %v4360_v10, %v3268_v53  ;;  %vm3319_vm14 = vweird.f32 %v4360_v10  ;;  %v3939_v59 = vld [vmem:[%s6247_s7 + $0xc0] sm:$0xff] }
0x1178   : > { %4361 = vrsqrt.f32 %v3269_v7  ;;  %4014 = vmatmul.msk.f32.gmra.mxu2 %vm418_vm1, %v3372_v24  ;;  %vm3320_vm0 = vmor %vm3318_vm15, %vm3319_vm14  ;;  %vm3328_vm7 = vweird.f32 %v3269_v7 }
0x1179   : > { %v3311_v11 = vsel %vm3310_vm13, %v4358_v19, %v3307_v23  ;;  %v3314_v16 = vmul.f32 %v4360_v10, %v3313_v61  ;;  %v3937_v23 = vld [vmem:[%s6247_s7 + $0xb0] sm:$0xff] }
0x117a   : > { %v3355_v39 = vmul.f32 %v3311_v11, %v5981_v56  ;;  %v6099_v11 = vperm.slane %v5913_v0, 6  ;;  %v3934_v0 = vld [vmem:[%s6247_s7 + $0x98] sm:$0xff] }
0x117b   : > { %v3315_v9 = vmul.f32 0.5, %v3314_v16  ;;  %v3936_v16 = vld [vmem:[%s6247_s7 + $0xa8] sm:$0xff] }
0x117c   : > { %v3364_v20 = vmul.f32 %v6022_v5, %v3355_v39 }
0x117d   : > { %v3316_v54 = vsub.f32 1.5, %v3315_v9 }
0x117e   : > { %v4362_v27 = vpop.eup %4361  ;;  %v3373_v3 = vadd.f32 %v6028_v8, %v3364_v20  ;;  %v3935_v20 = vld [vmem:[%s6247_s7 + $0xa0] sm:$0xff] }
0x117f   : > { %v3317_v55 = vmul.f32 %v4360_v10, %v3316_v54  ;;  %v3323_v30 = vmul.f32 %v4362_v27, %v3269_v7  ;;  %vm3329_vm6 = vweird.f32 %v4362_v27  ;;  %v3938_v7 = vld [vmem:[%s6247_s7 + $0xb8] sm:$0xff] }
0x1180   : > { %4015 = vmatmul.msk.f32.gmra.mxu2 %vm418_vm1, %v3373_v3  ;;  %vm3330_vm2 = vmor %vm3328_vm7, %vm3329_vm6 }
0x1181   : > { %v3321_v22 = vsel %vm3320_vm0, %v4360_v10, %v3317_v55  ;;  %v3324_v25 = vmul.f32 %v4362_v27, %v3323_v30 }
0x1182   : > { %v3356_v2 = vmul.f32 %v3321_v22, %v5988_v21  ;;  %v3933_v22 = vld [vmem:[%s6247_s7 + $0x90] sm:$0xff] }
0x1183   : > { %v3325_v12 = vmul.f32 0.5, %v3324_v25 }
0x1184   : > { %v3365_v56 = vmul.f32 %v6022_v5, %v3356_v2 }
0x1185   : > { %v3326_v43 = vsub.f32 1.5, %v3325_v12  ;;  %v3932_v12 = vld [vmem:[%s6247_s7 + $0x88] sm:$0xff] }
0x1186   : > { %v3374_v38 = vadd.f32 %v6028_v8, %v3365_v56 }
0x1187   : > { %v3327_v32 = vmul.f32 %v4362_v27, %v3326_v43 }
0x1188   : > { %4016 = vmatmul.msk.f32.gmra.mxu2 %vm418_vm1, %v3374_v38 }
0x1189   : > { %v3331_v29 = vsel %vm3330_vm2, %v4362_v27, %v3327_v32  ;;  %v3252_v44 = vpop.xlane.xlu0 %3251 }
0x118a   : > { %v3357_v35 = vmul.f32 %v3331_v29, %v5995_v48  ;;  %v3262_v50 = vmul.f32 %v3252_v44, %v4508_v46 }
0x118c   : > { %v3270_v28 = vadd.f32 1e-05, %v3262_v50  ;;  %v3366_v21 = vmul.f32 %v6022_v5, %v3357_v35 }
0x118e   : > { %4363 = vrsqrt.f32 %v3270_v28  ;;  %v3375_v36 = vadd.f32 %v6028_v8, %v3366_v21  ;;  %vm3338_vm4 = vweird.f32 %v3270_v28 }
0x1190   : > { %4017 = vmatmul.msk.f32.gmra.mxu2 %vm418_vm1, %v3375_v36 }
0x1194   : > { %v4364_v33 = vpop.eup %4363 }
0x1195   : > { %v3333_v1 = vmul.f32 %v4364_v33, %v3270_v28  ;;  %vm3339_vm3 = vweird.f32 %v4364_v33 }
0x1196   : > { %vm3340_vm5 = vmor %vm3338_vm4, %vm3339_vm3 }
0x1197   : > { %v3334_v58 = vmul.f32 %v4364_v33, %v3333_v1 }
0x1199   : > { %v3335_v18 = vmul.f32 0.5, %v3334_v58 }
0x119b   : > { %v3336_v15 = vsub.f32 1.5, %v3335_v18 }
0x119d   : > { %v3337_v31 = vmul.f32 %v4364_v33, %v3336_v15 }
0x119f   : > { %v3341_v48 = vsel %vm3340_vm5, %v4364_v33, %v3337_v31 }
0x11a0   : > { %v3358_v4 = vmul.f32 %v3341_v48, %v6002_v41  ;;  %v3944_v41 = vld [vmem:[%s6247_s7 + $0xe8] sm:$0xff] }
0x11a1   : > { %3686 = vmatpush.msra.mxu1 %v3944_v41 }
0x11a2   : > { %v3367_v19 = vmul.f32 %v6022_v5, %v3358_v4 }
0x11a3   : > { %3687 = vmatpush.msra.mxu1 %v3943_v60 }
0x11a4   : > { %v3376_v53 = vadd.f32 %v6028_v8, %v3367_v19 }
0x11a5   : > { %3688 = vmatpush.msra.mxu1 %v3942_v14 }
0x11a6   : > { %4018 = vmatmul.msk.f32.gmra.mxu2 %vm418_vm1, %v3376_v53 }
0x11a9   : > { %v3255_v6 = vpop.xlane.xlu1 %3254 }
0x11aa   : > { %v3263_v62 = vmul.f32 %v3255_v6, %v4508_v46  ;;  %v3941_v46 = vld [vmem:[%s6247_s7 + $0xd0] sm:$0xff] }
0x11ab   : > { %3689 = vmatpush.msra.mxu1 %v3941_v46 }
0x11ac   : > { %v3271_v47 = vadd.f32 1e-05, %v3263_v62 }
0x11ad   : > { %3690 = vmatpush.msra.mxu1 %v3940_v17 }
0x11ae   : > { %4365 = vrsqrt.f32 %v3271_v47  ;;  %vm3348_vm9 = vweird.f32 %v3271_v47 }
0x11af   : > { %3691 = vmatpush.msra.mxu1 %v3939_v59 }
0x11b1   : > { %3692 = vmatpush.msra.mxu1 %v3938_v7 }
0x11b3   : > { %3693 = vmatpush.msra.mxu1 %v3937_v23 }
0x11b4   : > { %v4366_v63 = vpop.eup %4365 }
0x11b5   : > { %v3343_v10 = vmul.f32 %v4366_v63, %v3271_v47  ;;  %vm3349_vm8 = vweird.f32 %v4366_v63  ;;  %3694 = vmatpush.msra.mxu1 %v3936_v16 }
0x11b6   : > { %vm3350_vm10 = vmor %vm3348_vm9, %vm3349_vm8 }
0x11b7   : > { %v3344_v24 = vmul.f32 %v4366_v63, %v3343_v10  ;;  %3695 = vmatpush.msra.mxu1 %v3935_v20 }
0x11b9   : > { %v3345_v61 = vmul.f32 0.5, %v3344_v24  ;;  %3696 = vmatpush.msra.mxu1 %v3934_v0 }
0x11bb   : > { %v3346_v39 = vsub.f32 1.5, %v3345_v61  ;;  %3697 = vmatpush.msra.mxu1 %v3933_v22 }
0x11bd   : > { %v3420_v9 = vpop.f32.mrf.mxu2  ;;  %v3347_v54 = vmul.f32 %v4366_v63, %v3346_v39  ;;  %3698 = vmatpush.msra.mxu1 %v3932_v12 }
0x11be   : > { %v3421_v27 = vadd.f32 %v3420_v9, %v6099_v11 }
0x11bf   : > { %v3351_v3 = vsel %vm3350_vm10, %v4366_v63, %v3347_v54 }
0x11c0   : > { %v3452_v55 = vmul.f32 0.70710677, %v3421_v27  ;;  %v3359_v30 = vmul.f32 %v3351_v3, %v6025_v26  ;;  %v3931_v26 = vld [vmem:[%s6247_s7 + $0x80] sm:$0xff]  ;;  %v3444_v47 = vmul.f32 0.5, %v3421_v27 }
0x11c1   : > { %3699 = vmatpush.msra.mxu1 %v3931_v26 }
0x11c2   : > { %v4020_v25 = vclamps-f32 %v3452_v55, 4.0  ;;  %v3368_v2 = vmul.f32 %v6022_v5, %v3359_v30 }
0x11c4   : > { %v3476_v56 = vmul.f32 %v4020_v25, %v4020_v25  ;;  %v3377_v43 = vadd.f32 %v6028_v8, %v3368_v2 }
0x11c6   : > { %v3484_v38 = vmul.f32 -2.7261424e-10, %v3476_v56  ;;  %v3580_v32 = vmul.f32 -1.45660715e-05, %v3476_v56  ;;  %4019 = vmatmul.msk.f32.gmra.mxu2 %vm418_vm1, %v3377_v43 }
0x11c8   : > { %v3492_v29 = vadd.f32 2.7706815e-08, %v3484_v38  ;;  %v3588_v44 = vadd.f32 -0.00021337405, %v3580_v32 }
0x11ca   : > { %v3500_v5 = vmul.f32 %v3492_v29, %v3476_v56  ;;  %v3596_v35 = vmul.f32 %v3588_v44, %v3476_v56 }
0x11cc   : > { %v3508_v50 = vadd.f32 -2.101024e-06, %v3500_v5  ;;  %v3604_v28 = vadd.f32 -0.001682827, %v3596_v35 }
0x11ce   : > { %v3516_v21 = vmul.f32 %v3508_v50, %v3476_v56  ;;  %v3612_v36 = vmul.f32 %v3604_v28, %v3476_v56 }
0x11d0   : > { %v3524_v33 = vadd.f32 -5.6925062e-05, %v3516_v21  ;;  %v3620_v1 = vadd.f32 -0.0073733293, %v3612_v36 }
0x11d2   : > { %v3532_v8 = vmul.f32 %v3524_v33, %v3476_v56  ;;  %v3628_v58 = vmul.f32 %v3620_v1, %v3476_v56 }
0x11d4   : > { %v3540_v18 = vadd.f32 -0.00073499064, %v3532_v8  ;;  %v3636_v15 = vadd.f32 -0.014264739, %v3628_v58 }
0x11d6   : > { %v3548_v31 = vmul.f32 %v3540_v18, %v3476_v56  ;;  %4367 = vrcp.f32 %v3636_v15 }
0x11d8   : > { %v3556_v48 = vadd.f32 -0.0029546, %v3548_v31 }
0x11da   : > { %v3564_v4 = vmul.f32 %v3556_v48, %v3476_v56 }
0x11dc   : > { %v3572_v19 = vadd.f32 -0.016096033, %v3564_v4  ;;  %v4368_v6 = vpop.eup %4367 }
0x11dd   : > { %v3423_v53 = vpop.f32.mrf.mxu2 }
0x11de   : > { %v3644_v40 = vmul.f32 %v4020_v25, %v3572_v19  ;;  %v3424_v45 = vadd.f32 %v3423_v53, %v6099_v11 }
0x11e0   : > { %v3660_v62 = vmul.f32 %v4368_v6, %v3644_v40  ;;  %v3453_v41 = vmul.f32 0.70710677, %v3424_v45  ;;  %v3445_v44 = vmul.f32 0.5, %v3424_v45 }
0x11e2   : > { %v3668_v60 = vadd.f32 1.0, %v3660_v62  ;;  %v4021_v14 = vclamps-f32 %v3453_v41, 4.0 }
0x11e4   : > { %v3676_v46 = vmul.f32 %v3668_v60, %v3444_v47  ;;  %v3477_v17 = vmul.f32 %v4021_v14, %v4021_v14 }
0x11e6   : > { %v3485_v63 = vmul.f32 -2.7261424e-10, %v3477_v17  ;;  %3700 = vmatmul.f32.vlgmr.msra.gmra.mxu1 %v3676_v46  ;;  %v3581_v59 = vmul.f32 -1.45660715e-05, %v3477_v17 }
0x11e8   : > { %v3493_v10 = vadd.f32 2.7706815e-08, %v3485_v63  ;;  %v3589_v7 = vadd.f32 -0.00021337405, %v3581_v59 }
0x11ea   : > { %v3501_v24 = vmul.f32 %v3493_v10, %v3477_v17  ;;  %v3597_v23 = vmul.f32 %v3589_v7, %v3477_v17 }
0x11ec   : > { %v3509_v61 = vadd.f32 -2.101024e-06, %v3501_v24  ;;  %v3605_v16 = vadd.f32 -0.001682827, %v3597_v23 }
0x11ee   : > { %v3517_v39 = vmul.f32 %v3509_v61, %v3477_v17  ;;  %v3613_v9 = vmul.f32 %v3605_v16, %v3477_v17 }
0x11f0   : > { %v3525_v20 = vadd.f32 -5.6925062e-05, %v3517_v39  ;;  %v3621_v54 = vadd.f32 -0.0073733293, %v3613_v9 }
0x11f2   : > { %v3533_v0 = vmul.f32 %v3525_v20, %v3477_v17  ;;  %v3629_v3 = vmul.f32 %v3621_v54, %v3477_v17 }
0x11f4   : > { %v3541_v27 = vadd.f32 -0.00073499064, %v3533_v0  ;;  %v3637_v55 = vadd.f32 -0.014264739, %v3629_v3 }
0x11f6   : > { %v3549_v30 = vmul.f32 %v3541_v27, %v3477_v17  ;;  %4369 = vrcp.f32 %v3637_v55 }
0x11f8   : > { %v3557_v22 = vadd.f32 -0.0029546, %v3549_v30 }
0x11fa   : > { %v3565_v25 = vmul.f32 %v3557_v22, %v3477_v17 }
0x11fb   : > { %v3426_v12 = vpop.f32.mrf.mxu2 }
0x11fc   : > { %v3573_v2 = vadd.f32 -0.016096033, %v3565_v25  ;;  %v6126_v56 = vadd.f32 %v3426_v12, %v6099_v11  ;;  %v4370_v26 = vpop.eup %4369 }
0x11fe   : > { %v3645_v43 = vmul.f32 %v4021_v14, %v3573_v2  ;;  %v3454_v38 = vmul.f32 0.70710677, %v6126_v56 }
0x1200   : > { %v3661_v32 = vmul.f32 %v4370_v26, %v3645_v43  ;;  %v6129_v29 = vclamps-f32 %v3454_v38, 4.0 }
0x1202   : > { %v3669_v5 = vadd.f32 1.0, %v3661_v32  ;;  %v3478_v35 = vmul.f32 %v6129_v29, %v6129_v29 }
0x1203   : > { %v3429_v50 = vpop.f32.mrf.mxu2 }
0x1204   : > { %v3677_v28 = vmul.f32 %v3669_v5, %v3445_v44  ;;  %v3486_v21 = vmul.f32 -2.7261424e-10, %v3478_v35  ;;  %v6134_v36 = vadd.f32 %v3429_v50, %v6099_v11  ;;  %v3582_v33 = vmul.f32 -1.45660715e-05, %v3478_v35 }
0x1206   : > { %3703 = vmatmul.f32.gmra.mxu1 %v3677_v28  ;;  %v3494_v1 = vadd.f32 2.7706815e-08, %v3486_v21  ;;  %v3455_v8 = vmul.f32 0.70710677, %v6134_v36  ;;  %v3590_v58 = vadd.f32 -0.00021337405, %v3582_v33 }
0x1208   : > { %v3502_v18 = vmul.f32 %v3494_v1, %v3478_v35  ;;  %v6137_v15 = vclamps-f32 %v3455_v8, 4.0  ;;  %v3598_v31 = vmul.f32 %v3590_v58, %v3478_v35 }
0x120a   : > { %v3510_v48 = vadd.f32 -2.101024e-06, %v3502_v18  ;;  %v6141_v4 = vmul.f32 %v6137_v15, %v6137_v15  ;;  %v3606_v53 = vadd.f32 -0.001682827, %v3598_v31 }
0x120b   : > { %v3432_v19 = vpop.f32.mrf.mxu2 }
0x120c   : > { %v3518_v40 = vmul.f32 %v3510_v48, %v3478_v35  ;;  %v3487_v45 = vmul.f32 -2.7261424e-10, %v6141_v4  ;;  %v6145_v6 = vadd.f32 %v3432_v19, %v6099_v11  ;;  %v3583_v62 = vmul.f32 -1.45660715e-05, %v6141_v4 }
0x120d   : > { %v3614_v41 = vmul.f32 %v3606_v53, %v3478_v35 }
0x120e   : > { %v3526_v47 = vadd.f32 -5.6925062e-05, %v3518_v40  ;;  %v3495_v60 = vadd.f32 2.7706815e-08, %v3487_v45  ;;  %v3456_v14 = vmul.f32 0.70710677, %v6145_v6 }
0x120f   : > { %v3622_v46 = vadd.f32 -0.0073733293, %v3614_v41  ;;  %v3591_v17 = vadd.f32 -0.00021337405, %v3583_v62 }
0x1210   : > { %v3534_v63 = vmul.f32 %v3526_v47, %v3478_v35  ;;  %v3503_v59 = vmul.f32 %v3495_v60, %v6141_v4  ;;  %v6150_v10 = vclamps-f32 %v3456_v14, 4.0 }
0x1211   : > { %v3630_v7 = vmul.f32 %v3622_v46, %v3478_v35  ;;  %v3599_v24 = vmul.f32 %v3591_v17, %v6141_v4 }
0x1212   : > { %v3542_v23 = vadd.f32 -0.00073499064, %v3534_v63  ;;  %v3511_v61 = vadd.f32 -2.101024e-06, %v3503_v59  ;;  %v6155_v16 = vmul.f32 %v6150_v10, %v6150_v10 }
0x1213   : > { %v3435_v39 = vpop.f32.mrf.mxu2  ;;  %v3638_v9 = vadd.f32 -0.014264739, %v3630_v7  ;;  %v3607_v20 = vadd.f32 -0.001682827, %v3599_v24 }
0x1214   : > { %v3550_v54 = vmul.f32 %v3542_v23, %v3478_v35  ;;  %v3519_v0 = vmul.f32 %v3511_v61, %v6141_v4  ;;  %v6159_v3 = vadd.f32 %v3435_v39, %v6099_v11  ;;  %v3488_v27 = vmul.f32 -2.7261424e-10, %v6155_v16 }
0x1215   : > { %v3615_v55 = vmul.f32 %v3607_v20, %v6141_v4  ;;  %v3584_v30 = vmul.f32 -1.45660715e-05, %v6155_v16  ;;  %4371 = vrcp.f32 %v3638_v9 }
0x1216   : > { %v3558_v22 = vadd.f32 -0.0029546, %v3550_v54  ;;  %v3527_v25 = vadd.f32 -5.6925062e-05, %v3519_v0  ;;  %v3496_v2 = vadd.f32 2.7706815e-08, %v3488_v27 }
0x1217   : > { %v3457_v12 = vmul.f32 0.70710677, %v6159_v3  ;;  %v3623_v43 = vadd.f32 -0.0073733293, %v3615_v55  ;;  %v3592_v32 = vadd.f32 -0.00021337405, %v3584_v30 }
0x1218   : > { %v3566_v26 = vmul.f32 %v3558_v22, %v3478_v35  ;;  %v3535_v38 = vmul.f32 %v3527_v25, %v6141_v4  ;;  %v3504_v44 = vmul.f32 %v3496_v2, %v6155_v16 }
0x1219   : > { %v6167_v5 = vclamps-f32 %v3457_v12, 4.0  ;;  %v3631_v50 = vmul.f32 %v3623_v43, %v6141_v4  ;;  %v3600_v33 = vmul.f32 %v3592_v32, %v6155_v16  ;;  %v3447_v43 = vmul.f32 0.5, %v6134_v36 }
0x121a   : > { %v3574_v28 = vadd.f32 -0.016096033, %v3566_v26  ;;  %v3543_v21 = vadd.f32 -0.00073499064, %v3535_v38  ;;  %v3512_v1 = vadd.f32 -2.101024e-06, %v3504_v44 }
0x121b   : > { %v6173_v8 = vmul.f32 %v6167_v5, %v6167_v5  ;;  %v3639_v58 = vadd.f32 -0.014264739, %v3631_v50  ;;  %v3608_v31 = vadd.f32 -0.001682827, %v3600_v33  ;;  %v4372_v48 = vpop.eup %4371 }
0x121c   : > { %v3646_v35 = vmul.f32 %v6129_v29, %v3574_v28  ;;  %v3551_v18 = vmul.f32 %v3543_v21, %v6141_v4  ;;  %v3520_v19 = vmul.f32 %v3512_v1, %v6155_v16  ;;  %v3446_v29 = vmul.f32 0.5, %v6126_v56 }
0x121d   : > { %v3489_v53 = vmul.f32 -2.7261424e-10, %v6173_v8  ;;  %v3585_v40 = vmul.f32 -1.45660715e-05, %v6173_v8  ;;  %v3616_v41 = vmul.f32 %v3608_v31, %v6155_v16  ;;  %4373 = vrcp.f32 %v3639_v58 }
0x121e   : > { %v3559_v45 = vadd.f32 -0.0029546, %v3551_v18  ;;  %v3662_v62 = vmul.f32 %v4372_v48, %v3646_v35  ;;  %v3528_v47 = vadd.f32 -5.6925062e-05, %v3520_v19 }
0x121f   : > { %v3497_v60 = vadd.f32 2.7706815e-08, %v3489_v53  ;;  %v3593_v14 = vadd.f32 -0.00021337405, %v3585_v40  ;;  %v3624_v63 = vadd.f32 -0.0073733293, %v3616_v41 }
0x1220   : > { %v3567_v46 = vmul.f32 %v3559_v45, %v6141_v4  ;;  %v3670_v17 = vadd.f32 1.0, %v3662_v62  ;;  %v3536_v59 = vmul.f32 %v3528_v47, %v6155_v16  ;;  %v3448_v53 = vmul.f32 0.5, %v6145_v6 }
0x1221   : > { %v3505_v7 = vmul.f32 %v3497_v60, %v6173_v8  ;;  %v3601_v24 = vmul.f32 %v3593_v14, %v6173_v8  ;;  %v3632_v39 = vmul.f32 %v3624_v63, %v6155_v16  ;;  %v3449_v6 = vmul.f32 0.5, %v6159_v3 }
0x1222   : > { %v3575_v23 = vadd.f32 -0.016096033, %v3567_v46  ;;  %v3678_v61 = vmul.f32 %v3670_v17, %v3446_v29  ;;  %v3544_v9 = vadd.f32 -0.00073499064, %v3536_v59 }
0x1223   : > { %v3513_v20 = vadd.f32 -2.101024e-06, %v3505_v7  ;;  %v3609_v54 = vadd.f32 -0.001682827, %v3601_v24  ;;  %v3640_v56 = vadd.f32 -0.014264739, %v3632_v39  ;;  %v4374_v4 = vpop.eup %4373 }
0x1224   : > { %v3647_v0 = vmul.f32 %v6137_v15, %v3575_v23  ;;  %3706 = vmatmul.f32.gmra.mxu1 %v3678_v61  ;;  %v3552_v27 = vmul.f32 %v3544_v9, %v6155_v16 }
0x1225   : > { %v3521_v55 = vmul.f32 %v3513_v20, %v6173_v8  ;;  %v3617_v30 = vmul.f32 %v3609_v54, %v6173_v8  ;;  %4375 = vrcp.f32 %v3640_v56 }
0x1226   : > { %v3663_v22 = vmul.f32 %v4374_v4, %v3647_v0  ;;  %v3560_v25 = vadd.f32 -0.0029546, %v3552_v27 }
0x1227   : > { %v3529_v2 = vadd.f32 -5.6925062e-05, %v3521_v55  ;;  %v3625_v12 = vadd.f32 -0.0073733293, %v3617_v30 }
0x1228   : > { %v3671_v26 = vadd.f32 1.0, %v3663_v22  ;;  %v3568_v38 = vmul.f32 %v3560_v25, %v6155_v16 }
0x1229   : > { %v3537_v15 = vmul.f32 %v3529_v2, %v6173_v8  ;;  %v3438_v32 = vpop.f32.mrf.mxu2  ;;  %v3633_v44 = vmul.f32 %v3625_v12, %v6173_v8 }
0x122a   : > { %v3439_v50 = vadd.f32 %v3438_v32, %v6099_v11  ;;  %v3679_v28 = vmul.f32 %v3671_v26, %v3447_v43  ;;  %v3576_v21 = vadd.f32 -0.016096033, %v3568_v38 }
0x122b   : > { %v3545_v33 = vadd.f32 -0.00073499064, %v3537_v15  ;;  %v3641_v58 = vadd.f32 -0.014264739, %v3633_v44  ;;  %v4376_v18 = vpop.eup %4375 }
0x122c   : > { %v3458_v1 = vmul.f32 0.70710677, %v3439_v50  ;;  %3709 = vmatmul.f32.gmra.mxu1 %v3679_v28  ;;  %v3648_v35 = vmul.f32 %v6150_v10, %v3576_v21  ;;  %v3450_v26 = vmul.f32 0.5, %v3439_v50 }
0x122d   : > { %v3553_v36 = vmul.f32 %v3545_v33, %v6173_v8  ;;  %4377 = vrcp.f32 %v3641_v58 }
0x122e   : > { %v4026_v31 = vclamps-f32 %v3458_v1, 4.0  ;;  %v3664_v48 = vmul.f32 %v4376_v18, %v3648_v35 }
0x122f   : > { %v3561_v16 = vadd.f32 -0.0029546, %v3553_v36 }
0x1230   : > { %v3482_v19 = vmul.f32 %v4026_v31, %v4026_v31  ;;  %v3672_v45 = vadd.f32 1.0, %v3664_v48 }
0x1231   : > { %v3569_v40 = vmul.f32 %v3561_v16, %v6173_v8 }
0x1232   : > { %v3490_v62 = vmul.f32 -2.7261424e-10, %v3482_v19  ;;  %v3586_v41 = vmul.f32 -1.45660715e-05, %v3482_v19  ;;  %v3680_v60 = vmul.f32 %v3672_v45, %v3448_v53 }
0x1233   : > { %v3577_v47 = vadd.f32 -0.016096033, %v3569_v40  ;;  %v4378_v46 = vpop.eup %4377  ;;  %v4386_v40 = vld [vmem:[%s6248_s8 + $0x8] sm:$0xff] }
0x1234   : > { %v3498_v14 = vadd.f32 2.7706815e-08, %v3490_v62  ;;  %v3594_v29 = vadd.f32 -0.00021337405, %v3586_v41  ;;  %3712 = vmatmul.f32.gmra.mxu1 %v3680_v60  ;;  %v3733_v45 = vperm.slane %v4386_v40, 7 }
0x1235   : > { %v3649_v10 = vmul.f32 %v6167_v5, %v3577_v47 }
0x1236   : > { %v3506_v17 = vmul.f32 %v3498_v14, %v3482_v19  ;;  %v3602_v63 = vmul.f32 %v3594_v29, %v3482_v19 }
0x1237   : > { %v3665_v59 = vmul.f32 %v4378_v46, %v3649_v10 }
0x1238   : > { %v3514_v7 = vadd.f32 -2.101024e-06, %v3506_v17  ;;  %v3610_v24 = vadd.f32 -0.001682827, %v3602_v63 }
0x1239   : > { %v3673_v23 = vadd.f32 1.0, %v3665_v59 }
0x123a   : > { %v3522_v8 = vmul.f32 %v3514_v7, %v3482_v19  ;;  %v3618_v61 = vmul.f32 %v3610_v24, %v3482_v19 }
0x123b   : > { %v3681_v39 = vmul.f32 %v3673_v23, %v3449_v6 }
0x123c   : > { %v3530_v9 = vadd.f32 -5.6925062e-05, %v3522_v8  ;;  %v3626_v20 = vadd.f32 -0.0073733293, %v3618_v61 }
0x123d   : > { %3715 = vmatmul.f32.gmra.mxu1 %v3681_v39 }
0x123e   : > { %v3538_v54 = vmul.f32 %v3530_v9, %v3482_v19  ;;  %v3634_v0 = vmul.f32 %v3626_v20, %v3482_v19 }
0x1240   : > { %v3546_v56 = vadd.f32 -0.00073499064, %v3538_v54  ;;  %v3642_v5 = vadd.f32 -0.014264739, %v3634_v0 }
0x1242   : > { %v3554_v4 = vmul.f32 %v3546_v56, %v3482_v19  ;;  %4379 = vrcp.f32 %v3642_v5 }
0x1244   : > { %v3562_v27 = vadd.f32 -0.0029546, %v3554_v4 }
0x1246   : > { %v3570_v55 = vmul.f32 %v3562_v27, %v3482_v19 }
0x1248   : > { %v3578_v30 = vadd.f32 -0.016096033, %v3570_v55  ;;  %v4380_v2 = vpop.eup %4379 }
0x1249   : > { %v3441_v22 = vpop.f32.mrf.mxu2 }
0x124a   : > { %v3650_v25 = vmul.f32 %v4026_v31, %v3578_v30  ;;  %v3442_v3 = vadd.f32 %v3441_v22, %v6099_v11 }
0x124c   : > { %v3459_v12 = vmul.f32 0.70710677, %v3442_v3  ;;  %v3666_v43 = vmul.f32 %v4380_v2, %v3650_v25 }
0x124e   : > { %v4027_v38 = vclamps-f32 %v3459_v12, 4.0  ;;  %v3674_v15 = vadd.f32 1.0, %v3666_v43 }
0x1250   : > { %v3483_v32 = vmul.f32 %v4027_v38, %v4027_v38  ;;  %v3682_v44 = vmul.f32 %v3674_v15, %v3450_v26 }
0x1252   : > { %v3491_v28 = vmul.f32 -2.7261424e-10, %v3483_v32  ;;  %3718 = vmatmul.f32.gmra.mxu1 %v3682_v44  ;;  %v3587_v21 = vmul.f32 -1.45660715e-05, %v3483_v32 }
0x1254   : > { %v3499_v33 = vadd.f32 2.7706815e-08, %v3491_v28  ;;  %v3595_v1 = vadd.f32 -0.00021337405, %v3587_v21 }
0x1256   : > { %v3507_v58 = vmul.f32 %v3499_v33, %v3483_v32  ;;  %v3603_v35 = vmul.f32 %v3595_v1, %v3483_v32 }
0x1258   : > { %v3515_v36 = vadd.f32 -2.101024e-06, %v3507_v58  ;;  %v3611_v18 = vadd.f32 -0.001682827, %v3603_v35 }
0x125a   : > { %v3523_v31 = vmul.f32 %v3515_v36, %v3483_v32  ;;  %v3619_v11 = vmul.f32 %v3611_v18, %v3483_v32 }
0x125c   : > { %v3531_v16 = vadd.f32 -5.6925062e-05, %v3523_v31  ;;  %v3627_v48 = vadd.f32 -0.0073733293, %v3619_v11 }
0x125e   : > { %v3539_v19 = vmul.f32 %v3531_v16, %v3483_v32  ;;  %v3635_v50 = vmul.f32 %v3627_v48, %v3483_v32 }
0x1260   : > { %v3547_v53 = vadd.f32 -0.00073499064, %v3539_v19  ;;  %v3643_v62 = vadd.f32 -0.014264739, %v3635_v50 }
0x1262   : > { %v3555_v41 = vmul.f32 %v3547_v53, %v3483_v32  ;;  %4381 = vrcp.f32 %v3643_v62 }
0x1263   : > { %v3701_v47 = vpop.f32.mrf.mxu1 }
0x1264   : > { %v3725_v60 = vadd.f32 %v3701_v47, %v5917_v13  ;;  %v3563_v14 = vadd.f32 -0.0029546, %v3555_v41  ;;  %v3451_v13 = vmul.f32 0.5, %v3442_v3 }
0x1266   : > { %v3734_v29 = vadd.f32 %v3733_v45, %v3725_v60  ;;  %v3571_v10 = vmul.f32 %v3563_v14, %v3483_v32 }
0x1268   : > { %3742 = vst.msk [vmem:[%s6212_s24] sm:$0xff] %vm418_vm1, %v3734_v29  ;;  %v3579_v46 = vadd.f32 -0.016096033, %v3571_v10  ;;  %v4382_v63 = vpop.eup %4381 }
0x126a   : > { %v3651_v17 = vmul.f32 %v4027_v38, %v3579_v46 }
0x126c   : > { %v3667_v59 = vmul.f32 %v4382_v63, %v3651_v17 }
0x126e   : > { %v3675_v7 = vadd.f32 1.0, %v3667_v59 }
0x1270   : > { %v3683_v24 = vmul.f32 %v3675_v7, %v3451_v13 }
0x1272   : > { %3721 = vmatmul.f32.gmra.mxu1 %v3683_v24 }
0x1283   : > { %v3704_v6 = vpop.f32.mrf.mxu1 }
0x1284   : > { %v3726_v23 = vadd.f32 %v3704_v6, %v5924_v49 }
0x1286   : > { %v3735_v8 = vadd.f32 %v3733_v45, %v3726_v23 }
0x1288   : > { %3743 = vst.msk [vmem:[%s6212_s24 + $0x8] sm:$0xff] %vm418_vm1, %v3735_v8 }
0x12a1   : > { %v3707_v61 = vpop.f32.mrf.mxu1 }
0x12a2   : > { %v3727_v39 = vadd.f32 %v3707_v61, %v5929_v51 }
0x12a4   : > { %v3736_v9 = vadd.f32 %v3733_v45, %v3727_v39 }
0x12a6   : > { %3744 = vst.msk [vmem:[%s6212_s24 + $0x10] sm:$0xff] %vm418_vm1, %v3736_v9 }
0x12a9   : > { %v3710_v20 = vpop.f32.mrf.mxu1 }
0x12aa   : > { %v3728_v54 = vadd.f32 %v3710_v20, %v5934_v52 }
0x12ac   : > { %v3737_v0 = vadd.f32 %v3733_v45, %v3728_v54 }
0x12ae   : > { %3745 = vst.msk [vmem:[%s6212_s24 + $0x18] sm:$0xff] %vm418_vm1, %v3737_v0 }
0x12b1   : > { %v3713_v56 = vpop.f32.mrf.mxu1 }
0x12b2   : > { %v3729_v49 = vadd.f32 %v3713_v56, %v5939_v42 }
0x12b4   : > { %v3738_v5 = vadd.f32 %v3733_v45, %v3729_v49 }
0x12b6   : > { %3746 = vst.msk [vmem:[%s6212_s24 + $0x20] sm:$0xff] %vm418_vm1, %v3738_v5 }
0x12ba   : > { %v3716_v4 = vpop.f32.mrf.mxu1 }
0x12bb   : > { %v3730_v51 = vadd.f32 %v3716_v4, %v5944_v57 }
0x12bd   : > { %v3739_v27 = vadd.f32 %v3733_v45, %v3730_v51 }
0x12bf   : > { %3747 = vst.msk [vmem:[%s6212_s24 + $0x28] sm:$0xff] %vm418_vm1, %v3739_v27 }
0x12cf   : > { %v3719_v55 = vpop.f32.mrf.mxu1 }
0x12d0   : > { %v3731_v30 = vadd.f32 %v3719_v55, %v5949_v34 }
0x12d2   : > { %v3740_v52 = vadd.f32 %v3733_v45, %v3731_v30 }
0x12d4   : > { %3748 = vst.msk [vmem:[%s6212_s24 + $0x30] sm:$0xff] %vm418_vm1, %v3740_v52 }
0x12ef   : > { %v3722_v22 = vpop.f32.mrf.mxu1 }
0x12f0   : > { %v3732_v25 = vadd.f32 %v3722_v22, %v5961_v37 }
0x12f2   : > { %v3741_v3 = vadd.f32 %v3733_v45, %v3732_v25 }
0x12f4   : > { %3749 = vst.msk [vmem:[%s6212_s24 + $0x38] sm:$0xff] %vm418_vm1, %v3741_v3 }
0x12f5 PF: > { %s19_s30 = sadd.s32 1, %s4393_s30  }
0x12f6   : > { %p16_p4 = scmp.ge.s32.totalorder %s19_s30, 4  }
0x12f8   :  { %18 = sbr.rel (!%p16_p4) target bundleno = 1 (0x1), region = 92 }

</bundles_post_ra>
